<compile_context>
chip_gen: v7x
topology: tpu7x:2x2x1
jax: 0.10.0
libtpu: 0.0.40
codegen_flags: <defaults>
</compile_context>

<pallas_src>
import functools

import jax
import jax.numpy as jnp
import numpy as np
from jax import lax
from jax.experimental import pallas as pl
from jax.experimental.pallas import tpu as pltpu

_BN_EPS = 1e-5
_VMEM_LIMIT = 40 * 1024 * 1024  # <= ~48 MiB: safe on v7x (64 MiB), fine on v5e/v6e


# ------------------------------- tiling utils ------------------------------ #
def _largest_divisor(extent, unit, upper):
    """Largest d <= upper with d % unit == 0 and extent % d == 0, else extent."""
    upper = max(unit, (upper // unit) * unit)
    for d in range(upper, unit - 1, -unit):
        if extent % d == 0:
            return d
    return extent


def _choose_tiles(m, n):
    """Pick (tm, tn) dividing (m, n).  Aim for >= 2 blocks per call so v7x's
    two TensorCores both get work, without making blocks tiny."""
    tm, tn = m, n
    if m >= 256:
        tm = _largest_divisor(m, 8, max(256, m // 2))     # split M
    elif n >= 256:
        tn = _largest_divisor(n, 128, n // 2)             # split N
    return tm, tn


# ------------------------------ Pallas kernels ------------------------------ #
def _gemm_bn_lrelu_kernel(a_ref, w_ref, shift_ref, o_ref, *, slope):
    """One (tm,K)@(K,tn) MXU GEMM fused with folded-BN shift + LeakyReLU.
    Full K is resident: no K grid axis, no accumulator scratch."""
    y = jnp.dot(a_ref[...], w_ref[...], preferred_element_type=jnp.float32)
    y = y + shift_ref[...]
    y = jnp.where(y >= 0.0, y, slope * y)       # f32 epilogue (v5e: no bf16 VPU)
    o_ref[...] = y.astype(o_ref.dtype)


def _tail_kernel(p4_ref, w4_ref, sh4_ref, w5_ref, sh5_ref, w6_ref, b6_ref,
                 o_ref, *, slope, k5, hw4):
    """Layers 4..6 fused in one grid step:
       h4  = lrelu(p4 @ W4s + sh4)                 (nb*ho4*wo4, 512) f32
       h5  = lrelu(sum_r tap_r(h4) @ W5s[r] + sh5) (nb, 512) f32
       out = h5 @ W6 + b6                          (nb, z)   f32
    Layer 5 has pad=0 and a single output position, so its im2col is just a
    per-tap row selection from h4 (static slices, no strided access)."""
    nb = o_ref.shape[0]
    ho4, wo4 = hw4
    c5out = w5_ref.shape[2]

    h4 = jnp.dot(p4_ref[...], w4_ref[...], preferred_element_type=jnp.float32)
    h4 = h4 + sh4_ref[...]
    h4 = jnp.where(h4 >= 0.0, h4, slope * h4)

    acc5 = jnp.zeros((nb, c5out), jnp.float32)
    for ki in range(k5):
        for kj in range(k5):
            off = ki * wo4 + kj
            tap = jnp.concatenate(
                [h4[b * ho4 * wo4 + off: b * ho4 * wo4 + off + 1, :]
                 for b in range(nb)], axis=0)                  # (nb, 512)
            acc5 = acc5 + jnp.dot(tap.astype(w5_ref.dtype),
                                  w5_ref[ki * k5 + kj],
                                  preferred_element_type=jnp.float32)
    h5 = acc5 + sh5_ref[...]
    h5 = jnp.where(h5 >= 0.0, h5, slope * h5)                  # keep f32

    # Layer 6 (1x1 conv + bias) on the resident f32 hidden (no bf16 round trip).
    out = jnp.dot(h5, w6_ref[...], preferred_element_type=jnp.float32)
    o_ref[...] = (out + b6_ref[...]).astype(o_ref.dtype)


# ----------------------------- kernel wrappers ------------------------------ #
def conv_bn_lrelu_pallas(patches, w_mat, shift, slope):
    """lrelu(patches @ w_mat + shift).  patches (M,K) bf16, w_mat (K,N) bf16
    (BN scale pre-folded), shift (1,N) f32.  Returns (M,N) bf16."""
    m, k = patches.shape
    k2, n = w_mat.shape
    assert k == k2 and shift.shape == (1, n)
    tm, tn = _choose_tiles(m, n)
    assert m % tm == 0 and n % tn == 0
    kernel = functools.partial(_gemm_bn_lrelu_kernel, slope=float(slope))
    return pl.pallas_call(
        kernel,
        out_shape=jax.ShapeDtypeStruct((m, n), jnp.bfloat16),
        grid_spec=pltpu.PrefetchScalarGridSpec(
            num_scalar_prefetch=0,
            grid=(m // tm, n // tn),
            in_specs=[
                pl.BlockSpec((tm, k), lambda i, j: (i, 0)),
                pl.BlockSpec((k, tn), lambda i, j: (0, j)),
                pl.BlockSpec((1, tn), lambda i, j: (0, j)),
            ],
            out_specs=pl.BlockSpec((tm, tn), lambda i, j: (i, j)),
        ),
        compiler_params=pltpu.CompilerParams(
            dimension_semantics=("parallel", "parallel"),
            vmem_limit_bytes=_VMEM_LIMIT,
        ),
    )(patches, w_mat, shift)


def tail_pallas(patches4, w4, shift4, w5_stack, shift5, w6, b6, slope, nb, k5, hw4):
    """Layers 4+5+6 in a single pallas_call (all weights resident in VMEM)."""
    m4, k4 = patches4.shape
    taps, c5in, c5 = w5_stack.shape
    z = w6.shape[1]
    assert m4 == nb * hw4[0] * hw4[1] and taps == k5 * k5
    kernel = functools.partial(_tail_kernel, slope=float(slope), k5=k5, hw4=hw4)
    return pl.pallas_call(
        kernel,
        out_shape=jax.ShapeDtypeStruct((nb, z), jnp.float32),
        grid_spec=pltpu.PrefetchScalarGridSpec(
            num_scalar_prefetch=0,
            grid=(1,),
            in_specs=[
                pl.BlockSpec((m4, k4), lambda i: (0, 0)),
                pl.BlockSpec((k4, c5in), lambda i: (0, 0)),
                pl.BlockSpec((1, c5in), lambda i: (0, 0)),
                pl.BlockSpec((taps, c5in, c5), lambda i: (0, 0, 0)),
                pl.BlockSpec((1, c5), lambda i: (0, 0)),
                pl.BlockSpec((c5, z), lambda i: (0, 0)),
                pl.BlockSpec((1, z), lambda i: (0, 0)),
            ],
            out_specs=pl.BlockSpec((nb, z), lambda i: (0, 0)),
        ),
        compiler_params=pltpu.CompilerParams(
            dimension_semantics=("arbitrary",),
            vmem_limit_bytes=_VMEM_LIMIT,
        ),
    )(patches4, w4, shift4, w5_stack, shift5, w6, b6)


# --------------------------------- JAX glue --------------------------------- #
def _extract_patches(x_nhwc, k, stride, pad):
    """im2col as one XLA op.  Patch features are channel-major:
    K index = c*k*k + ki*k + kj  (matches the weight matrices below)."""
    if k == 1 and stride == 1 and pad == 0:
        n, h, w, c = x_nhwc.shape
        return x_nhwc.reshape(n * h * w, c), h, w
    p = lax.conv_general_dilated_patches(
        x_nhwc, (k, k), (stride, stride), ((pad, pad), (pad, pad)),
        dimension_numbers=("NHWC", "HWIO", "NHWC"))
    n, ho, wo, kk = p.shape
    return p.reshape(n * ho * wo, kk), ho, wo


def prepare_params(layers):
    """One-time host-side prep (numpy): BN fold (eval), OIHW -> GEMM matrices
    (channel-major K), bf16 casts.  Nothing here becomes a runtime XLA op."""
    def fold(layer):
        w = np.asarray(layer["w"], np.float32)
        b = np.asarray(layer["b"], np.float32)
        if layer["bn"]:
            scale = np.asarray(layer["gamma"], np.float32) / np.sqrt(
                np.asarray(layer["var"], np.float32) + _BN_EPS)
            shift = (b - np.asarray(layer["mean"], np.float32)) * scale + \
                np.asarray(layer["beta"], np.float32)
        else:
            scale = np.ones_like(b)
            shift = b
        return w, scale, shift

    body = []
    for layer in layers[:3]:
        w, scale, shift = fold(layer)
        cout = w.shape[0]
        w_mat = w.reshape(cout, -1).T * scale[None, :]          # (K, Cout)
        body.append(dict(
            w=jnp.asarray(w_mat, jnp.bfloat16),
            shift=jnp.asarray(shift.reshape(1, cout), jnp.float32),
            k=layer["k"], stride=layer["stride"], pad=layer["pad"]))

    l4, l5, l6 = layers[3], layers[4], layers[5]
    w4, s4, sh4 = fold(l4)
    c4 = w4.shape[0]
    w4_mat = w4.reshape(c4, -1).T * s4[None, :]                 # (2304, 512)
    w5, s5, sh5 = fold(l5)
    c5, k5 = w5.shape[0], l5["k"]
    # tap-stacked layer-5 weights: w5_stack[ki*k5+kj] = W5[:,:,ki,kj].T * scale5
    w5_stack = np.transpose(w5, (2, 3, 1, 0)).reshape(k5 * k5, w5.shape[1], c5)
    w5_stack = w5_stack * s5[None, None, :]
    w6, _, b6 = fold(l6)
    z = w6.shape[0]
    w6_mat = w6.reshape(z, -1).T                                # (512, z) f32
    tail = dict(
        w4=jnp.asarray(w4_mat, jnp.bfloat16),
        shift4=jnp.asarray(sh4.reshape(1, c4), jnp.float32),
        w5=jnp.asarray(w5_stack, jnp.bfloat16),
        shift5=jnp.asarray(sh5.reshape(1, c5), jnp.float32),
        w6=jnp.asarray(w6_mat, jnp.float32),
        b6=jnp.asarray(b6.reshape(1, z), jnp.float32),
        k4=l4["k"], s4=l4["stride"], p4=l4["pad"],
        k5=k5, s5=l5["stride"], p5=l5["pad"])
    return dict(body=body, tail=tail)


def encoder_forward(x_nchw, prep, slope):
    x = jnp.transpose(x_nchw, (0, 2, 3, 1)).astype(jnp.bfloat16)   # NHWC bf16
    nb = x.shape[0]

    # Layers 1-3: one fused conv+BN+LeakyReLU GEMM pallas_call each.
    for lp in prep["body"]:
        patches, ho, wo = _extract_patches(x, lp["k"], lp["stride"], lp["pad"])
        y = conv_bn_lrelu_pallas(patches, lp["w"], lp["shift"], slope)
        x = y.reshape(nb, ho, wo, y.shape[-1])

    # Layers 4-6 fused in a single pallas_call.
    t = prep["tail"]
    patches4, ho4, wo4 = _extract_patches(x, t["k4"], t["s4"], t["p4"])
    # Layer 5 (pad=0) must collapse the layer-4 output to one spatial position.
    assert t["p5"] == 0
    assert (ho4 - t["k5"]) // t["s5"] + 1 == 1 and (wo4 - t["k5"]) // t["s5"] + 1 == 1
    z = tail_pallas(patches4, t["w4"], t["shift4"], t["w5"], t["shift5"],
                    t["w6"], t["b6"], slope, nb, t["k5"], (ho4, wo4))
    return z.reshape(nb, z.shape[1], 1, 1)                     # NCHW (nb,z,1,1)


# ----------------------------- pure-JAX reference --------------------------- #
def reference_forward(x_nchw, layers, slope):
    x = x_nchw
    for layer in layers:
        s, p = layer["stride"], layer["pad"]
        y = lax.conv_general_dilated(
            x, layer["w"], (s, s), [(p, p), (p, p)],
            dimension_numbers=("NCHW", "OIHW", "NCHW"))
        y = y + layer["b"][None, :, None, None]
        if layer["bn"]:
            g = layer["gamma"][None, :, None, None]
            bt = layer["beta"][None, :, None, None]
            mu = layer["mean"][None, :, None, None]
            vv = layer["var"][None, :, None, None]
            y = g * (y - mu) / jnp.sqrt(vv + _BN_EPS) + bt
            y = jnp.where(y >= 0.0, y, slope * y)
        x = y
    return x


# ------------------------------- parameter init ----------------------------- #
def init_params(key, z_dim):
    # (C_in, C_out, k, stride, pad, has_bn) -- matches the nn.Sequential.
    cfg = [(3, 64, 3, 2, 1, True),
           (64, 128, 3, 2, 1, True),
           (128, 256, 3, 2, 1, True),
           (256, 512, 3, 2, 1, True),
           (512, 512, 3, 2, 0, True),
           (512, z_dim, 1, 1, 0, False)]
    layers = []
    for (cin, cout, k, s, p, bn) in cfg:
        key, k1, k2, k3, k4, k5, k6 = jax.random.split(key, 7)
        w = jax.random.normal(k1, (cout, cin, k, k), jnp.float32) \
            * (1.0 / np.sqrt(cin * k * k))
        b = 0.01 * jax.random.normal(k2, (cout,), jnp.float32)
        if bn:
            gamma = 1.0 + 0.1 * jax.random.normal(k3, (cout,), jnp.float32)
            beta = 0.1 * jax.random.normal(k4, (cout,), jnp.float32)
            mean = 0.1 * jax.random.normal(k5, (cout,), jnp.float32)
            var = 1.0 + 0.1 * jnp.abs(jax.random.normal(k6, (cout,), jnp.float32))
        else:
            gamma = beta = mean = var = None
        layers.append(dict(w=w, b=b, gamma=gamma, beta=beta, mean=mean,
                           var=var, k=k, stride=s, pad=p, bn=bn))
    return layers


# ------------------------------------ main ---------------------------------- #
if __name__ == "__main__":
    z_dim = 32
    slope = 0.2          # params['slope']
    batch = 2            # params['batch_size'] (dropout unused in forward)

    key = jax.random.PRNGKey(0)
    kx, kp = jax.random.split(key)
    # 48x48 input -> spatial 48/24/12/6/3 -> 1 after the pad-0 conv -> 1x1 out.
    x = jax.random.normal(kx, (batch, 3, 48, 48), jnp.float32)
    layers = init_params(kp, z_dim)
    prep = prepare_params(layers)          # one-time host-side weight prep

    fwd = jax.jit(functools.partial(encoder_forward, prep=prep, slope=slope))
    out = jax.block_until_ready(fwd(x))
    assert out.shape == (batch, z_dim, 1, 1), out.shape

    ref = jax.block_until_ready(reference_forward(x, layers, slope))
    # bf16 GEMM operands (f32 accumulation / epilogue) -> slightly looser tol.
    if not np.allclose(np.asarray(out), np.asarray(ref), rtol=5e-2, atol=5e-2):
        raise AssertionError("Pallas encoder output does not match JAX reference")

    print("KERNEL_OK")
</pallas_src>

<mosaic_0001>
module attributes {stable_mosaic.version = 11 : i64} {
  func.func @_gemm_bn_lrelu_kernel(%arg0: i32, %arg1: i32, %arg2: memref<576x27xbf16, #tpu.memory_space<vmem>>, %arg3: memref<27x64xbf16, #tpu.memory_space<vmem>>, %arg4: memref<1x64xf32, #tpu.memory_space<vmem>>, %arg5: memref<576x64xbf16, #tpu.memory_space<vmem>>) attributes {dimension_semantics = [#tpu.dimension_semantics<parallel>, #tpu.dimension_semantics<parallel>], iteration_bounds = array<i64: 2, 1>, scalar_prefetch = 0 : i64, scratch_operands = 0 : i64, tpu.core_type = #tpu.core_type<tc>, window_params = [{transform_indices = @transform_0, window_bounds = array<i64: 576, 27>}, {transform_indices = @transform_1, window_bounds = array<i64: 27, 64>}, {transform_indices = @transform_2, window_bounds = array<i64: 1, 64>}, {transform_indices = @transform_3, window_bounds = array<i64: 576, 64>}]} {
    %c0 = arith.constant 0 : index
    %c0_0 = arith.constant 0 : index
    %0 = vector.load %arg2[%c0, %c0_0] : memref<576x27xbf16, #tpu.memory_space<vmem>>, vector<576x27xbf16>
    %c0_1 = arith.constant 0 : index
    %c0_2 = arith.constant 0 : index
    %1 = vector.load %arg3[%c0_1, %c0_2] : memref<27x64xbf16, #tpu.memory_space<vmem>>, vector<27x64xbf16>
    %cst = arith.constant dense<0.000000e+00> : vector<576x64xf32>
    %2 = tpu.matmul %0, %1, %cst {dimension_numbers = #tpu.dot_dimension_numbers<[1], [0], [0], [1], [0, 0, 1, 1], [], []>} : vector<576x27xbf16>, vector<27x64xbf16>, vector<576x64xf32> -> vector<576x64xf32>
    %c0_3 = arith.constant 0 : index
    %c0_4 = arith.constant 0 : index
    %3 = vector.load %arg4[%c0_3, %c0_4] : memref<1x64xf32, #tpu.memory_space<vmem>>, vector<1x64xf32>
    %4 = vector.broadcast %3 : vector<1x64xf32> to vector<576x64xf32>
    %5 = arith.addf %2, %4 : vector<576x64xf32>
    %cst_5 = arith.constant 0.000000e+00 : f32
    %6 = vector.broadcast %cst_5 : f32 to vector<576x64xf32>
    %7 = arith.cmpf oge, %5, %6 : vector<576x64xf32>
    %cst_6 = arith.constant 2.000000e-01 : f32
    %8 = vector.broadcast %cst_6 : f32 to vector<576x64xf32>
    %9 = arith.mulf %8, %5 : vector<576x64xf32>
    %10 = arith.select %7, %5, %9 : vector<576x64xi1>, vector<576x64xf32>
    %11 = arith.truncf %10 : vector<576x64xf32> to vector<576x64xbf16>
    %c0_7 = arith.constant 0 : index
    %c0_8 = arith.constant 0 : index
    %12 = vector.load %arg5[%c0_7, %c0_8] : memref<576x64xbf16, #tpu.memory_space<vmem>>, vector<576x64xbf16>
    tpu.vector_store %arg5[%c0_7, %c0_8], %11 {strides = array<i32>} : memref<576x64xbf16, #tpu.memory_space<vmem>>, vector<576x64xbf16>,
    return
  }
  func.func @transform_0(%arg0: i32, %arg1: i32) -> (i32, i32) {
    %c0_i32 = arith.constant 0 : i32
    %c0_i32_0 = arith.constant 0 : i32
    return %arg0, %c0_i32 : i32, i32
  }
  func.func @transform_1(%arg0: i32, %arg1: i32) -> (i32, i32) {
    %c0_i32 = arith.constant 0 : i32
    %c0_i32_0 = arith.constant 0 : i32
    return %c0_i32, %arg1 : i32, i32
  }
  func.func @transform_2(%arg0: i32, %arg1: i32) -> (i32, i32) {
    %c0_i32 = arith.constant 0 : i32
    %c0_i32_0 = arith.constant 0 : i32
    return %c0_i32, %arg1 : i32, i32
  }
  func.func @transform_3(%arg0: i32, %arg1: i32) -> (i32, i32) {
    %c0_i32 = arith.constant 0 : i32
    return %arg0, %arg1 : i32, i32
  }
}

module attributes {stable_mosaic.version = 11 : i64} {
  func.func @_gemm_bn_lrelu_kernel(%arg0: i32, %arg1: i32, %arg2: memref<144x576xbf16, #tpu.memory_space<vmem>>, %arg3: memref<576x128xbf16, #tpu.memory_space<vmem>>, %arg4: memref<1x128xf32, #tpu.memory_space<vmem>>, %arg5: memref<144x128xbf16, #tpu.memory_space<vmem>>) attributes {dimension_semantics = [#tpu.dimension_semantics<parallel>, #tpu.dimension_semantics<parallel>], iteration_bounds = array<i64: 2, 1>, scalar_prefetch = 0 : i64, scratch_operands = 0 : i64, tpu.core_type = #tpu.core_type<tc>, window_params = [{transform_indices = @transform_0, window_bounds = array<i64: 144, 576>}, {transform_indices = @transform_1, window_bounds = array<i64: 576, 128>}, {transform_indices = @transform_2, window_bounds = array<i64: 1, 128>}, {transform_indices = @transform_3, window_bounds = array<i64: 144, 128>}]} {
    %c0 = arith.constant 0 : index
    %c0_0 = arith.constant 0 : index
    %0 = vector.load %arg2[%c0, %c0_0] : memref<144x576xbf16, #tpu.memory_space<vmem>>, vector<144x576xbf16>
    %c0_1 = arith.constant 0 : index
    %c0_2 = arith.constant 0 : index
    %1 = vector.load %arg3[%c0_1, %c0_2] : memref<576x128xbf16, #tpu.memory_space<vmem>>, vector<576x128xbf16>
    %cst = arith.constant dense<0.000000e+00> : vector<144x128xf32>
    %2 = tpu.matmul %0, %1, %cst {dimension_numbers = #tpu.dot_dimension_numbers<[1], [0], [0], [1], [0, 0, 1, 1], [], []>} : vector<144x576xbf16>, vector<576x128xbf16>, vector<144x128xf32> -> vector<144x128xf32>
    %c0_3 = arith.constant 0 : index
    %c0_4 = arith.constant 0 : index
    %3 = vector.load %arg4[%c0_3, %c0_4] : memref<1x128xf32, #tpu.memory_space<vmem>>, vector<1x128xf32>
    %4 = vector.broadcast %3 : vector<1x128xf32> to vector<144x128xf32>
    %5 = arith.addf %2, %4 : vector<144x128xf32>
    %cst_5 = arith.constant 0.000000e+00 : f32
    %6 = vector.broadcast %cst_5 : f32 to vector<144x128xf32>
    %7 = arith.cmpf oge, %5, %6 : vector<144x128xf32>
    %cst_6 = arith.constant 2.000000e-01 : f32
    %8 = vector.broadcast %cst_6 : f32 to vector<144x128xf32>
    %9 = arith.mulf %8, %5 : vector<144x128xf32>
    %10 = arith.select %7, %5, %9 : vector<144x128xi1>, vector<144x128xf32>
    %11 = arith.truncf %10 : vector<144x128xf32> to vector<144x128xbf16>
    %c0_7 = arith.constant 0 : index
    %c0_8 = arith.constant 0 : index
    %12 = vector.load %arg5[%c0_7, %c0_8] : memref<144x128xbf16, #tpu.memory_space<vmem>>, vector<144x128xbf16>
    tpu.vector_store %arg5[%c0_7, %c0_8], %11 {strides = array<i32>} : memref<144x128xbf16, #tpu.memory_space<vmem>>, vector<144x128xbf16>,
    return
  }
  func.func @transform_0(%arg0: i32, %arg1: i32) -> (i32, i32) {
    %c0_i32 = arith.constant 0 : i32
    %c0_i32_0 = arith.constant 0 : i32
    return %arg0, %c0_i32 : i32, i32
  }
  func.func @transform_1(%arg0: i32, %arg1: i32) -> (i32, i32) {
    %c0_i32 = arith.constant 0 : i32
    %c0_i32_0 = arith.constant 0 : i32
    return %c0_i32, %arg1 : i32, i32
  }
  func.func @transform_2(%arg0: i32, %arg1: i32) -> (i32, i32) {
    %c0_i32 = arith.constant 0 : i32
    %c0_i32_0 = arith.constant 0 : i32
    return %c0_i32, %arg1 : i32, i32
  }
  func.func @transform_3(%arg0: i32, %arg1: i32) -> (i32, i32) {
    %c0_i32 = arith.constant 0 : i32
    return %arg0, %arg1 : i32, i32
  }
}

module attributes {stable_mosaic.version = 11 : i64} {
  func.func @_gemm_bn_lrelu_kernel(%arg0: i32, %arg1: i32, %arg2: memref<72x1152xbf16, #tpu.memory_space<vmem>>, %arg3: memref<1152x128xbf16, #tpu.memory_space<vmem>>, %arg4: memref<1x128xf32, #tpu.memory_space<vmem>>, %arg5: memref<72x128xbf16, #tpu.memory_space<vmem>>) attributes {dimension_semantics = [#tpu.dimension_semantics<parallel>, #tpu.dimension_semantics<parallel>], iteration_bounds = array<i64: 1, 2>, scalar_prefetch = 0 : i64, scratch_operands = 0 : i64, tpu.core_type = #tpu.core_type<tc>, window_params = [{transform_indices = @transform_0, window_bounds = array<i64: 72, 1152>}, {transform_indices = @transform_1, window_bounds = array<i64: 1152, 128>}, {transform_indices = @transform_2, window_bounds = array<i64: 1, 128>}, {transform_indices = @transform_3, window_bounds = array<i64: 72, 128>}]} {
    %c0 = arith.constant 0 : index
    %c0_0 = arith.constant 0 : index
    %0 = vector.load %arg2[%c0, %c0_0] : memref<72x1152xbf16, #tpu.memory_space<vmem>>, vector<72x1152xbf16>
    %c0_1 = arith.constant 0 : index
    %c0_2 = arith.constant 0 : index
    %1 = vector.load %arg3[%c0_1, %c0_2] : memref<1152x128xbf16, #tpu.memory_space<vmem>>, vector<1152x128xbf16>
    %cst = arith.constant dense<0.000000e+00> : vector<72x128xf32>
    %2 = tpu.matmul %0, %1, %cst {dimension_numbers = #tpu.dot_dimension_numbers<[1], [0], [0], [1], [0, 0, 1, 1], [], []>} : vector<72x1152xbf16>, vector<1152x128xbf16>, vector<72x128xf32> -> vector<72x128xf32>
    %c0_3 = arith.constant 0 : index
    %c0_4 = arith.constant 0 : index
    %3 = vector.load %arg4[%c0_3, %c0_4] : memref<1x128xf32, #tpu.memory_space<vmem>>, vector<1x128xf32>
    %4 = vector.broadcast %3 : vector<1x128xf32> to vector<72x128xf32>
    %5 = arith.addf %2, %4 : vector<72x128xf32>
    %cst_5 = arith.constant 0.000000e+00 : f32
    %6 = vector.broadcast %cst_5 : f32 to vector<72x128xf32>
    %7 = arith.cmpf oge, %5, %6 : vector<72x128xf32>
    %cst_6 = arith.constant 2.000000e-01 : f32
    %8 = vector.broadcast %cst_6 : f32 to vector<72x128xf32>
    %9 = arith.mulf %8, %5 : vector<72x128xf32>
    %10 = arith.select %7, %5, %9 : vector<72x128xi1>, vector<72x128xf32>
    %11 = arith.truncf %10 : vector<72x128xf32> to vector<72x128xbf16>
    %c0_7 = arith.constant 0 : index
    %c0_8 = arith.constant 0 : index
    %12 = vector.load %arg5[%c0_7, %c0_8] : memref<72x128xbf16, #tpu.memory_space<vmem>>, vector<72x128xbf16>
    tpu.vector_store %arg5[%c0_7, %c0_8], %11 {strides = array<i32>} : memref<72x128xbf16, #tpu.memory_space<vmem>>, vector<72x128xbf16>,
    return
  }
  func.func @transform_0(%arg0: i32, %arg1: i32) -> (i32, i32) {
    %c0_i32 = arith.constant 0 : i32
    %c0_i32_0 = arith.constant 0 : i32
    return %arg0, %c0_i32 : i32, i32
  }
  func.func @transform_1(%arg0: i32, %arg1: i32) -> (i32, i32) {
    %c0_i32 = arith.constant 0 : i32
    %c0_i32_0 = arith.constant 0 : i32
    return %c0_i32, %arg1 : i32, i32
  }
  func.func @transform_2(%arg0: i32, %arg1: i32) -> (i32, i32) {
    %c0_i32 = arith.constant 0 : i32
    %c0_i32_0 = arith.constant 0 : i32
    return %c0_i32, %arg1 : i32, i32
  }
  func.func @transform_3(%arg0: i32, %arg1: i32) -> (i32, i32) {
    %c0_i32 = arith.constant 0 : i32
    return %arg0, %arg1 : i32, i32
  }
}

module attributes {stable_mosaic.version = 11 : i64} {
  func.func @_tail_kernel(%arg0: i32, %arg1: memref<18x2304xbf16, #tpu.memory_space<vmem>>, %arg2: memref<2304x512xbf16, #tpu.memory_space<vmem>>, %arg3: memref<1x512xf32, #tpu.memory_space<vmem>>, %arg4: memref<9x512x512xbf16, #tpu.memory_space<vmem>>, %arg5: memref<1x512xf32, #tpu.memory_space<vmem>>, %arg6: memref<512x32xf32, #tpu.memory_space<vmem>>, %arg7: memref<1x32xf32, #tpu.memory_space<vmem>>, %arg8: memref<2x32xf32, #tpu.memory_space<vmem>>) attributes {dimension_semantics = [#tpu.dimension_semantics<arbitrary>], iteration_bounds = array<i64: 1>, scalar_prefetch = 0 : i64, scratch_operands = 0 : i64, tpu.core_type = #tpu.core_type<tc>, window_params = [{pipeline_mode = #tpu.pipeline_mode<synchronous>, transform_indices = @transform_0, window_bounds = array<i64: 18, 2304>}, {pipeline_mode = #tpu.pipeline_mode<synchronous>, transform_indices = @transform_1, window_bounds = array<i64: 2304, 512>}, {pipeline_mode = #tpu.pipeline_mode<synchronous>, transform_indices = @transform_2, window_bounds = array<i64: 1, 512>}, {pipeline_mode = #tpu.pipeline_mode<synchronous>, transform_indices = @transform_3, window_bounds = array<i64: 9, 512, 512>}, {pipeline_mode = #tpu.pipeline_mode<synchronous>, transform_indices = @transform_4, window_bounds = array<i64: 1, 512>}, {pipeline_mode = #tpu.pipeline_mode<synchronous>, transform_indices = @transform_5, window_bounds = array<i64: 512, 32>}, {pipeline_mode = #tpu.pipeline_mode<synchronous>, transform_indices = @transform_6, window_bounds = array<i64: 1, 32>}, {pipeline_mode = #tpu.pipeline_mode<synchronous>, transform_indices = @transform_7, window_bounds = array<i64: 2, 32>}]} {
    %c0 = arith.constant 0 : index
    %c0_0 = arith.constant 0 : index
    %0 = vector.load %arg1[%c0, %c0_0] : memref<18x2304xbf16, #tpu.memory_space<vmem>>, vector<18x2304xbf16>
    %c0_1 = arith.constant 0 : index
    %c0_2 = arith.constant 0 : index
    %1 = vector.load %arg2[%c0_1, %c0_2] : memref<2304x512xbf16, #tpu.memory_space<vmem>>, vector<2304x512xbf16>
    %cst = arith.constant dense<0.000000e+00> : vector<18x512xf32>
    %2 = tpu.matmul %0, %1, %cst {dimension_numbers = #tpu.dot_dimension_numbers<[1], [0], [0], [1], [0, 0, 1, 1], [], []>} : vector<18x2304xbf16>, vector<2304x512xbf16>, vector<18x512xf32> -> vector<18x512xf32>
    %c0_3 = arith.constant 0 : index
    %c0_4 = arith.constant 0 : index
    %3 = vector.load %arg3[%c0_3, %c0_4] : memref<1x512xf32, #tpu.memory_space<vmem>>, vector<1x512xf32>
    %4 = vector.broadcast %3 : vector<1x512xf32> to vector<18x512xf32>
    %5 = arith.addf %2, %4 : vector<18x512xf32>
    %cst_5 = arith.constant 0.000000e+00 : f32
    %6 = vector.broadcast %cst_5 : f32 to vector<18x512xf32>
    %7 = arith.cmpf oge, %5, %6 : vector<18x512xf32>
    %cst_6 = arith.constant 2.000000e-01 : f32
    %8 = vector.broadcast %cst_6 : f32 to vector<18x512xf32>
    %9 = arith.mulf %8, %5 : vector<18x512xf32>
    %10 = arith.select %7, %5, %9 : vector<18x512xi1>, vector<18x512xf32>
    %cst_7 = arith.constant 0.000000e+00 : f32
    %11 = vector.broadcast %cst_7 : f32 to vector<2x512xf32>
    %12 = vector.extract_strided_slice %10 {offsets = [0, 0], sizes = [1, 512], strides = [1, 1]} : vector<18x512xf32> to vector<1x512xf32>
    %13 = vector.extract_strided_slice %10 {offsets = [9, 0], sizes = [1, 512], strides = [1, 1]} : vector<18x512xf32> to vector<1x512xf32>
    %14 = tpu.concatenate %12, %13 in 0 : vector<1x512xf32>, vector<1x512xf32> -> vector<2x512xf32>
    %15 = arith.truncf %14 : vector<2x512xf32> to vector<2x512xbf16>
    %c0_8 = arith.constant 0 : index
    %c0_9 = arith.constant 0 : index
    %c0_10 = arith.constant 0 : index
    %16 = vector.load %arg4[%c0_8, %c0_9, %c0_10] : memref<9x512x512xbf16, #tpu.memory_space<vmem>>, vector<1x512x512xbf16>
    %17 = vector.shape_cast %16 : vector<1x512x512xbf16> to vector<512x512xbf16>
    %cst_11 = arith.constant dense<0.000000e+00> : vector<2x512xf32>
    %18 = tpu.matmul %15, %17, %cst_11 {dimension_numbers = #tpu.dot_dimension_numbers<[1], [0], [0], [1], [0, 0, 1, 1], [], []>} : vector<2x512xbf16>, vector<512x512xbf16>, vector<2x512xf32> -> vector<2x512xf32>
    %19 = arith.addf %11, %18 : vector<2x512xf32>
    %20 = vector.extract_strided_slice %10 {offsets = [1, 0], sizes = [1, 512], strides = [1, 1]} : vector<18x512xf32> to vector<1x512xf32>
    %21 = vector.extract_strided_slice %10 {offsets = [10, 0], sizes = [1, 512], strides = [1, 1]} : vector<18x512xf32> to vector<1x512xf32>
    %22 = tpu.concatenate %20, %21 in 0 : vector<1x512xf32>, vector<1x512xf32> -> vector<2x512xf32>
    %23 = arith.truncf %22 : vector<2x512xf32> to vector<2x512xbf16>
    %c1 = arith.constant 1 : index
    %c0_12 = arith.constant 0 : index
    %c0_13 = arith.constant 0 : index
    %24 = vector.load %arg4[%c1, %c0_12, %c0_13] : memref<9x512x512xbf16, #tpu.memory_space<vmem>>, vector<1x512x512xbf16>
    %25 = vector.shape_cast %24 : vector<1x512x512xbf16> to vector<512x512xbf16>
    %cst_14 = arith.constant dense<0.000000e+00> : vector<2x512xf32>
    %26 = tpu.matmul %23, %25, %cst_14 {dimension_numbers = #tpu.dot_dimension_numbers<[1], [0], [0], [1], [0, 0, 1, 1], [], []>} : vector<2x512xbf16>, vector<512x512xbf16>, vector<2x512xf32> -> vector<2x512xf32>
    %27 = arith.addf %19, %26 : vector<2x512xf32>
    %28 = vector.extract_strided_slice %10 {offsets = [2, 0], sizes = [1, 512], strides = [1, 1]} : vector<18x512xf32> to vector<1x512xf32>
    %29 = vector.extract_strided_slice %10 {offsets = [11, 0], sizes = [1, 512], strides = [1, 1]} : vector<18x512xf32> to vector<1x512xf32>
    %30 = tpu.concatenate %28, %29 in 0 : vector<1x512xf32>, vector<1x512xf32> -> vector<2x512xf32>
    %31 = arith.truncf %30 : vector<2x512xf32> to vector<2x512xbf16>
    %c2 = arith.constant 2 : index
    %c0_15 = arith.constant 0 : index
    %c0_16 = arith.constant 0 : index
    %32 = vector.load %arg4[%c2, %c0_15, %c0_16] : memref<9x512x512xbf16, #tpu.memory_space<vmem>>, vector<1x512x512xbf16>
    %33 = vector.shape_cast %32 : vector<1x512x512xbf16> to vector<512x512xbf16>
    %cst_17 = arith.constant dense<0.000000e+00> : vector<2x512xf32>
    %34 = tpu.matmul %31, %33, %cst_17 {dimension_numbers = #tpu.dot_dimension_numbers<[1], [0], [0], [1], [0, 0, 1, 1], [], []>} : vector<2x512xbf16>, vector<512x512xbf16>, vector<2x512xf32> -> vector<2x512xf32>
    %35 = arith.addf %27, %34 : vector<2x512xf32>
    %36 = vector.extract_strided_slice %10 {offsets = [3, 0], sizes = [1, 512], strides = [1, 1]} : vector<18x512xf32> to vector<1x512xf32>
    %37 = vector.extract_strided_slice %10 {offsets = [12, 0], sizes = [1, 512], strides = [1, 1]} : vector<18x512xf32> to vector<1x512xf32>
    %38 = tpu.concatenate %36, %37 in 0 : vector<1x512xf32>, vector<1x512xf32> -> vector<2x512xf32>
    %39 = arith.truncf %38 : vector<2x512xf32> to vector<2x512xbf16>
    %c3 = arith.constant 3 : index
    %c0_18 = arith.constant 0 : index
    %c0_19 = arith.constant 0 : index
    %40 = vector.load %arg4[%c3, %c0_18, %c0_19] : memref<9x512x512xbf16, #tpu.memory_space<vmem>>, vector<1x512x512xbf16>
    %41 = vector.shape_cast %40 : vector<1x512x512xbf16> to vector<512x512xbf16>
    %cst_20 = arith.constant dense<0.000000e+00> : vector<2x512xf32>
    %42 = tpu.matmul %39, %41, %cst_20 {dimension_numbers = #tpu.dot_dimension_numbers<[1], [0], [0], [1], [0, 0, 1, 1], [], []>} : vector<2x512xbf16>, vector<512x512xbf16>, vector<2x512xf32> -> vector<2x512xf32>
    %43 = arith.addf %35, %42 : vector<2x512xf32>
    %44 = vector.extract_strided_slice %10 {offsets = [4, 0], sizes = [1, 512], strides = [1, 1]} : vector<18x512xf32> to vector<1x512xf32>
    %45 = vector.extract_strided_slice %10 {offsets = [13, 0], sizes = [1, 512], strides = [1, 1]} : vector<18x512xf32> to vector<1x512xf32>
    %46 = tpu.concatenate %44, %45 in 0 : vector<1x512xf32>, vector<1x512xf32> -> vector<2x512xf32>
    %47 = arith.truncf %46 : vector<2x512xf32> to vector<2x512xbf16>
    %c4 = arith.constant 4 : index
    %c0_21 = arith.constant 0 : index
    %c0_22 = arith.constant 0 : index
    %48 = vector.load %arg4[%c4, %c0_21, %c0_22] : memref<9x512x512xbf16, #tpu.memory_space<vmem>>, vector<1x512x512xbf16>
    %49 = vector.shape_cast %48 : vector<1x512x512xbf16> to vector<512x512xbf16>
    %cst_23 = arith.constant dense<0.000000e+00> : vector<2x512xf32>
    %50 = tpu.matmul %47, %49, %cst_23 {dimension_numbers = #tpu.dot_dimension_numbers<[1], [0], [0], [1], [0, 0, 1, 1], [], []>} : vector<2x512xbf16>, vector<512x512xbf16>, vector<2x512xf32> -> vector<2x512xf32>
    %51 = arith.addf %43, %50 : vector<2x512xf32>
    %52 = vector.extract_strided_slice %10 {offsets = [5, 0], sizes = [1, 512], strides = [1, 1]} : vector<18x512xf32> to vector<1x512xf32>
    %53 = vector.extract_strided_slice %10 {offsets = [14, 0], sizes = [1, 512], strides = [1, 1]} : vector<18x512xf32> to vector<1x512xf32>
    %54 = tpu.concatenate %52, %53 in 0 : vector<1x512xf32>, vector<1x512xf32> -> vector<2x512xf32>
    %55 = arith.truncf %54 : vector<2x512xf32> to vector<2x512xbf16>
    %c5 = arith.constant 5 : index
    %c0_24 = arith.constant 0 : index
    %c0_25 = arith.constant 0 : index
    %56 = vector.load %arg4[%c5, %c0_24, %c0_25] : memref<9x512x512xbf16, #tpu.memory_space<vmem>>, vector<1x512x512xbf16>
    %57 = vector.shape_cast %56 : vector<1x512x512xbf16> to vector<512x512xbf16>
    %cst_26 = arith.constant dense<0.000000e+00> : vector<2x512xf32>
    %58 = tpu.matmul %55, %57, %cst_26 {dimension_numbers = #tpu.dot_dimension_numbers<[1], [0], [0], [1], [0, 0, 1, 1], [], []>} : vector<2x512xbf16>, vector<512x512xbf16>, vector<2x512xf32> -> vector<2x512xf32>
    %59 = arith.addf %51, %58 : vector<2x512xf32>
    %60 = vector.extract_strided_slice %10 {offsets = [6, 0], sizes = [1, 512], strides = [1, 1]} : vector<18x512xf32> to vector<1x512xf32>
    %61 = vector.extract_strided_slice %10 {offsets = [15, 0], sizes = [1, 512], strides = [1, 1]} : vector<18x512xf32> to vector<1x512xf32>
    %62 = tpu.concatenate %60, %61 in 0 : vector<1x512xf32>, vector<1x512xf32> -> vector<2x512xf32>
    %63 = arith.truncf %62 : vector<2x512xf32> to vector<2x512xbf16>
    %c6 = arith.constant 6 : index
    %c0_27 = arith.constant 0 : index
    %c0_28 = arith.constant 0 : index
    %64 = vector.load %arg4[%c6, %c0_27, %c0_28] : memref<9x512x512xbf16, #tpu.memory_space<vmem>>, vector<1x512x512xbf16>
    %65 = vector.shape_cast %64 : vector<1x512x512xbf16> to vector<512x512xbf16>
    %cst_29 = arith.constant dense<0.000000e+00> : vector<2x512xf32>
    %66 = tpu.matmul %63, %65, %cst_29 {dimension_numbers = #tpu.dot_dimension_numbers<[1], [0], [0], [1], [0, 0, 1, 1], [], []>} : vector<2x512xbf16>, vector<512x512xbf16>, vector<2x512xf32> -> vector<2x512xf32>
    %67 = arith.addf %59, %66 : vector<2x512xf32>
    %68 = vector.extract_strided_slice %10 {offsets = [7, 0], sizes = [1, 512], strides = [1, 1]} : vector<18x512xf32> to vector<1x512xf32>
    %69 = vector.extract_strided_slice %10 {offsets = [16, 0], sizes = [1, 512], strides = [1, 1]} : vector<18x512xf32> to vector<1x512xf32>
    %70 = tpu.concatenate %68, %69 in 0 : vector<1x512xf32>, vector<1x512xf32> -> vector<2x512xf32>
    %71 = arith.truncf %70 : vector<2x512xf32> to vector<2x512xbf16>
    %c7 = arith.constant 7 : index
    %c0_30 = arith.constant 0 : index
    %c0_31 = arith.constant 0 : index
    %72 = vector.load %arg4[%c7, %c0_30, %c0_31] : memref<9x512x512xbf16, #tpu.memory_space<vmem>>, vector<1x512x512xbf16>
    %73 = vector.shape_cast %72 : vector<1x512x512xbf16> to vector<512x512xbf16>
    %cst_32 = arith.constant dense<0.000000e+00> : vector<2x512xf32>
    %74 = tpu.matmul %71, %73, %cst_32 {dimension_numbers = #tpu.dot_dimension_numbers<[1], [0], [0], [1], [0, 0, 1, 1], [], []>} : vector<2x512xbf16>, vector<512x512xbf16>, vector<2x512xf32> -> vector<2x512xf32>
    %75 = arith.addf %67, %74 : vector<2x512xf32>
    %76 = vector.extract_strided_slice %10 {offsets = [8, 0], sizes = [1, 512], strides = [1, 1]} : vector<18x512xf32> to vector<1x512xf32>
    %77 = vector.extract_strided_slice %10 {offsets = [17, 0], sizes = [1, 512], strides = [1, 1]} : vector<18x512xf32> to vector<1x512xf32>
    %78 = tpu.concatenate %76, %77 in 0 : vector<1x512xf32>, vector<1x512xf32> -> vector<2x512xf32>
    %79 = arith.truncf %78 : vector<2x512xf32> to vector<2x512xbf16>
    %c8 = arith.constant 8 : index
    %c0_33 = arith.constant 0 : index
    %c0_34 = arith.constant 0 : index
    %80 = vector.load %arg4[%c8, %c0_33, %c0_34] : memref<9x512x512xbf16, #tpu.memory_space<vmem>>, vector<1x512x512xbf16>
    %81 = vector.shape_cast %80 : vector<1x512x512xbf16> to vector<512x512xbf16>
    %cst_35 = arith.constant dense<0.000000e+00> : vector<2x512xf32>
    %82 = tpu.matmul %79, %81, %cst_35 {dimension_numbers = #tpu.dot_dimension_numbers<[1], [0], [0], [1], [0, 0, 1, 1], [], []>} : vector<2x512xbf16>, vector<512x512xbf16>, vector<2x512xf32> -> vector<2x512xf32>
    %83 = arith.addf %75, %82 : vector<2x512xf32>
    %c0_36 = arith.constant 0 : index
    %c0_37 = arith.constant 0 : index
    %84 = vector.load %arg5[%c0_36, %c0_37] : memref<1x512xf32, #tpu.memory_space<vmem>>, vector<1x512xf32>
    %85 = vector.broadcast %84 : vector<1x512xf32> to vector<2x512xf32>
    %86 = arith.addf %83, %85 : vector<2x512xf32>
    %cst_38 = arith.constant 0.000000e+00 : f32
    %87 = vector.broadcast %cst_38 : f32 to vector<2x512xf32>
    %88 = arith.cmpf oge, %86, %87 : vector<2x512xf32>
    %cst_39 = arith.constant 2.000000e-01 : f32
    %89 = vector.broadcast %cst_39 : f32 to vector<2x512xf32>
    %90 = arith.mulf %89, %86 : vector<2x512xf32>
    %91 = arith.select %88, %86, %90 : vector<2x512xi1>, vector<2x512xf32>
    %c0_40 = arith.constant 0 : index
    %c0_41 = arith.constant 0 : index
    %92 = vector.load %arg6[%c0_40, %c0_41] : memref<512x32xf32, #tpu.memory_space<vmem>>, vector<512x32xf32>
    %cst_42 = arith.constant dense<0.000000e+00> : vector<2x32xf32>
    %93 = tpu.matmul %91, %92, %cst_42 {dimension_numbers = #tpu.dot_dimension_numbers<[1], [0], [0], [1], [0, 0, 1, 1], [], []>} : vector<2x512xf32>, vector<512x32xf32>, vector<2x32xf32> -> vector<2x32xf32>
    %c0_43 = arith.constant 0 : index
    %c0_44 = arith.constant 0 : index
    %94 = vector.load %arg7[%c0_43, %c0_44] : memref<1x32xf32, #tpu.memory_space<vmem>>, vector<1x32xf32>
    %95 = vector.broadcast %94 : vector<1x32xf32> to vector<2x32xf32>
    %96 = arith.addf %93, %95 : vector<2x32xf32>
    %c0_45 = arith.constant 0 : index
    %c0_46 = arith.constant 0 : index
    %97 = vector.load %arg8[%c0_45, %c0_46] : memref<2x32xf32, #tpu.memory_space<vmem>>, vector<2x32xf32>
    tpu.vector_store %arg8[%c0_45, %c0_46], %96 {strides = array<i32>} : memref<2x32xf32, #tpu.memory_space<vmem>>, vector<2x32xf32>,
    return
  }
  func.func @transform_0(%arg0: i32) -> (i32, i32) {
    %c0_i32 = arith.constant 0 : i32
    %c0_i32_0 = arith.constant 0 : i32
    %c0_i32_1 = arith.constant 0 : i32
    return %c0_i32, %c0_i32_0 : i32, i32
  }
  func.func @transform_1(%arg0: i32) -> (i32, i32) {
    %c0_i32 = arith.constant 0 : i32
    %c0_i32_0 = arith.constant 0 : i32
    %c0_i32_1 = arith.constant 0 : i32
    return %c0_i32, %c0_i32_0 : i32, i32
  }
  func.func @transform_2(%arg0: i32) -> (i32, i32) {
    %c0_i32 = arith.constant 0 : i32
    %c0_i32_0 = arith.constant 0 : i32
    %c0_i32_1 = arith.constant 0 : i32
    return %c0_i32, %c0_i32_0 : i32, i32
  }
  func.func @transform_3(%arg0: i32) -> (i32, i32, i32) {
    %c0_i32 = arith.constant 0 : i32
    %c0_i32_0 = arith.constant 0 : i32
    %c0_i32_1 = arith.constant 0 : i32
    %c0_i32_2 = arith.constant 0 : i32
    return %c0_i32, %c0_i32_0, %c0_i32_1 : i32, i32, i32
  }
  func.func @transform_4(%arg0: i32) -> (i32, i32) {
    %c0_i32 = arith.constant 0 : i32
    %c0_i32_0 = arith.constant 0 : i32
    %c0_i32_1 = arith.constant 0 : i32
    return %c0_i32, %c0_i32_0 : i32, i32
  }
  func.func @transform_5(%arg0: i32) -> (i32, i32) {
    %c0_i32 = arith.constant 0 : i32
    %c0_i32_0 = arith.constant 0 : i32
    %c0_i32_1 = arith.constant 0 : i32
    return %c0_i32, %c0_i32_0 : i32, i32
  }
  func.func @transform_6(%arg0: i32) -> (i32, i32) {
    %c0_i32 = arith.constant 0 : i32
    %c0_i32_0 = arith.constant 0 : i32
    %c0_i32_1 = arith.constant 0 : i32
    return %c0_i32, %c0_i32_0 : i32, i32
  }
  func.func @transform_7(%arg0: i32) -> (i32, i32) {
    %c0_i32 = arith.constant 0 : i32
    %c0_i32_0 = arith.constant 0 : i32
    %c0_i32_1 = arith.constant 0 : i32
    return %c0_i32, %c0_i32_0 : i32, i32
  }
}

</mosaic_0001>

<bundles_post_ra>
// kernel: encoder_forward.4
= control target key start
LH: loop header
LB: loop body
LE: loop exit
PB: predicated region body
PF: predicated region fallthrough
CT: control target
= control target key end

     0   :  { %s2072_s12 = smov 0   ;;  %s2074_s13 = smov 0   ;;  %s2507_s0 = inlined_call_operand.vmem [shape: bf16[1152,27], index: 0, kind: input, shape index: {}]   ;;  %s2508_s1 = inlined_call_operand.vmem [shape: bf16[27,64], index: 1, kind: input, shape index: {}]   ;;  %s2509_s2 = inlined_call_operand.vmem [shape: f32[1,64], index: 2, kind: input, shape index: {}]   ;;  %s2510_s3 = inlined_call_operand.vmem [shape: bf16[1152,64], index: 3, kind: output, shape index: {}]  }
   0x1   :  { %s2076_s14 = smov 0  }
   0x2 LB: > { %s25_s15 = sadd.s32 1, %s2045_s13  ;;  %p1622_p0 = scmp.ge.s32.totalorder %s2049_s14, 1  ;;  %s2049_s14 = sphi %s2076_s14, %s13_s14   ;;  %s2045_s13 = sphi %s2074_s13, %s2512_s13   ;;  %s2041_s12 = sphi %s2072_s12, %s2511_s12  }
   0x3   : > { %p27_p1 = scmp.ge.s32.totalorder %s25_s15, 2  ;;  %p169_p2 = scmp.lt.s32.totalorder %s2049_s14, 3 }
   0x5   : > { %s2514_s15 = smov (%p27_p1, %s25_s15), 0  ;;  %p170_p3 = pnand %p1622_p0, %p169_p2 }
   0x6   : > { %v1989_v0 = vld [vmem:[%s2508_s1] sm:$0xff] (!%p170_p3)   ;;  %vm609_vm0 = vcmask (!%p170_p3), 1044480   ;;  %v1990_v1 = vld [vmem:[%s2508_s1 + $0x8] sm:$0x3f] (!%p170_p3)   ;;  %vm610_vm1 = vcmask (!%p170_p3), 1045504   ;;  %s203_s20 = smul.u32 (!%p170_p3), 72, %s2041_s12 }
   0x7   : > { %173 = sbr.rel (%p170_p3) target bundleno = 328 (0x148), region = 32  ;;  %1884 = vmatprep.subr.bf16.mxu0 (!%p170_p3), %v1989_v0  ;;  %1960 = vmatprep.subr.bf16.mxu1 (!%p170_p3), %v1989_v0  ;;  %v2051_v2 = vmov (!%p170_p3), 65535   ;;  %vm500_vm2 = vcmask (!%p170_p3), 220160   ;;  %v2181_v42 = vld [vmem:[%s2509_s2] ss:$0 sm:$0xff] (!%p170_p3)  ;;  %vm1441_vm3 = vcmask (!%p170_p3), 519168  }
   0x8   : > { %1885 = vmatpush3.bf16.msra.mxu0 (!%p170_p3), %v1989_v0  ;;  %1962 = vmatpush3.bf16.msra.mxu1 (!%p170_p3), %v1989_v0  ;;  %v611_v3 = vsel (!%p170_p3), %vm609_vm0, 4294967295, %v2051_v2  ;;  %p204_p4 = scmp.lt.s32.totalorder (!%p170_p3), %s203_s20, 143 }
   0x9   : > { %v612_v4 = vsel (!%p170_p3), %vm610_vm1, %v611_v3, 0 }
   0xa   : > { %v614_v5 = vand.u32 (!%p170_p3), %v1990_v1, %v612_v4 }
   0xc   : > { %1886 = vmatprep.subr.bf16.mxu0 (!%p170_p3), %v614_v5  ;;  %1961 = vmatprep.subr.bf16.mxu1 (!%p170_p3), %v614_v5 }
   0xd   : > { %1887 = vmatpush3.bf16.msra.mxu0 (!%p170_p3), %v614_v5  ;;  %1963 = vmatpush3.bf16.msra.mxu1 (!%p170_p3), %v614_v5 }
   0xe   : > { %s2516_s20 = smov (!%p204_p4, %s203_s20), 143 }
   0xf   : > { %s1623_s21 = sshll.u32 %s2516_s20, 2 }
  0x10   : > { %s2104_s24 = scalar_lea.vmem %s2507_s0, %s1623_s21  ;;  %s2193_s29 = scalar_lea.vmem %s2510_s3, %s1623_s21 }
  0x11   : > { %v1991_v6 = vld [vmem:[%s2104_s24] sm:$0xff]   ;;  %v1992_v7 = vld [vmem:[%s2104_s24 + $0x90] sm:$0xff]   ;;  %v1993_v8 = vld [vmem:[%s2104_s24 + $0x8] sm:$0xff]  }
  0x12   : > { %1888 = vmatprep.mubr.msk.bf16.mxu0 %vm500_vm2, %v1991_v6  ;;  %1924 = vmatprep.mubr.msk.bf16.mxu1 %vm500_vm2, %v1992_v7  ;;  %v1994_v9 = vld [vmem:[%s2104_s24 + $0x98] sm:$0xff]   ;;  %v1995_v10 = vld [vmem:[%s2104_s24 + $0x10] sm:$0xff]   ;;  %v1996_v11 = vld [vmem:[%s2104_s24 + $0xa0] sm:$0xff]  }
  0x13   : > { %1889 = vmatmul.mubr.msk.bf16.vlgmr.msra.gmra.mrb[0].mxu0 %vm500_vm2, %v1993_v8  ;;  %1925 = vmatmul.mubr.msk.bf16.vlgmr.msra.gmra.mrb[0].mxu1 %vm500_vm2, %v1994_v9  ;;  %v1997_v12 = vld [vmem:[%s2104_s24 + $0x18] sm:$0xff]   ;;  %v1998_v13 = vld [vmem:[%s2104_s24 + $0xa8] sm:$0xff]   ;;  %v1999_v14 = vld [vmem:[%s2104_s24 + $0x20] sm:$0xff]  }
  0x14   : > { %1892 = vmatprep.mubr.msk.bf16.mxu0 %vm500_vm2, %v1995_v10  ;;  %1928 = vmatprep.mubr.msk.bf16.mxu1 %vm500_vm2, %v1996_v11  ;;  %v2000_v15 = vld [vmem:[%s2104_s24 + $0xb0] sm:$0xff]   ;;  %v2001_v16 = vld [vmem:[%s2104_s24 + $0x28] sm:$0xff]   ;;  %v2002_v17 = vld [vmem:[%s2104_s24 + $0xb8] sm:$0xff]  }
  0x15   : > { %v2003_v18 = vld [vmem:[%s2104_s24 + $0x30] sm:$0xff]   ;;  %v2004_v19 = vld [vmem:[%s2104_s24 + $0xc0] sm:$0xff]   ;;  %v2005_v20 = vld [vmem:[%s2104_s24 + $0x38] sm:$0xff]  }
  0x16   : > { %v2006_v21 = vld [vmem:[%s2104_s24 + $0xc8] sm:$0xff]   ;;  %v2007_v22 = vld [vmem:[%s2104_s24 + $0x40] sm:$0xff]   ;;  %v2008_v23 = vld [vmem:[%s2104_s24 + $0xd0] sm:$0xff]  }
  0x17   : > { %v2009_v24 = vld [vmem:[%s2104_s24 + $0x48] sm:$0xff]   ;;  %v2010_v25 = vld [vmem:[%s2104_s24 + $0xd8] sm:$0xff]   ;;  %v2011_v26 = vld [vmem:[%s2104_s24 + $0x50] sm:$0xff]  }
  0x18   : > { %v2012_v27 = vld [vmem:[%s2104_s24 + $0xe0] sm:$0xff]   ;;  %v2013_v28 = vld [vmem:[%s2104_s24 + $0x58] sm:$0xff]   ;;  %v2014_v29 = vld [vmem:[%s2104_s24 + $0xe8] sm:$0xff]  }
  0x19   : > { %v2015_v30 = vld [vmem:[%s2104_s24 + $0x60] sm:$0xff]   ;;  %v2016_v31 = vld [vmem:[%s2104_s24 + $0xf0] sm:$0xff]   ;;  %v2017_v32 = vld [vmem:[%s2104_s24 + $0x68] sm:$0xff]  }
  0x1a   : > { %v2018_v33 = vld [vmem:[%s2104_s24 + $0xf8] sm:$0xff]   ;;  %v2019_v34 = vld [vmem:[%s2104_s24 + $0x70] sm:$0xff]   ;;  %v2020_v35 = vld [vmem:[%s2104_s24 + $0x100] sm:$0xff]  }
  0x1b   : > { %1893 = vmatmul.mubr.msk.bf16.gmra.mrb[4].mxu0 %vm500_vm2, %v1997_v12  ;;  %1929 = vmatmul.mubr.msk.bf16.gmra.mrb[4].mxu1 %vm500_vm2, %v1998_v13  ;;  %v2021_v36 = vld [vmem:[%s2104_s24 + $0x78] sm:$0xff]   ;;  %v2022_v37 = vld [vmem:[%s2104_s24 + $0x108] sm:$0xff]   ;;  %v2023_v38 = vld [vmem:[%s2104_s24 + $0x80] sm:$0xff]  }
  0x1c   : > { %1896 = vmatprep.mubr.msk.bf16.mxu0 %vm500_vm2, %v1999_v14  ;;  %1932 = vmatprep.mubr.msk.bf16.mxu1 %vm500_vm2, %v2000_v15  ;;  %v2024_v39 = vld [vmem:[%s2104_s24 + $0x110] sm:$0xff]   ;;  %v2025_v40 = vld [vmem:[%s2104_s24 + $0x88] sm:$0xff]   ;;  %v2026_v41 = vld [vmem:[%s2104_s24 + $0x118] sm:$0xff]  }
  0x23   : > { %1897 = vmatmul.mubr.msk.bf16.gmra.mrb[8].mxu0 %vm500_vm2, %v2001_v16  ;;  %1933 = vmatmul.mubr.msk.bf16.gmra.mrb[8].mxu1 %vm500_vm2, %v2002_v17 }
  0x24   : > { %1900 = vmatprep.mubr.msk.bf16.mxu0 %vm500_vm2, %v2003_v18  ;;  %1936 = vmatprep.mubr.msk.bf16.mxu1 %vm500_vm2, %v2004_v19 }
  0x2b   : > { %1901 = vmatmul.mubr.msk.bf16.gmra.mrb[12].mxu0 %vm500_vm2, %v2005_v20  ;;  %1937 = vmatmul.mubr.msk.bf16.gmra.mrb[12].mxu1 %vm500_vm2, %v2006_v21 }
  0x2c   : > { %1904 = vmatprep.mubr.msk.bf16.mxu0 %vm500_vm2, %v2007_v22  ;;  %1940 = vmatprep.mubr.msk.bf16.mxu1 %vm500_vm2, %v2008_v23 }
  0x33   : > { %1905 = vmatmul.mubr.msk.bf16.gmra.mrb[16].mxu0 %vm500_vm2, %v2009_v24  ;;  %1941 = vmatmul.mubr.msk.bf16.gmra.mrb[16].mxu1 %vm500_vm2, %v2010_v25 }
  0x34   : > { %1908 = vmatprep.mubr.msk.bf16.mxu0 %vm500_vm2, %v2011_v26  ;;  %1944 = vmatprep.mubr.msk.bf16.mxu1 %vm500_vm2, %v2012_v27 }
  0x3b   : > { %1909 = vmatmul.mubr.msk.bf16.gmra.mrb[20].mxu0 %vm500_vm2, %v2013_v28  ;;  %1945 = vmatmul.mubr.msk.bf16.gmra.mrb[20].mxu1 %vm500_vm2, %v2014_v29 }
  0x3c   : > { %1912 = vmatprep.mubr.msk.bf16.mxu0 %vm500_vm2, %v2015_v30  ;;  %1948 = vmatprep.mubr.msk.bf16.mxu1 %vm500_vm2, %v2016_v31 }
  0x43   : > { %1913 = vmatmul.mubr.msk.bf16.gmra.mrb[24].mxu0 %vm500_vm2, %v2017_v32  ;;  %1949 = vmatmul.mubr.msk.bf16.gmra.mrb[24].mxu1 %vm500_vm2, %v2018_v33 }
  0x44   : > { %1916 = vmatprep.mubr.msk.bf16.mxu0 %vm500_vm2, %v2019_v34  ;;  %1952 = vmatprep.mubr.msk.bf16.mxu1 %vm500_vm2, %v2020_v35 }
  0x4b   : > { %1917 = vmatmul.mubr.msk.bf16.gmra.mrb[28].mxu0 %vm500_vm2, %v2021_v36  ;;  %1953 = vmatmul.mubr.msk.bf16.gmra.mrb[28].mxu1 %vm500_vm2, %v2022_v37 }
  0x4c   : > { %1920 = vmatprep.mubr.msk.bf16.mxu0 %vm500_vm2, %v2023_v38  ;;  %1956 = vmatprep.mubr.msk.bf16.mxu1 %vm500_vm2, %v2024_v39 }
  0x53   : > { %1921 = vmatmul.mubr.msk.bf16.gmra.mrb[32].mxu0 %vm500_vm2, %v2025_v40  ;;  %1957 = vmatmul.mubr.msk.bf16.gmra.mrb[32].mxu1 %vm500_vm2, %v2026_v41 }
  0xe6   : > { %v1890_v43 = vpop.f32.mrb[0].mxu0  ;;  %v1926_v45 = vpop.f32.mrb[0].mxu1 }
  0xe7   : > { %v659_v44 = vadd.f32 %v1890_v43, %v2181_v42  ;;  %v650_v46 = vpop.f32.mrb[1].mxu0  ;;  %v803_v47 = vadd.f32 %v1926_v45, %v2181_v42  ;;  %v794_v49 = vpop.f32.mrb[1].mxu1 }
  0xe8   : > { %v651_v48 = vadd.f32 %v2181_v42, %v650_v46  ;;  %v1891_v50 = vpop.f32.mrb[2].mxu0  ;;  %v795_v52 = vadd.f32 %v2181_v42, %v794_v49  ;;  %v1927_v54 = vpop.f32.mrb[2].mxu1 }
  0xe9   : > { %vm939_vm4 = vcmp.ge.f32.partialorder %v659_v44, 0.0  ;;  %v1011_v51 = vmul.f32 0.2, %v659_v44  ;;  %v662_v53 = vadd.f32 %v1891_v50, %v2181_v42  ;;  %v653_v55 = vpop.f32.mrb[3].mxu0  ;;  %vm975_vm5 = vcmp.ge.f32.partialorder %v803_v47, 0.0  ;;  %v797_v60 = vpop.f32.mrb[3].mxu1 }
  0xea   : > { %v1047_v56 = vmul.f32 0.2, %v803_v47  ;;  %vm937_vm6 = vcmp.ge.f32.partialorder %v651_v48, 0.0  ;;  %v1009_v57 = vmul.f32 0.2, %v651_v48  ;;  %vm973_vm7 = vcmp.ge.f32.partialorder %v795_v52, 0.0 }
  0xeb   : > { %v1083_v58 = vsel %vm939_vm4, %v659_v44, %v1011_v51  ;;  %v1045_v59 = vmul.f32 0.2, %v795_v52  ;;  %vm940_vm8 = vcmp.ge.f32.partialorder %v662_v53, 0.0  ;;  %v1012_v0 = vmul.f32 0.2, %v662_v53 }
  0xec   : > { %v1776_v61 = vpack.c.bf16 %v1083_v58, %v1083_v58  ;;  %v1119_v62 = vsel %vm975_vm5, %v803_v47, %v1047_v56  ;;  %v1081_v63 = vsel %vm937_vm6, %v651_v48, %v1009_v57  ;;  %v806_v4 = vadd.f32 %v1927_v54, %v2181_v42 }
  0xed   : > { %v1812_v1 = vpack.c.bf16 %v1119_v62, %v1119_v62  ;;  %v1774_v2 = vpack.c.bf16 %v1081_v63, %v1081_v63  ;;  %v1117_v3 = vsel %vm973_vm7, %v795_v52, %v1045_v59  ;;  %v1084_v6 = vsel %vm940_vm8, %v662_v53, %v1012_v0 }
  0xee   : > { %1444 = vst.msk [vmem:[%s2193_s29 + $0x8] sm:$0xf] %vm1441_vm3, %v1776_v61  ;;  %v1810_v5 = vpack.c.bf16 %v1117_v3, %v1117_v3  ;;  %v654_v7 = vadd.f32 %v2181_v42, %v653_v55  ;;  %v798_v8 = vadd.f32 %v2181_v42, %v797_v60  ;;  %v1894_v9 = vpop.f32.mrb[4].mxu0  ;;  %v1777_v10 = vpack.c.bf16 %v1084_v6, %v1084_v6  ;;  %v1930_v13 = vpop.f32.mrb[4].mxu1 }
  0xef   : > { %1480 = vst.msk [vmem:[%s2193_s29 + $0x98] sm:$0xf] %vm1441_vm3, %v1812_v1  ;;  %1442 = vst.msk [vmem:[%s2193_s29] sm:$0xf] %vm1441_vm3, %v1774_v2  ;;  %vm976_vm9 = vcmp.ge.f32.partialorder %v806_v4, 0.0  ;;  %v675_v12 = vadd.f32 %v1894_v9, %v2181_v42  ;;  %v666_v14 = vpop.f32.mrb[5].mxu0  ;;  %v819_v19 = vadd.f32 %v1930_v13, %v2181_v42 }
  0xf0   : > { %v1048_v11 = vmul.f32 0.2, %v806_v4  ;;  %1478 = vst.msk [vmem:[%s2193_s29 + $0x90] sm:$0xf] %vm1441_vm3, %v1810_v5  ;;  %vm938_vm10 = vcmp.ge.f32.partialorder %v654_v7, 0.0  ;;  %vm974_vm11 = vcmp.ge.f32.partialorder %v798_v8, 0.0  ;;  %v667_v25 = vadd.f32 %v2181_v42, %v666_v14 }
  0xf1   : > { %v1010_v15 = vmul.f32 0.2, %v654_v7  ;;  %v1046_v16 = vmul.f32 0.2, %v798_v8  ;;  %1445 = vst.msk [vmem:[%s2193_s29 + $0xc] sm:$0xf] %vm1441_vm3, %v1777_v10 }
  0xf2   : > { %v1120_v17 = vsel %vm976_vm9, %v806_v4, %v1048_v11  ;;  %vm943_vm12 = vcmp.ge.f32.partialorder %v675_v12, 0.0  ;;  %v1015_v18 = vmul.f32 0.2, %v675_v12  ;;  %v810_v20 = vpop.f32.mrb[5].mxu1  ;;  %v1895_v21 = vpop.f32.mrb[6].mxu0  ;;  %vm979_vm13 = vcmp.ge.f32.partialorder %v819_v19, 0.0 }
  0xf3   : > { %v1813_v22 = vpack.c.bf16 %v1120_v17, %v1120_v17  ;;  %v1082_v23 = vsel %vm938_vm10, %v654_v7, %v1010_v15  ;;  %v1118_v24 = vsel %vm974_vm11, %v798_v8, %v1046_v16  ;;  %v1931_v26 = vpop.f32.mrb[6].mxu1  ;;  %v669_v27 = vpop.f32.mrb[7].mxu0  ;;  %v1051_v33 = vmul.f32 0.2, %v819_v19 }
  0xf4   : > { %v1775_v28 = vpack.c.bf16 %v1082_v23, %v1082_v23  ;;  %v1811_v29 = vpack.c.bf16 %v1118_v24, %v1118_v24  ;;  %v1087_v30 = vsel %vm943_vm12, %v675_v12, %v1015_v18  ;;  %v813_v31 = vpop.f32.mrb[7].mxu1  ;;  %vm941_vm14 = vcmp.ge.f32.partialorder %v667_v25, 0.0 }
  0xf5   : > { %1481 = vst.msk [vmem:[%s2193_s29 + $0x9c] sm:$0xf] %vm1441_vm3, %v1813_v22  ;;  %v1780_v32 = vpack.c.bf16 %v1087_v30, %v1087_v30  ;;  %v1013_v34 = vmul.f32 0.2, %v667_v25  ;;  %v811_v35 = vadd.f32 %v2181_v42, %v810_v20  ;;  %v678_v36 = vadd.f32 %v1895_v21, %v2181_v42 }
  0xf6   : > { %1443 = vst.msk [vmem:[%s2193_s29 + $0x4] sm:$0xf] %vm1441_vm3, %v1775_v28  ;;  %1479 = vst.msk [vmem:[%s2193_s29 + $0x94] sm:$0xf] %vm1441_vm3, %v1811_v29  ;;  %v822_v37 = vadd.f32 %v1931_v26, %v2181_v42  ;;  %v670_v38 = vadd.f32 %v2181_v42, %v669_v27  ;;  %v1123_v39 = vsel %vm979_vm13, %v819_v19, %v1051_v33  ;;  %v1898_v43 = vpop.f32.mrb[8].mxu0  ;;  %v1934_v47 = vpop.f32.mrb[8].mxu1 }
  0xf7   : > { %1448 = vst.msk [vmem:[%s2193_s29 + $0x18] sm:$0xf] %vm1441_vm3, %v1780_v32  ;;  %v1085_v40 = vsel %vm941_vm14, %v667_v25, %v1013_v34  ;;  %v814_v41 = vadd.f32 %v2181_v42, %v813_v31  ;;  %v1816_v44 = vpack.c.bf16 %v1123_v39, %v1123_v39  ;;  %vm977_vm15 = vcmp.ge.f32.partialorder %v811_v35, 0.0  ;;  %v682_v48 = vpop.f32.mrb[9].mxu0  ;;  %v826_v53 = vpop.f32.mrb[9].mxu1 }
  0xf8   : > { %v1778_v45 = vpack.c.bf16 %v1085_v40, %v1085_v40  ;;  %v1049_v46 = vmul.f32 0.2, %v811_v35  ;;  %vm944_vm0 = vcmp.ge.f32.partialorder %v678_v36, 0.0  ;;  %v1016_v49 = vmul.f32 0.2, %v678_v36  ;;  %v1899_v54 = vpop.f32.mrb[10].mxu0 }
  0xf9   : > { %vm980_vm1 = vcmp.ge.f32.partialorder %v822_v37, 0.0  ;;  %v1052_v50 = vmul.f32 0.2, %v822_v37  ;;  %1484 = vst.msk [vmem:[%s2193_s29 + $0xa8] sm:$0xf] %vm1441_vm3, %v1816_v44  ;;  %vm942_vm2 = vcmp.ge.f32.partialorder %v670_v38, 0.0  ;;  %v691_v0 = vadd.f32 %v1898_v43, %v2181_v42 }
  0xfa   : > { %1446 = vst.msk [vmem:[%s2193_s29 + $0x10] sm:$0xf] %vm1441_vm3, %v1778_v45  ;;  %v1121_v51 = vsel %vm977_vm15, %v811_v35, %v1049_v46  ;;  %v1014_v52 = vmul.f32 0.2, %v670_v38  ;;  %vm978_vm4 = vcmp.ge.f32.partialorder %v814_v41, 0.0  ;;  %v1088_v56 = vsel %vm944_vm0, %v678_v36, %v1016_v49  ;;  %v1935_v59 = vpop.f32.mrb[10].mxu1 }
  0xfb   : > { %v1814_v55 = vpack.c.bf16 %v1121_v51, %v1121_v51  ;;  %v1124_v57 = vsel %vm980_vm1, %v822_v37, %v1052_v50  ;;  %v1050_v58 = vmul.f32 0.2, %v814_v41  ;;  %v685_v60 = vpop.f32.mrb[11].mxu0  ;;  %v1781_v61 = vpack.c.bf16 %v1088_v56, %v1088_v56  ;;  %v829_v1 = vpop.f32.mrb[11].mxu1 }
  0xfc   : > { %v1817_v62 = vpack.c.bf16 %v1124_v57, %v1124_v57  ;;  %v1086_v63 = vsel %vm942_vm2, %v670_v38, %v1014_v52  ;;  %v835_v4 = vadd.f32 %v1934_v47, %v2181_v42  ;;  %v683_v5 = vadd.f32 %v2181_v42, %v682_v48 }
  0xfd   : > { %1482 = vst.msk [vmem:[%s2193_s29 + $0xa0] sm:$0xf] %vm1441_vm3, %v1814_v55  ;;  %v1779_v2 = vpack.c.bf16 %v1086_v63, %v1086_v63  ;;  %v1122_v3 = vsel %vm978_vm4, %v814_v41, %v1050_v58  ;;  %1449 = vst.msk [vmem:[%s2193_s29 + $0x1c] sm:$0xf] %vm1441_vm3, %v1781_v61  ;;  %vm947_vm5 = vcmp.ge.f32.partialorder %v691_v0, 0.0  ;;  %v827_v8 = vadd.f32 %v2181_v42, %v826_v53 }
  0xfe   : > { %1485 = vst.msk [vmem:[%s2193_s29 + $0xac] sm:$0xf] %vm1441_vm3, %v1817_v62  ;;  %v1815_v6 = vpack.c.bf16 %v1122_v3, %v1122_v3  ;;  %v1019_v7 = vmul.f32 0.2, %v691_v0  ;;  %vm983_vm6 = vcmp.ge.f32.partialorder %v835_v4, 0.0  ;;  %vm945_vm7 = vcmp.ge.f32.partialorder %v683_v5, 0.0 }
  0xff   : > { %1447 = vst.msk [vmem:[%s2193_s29 + $0x14] sm:$0xf] %vm1441_vm3, %v1779_v2  ;;  %v1055_v9 = vmul.f32 0.2, %v835_v4  ;;  %v1017_v10 = vmul.f32 0.2, %v683_v5  ;;  %v694_v13 = vadd.f32 %v1899_v54, %v2181_v42  ;;  %v838_v19 = vadd.f32 %v1935_v59, %v2181_v42 }
 0x100   : > { %1483 = vst.msk [vmem:[%s2193_s29 + $0xa4] sm:$0xf] %vm1441_vm3, %v1815_v6  ;;  %v1091_v11 = vsel %vm947_vm5, %v691_v0, %v1019_v7  ;;  %vm981_vm8 = vcmp.ge.f32.partialorder %v827_v8, 0.0  ;;  %v1053_v12 = vmul.f32 0.2, %v827_v8  ;;  %v1902_v14 = vpop.f32.mrb[12].mxu0  ;;  %v686_v31 = vadd.f32 %v2181_v42, %v685_v60 }
 0x101   : > { %v1938_v15 = vpop.f32.mrb[12].mxu1  ;;  %v1784_v16 = vpack.c.bf16 %v1091_v11, %v1091_v11  ;;  %v1127_v17 = vsel %vm983_vm6, %v835_v4, %v1055_v9  ;;  %v1089_v18 = vsel %vm945_vm7, %v683_v5, %v1017_v10  ;;  %v698_v20 = vpop.f32.mrb[13].mxu0  ;;  %vm948_vm9 = vcmp.ge.f32.partialorder %v694_v13, 0.0 }
 0x102   : > { %v842_v21 = vpop.f32.mrb[13].mxu1  ;;  %v1820_v22 = vpack.c.bf16 %v1127_v17, %v1127_v17  ;;  %v1782_v23 = vpack.c.bf16 %v1089_v18, %v1089_v18  ;;  %v1125_v24 = vsel %vm981_vm8, %v827_v8, %v1053_v12  ;;  %v1903_v25 = vpop.f32.mrb[14].mxu0  ;;  %v1020_v28 = vmul.f32 0.2, %v694_v13 }
 0x103   : > { %v1939_v26 = vpop.f32.mrb[14].mxu1  ;;  %1452 = vst.msk [vmem:[%s2193_s29 + $0x28] sm:$0xf] %vm1441_vm3, %v1784_v16  ;;  %v1818_v27 = vpack.c.bf16 %v1125_v24, %v1125_v24  ;;  %vm984_vm10 = vcmp.ge.f32.partialorder %v838_v19, 0.0  ;;  %v1056_v29 = vmul.f32 0.2, %v838_v19  ;;  %v830_v32 = vadd.f32 %v2181_v42, %v829_v1 }
 0x104   : > { %v701_v30 = vpop.f32.mrb[15].mxu0  ;;  %1488 = vst.msk [vmem:[%s2193_s29 + $0xb8] sm:$0xf] %vm1441_vm3, %v1820_v22  ;;  %1450 = vst.msk [vmem:[%s2193_s29 + $0x20] sm:$0xf] %vm1441_vm3, %v1782_v23  ;;  %v707_v33 = vadd.f32 %v1902_v14, %v2181_v42  ;;  %v851_v34 = vadd.f32 %v1938_v15, %v2181_v42  ;;  %v845_v35 = vpop.f32.mrb[15].mxu1  ;;  %v1092_v36 = vsel %vm948_vm9, %v694_v13, %v1020_v28 }
 0x105   : > { %1486 = vst.msk [vmem:[%s2193_s29 + $0xb0] sm:$0xf] %vm1441_vm3, %v1818_v27  ;;  %v1128_v37 = vsel %vm984_vm10, %v838_v19, %v1056_v29  ;;  %v699_v38 = vadd.f32 %v2181_v42, %v698_v20  ;;  %v843_v39 = vadd.f32 %v2181_v42, %v842_v21  ;;  %v1785_v40 = vpack.c.bf16 %v1092_v36, %v1092_v36 }
 0x106   : > { %v1821_v41 = vpack.c.bf16 %v1128_v37, %v1128_v37  ;;  %vm946_vm11 = vcmp.ge.f32.partialorder %v686_v31, 0.0  ;;  %v1018_v43 = vmul.f32 0.2, %v686_v31  ;;  %vm982_vm12 = vcmp.ge.f32.partialorder %v830_v32, 0.0  ;;  %v1906_v48 = vpop.f32.mrb[16].mxu0  ;;  %v1942_v49 = vpop.f32.mrb[16].mxu1 }
 0x107   : > { %v1054_v44 = vmul.f32 0.2, %v830_v32  ;;  %vm951_vm13 = vcmp.ge.f32.partialorder %v707_v33, 0.0  ;;  %v1023_v45 = vmul.f32 0.2, %v707_v33  ;;  %vm987_vm14 = vcmp.ge.f32.partialorder %v851_v34, 0.0 }
 0x108   : > { %1453 = vst.msk [vmem:[%s2193_s29 + $0x2c] sm:$0xf] %vm1441_vm3, %v1785_v40  ;;  %1489 = vst.msk [vmem:[%s2193_s29 + $0xbc] sm:$0xf] %vm1441_vm3, %v1821_v41  ;;  %v1090_v46 = vsel %vm946_vm11, %v686_v31, %v1018_v43  ;;  %v1059_v47 = vmul.f32 0.2, %v851_v34  ;;  %v710_v0 = vadd.f32 %v1903_v25, %v2181_v42  ;;  %v854_v4 = vadd.f32 %v1939_v26, %v2181_v42 }
 0x109   : > { %vm949_vm15 = vcmp.ge.f32.partialorder %v699_v38, 0.0  ;;  %v1783_v50 = vpack.c.bf16 %v1090_v46, %v1090_v46  ;;  %v1126_v51 = vsel %vm982_vm12, %v830_v32, %v1054_v44  ;;  %v1095_v52 = vsel %vm951_vm13, %v707_v33, %v1023_v45  ;;  %v714_v54 = vpop.f32.mrb[17].mxu0  ;;  %v858_v55 = vpop.f32.mrb[17].mxu1 }
 0x10a   : > { %v1021_v53 = vmul.f32 0.2, %v699_v38  ;;  %v1819_v56 = vpack.c.bf16 %v1126_v51, %v1126_v51  ;;  %v1788_v57 = vpack.c.bf16 %v1095_v52, %v1095_v52  ;;  %v1131_v58 = vsel %vm987_vm14, %v851_v34, %v1059_v47  ;;  %v1907_v59 = vpop.f32.mrb[18].mxu0  ;;  %v1943_v60 = vpop.f32.mrb[18].mxu1 }
 0x10b   : > { %vm985_vm0 = vcmp.ge.f32.partialorder %v843_v39, 0.0  ;;  %1451 = vst.msk [vmem:[%s2193_s29 + $0x24] sm:$0xf] %vm1441_vm3, %v1783_v50  ;;  %v1824_v61 = vpack.c.bf16 %v1131_v58, %v1131_v58  ;;  %v1057_v63 = vmul.f32 0.2, %v843_v39  ;;  %v717_v1 = vpop.f32.mrb[19].mxu0  ;;  %v702_v5 = vadd.f32 %v2181_v42, %v701_v30 }
 0x10c   : > { %v1093_v62 = vsel %vm949_vm15, %v699_v38, %v1021_v53  ;;  %v2268_v2 = vpop.f32.mrb[19].mxu1  ;;  %1487 = vst.msk [vmem:[%s2193_s29 + $0xb4] sm:$0xf] %vm1441_vm3, %v1819_v56  ;;  %1456 = vst.msk [vmem:[%s2193_s29 + $0x38] sm:$0xf] %vm1441_vm3, %v1788_v57  ;;  %v846_v6 = vadd.f32 %v2181_v42, %v845_v35  ;;  %vm952_vm1 = vcmp.ge.f32.partialorder %v710_v0, 0.0  ;;  %v723_v9 = vadd.f32 %v1906_v48, %v2181_v42 }
 0x10d   : > { %v1786_v3 = vpack.c.bf16 %v1093_v62, %v1093_v62  ;;  %1492 = vst.msk [vmem:[%s2193_s29 + $0xc8] sm:$0xf] %vm1441_vm3, %v1824_v61  ;;  %v1129_v7 = vsel %vm985_vm0, %v843_v39, %v1057_v63  ;;  %v1024_v8 = vmul.f32 0.2, %v710_v0  ;;  %vm988_vm2 = vcmp.ge.f32.partialorder %v854_v4, 0.0 }
 0x10e   : > { %v1822_v10 = vpack.c.bf16 %v1129_v7, %v1129_v7  ;;  %v1060_v11 = vmul.f32 0.2, %v854_v4  ;;  %vm950_vm4 = vcmp.ge.f32.partialorder %v702_v5, 0.0  ;;  %v1022_v13 = vmul.f32 0.2, %v702_v5  ;;  %v1910_v15 = vpop.f32.mrb[20].mxu0 }
 0x10f   : > { %1454 = vst.msk [vmem:[%s2193_s29 + $0x30] sm:$0xf] %vm1441_vm3, %v1786_v3  ;;  %v1096_v12 = vsel %vm952_vm1, %v710_v0, %v1024_v8  ;;  %vm986_vm5 = vcmp.ge.f32.partialorder %v846_v6, 0.0  ;;  %v1058_v14 = vmul.f32 0.2, %v846_v6  ;;  %vm955_vm6 = vcmp.ge.f32.partialorder %v723_v9, 0.0 }
 0x110   : > { %1490 = vst.msk [vmem:[%s2193_s29 + $0xc0] sm:$0xf] %vm1441_vm3, %v1822_v10  ;;  %v1789_v16 = vpack.c.bf16 %v1096_v12, %v1096_v12  ;;  %v1132_v17 = vsel %vm988_vm2, %v854_v4, %v1060_v11  ;;  %v1027_v18 = vmul.f32 0.2, %v723_v9  ;;  %v1946_v19 = vpop.f32.mrb[20].mxu1  ;;  %v730_v20 = vpop.f32.mrb[21].mxu0  ;;  %v1094_v22 = vsel %vm950_vm4, %v702_v5, %v1022_v13 }
 0x111   : > { %v1825_v21 = vpack.c.bf16 %v1132_v17, %v1132_v17  ;;  %v1130_v23 = vsel %vm986_vm5, %v846_v6, %v1058_v14  ;;  %v867_v24 = vadd.f32 %v1942_v49, %v2181_v42  ;;  %v2286_v25 = vpop.f32.mrb[21].mxu1  ;;  %v2288_v26 = vpop.f32.mrb[22].mxu0  ;;  %v1787_v27 = vpack.c.bf16 %v1094_v22, %v1094_v22 }
 0x112   : > { %1457 = vst.msk [vmem:[%s2193_s29 + $0x3c] sm:$0xf] %vm1441_vm3, %v1789_v16  ;;  %v1823_v28 = vpack.c.bf16 %v1130_v23, %v1130_v23  ;;  %v1099_v29 = vsel %vm955_vm6, %v723_v9, %v1027_v18  ;;  %v715_v30 = vadd.f32 %v2181_v42, %v714_v54  ;;  %v2293_v31 = vpop.f32.mrb[22].mxu1  ;;  %v2295_v32 = vpop.f32.mrb[23].mxu0  ;;  %v859_v35 = vadd.f32 %v2181_v42, %v858_v55 }
 0x113   : > { %1493 = vst.msk [vmem:[%s2193_s29 + $0xcc] sm:$0xf] %vm1441_vm3, %v1825_v21  ;;  %v1792_v33 = vpack.c.bf16 %v1099_v29, %v1099_v29  ;;  %vm991_vm7 = vcmp.ge.f32.partialorder %v867_v24, 0.0  ;;  %v1063_v34 = vmul.f32 0.2, %v867_v24  ;;  %v2300_v36 = vpop.f32.mrb[23].mxu1  ;;  %v726_v38 = vadd.f32 %v1907_v59, %v2181_v42 }
 0x114   : > { %1455 = vst.msk [vmem:[%s2193_s29 + $0x34] sm:$0xf] %vm1441_vm3, %v1787_v27  ;;  %1491 = vst.msk [vmem:[%s2193_s29 + $0xc4] sm:$0xf] %vm1441_vm3, %v1823_v28  ;;  %vm953_vm8 = vcmp.ge.f32.partialorder %v715_v30, 0.0  ;;  %v870_v39 = vadd.f32 %v1943_v60, %v2181_v42  ;;  %vm989_vm9 = vcmp.ge.f32.partialorder %v859_v35, 0.0  ;;  %v718_v43 = vadd.f32 %v2181_v42, %v717_v1 }
 0x115   : > { %v1025_v37 = vmul.f32 0.2, %v715_v30  ;;  %1460 = vst.msk [vmem:[%s2193_s29 + $0x48] sm:$0xf] %vm1441_vm3, %v1792_v33  ;;  %v1135_v40 = vsel %vm991_vm7, %v867_v24, %v1063_v34  ;;  %v1061_v41 = vmul.f32 0.2, %v859_v35  ;;  %v862_v58 = vadd.f32 %v2181_v42, %v2268_v2 }
 0x116   : > { %v1828_v44 = vpack.c.bf16 %v1135_v40, %v1135_v40  ;;  %vm956_vm10 = vcmp.ge.f32.partialorder %v726_v38, 0.0  ;;  %v1028_v46 = vmul.f32 0.2, %v726_v38  ;;  %vm992_vm11 = vcmp.ge.f32.partialorder %v870_v39, 0.0  ;;  %v2311_v50 = vpop.f32.mrb[24].mxu0  ;;  %v1950_v54 = vpop.f32.mrb[24].mxu1 }
 0x117   : > { %v1097_v45 = vsel %vm953_vm8, %v715_v30, %v1025_v37  ;;  %v1133_v48 = vsel %vm989_vm9, %v859_v35, %v1061_v41  ;;  %v1064_v49 = vmul.f32 0.2, %v870_v39  ;;  %vm954_vm12 = vcmp.ge.f32.partialorder %v718_v43, 0.0  ;;  %v2315_v55 = vpop.f32.mrb[25].mxu0  ;;  %v2322_v60 = vpop.f32.mrb[25].mxu1 }
 0x118   : > { %v1790_v47 = vpack.c.bf16 %v1097_v45, %v1097_v45  ;;  %1496 = vst.msk [vmem:[%s2193_s29 + $0xd8] sm:$0xf] %vm1441_vm3, %v1828_v44  ;;  %v1826_v51 = vpack.c.bf16 %v1133_v48, %v1133_v48  ;;  %v1100_v52 = vsel %vm956_vm10, %v726_v38, %v1028_v46  ;;  %v1026_v53 = vmul.f32 0.2, %v718_v43  ;;  %v2324_v61 = vpop.f32.mrb[26].mxu0  ;;  %v2330_v3 = vpop.f32.mrb[26].mxu1 }
 0x119   : > { %v1793_v56 = vpack.c.bf16 %v1100_v52, %v1100_v52  ;;  %v1136_v57 = vsel %vm992_vm11, %v870_v39, %v1064_v49  ;;  %v739_v59 = vadd.f32 %v1910_v15, %v2181_v42  ;;  %v883_v0 = vadd.f32 %v1946_v19, %v2181_v42  ;;  %v2332_v4 = vpop.f32.mrb[27].mxu0  ;;  %v2336_v6 = vpop.f32.mrb[27].mxu1 }
 0x11a   : > { %1458 = vst.msk [vmem:[%s2193_s29 + $0x40] sm:$0xf] %vm1441_vm3, %v1790_v47  ;;  %1494 = vst.msk [vmem:[%s2193_s29 + $0xd0] sm:$0xf] %vm1441_vm3, %v1826_v51  ;;  %v1829_v62 = vpack.c.bf16 %v1136_v57, %v1136_v57  ;;  %v1098_v63 = vsel %vm954_vm12, %v718_v43, %v1026_v53  ;;  %v731_v1 = vadd.f32 %v2181_v42, %v730_v20  ;;  %vm990_vm13 = vcmp.ge.f32.partialorder %v862_v58, 0.0 }
 0x11b   : > { %1461 = vst.msk [vmem:[%s2193_s29 + $0x4c] sm:$0xf] %vm1441_vm3, %v1793_v56  ;;  %v1791_v2 = vpack.c.bf16 %v1098_v63, %v1098_v63  ;;  %v1062_v5 = vmul.f32 0.2, %v862_v58  ;;  %vm959_vm14 = vcmp.ge.f32.partialorder %v739_v59, 0.0  ;;  %vm995_vm15 = vcmp.ge.f32.partialorder %v883_v0, 0.0 }
 0x11c   : > { %1497 = vst.msk [vmem:[%s2193_s29 + $0xdc] sm:$0xf] %vm1441_vm3, %v1829_v62  ;;  %v1031_v7 = vmul.f32 0.2, %v739_v59  ;;  %v1067_v8 = vmul.f32 0.2, %v883_v0  ;;  %v875_v11 = vadd.f32 %v2181_v42, %v2286_v25  ;;  %v742_v12 = vadd.f32 %v2288_v26, %v2181_v42 }
 0x11d   : > { %vm957_vm0 = vcmp.ge.f32.partialorder %v731_v1, 0.0  ;;  %1459 = vst.msk [vmem:[%s2193_s29 + $0x44] sm:$0xf] %vm1441_vm3, %v1791_v2  ;;  %v1134_v9 = vsel %vm990_vm13, %v862_v58, %v1062_v5  ;;  %v1029_v10 = vmul.f32 0.2, %v731_v1  ;;  %v886_v16 = vadd.f32 %v2293_v31, %v2181_v42 }
 0x11e   : > { %v1827_v13 = vpack.c.bf16 %v1134_v9, %v1134_v9  ;;  %v1103_v14 = vsel %vm959_vm14, %v739_v59, %v1031_v7  ;;  %v1139_v15 = vsel %vm995_vm15, %v883_v0, %v1067_v8  ;;  %vm993_vm1 = vcmp.ge.f32.partialorder %v875_v11, 0.0  ;;  %v2348_v20 = vpop.f32.mrb[28].mxu0  ;;  %v2352_v24 = vpop.f32.mrb[28].mxu1 }
 0x11f   : > { %v1796_v17 = vpack.c.bf16 %v1103_v14, %v1103_v14  ;;  %v1832_v18 = vpack.c.bf16 %v1139_v15, %v1139_v15  ;;  %v1101_v19 = vsel %vm957_vm0, %v731_v1, %v1029_v10  ;;  %v1065_v22 = vmul.f32 0.2, %v875_v11  ;;  %v2362_v28 = vpop.f32.mrb[29].mxu0  ;;  %v2364_v29 = vpop.f32.mrb[29].mxu1 }
 0x120   : > { %1495 = vst.msk [vmem:[%s2193_s29 + $0xd4] sm:$0xf] %vm1441_vm3, %v1827_v13  ;;  %v1794_v21 = vpack.c.bf16 %v1101_v19, %v1101_v19  ;;  %vm960_vm2 = vcmp.ge.f32.partialorder %v742_v12, 0.0  ;;  %v1032_v23 = vmul.f32 0.2, %v742_v12  ;;  %vm996_vm4 = vcmp.ge.f32.partialorder %v886_v16, 0.0 }
 0x121   : > { %1464 = vst.msk [vmem:[%s2193_s29 + $0x58] sm:$0xf] %vm1441_vm3, %v1796_v17  ;;  %1500 = vst.msk [vmem:[%s2193_s29 + $0xe8] sm:$0xf] %vm1441_vm3, %v1832_v18  ;;  %v1068_v25 = vmul.f32 0.2, %v886_v16  ;;  %v734_v26 = vadd.f32 %v2181_v42, %v2295_v32  ;;  %v878_v27 = vadd.f32 %v2181_v42, %v2300_v36  ;;  %v1137_v30 = vsel %vm993_vm1, %v875_v11, %v1065_v22 }
 0x122   : > { %1462 = vst.msk [vmem:[%s2193_s29 + $0x50] sm:$0xf] %vm1441_vm3, %v1794_v21  ;;  %v1104_v31 = vsel %vm960_vm2, %v742_v12, %v1032_v23  ;;  %v755_v33 = vadd.f32 %v2311_v50, %v2181_v42  ;;  %v899_v34 = vadd.f32 %v1950_v54, %v2181_v42  ;;  %v2372_v32 = vpop.f32.mrb[30].mxu0  ;;  %v2374_v35 = vpop.f32.mrb[30].mxu1  ;;  %v1830_v36 = vpack.c.bf16 %v1137_v30, %v1137_v30 }
 0x123   : > { %v1797_v37 = vpack.c.bf16 %v1104_v31, %v1104_v31  ;;  %v1140_v38 = vsel %vm996_vm4, %v886_v16, %v1068_v25  ;;  %vm958_vm5 = vcmp.ge.f32.partialorder %v734_v26, 0.0  ;;  %v2376_v39 = vpop.f32.mrb[31].mxu0  ;;  %v2378_v40 = vpop.f32.mrb[31].mxu1  ;;  %v1030_v43 = vmul.f32 0.2, %v734_v26 }
 0x124   : > { %v1833_v41 = vpack.c.bf16 %v1140_v38, %v1140_v38  ;;  %vm994_vm6 = vcmp.ge.f32.partialorder %v878_v27, 0.0  ;;  %v1066_v44 = vmul.f32 0.2, %v878_v27  ;;  %1498 = vst.msk [vmem:[%s2193_s29 + $0xe0] sm:$0xf] %vm1441_vm3, %v1830_v36  ;;  %vm963_vm7 = vcmp.ge.f32.partialorder %v755_v33, 0.0 }
 0x125   : > { %1465 = vst.msk [vmem:[%s2193_s29 + $0x5c] sm:$0xf] %vm1441_vm3, %v1797_v37  ;;  %v1035_v45 = vmul.f32 0.2, %v755_v33  ;;  %vm999_vm8 = vcmp.ge.f32.partialorder %v899_v34, 0.0  ;;  %v1102_v47 = vsel %vm958_vm5, %v734_v26, %v1030_v43  ;;  %v747_v49 = vadd.f32 %v2181_v42, %v2315_v55 }
 0x126   : > { %v1071_v46 = vmul.f32 0.2, %v899_v34  ;;  %1501 = vst.msk [vmem:[%s2193_s29 + $0xec] sm:$0xf] %vm1441_vm3, %v1833_v41  ;;  %v1138_v48 = vsel %vm994_vm6, %v878_v27, %v1066_v44  ;;  %v891_v50 = vadd.f32 %v2181_v42, %v2322_v60  ;;  %v1795_v51 = vpack.c.bf16 %v1102_v47, %v1102_v47  ;;  %v2390_v56 = vpop.f32.mrb[32].mxu0  ;;  %v2392_v62 = vpop.f32.mrb[32].mxu1 }
 0x127   : > { %v1831_v52 = vpack.c.bf16 %v1138_v48, %v1138_v48  ;;  %v1107_v53 = vsel %vm963_vm7, %v755_v33, %v1035_v45  ;;  %vm961_vm9 = vcmp.ge.f32.partialorder %v747_v49, 0.0  ;;  %v1033_v59 = vmul.f32 0.2, %v747_v49  ;;  %v2394_v63 = vpop.f32.mrb[33].mxu0  ;;  %v2404_v1 = vpop.f32.mrb[33].mxu1 }
 0x128   : > { %v1143_v54 = vsel %vm999_vm8, %v899_v34, %v1071_v46  ;;  %v1800_v57 = vpack.c.bf16 %v1107_v53, %v1107_v53  ;;  %1463 = vst.msk [vmem:[%s2193_s29 + $0x54] sm:$0xf] %vm1441_vm3, %v1795_v51  ;;  %vm997_vm10 = vcmp.ge.f32.partialorder %v891_v50, 0.0  ;;  %v1069_v55 = vmul.f32 0.2, %v891_v50  ;;  %v2406_v2 = vpop.f32.mrb[34].mxu0 }
 0x129   : > { %v1836_v58 = vpack.c.bf16 %v1143_v54, %v1143_v54  ;;  %1499 = vst.msk [vmem:[%s2193_s29 + $0xe4] sm:$0xf] %vm1441_vm3, %v1831_v52  ;;  %v758_v60 = vadd.f32 %v2324_v61, %v2181_v42  ;;  %v902_v0 = vadd.f32 %v2330_v3, %v2181_v42  ;;  %v1105_v5 = vsel %vm961_vm9, %v747_v49, %v1033_v59  ;;  %v2418_v3 = vpop.f32.mrb[34].mxu1  ;;  %v2420_v9 = vpop.f32.mrb[35].mxu0 }
 0x12a   : > { %1468 = vst.msk [vmem:[%s2193_s29 + $0x68] sm:$0xf] %vm1441_vm3, %v1800_v57  ;;  %v750_v7 = vadd.f32 %v2181_v42, %v2332_v4  ;;  %v894_v8 = vadd.f32 %v2181_v42, %v2336_v6  ;;  %v771_v61 = vadd.f32 %v2348_v20, %v2181_v42  ;;  %v1798_v10 = vpack.c.bf16 %v1105_v5, %v1105_v5  ;;  %v2422_v13 = vpop.f32.mrb[35].mxu1 }
 0x12b   : > { %1504 = vst.msk [vmem:[%s2193_s29 + $0xf8] sm:$0xf] %vm1441_vm3, %v1836_v58  ;;  %v1141_v11 = vsel %vm997_vm10, %v891_v50, %v1069_v55  ;;  %vm964_vm11 = vcmp.ge.f32.partialorder %v758_v60, 0.0  ;;  %v1036_v12 = vmul.f32 0.2, %v758_v60  ;;  %vm1000_vm12 = vcmp.ge.f32.partialorder %v902_v0, 0.0 }
 0x12c   : > { %v1834_v14 = vpack.c.bf16 %v1141_v11, %v1141_v11  ;;  %v1072_v4 = vmul.f32 0.2, %v902_v0  ;;  %vm962_vm13 = vcmp.ge.f32.partialorder %v750_v7, 0.0  ;;  %1466 = vst.msk [vmem:[%s2193_s29 + $0x60] sm:$0xf] %vm1441_vm3, %v1798_v10  ;;  %vm998_vm14 = vcmp.ge.f32.partialorder %v894_v8, 0.0 }
 0x12d   : > { %v1108_v6 = vsel %vm964_vm11, %v758_v60, %v1036_v12  ;;  %v1034_v15 = vmul.f32 0.2, %v750_v7  ;;  %v1070_v16 = vmul.f32 0.2, %v894_v8  ;;  %vm967_vm15 = vcmp.ge.f32.partialorder %v771_v61, 0.0 }
 0x12e   : > { %1502 = vst.msk [vmem:[%s2193_s29 + $0xf0] sm:$0xf] %vm1441_vm3, %v1834_v14  ;;  %v1801_v17 = vpack.c.bf16 %v1108_v6, %v1108_v6  ;;  %v1144_v18 = vsel %vm1000_vm12, %v902_v0, %v1072_v4  ;;  %v1039_v19 = vmul.f32 0.2, %v771_v61  ;;  %v915_v23 = vadd.f32 %v2352_v24, %v2181_v42 }
 0x12f   : > { %v1837_v20 = vpack.c.bf16 %v1144_v18, %v1144_v18  ;;  %v1106_v21 = vsel %vm962_vm13, %v750_v7, %v1034_v15  ;;  %v1142_v22 = vsel %vm998_vm14, %v894_v8, %v1070_v16  ;;  %v763_v30 = vadd.f32 %v2181_v42, %v2362_v28 }
 0x130   : > { %1469 = vst.msk [vmem:[%s2193_s29 + $0x6c] sm:$0xf] %vm1441_vm3, %v1801_v17  ;;  %v1799_v25 = vpack.c.bf16 %v1106_v21, %v1106_v21  ;;  %v1835_v26 = vpack.c.bf16 %v1142_v22, %v1142_v22  ;;  %v1111_v27 = vsel %vm967_vm15, %v771_v61, %v1039_v19  ;;  %vm1003_vm0 = vcmp.ge.f32.partialorder %v915_v23, 0.0 }
 0x131   : > { %1505 = vst.msk [vmem:[%s2193_s29 + $0xfc] sm:$0xf] %vm1441_vm3, %v1837_v20  ;;  %v1804_v31 = vpack.c.bf16 %v1111_v27, %v1111_v27  ;;  %v1075_v33 = vmul.f32 0.2, %v915_v23  ;;  %v907_v34 = vadd.f32 %v2181_v42, %v2364_v29  ;;  %vm965_vm1 = vcmp.ge.f32.partialorder %v763_v30, 0.0 }
 0x132   : > { %1467 = vst.msk [vmem:[%s2193_s29 + $0x64] sm:$0xf] %vm1441_vm3, %v1799_v25  ;;  %1503 = vst.msk [vmem:[%s2193_s29 + $0xf4] sm:$0xf] %vm1441_vm3, %v1835_v26  ;;  %v1037_v24 = vmul.f32 0.2, %v763_v30  ;;  %v774_v36 = vadd.f32 %v2372_v32, %v2181_v42  ;;  %v918_v28 = vadd.f32 %v2374_v35, %v2181_v42  ;;  %v766_v29 = vadd.f32 %v2181_v42, %v2376_v39 }
 0x133   : > { %1472 = vst.msk [vmem:[%s2193_s29 + $0x78] sm:$0xf] %vm1441_vm3, %v1804_v31  ;;  %v1147_v37 = vsel %vm1003_vm0, %v915_v23, %v1075_v33  ;;  %vm1001_vm2 = vcmp.ge.f32.partialorder %v907_v34, 0.0  ;;  %v1073_v38 = vmul.f32 0.2, %v907_v34  ;;  %v910_v50 = vadd.f32 %v2181_v42, %v2378_v40 }
 0x134   : > { %v1840_v41 = vpack.c.bf16 %v1147_v37, %v1147_v37  ;;  %v1109_v43 = vsel %vm965_vm1, %v763_v30, %v1037_v24  ;;  %vm968_vm4 = vcmp.ge.f32.partialorder %v774_v36, 0.0  ;;  %v1040_v44 = vmul.f32 0.2, %v774_v36 }
 0x135   : > { %v1802_v45 = vpack.c.bf16 %v1109_v43, %v1109_v43  ;;  %v1145_v46 = vsel %vm1001_vm2, %v907_v34, %v1073_v38  ;;  %vm1004_vm5 = vcmp.ge.f32.partialorder %v918_v28, 0.0  ;;  %v1076_v32 = vmul.f32 0.2, %v918_v28 }
 0x136   : > { %1508 = vst.msk [vmem:[%s2193_s29 + $0x108] sm:$0xf] %vm1441_vm3, %v1840_v41  ;;  %v1838_v35 = vpack.c.bf16 %v1145_v46, %v1145_v46  ;;  %v1112_v47 = vsel %vm968_vm4, %v774_v36, %v1040_v44  ;;  %vm966_vm6 = vcmp.ge.f32.partialorder %v766_v29, 0.0  ;;  %v1038_v48 = vmul.f32 0.2, %v766_v29 }
 0x137   : > { %1470 = vst.msk [vmem:[%s2193_s29 + $0x70] sm:$0xf] %vm1441_vm3, %v1802_v45  ;;  %v1805_v39 = vpack.c.bf16 %v1112_v47, %v1112_v47  ;;  %v1148_v49 = vsel %vm1004_vm5, %v918_v28, %v1076_v32  ;;  %v787_v51 = vadd.f32 %v2390_v56, %v2181_v42  ;;  %v931_v54 = vadd.f32 %v2392_v62, %v2181_v42 }
 0x138   : > { %1506 = vst.msk [vmem:[%s2193_s29 + $0x100] sm:$0xf] %vm1441_vm3, %v1838_v35  ;;  %v1841_v52 = vpack.c.bf16 %v1148_v49, %v1148_v49  ;;  %v1110_v53 = vsel %vm966_vm6, %v766_v29, %v1038_v48  ;;  %v779_v57 = vadd.f32 %v2181_v42, %v2394_v63  ;;  %vm1002_vm7 = vcmp.ge.f32.partialorder %v910_v50, 0.0 }
 0x139   : > { %1473 = vst.msk [vmem:[%s2193_s29 + $0x7c] sm:$0xf] %vm1441_vm3, %v1805_v39  ;;  %v1803_v58 = vpack.c.bf16 %v1110_v53, %v1110_v53  ;;  %v1074_v59 = vmul.f32 0.2, %v910_v50  ;;  %vm971_vm8 = vcmp.ge.f32.partialorder %v787_v51, 0.0  ;;  %vm1007_vm9 = vcmp.ge.f32.partialorder %v931_v54, 0.0 }
 0x13a   : > { %1509 = vst.msk [vmem:[%s2193_s29 + $0x10c] sm:$0xf] %vm1441_vm3, %v1841_v52  ;;  %v1043_v40 = vmul.f32 0.2, %v787_v51  ;;  %v1079_v56 = vmul.f32 0.2, %v931_v54  ;;  %v923_v63 = vadd.f32 %v2181_v42, %v2404_v1  ;;  %v790_v60 = vadd.f32 %v2406_v2, %v2181_v42 }
 0x13b   : > { %vm969_vm10 = vcmp.ge.f32.partialorder %v779_v57, 0.0  ;;  %1471 = vst.msk [vmem:[%s2193_s29 + $0x74] sm:$0xf] %vm1441_vm3, %v1803_v58  ;;  %v1146_v55 = vsel %vm1002_vm7, %v910_v50, %v1074_v59  ;;  %v1041_v62 = vmul.f32 0.2, %v779_v57  ;;  %v934_v8 = vadd.f32 %v2418_v3, %v2181_v42 }
 0x13c   : > { %v1839_v0 = vpack.c.bf16 %v1146_v55, %v1146_v55  ;;  %v1115_v5 = vsel %vm971_vm8, %v787_v51, %v1043_v40  ;;  %v1151_v7 = vsel %vm1007_vm9, %v931_v54, %v1079_v56  ;;  %vm1005_vm11 = vcmp.ge.f32.partialorder %v923_v63, 0.0 }
 0x13d   : > { %v1808_v61 = vpack.c.bf16 %v1115_v5, %v1115_v5  ;;  %v1844_v10 = vpack.c.bf16 %v1151_v7, %v1151_v7  ;;  %v1113_v11 = vsel %vm969_vm10, %v779_v57, %v1041_v62  ;;  %v1077_v14 = vmul.f32 0.2, %v923_v63 }
 0x13e   : > { %1507 = vst.msk [vmem:[%s2193_s29 + $0x104] sm:$0xf] %vm1441_vm3, %v1839_v0  ;;  %v1806_v12 = vpack.c.bf16 %v1113_v11, %v1113_v11  ;;  %vm972_vm12 = vcmp.ge.f32.partialorder %v790_v60, 0.0  ;;  %v1044_v1 = vmul.f32 0.2, %v790_v60  ;;  %vm1008_vm13 = vcmp.ge.f32.partialorder %v934_v8, 0.0 }
 0x13f   : > { %1476 = vst.msk [vmem:[%s2193_s29 + $0x88] sm:$0xf] %vm1441_vm3, %v1808_v61  ;;  %1512 = vst.msk [vmem:[%s2193_s29 + $0x118] sm:$0xf] %vm1441_vm3, %v1844_v10  ;;  %v1080_v2 = vmul.f32 0.2, %v934_v8  ;;  %v782_v3 = vadd.f32 %v2181_v42, %v2420_v9  ;;  %v926_v4 = vadd.f32 %v2181_v42, %v2422_v13  ;;  %v1149_v6 = vsel %vm1005_vm11, %v923_v63, %v1077_v14 }
 0x140   : > { %1474 = vst.msk [vmem:[%s2193_s29 + $0x80] sm:$0xf] %vm1441_vm3, %v1806_v12  ;;  %v1116_v15 = vsel %vm972_vm12, %v790_v60, %v1044_v1  ;;  %v1842_v16 = vpack.c.bf16 %v1149_v6, %v1149_v6 }
 0x141   : > { %v1809_v17 = vpack.c.bf16 %v1116_v15, %v1116_v15  ;;  %v1152_v18 = vsel %vm1008_vm13, %v934_v8, %v1080_v2  ;;  %vm970_vm14 = vcmp.ge.f32.partialorder %v782_v3, 0.0  ;;  %v1042_v20 = vmul.f32 0.2, %v782_v3 }
 0x142   : > { %v1845_v19 = vpack.c.bf16 %v1152_v18, %v1152_v18  ;;  %vm1006_vm15 = vcmp.ge.f32.partialorder %v926_v4, 0.0  ;;  %v1078_v21 = vmul.f32 0.2, %v926_v4  ;;  %1510 = vst.msk [vmem:[%s2193_s29 + $0x110] sm:$0xf] %vm1441_vm3, %v1842_v16 }
 0x143   : > { %1477 = vst.msk [vmem:[%s2193_s29 + $0x8c] sm:$0xf] %vm1441_vm3, %v1809_v17  ;;  %v1114_v42 = vsel %vm970_vm14, %v782_v3, %v1042_v20 }
 0x144   : > { %1513 = vst.msk [vmem:[%s2193_s29 + $0x11c] sm:$0xf] %vm1441_vm3, %v1845_v19  ;;  %v1150_v9 = vsel %vm1006_vm15, %v926_v4, %v1078_v21  ;;  %v1807_v13 = vpack.c.bf16 %v1114_v42, %v1114_v42 }
 0x145   : > { %v1843_v22 = vpack.c.bf16 %v1150_v9, %v1150_v9 }
 0x146   : > { %1475 = vst.msk [vmem:[%s2193_s29 + $0x84] sm:$0xf] %vm1441_vm3, %v1807_v13 }
 0x147   : > { %1511 = vst.msk [vmem:[%s2193_s29 + $0x114] sm:$0xf] %vm1441_vm3, %v1843_v22 }
 0x148 PF: > { %s13_s14 = sadd.s32 1, %s2049_s14   ;;  %s2511_s12 = smov %s2045_s13 }
 0x149   : > { %p10_p5 = scmp.ge.s32.totalorder %s13_s14, 4   ;;  %s2512_s13 = smov %s2514_s15 }
 0x14b   :  { %12 = sbr.rel (!%p10_p5) target bundleno = 2 (0x2), region = 68 }

// kernel: encoder_forward.5
= control target key start
LH: loop header
LB: loop body
LE: loop exit
PB: predicated region body
PF: predicated region fallthrough
CT: control target
= control target key end

     0   :  { %s1968_s12 = smov 0   ;;  %s1970_s13 = smov 0   ;;  %s2267_s0 = inlined_call_operand.vmem [shape: bf16[288,576], index: 0, kind: input, shape index: {}]   ;;  %s2268_s1 = inlined_call_operand.vmem [shape: bf16[576,128], index: 1, kind: input, shape index: {}]   ;;  %s2269_s2 = inlined_call_operand.vmem [shape: f32[1,128], index: 2, kind: input, shape index: {}]   ;;  %s2270_s3 = inlined_call_operand.vmem [shape: bf16[288,128], index: 3, kind: output, shape index: {}]  }
   0x1   :  { %s1972_s14 = smov 0  }
   0x2 LB: > { %s25_s15 = sadd.s32 1, %s1940_s13  ;;  %p1398_p0 = scmp.ge.s32.totalorder %s1944_s14, 1  ;;  %s1944_s14 = sphi %s1972_s14, %s13_s14   ;;  %s1940_s13 = sphi %s1970_s13, %s2272_s13   ;;  %s1936_s12 = sphi %s1968_s12, %s2271_s12  }
   0x3   : > { %p27_p1 = scmp.ge.s32.totalorder %s25_s15, 2  ;;  %p170_p2 = scmp.lt.s32.totalorder %s1944_s14, 3 }
   0x5   : > { %s2274_s15 = smov (%p27_p1, %s25_s15), 0  ;;  %p171_p3 = pnand %p1398_p0, %p170_p2 }
   0x6   : > { %v1823_v0 = vld [vmem:[%s2268_s1 + $0x40] sm:$0xff] (!%p171_p3)   ;;  %s205_s18 = smul.u32 (!%p171_p3), 18, %s1936_s12  ;;  %v1825_v2 = vld [vmem:[%s2268_s1 + $0x48] sm:$0xff] (!%p171_p3)   ;;  %v1827_v4 = vld [vmem:[%s2268_s1 + $0x50] sm:$0xff] (!%p171_p3)   ;;  %v1946_v24 = vmov (!%p171_p3), 0.0   ;;  %vm1947_vm0 = vmmov (!%p171_p3), 0  }
   0x7   : > { %174 = sbr.rel (%p171_p3) target bundleno = 365 (0x16d), region = 32  ;;  %v1824_v1 = vld [vmem:[%s2268_s1] sm:$0xff] (!%p171_p3)   ;;  %1583 = vmatprep.subr.bf16.mxu0 (!%p171_p3), %v1823_v0  ;;  %1780 = vmatprep.subr.bf16.mxu1 (!%p171_p3), %v1823_v0  ;;  %v1826_v3 = vld [vmem:[%s2268_s1 + $0x8] sm:$0xff] (!%p171_p3)   ;;  %v1828_v5 = vld [vmem:[%s2268_s1 + $0x10] sm:$0xff] (!%p171_p3)   ;;  %vm803_vm1 = vcmask (!%p171_p3), 523264  }
   0x8   : > { %p206_p4 = scmp.lt.s32.totalorder (!%p171_p3), %s205_s18, 35  ;;  %1584 = vmatpush3.bf16.msra.mxu0 (!%p171_p3), %v1824_v1  ;;  %1788 = vmatpush3.bf16.msra.mxu1 (!%p171_p3), %v1824_v1  ;;  %v1829_v6 = vld [vmem:[%s2268_s1 + $0x58] sm:$0xff] (!%p171_p3)   ;;  %v1831_v8 = vld [vmem:[%s2268_s1 + $0x60] sm:$0xff] (!%p171_p3)   ;;  %v1833_v10 = vld [vmem:[%s2268_s1 + $0x68] sm:$0xff] (!%p171_p3)  }
   0x9   : > { %1585 = vmatprep.subr.bf16.mxu0 (!%p171_p3), %v1825_v2  ;;  %1781 = vmatprep.subr.bf16.mxu1 (!%p171_p3), %v1825_v2  ;;  %v1830_v7 = vld [vmem:[%s2268_s1 + $0x18] sm:$0xff] (!%p171_p3)   ;;  %v1832_v9 = vld [vmem:[%s2268_s1 + $0x20] sm:$0xff] (!%p171_p3)   ;;  %v1834_v13 = vld [vmem:[%s2268_s1 + $0x28] sm:$0xff] (!%p171_p3)  }
   0xa   : > { %v1835_v14 = vld [vmem:[%s2268_s1 + $0x70] sm:$0xff] (!%p171_p3)   ;;  %v1837_v16 = vld [vmem:[%s2268_s1 + $0x78] sm:$0xff] (!%p171_p3)   ;;  %v1845_v20 = vld [vmem:[%s2268_s1 + $0xc0] sm:$0xff] (!%p171_p3)  }
   0xb   : > { %v1836_v15 = vld [vmem:[%s2268_s1 + $0x30] sm:$0xff] (!%p171_p3)   ;;  %v1838_v17 = vld [vmem:[%s2268_s1 + $0x38] sm:$0xff] (!%p171_p3)   ;;  %v1846_v21 = vld [vmem:[%s2268_s1 + $0x80] sm:$0xff] (!%p171_p3)  }
   0xc   : > { %1586 = vmatpush3.bf16.msra.mxu0 (!%p171_p3), %v1826_v3  ;;  %1789 = vmatpush3.bf16.msra.mxu1 (!%p171_p3), %v1826_v3  ;;  %v1847_v22 = vld [vmem:[%s2268_s1 + $0x100] sm:$0xff] (!%p171_p3)   ;;  %v1848_v23 = vld [vmem:[%s2268_s1 + $0xc8] sm:$0xff] (!%p171_p3)   ;;  %v1856_v31 = vld [vmem:[%s2268_s1 + $0xd0] sm:$0xff] (!%p171_p3)  }
   0xd   : > { %1587 = vmatprep.subr.bf16.mxu0 (!%p171_p3), %v1827_v4  ;;  %1782 = vmatprep.subr.bf16.mxu1 (!%p171_p3), %v1827_v4  ;;  %v1849_v27 = vld [vmem:[%s2268_s1 + $0x88] sm:$0xff] (!%p171_p3)   ;;  %v1857_v32 = vld [vmem:[%s2268_s1 + $0x90] sm:$0xff] (!%p171_p3)   ;;  %v1859_v33 = vld [vmem:[%s2268_s1 + $0xd8] sm:$0xff] (!%p171_p3)  }
   0xe   : > { %s2276_s18 = smov (!%p206_p4, %s205_s18), 35  ;;  %v1858_v28 = vld [vmem:[%s2268_s1 + $0x108] sm:$0xff]   ;;  %v1871_v36 = vld [vmem:[%s2268_s1 + $0x110] sm:$0xff]   ;;  %v1860_v37 = vld [vmem:[%s2268_s1 + $0x98] sm:$0xff]  }
   0xf   : > { %s1796_s4 = smul.u32 20, %s2276_s18  ;;  %v1867_v39 = vld [vmem:[%s2268_s1 + $0xe0] sm:$0xff]   ;;  %v1869_v42 = vld [vmem:[%s2268_s1 + $0xe8] sm:$0xff]   ;;  %v1887_v45 = vld [vmem:[%s2268_s1 + $0x118] sm:$0xff]   ;;  %s1400_s27 = sshll.u32 %s2276_s18, 2 }
  0x10   : > { %1588 = vmatpush3.bf16.msra.mxu0 %v1828_v5  ;;  %1790 = vmatpush3.bf16.msra.mxu1 %v1828_v5  ;;  %v1868_v41 = vld [vmem:[%s2268_s1 + $0xa0] sm:$0xff]   ;;  %v1870_v46 = vld [vmem:[%s2268_s1 + $0xa8] sm:$0xff]   ;;  %v1878_v49 = vld [vmem:[%s2268_s1 + $0xf0] sm:$0xff]   ;;  %s2221_s30 = scalar_lea.vmem %s2270_s3, %s1400_s27 }
  0x11   : > { %1589 = vmatprep.subr.bf16.mxu0 %v1829_v6  ;;  %1783 = vmatprep.subr.bf16.mxu1 %v1829_v6  ;;  %s2019_s11 = scalar_lea.vmem %s2267_s0, %s1796_s4  ;;  %v1879_v50 = vld [vmem:[%s2268_s1 + $0xb0] sm:$0xff]   ;;  %v1880_v51 = vld [vmem:[%s2268_s1 + $0xf8] sm:$0xff]  }
  0x12   : > { %v1841_v11 = vld [vmem:[%s2019_s11 + $0x4] ss:$20 sps:$4 sm:$0xff]   ;;  %v1844_v12 = vld [vmem:[%s2019_s11 + $0xcc] ss:$20 sps:$4 sm:$0xff]   ;;  %v1842_v19 = vld [vmem:[%s2019_s11 + $0xc8] ss:$20 sps:$4 sm:$0xff]  }
  0x13   : > { %863 = vmatprep.mubr.bf16.mxu0 %v1841_v11  ;;  %903 = vmatprep.mubr.bf16.mxu1 %v1844_v12  ;;  %v1839_v18 = vld [vmem:[%s2019_s11] ss:$20 sps:$4 sm:$0xff]   ;;  %v1854_v29 = vld [vmem:[%s2019_s11 + $0x28] ss:$20 sps:$4 sm:$0xff]   ;;  %v1855_v30 = vld [vmem:[%s2019_s11 + $0xf0] ss:$20 sps:$4 sm:$0xff]  }
  0x14   : > { %1590 = vmatpush3.bf16.msra.mxu0 %v1830_v7  ;;  %1791 = vmatpush3.bf16.msra.mxu1 %v1830_v7  ;;  %v1850_v25 = vld [vmem:[%s2019_s11 + $0x2c] ss:$20 sps:$4 sm:$0xff]   ;;  %v1852_v26 = vld [vmem:[%s2019_s11 + $0xf4] ss:$20 sps:$4 sm:$0xff]   ;;  %v1863_v35 = vld [vmem:[%s2019_s11 + $0x11c] ss:$20 sps:$4 sm:$0xff]  }
  0x15   : > { %1591 = vmatprep.subr.bf16.mxu0 %v1831_v8  ;;  %1784 = vmatprep.subr.bf16.mxu1 %v1831_v8  ;;  %v1861_v34 = vld [vmem:[%s2019_s11 + $0x54] ss:$20 sps:$4 sm:$0xff]   ;;  %v1865_v38 = vld [vmem:[%s2019_s11 + $0x50] ss:$20 sps:$4 sm:$0xff]   ;;  %v1866_v40 = vld [vmem:[%s2019_s11 + $0x118] ss:$20 sps:$4 sm:$0xff]  }
  0x16   : > { %v1872_v43 = vld [vmem:[%s2019_s11 + $0x7c] ss:$20 sps:$4 sm:$0xff]   ;;  %v1874_v44 = vld [vmem:[%s2019_s11 + $0x144] ss:$20 sps:$4 sm:$0xff]   ;;  %v1877_v48 = vld [vmem:[%s2019_s11 + $0x140] ss:$20 sps:$4 sm:$0xff]  }
  0x17   : > { %v1876_v47 = vld [vmem:[%s2019_s11 + $0x78] ss:$20 sps:$4 sm:$0xff]   ;;  %v1884_v55 = vld [vmem:[%s2019_s11 + $0x8] ss:$20 sps:$4 sm:$0xff]   ;;  %v1888_v56 = vld [vmem:[%s2019_s11 + $0xa0] ss:$20 sps:$4 sm:$0xff]  }
  0x18   : > { %1592 = vmatpush3.bf16.msra.mxu0 %v1832_v9  ;;  %1792 = vmatpush3.bf16.msra.mxu1 %v1832_v9  ;;  %v1882_v52 = vld [vmem:[%s2019_s11 + $0xa4] ss:$20 sps:$4 sm:$0xff]   ;;  %v1886_v53 = vld [vmem:[%s2019_s11 + $0xc] ss:$20 sps:$4 sm:$0xff]   ;;  %v1889_v57 = vld [vmem:[%s2019_s11 + $0x34] ss:$20 sps:$4 sm:$0xff]  }
  0x19   : > { %1593 = vmatprep.subr.bf16.mxu0 %v1833_v10  ;;  %1785 = vmatprep.subr.bf16.mxu1 %v1833_v10  ;;  %v1881_v54 = vld [vmem:[%s2268_s1 + $0xb8] sm:$0xff]   ;;  %v1891_v58 = vld [vmem:[%s2019_s11 + $0x30] ss:$20 sps:$4 sm:$0xff]   ;;  %v1899_v0 = vld [vmem:[%s2019_s11 + $0x80] ss:$20 sps:$4 sm:$0xff]  }
  0x1a   : > { %v1892_v59 = vld [vmem:[%s2019_s11 + $0x10] ss:$20 sps:$4 sm:$0xff]   ;;  %v1895_v61 = vld [vmem:[%s2019_s11 + $0x58] ss:$20 sps:$4 sm:$0xff]   ;;  %v1900_v1 = vld [vmem:[%s2019_s11 + $0x60] ss:$20 sps:$4 sm:$0xff]  }
  0x1b   : > { %v1893_v60 = vld [vmem:[%s2019_s11 + $0x5c] ss:$20 sps:$4 sm:$0xff]   ;;  %v1896_v62 = vld [vmem:[%s2019_s11 + $0x38] ss:$20 sps:$4 sm:$0xff]   ;;  %v1905_v5 = vld [vmem:[%s2019_s11 + $0xd4] ss:$20 sps:$4 sm:$0xff]  }
  0x1c   : > { %1594 = vmatpush3.bf16.msra.mxu0 %v1834_v13  ;;  %1793 = vmatpush3.bf16.msra.mxu1 %v1834_v13  ;;  %v1897_v63 = vld [vmem:[%s2019_s11 + $0x84] ss:$20 sps:$4 sm:$0xff]   ;;  %v1901_v2 = vld [vmem:[%s2019_s11 + $0xac] ss:$20 sps:$4 sm:$0xff]   ;;  %v1903_v3 = vld [vmem:[%s2019_s11 + $0xa8] ss:$20 sps:$4 sm:$0xff]  }
  0x1d   : > { %1595 = vmatprep.subr.bf16.mxu0 %v1835_v14  ;;  %1786 = vmatprep.subr.bf16.mxu1 %v1835_v14  ;;  %v1904_v4 = vld [vmem:[%s2019_s11 + $0x88] ss:$20 sps:$4 sm:$0xff]   ;;  %v1907_v6 = vld [vmem:[%s2019_s11 + $0xd0] ss:$20 sps:$4 sm:$0xff]   ;;  %v1911_v9 = vld [vmem:[%s2019_s11 + $0xf8] ss:$20 sps:$4 sm:$0xff]  }
  0x1e   : > { %v1908_v7 = vld [vmem:[%s2019_s11 + $0xb0] ss:$20 sps:$4 sm:$0xff]   ;;  %v1912_v10 = vld [vmem:[%s2019_s11 + $0xd8] ss:$20 sps:$4 sm:$0xff]   ;;  %v1915_v12 = vld [vmem:[%s2019_s11 + $0x120] ss:$20 sps:$4 sm:$0xff]  }
  0x1f   : > { %v1909_v8 = vld [vmem:[%s2019_s11 + $0xfc] ss:$20 sps:$4 sm:$0xff]   ;;  %v1913_v11 = vld [vmem:[%s2019_s11 + $0x124] ss:$20 sps:$4 sm:$0xff]   ;;  %v1916_v13 = vld [vmem:[%s2019_s11 + $0x100] ss:$20 sps:$4 sm:$0xff]  }
  0x20   : > { %1596 = vmatpush3.bf16.msra.mxu0 %v1836_v15  ;;  %1794 = vmatpush3.bf16.msra.mxu1 %v1836_v15  ;;  %v1917_v14 = vld [vmem:[%s2019_s11 + $0x14c] ss:$20 sps:$4 sm:$0xff]   ;;  %v1919_v15 = vld [vmem:[%s2019_s11 + $0x148] ss:$20 sps:$4 sm:$0xff]  }
  0x21   : > { %1597 = vmatprep.subr.bf16.mxu0 %v1837_v16  ;;  %1787 = vmatprep.subr.bf16.mxu1 %v1837_v16  ;;  %v1920_v16 = vld [vmem:[%s2019_s11 + $0x128] ss:$20 sps:$4 sm:$0xff]  }
  0x24   : > { %1598 = vmatpush3.bf16.msra.mxu0 %v1838_v17  ;;  %1795 = vmatpush3.bf16.msra.mxu1 %v1838_v17  ;;  %v1921_v17 = vld [vmem:[%s2019_s11 + $0x150] ss:$20 sps:$4 sm:$0xff]  }
  0x25   : > { %1653 = vmatprep.subr.bf16.mxu1 %v1845_v20  ;;  %1736 = vmatprep.subr.bf16.mxu0 %v1946_v24 }
  0x27   : > { %864 = vmatmul.mubr.bf16.vlgmr.msra.gmra.mrb[0].mxu0 %v1839_v18  ;;  %904 = vmatmul.mubr.bf16.vlgmr.msra.gmra.mrb[0].mxu1 %v1842_v19 }
  0x28   : > { %1654 = vmatpush3.bf16.msra.mxu1 %v1846_v21  ;;  %1737 = vmatpush3.bf16.msra.mxu0 %v1847_v22 }
  0x29   : > { %1655 = vmatprep.subr.bf16.mxu1 %v1848_v23  ;;  %871 = vmatprep.mubr.bf16.mxu0 %v1850_v25 }
  0x2a   : > { %911 = vmatprep.mubr.bf16.mxu1 %v1852_v26  ;;  %1738 = vmatprep.subr.bf16.mxu0 %v1946_v24 }
  0x2c   : > { %1656 = vmatpush3.bf16.msra.mxu1 %v1849_v27  ;;  %1739 = vmatpush3.bf16.msra.mxu0 %v1858_v28 }
  0x2d   : > { %1657 = vmatprep.subr.bf16.mxu1 %v1856_v31  ;;  %1740 = vmatprep.subr.bf16.mxu0 %v1946_v24 }
  0x2f   : > { %872 = vmatmul.mubr.bf16.gmra.mrb[4].mxu0 %v1854_v29  ;;  %912 = vmatmul.mubr.bf16.gmra.mrb[4].mxu1 %v1855_v30 }
  0x30   : > { %1658 = vmatpush3.bf16.msra.mxu1 %v1857_v32  ;;  %879 = vmatprep.mubr.bf16.mxu0 %v1861_v34 }
  0x31   : > { %1659 = vmatprep.subr.bf16.mxu1 %v1859_v33  ;;  %919 = vmatprep.mubr.bf16.mxu1 %v1863_v35 }
  0x32   : > { %1741 = vmatpush3.bf16.msra.mxu0 %v1871_v36 }
  0x33   : > { %1742 = vmatprep.subr.bf16.mxu0 %v1946_v24 }
  0x34   : > { %1660 = vmatpush3.bf16.msra.mxu1 %v1860_v37 }
  0x35   : > { %1661 = vmatprep.subr.bf16.mxu1 %v1867_v39 }
  0x36   : > { %1743 = vmatpush3.bf16.msra.mxu0 %v1887_v45 }
  0x37   : > { %880 = vmatmul.mubr.bf16.gmra.mrb[8].mxu0 %v1865_v38  ;;  %920 = vmatmul.mubr.bf16.gmra.mrb[8].mxu1 %v1866_v40 }
  0x38   : > { %1662 = vmatpush3.bf16.msra.mxu1 %v1868_v41  ;;  %887 = vmatprep.mubr.bf16.mxu0 %v1872_v43 }
  0x39   : > { %1663 = vmatprep.subr.bf16.mxu1 %v1869_v42  ;;  %927 = vmatprep.mubr.bf16.mxu1 %v1874_v44 }
  0x3c   : > { %1664 = vmatpush3.bf16.msra.mxu1 %v1870_v46 }
  0x3d   : > { %1665 = vmatprep.subr.bf16.mxu1 %v1878_v49 }
  0x3f   : > { %888 = vmatmul.mubr.bf16.gmra.mrb[12].mxu0 %v1876_v47  ;;  %928 = vmatmul.mubr.bf16.gmra.mrb[12].mxu1 %v1877_v48 }
  0x40   : > { %1666 = vmatpush3.bf16.msra.mxu1 %v1879_v50  ;;  %895 = vmatprep.mubr.bf16.mxu0 %v1882_v52 }
  0x41   : > { %1667 = vmatprep.subr.bf16.mxu1 %v1880_v51  ;;  %968 = vmatprep.mubr.bf16.mxu1 %v1886_v53 }
  0x44   : > { %1668 = vmatpush3.bf16.msra.mxu1 %v1881_v54 }
  0x47   : > { %896 = vmatmul.mubr.bf16.gmra.mrb[16].mxu0 %v1888_v56  ;;  %969 = vmatmul.mubr.bf16.vlgmr.msra.gmra.mrb[16].mxu1 %v1884_v55 }
  0x48   : > { %976 = vmatprep.mubr.bf16.mxu1 %v1889_v57  ;;  %1744 = vmatprep.mubr.msk.bf16.mxu0 %vm1947_vm0, %v1946_v24 }
  0x4f   : > { %977 = vmatmul.mubr.bf16.gmra.mrb[20].mxu1 %v1891_v58  ;;  %1745 = vmatmul.mubr.msk.bf16.vlgmr.msra.gmra.mrb[20].mxu0 %vm803_vm1, %v1892_v59 }
  0x50   : > { %984 = vmatprep.mubr.bf16.mxu1 %v1893_v60  ;;  %1748 = vmatprep.mubr.msk.bf16.mxu0 %vm1947_vm0, %v1946_v24 }
  0x57   : > { %985 = vmatmul.mubr.bf16.gmra.mrb[24].mxu1 %v1895_v61  ;;  %1749 = vmatmul.mubr.msk.bf16.gmra.mrb[24].mxu0 %vm803_vm1, %v1896_v62  ;;  %v2199_v62 = vld [vmem:[%s2269_s2] ss:$0 sm:$0xff] }
  0x58   : > { %992 = vmatprep.mubr.bf16.mxu1 %v1897_v63  ;;  %1752 = vmatprep.mubr.msk.bf16.mxu0 %vm1947_vm0, %v1946_v24 }
  0x5f   : > { %993 = vmatmul.mubr.bf16.gmra.mrb[28].mxu1 %v1899_v0  ;;  %1753 = vmatmul.mubr.msk.bf16.gmra.mrb[28].mxu0 %vm803_vm1, %v1900_v1 }
  0x60   : > { %1000 = vmatprep.mubr.bf16.mxu1 %v1901_v2  ;;  %1756 = vmatprep.mubr.msk.bf16.mxu0 %vm1947_vm0, %v1946_v24 }
  0x67   : > { %1001 = vmatmul.mubr.bf16.gmra.mrb[32].mxu1 %v1903_v3  ;;  %1757 = vmatmul.mubr.msk.bf16.gmra.mrb[32].mxu0 %vm803_vm1, %v1904_v4 }
  0x68   : > { %1008 = vmatprep.mubr.bf16.mxu1 %v1905_v5  ;;  %1760 = vmatprep.mubr.msk.bf16.mxu0 %vm1947_vm0, %v1946_v24 }
  0x6f   : > { %1009 = vmatmul.mubr.bf16.gmra.mrb[36].mxu1 %v1907_v6  ;;  %1761 = vmatmul.mubr.msk.bf16.gmra.mrb[36].mxu0 %vm803_vm1, %v1908_v7 }
  0x70   : > { %1016 = vmatprep.mubr.bf16.mxu1 %v1909_v8  ;;  %1764 = vmatprep.mubr.msk.bf16.mxu0 %vm1947_vm0, %v1946_v24 }
  0x77   : > { %1017 = vmatmul.mubr.bf16.gmra.mrb[40].mxu1 %v1911_v9  ;;  %1765 = vmatmul.mubr.msk.bf16.gmra.mrb[40].mxu0 %vm803_vm1, %v1912_v10 }
  0x78   : > { %1024 = vmatprep.mubr.bf16.mxu1 %v1913_v11  ;;  %1768 = vmatprep.mubr.msk.bf16.mxu0 %vm1947_vm0, %v1946_v24 }
  0x7f   : > { %1025 = vmatmul.mubr.bf16.gmra.mrb[44].mxu1 %v1915_v12  ;;  %1769 = vmatmul.mubr.msk.bf16.gmra.mrb[44].mxu0 %vm803_vm1, %v1916_v13 }
  0x80   : > { %1032 = vmatprep.mubr.bf16.mxu1 %v1917_v14  ;;  %1772 = vmatprep.mubr.msk.bf16.mxu0 %vm1947_vm0, %v1946_v24 }
  0x87   : > { %1033 = vmatmul.mubr.bf16.gmra.mrb[48].mxu1 %v1919_v15  ;;  %1773 = vmatmul.mubr.msk.bf16.gmra.mrb[48].mxu0 %vm803_vm1, %v1920_v16 }
  0x88   : > { %1776 = vmatprep.mubr.msk.bf16.mxu0 %vm1947_vm0, %v1946_v24 }
  0x8f   : > { %1777 = vmatmul.mubr.msk.bf16.gmra.mrb[52].mxu0 %vm803_vm1, %v1921_v17 }
  0xfa   : > { %v1599_v18 = vpop.f32.mrb[0].mxu0  ;;  %v1629_v19 = vpop.f32.mrb[0].mxu1 }
  0xfb   : > { %v1600_v20 = vpop.f32.mrb[1].mxu0  ;;  %v1630_v21 = vpop.f32.mrb[1].mxu1 }
  0xfc   : > { %v1601_v22 = vadd.f32 %v1600_v20, %v1599_v18  ;;  %v1602_v23 = vpop.f32.mrb[2].mxu0  ;;  %v2178_v25 = vadd.f32 %v1630_v21, %v1629_v19  ;;  %v1632_v26 = vpop.f32.mrb[2].mxu1 }
  0xfd   : > { %v1603_v27 = vpop.f32.mrb[3].mxu0  ;;  %v1633_v28 = vpop.f32.mrb[3].mxu1 }
  0xfe   : > { %v1604_v29 = vadd.f32 %v1603_v27, %v1602_v23  ;;  %v2180_v30 = vadd.f32 %v1633_v28, %v1632_v26  ;;  %v866_v9 = vadd.f32 %v1601_v22, %v2199_v62 }
 0x100   : > { %v869_v16 = vadd.f32 %v1604_v29, %v2199_v62 }
 0x102   : > { %v1605_v31 = vpop.f32.mrb[4].mxu0  ;;  %v1635_v32 = vpop.f32.mrb[4].mxu1 }
 0x103   : > { %v1606_v24 = vpop.f32.mrb[5].mxu0  ;;  %v1636_v33 = vpop.f32.mrb[5].mxu1 }
 0x104   : > { %v1607_v34 = vadd.f32 %v1606_v24, %v1605_v31  ;;  %v1608_v35 = vpop.f32.mrb[6].mxu0  ;;  %v2182_v36 = vadd.f32 %v1636_v33, %v1635_v32  ;;  %v1638_v37 = vpop.f32.mrb[6].mxu1 }
 0x105   : > { %v1609_v38 = vpop.f32.mrb[7].mxu0  ;;  %v1639_v39 = vpop.f32.mrb[7].mxu1 }
 0x106   : > { %v1610_v40 = vadd.f32 %v1609_v38, %v1608_v35  ;;  %v2184_v41 = vadd.f32 %v1639_v39, %v1638_v37  ;;  %v874_v28 = vadd.f32 %v1607_v34, %v2199_v62 }
 0x108   : > { %v877_v38 = vadd.f32 %v1610_v40, %v2199_v62 }
 0x10a   : > { %v1611_v42 = vpop.f32.mrb[8].mxu0  ;;  %v1641_v43 = vpop.f32.mrb[8].mxu1 }
 0x10b   : > { %v1612_v44 = vpop.f32.mrb[9].mxu0  ;;  %v1642_v45 = vpop.f32.mrb[9].mxu1 }
 0x10c   : > { %v2186_v46 = vadd.f32 %v1612_v44, %v1611_v42  ;;  %v1614_v47 = vpop.f32.mrb[10].mxu0  ;;  %v2188_v48 = vadd.f32 %v1642_v45, %v1641_v43  ;;  %v1644_v49 = vpop.f32.mrb[10].mxu1 }
 0x10d   : > { %v1615_v50 = vpop.f32.mrb[11].mxu0  ;;  %v1645_v51 = vpop.f32.mrb[11].mxu1 }
 0x10e   : > { %v2190_v52 = vadd.f32 %v1615_v50, %v1614_v47  ;;  %v2192_v53 = vadd.f32 %v1645_v51, %v1644_v49 }
 0x112   : > { %v1617_v54 = vpop.f32.mrb[12].mxu0  ;;  %v1647_v55 = vpop.f32.mrb[12].mxu1 }
 0x113   : > { %v1618_v56 = vpop.f32.mrb[13].mxu0  ;;  %v1648_v57 = vpop.f32.mrb[13].mxu1 }
 0x114   : > { %v2194_v58 = vadd.f32 %v1618_v56, %v1617_v54  ;;  %v1620_v59 = vpop.f32.mrb[14].mxu0  ;;  %v1649_v60 = vadd.f32 %v1648_v57, %v1647_v55  ;;  %v1650_v61 = vpop.f32.mrb[14].mxu1  ;;  %v882_v55 = vadd.f32 %v2186_v46, %v2199_v62 }
 0x115   : > { %v1621_v63 = vpop.f32.mrb[15].mxu0  ;;  %v1651_v0 = vpop.f32.mrb[15].mxu1 }
 0x116   : > { %v2202_v1 = vadd.f32 %v1649_v60, %v2199_v62  ;;  %v2204_v2 = vadd.f32 %v1621_v63, %v1620_v59  ;;  %v1652_v3 = vadd.f32 %v1651_v0, %v1650_v61 }
 0x118   : > { %v2207_v4 = vadd.f32 %v1652_v3, %v2199_v62  ;;  %v885_v3 = vadd.f32 %v2190_v52, %v2199_v62 }
 0x11a   : > { %v1623_v5 = vpop.f32.mrb[16].mxu0  ;;  %v1669_v6 = vpop.f32.mrb[16].mxu1 }
 0x11b   : > { %v1624_v7 = vpop.f32.mrb[17].mxu0  ;;  %v1670_v8 = vpop.f32.mrb[17].mxu1 }
 0x11c   : > { %v2210_v10 = vadd.f32 %v1624_v7, %v1623_v5  ;;  %v1671_v11 = vadd.f32 %v1670_v8, %v1669_v6  ;;  %v1626_v12 = vpop.f32.mrb[18].mxu0  ;;  %v1672_v13 = vpop.f32.mrb[18].mxu1 }
 0x11d   : > { %v1627_v14 = vpop.f32.mrb[19].mxu0  ;;  %v1673_v15 = vpop.f32.mrb[19].mxu1 }
 0x11e   : > { %v2213_v17 = vadd.f32 %v1627_v14, %v1626_v12  ;;  %v1674_v18 = vadd.f32 %v1673_v15, %v1672_v13  ;;  %v971_v19 = vadd.f32 %v1671_v11, %v866_v9 }
 0x120   : > { %v974_v20 = vadd.f32 %v1674_v18, %v869_v16  ;;  %v890_v18 = vadd.f32 %v2194_v58, %v2199_v62 }
 0x122   : > { %v1675_v21 = vpop.f32.mrb[20].mxu1  ;;  %v1075_v23 = vpop.f32.mrb[20].mxu0 }
 0x123   : > { %v1076_v26 = vadd.f32 %v1075_v23, %v971_v19  ;;  %v1676_v27 = vpop.f32.mrb[21].mxu1  ;;  %v1746_v22 = vpop.f32.mrb[21].mxu0 }
 0x124   : > { %v1677_v31 = vadd.f32 %v1676_v27, %v1675_v21  ;;  %v1678_v32 = vpop.f32.mrb[22].mxu1  ;;  %v1078_v24 = vpop.f32.mrb[22].mxu0  ;;  %v893_v22 = vadd.f32 %v2204_v2, %v2199_v62 }
 0x125   : > { %v1164_v33 = vmul.f32 0.2, %v1076_v26  ;;  %v1079_v35 = vadd.f32 %v1078_v24, %v974_v20  ;;  %v1679_v37 = vpop.f32.mrb[23].mxu1  ;;  %v1747_v29 = vpop.f32.mrb[23].mxu0  ;;  %vm1146_vm2 = vcmp.ge.f32.partialorder %v1076_v26, 0.0 }
 0x126   : > { %v1680_v39 = vadd.f32 %v1679_v37, %v1678_v32  ;;  %v979_v42 = vadd.f32 %v1677_v31, %v874_v28 }
 0x127   : > { %vm1147_vm3 = vcmp.ge.f32.partialorder %v1079_v35, 0.0  ;;  %v1165_v43 = vmul.f32 0.2, %v1079_v35  ;;  %v1182_v45 = vsel %vm1146_vm2, %v1076_v26, %v1164_v33 }
 0x128   : > { %v982_v44 = vadd.f32 %v1680_v39, %v877_v38 }
 0x129   : > { %v1183_v34 = vsel %vm1147_vm3, %v1079_v35, %v1165_v43  ;;  %v898_v43 = vadd.f32 %v2210_v10, %v2199_v62 }
 0x12a   : > { %v1533_v47 = vpack.c.bf16 %v1183_v34, %v1182_v45  ;;  %v1681_v49 = vpop.f32.mrb[24].mxu1  ;;  %v1083_v50 = vpop.f32.mrb[24].mxu0 }
 0x12b   : > { %v1084_v51 = vadd.f32 %v1083_v50, %v979_v42  ;;  %v1682_v40 = vpop.f32.mrb[25].mxu1  ;;  %v1750_v54 = vpop.f32.mrb[25].mxu0 }
 0x12c   : > { %1534 = vst [vmem:[%s2221_s30] sm:$0xff] %v1533_v47   ;;  %v1683_v56 = vadd.f32 %v1682_v40, %v1681_v49  ;;  %v1684_v57 = vpop.f32.mrb[26].mxu1  ;;  %v1086_v59 = vpop.f32.mrb[26].mxu0 }
 0x12d   : > { %v1166_v60 = vmul.f32 0.2, %v1084_v51  ;;  %v1087_v61 = vadd.f32 %v1086_v59, %v982_v44  ;;  %v1685_v63 = vpop.f32.mrb[27].mxu1  ;;  %v1751_v0 = vpop.f32.mrb[27].mxu0  ;;  %vm1148_vm4 = vcmp.ge.f32.partialorder %v1084_v51, 0.0 }
 0x12e   : > { %v1686_v5 = vadd.f32 %v1685_v63, %v1684_v57  ;;  %v987_v6 = vadd.f32 %v1683_v56, %v882_v55 }
 0x12f   : > { %vm1149_vm5 = vcmp.ge.f32.partialorder %v1087_v61, 0.0  ;;  %v1167_v7 = vmul.f32 0.2, %v1087_v61  ;;  %v1184_v9 = vsel %vm1148_vm4, %v1084_v51, %v1166_v60  ;;  %v901_v51 = vadd.f32 %v2213_v17, %v2199_v62 }
 0x130   : > { %v990_v8 = vadd.f32 %v1686_v5, %v885_v3  ;;  %v906_v5 = vadd.f32 %v2178_v25, %v2199_v62 }
 0x131   : > { %v1185_v46 = vsel %vm1149_vm5, %v1087_v61, %v1167_v7 }
 0x132   : > { %v1538_v11 = vpack.c.bf16 %v1185_v46, %v1184_v9  ;;  %v1687_v12 = vpop.f32.mrb[28].mxu1  ;;  %v1091_v13 = vpop.f32.mrb[28].mxu0 }
 0x133   : > { %v1092_v14 = vadd.f32 %v1091_v13, %v987_v6  ;;  %v1688_v15 = vpop.f32.mrb[29].mxu1  ;;  %v1754_v16 = vpop.f32.mrb[29].mxu0 }
 0x134   : > { %1575 = vst [vmem:[%s2221_s30 + $0x8] sm:$0xff] %v1538_v11   ;;  %v1689_v52 = vadd.f32 %v1688_v15, %v1687_v12  ;;  %v1690_v19 = vpop.f32.mrb[30].mxu1  ;;  %v1094_v20 = vpop.f32.mrb[30].mxu0  ;;  %v909_v12 = vadd.f32 %v2180_v30, %v2199_v62 }
 0x135   : > { %v1168_v21 = vmul.f32 0.2, %v1092_v14  ;;  %v1095_v23 = vadd.f32 %v1094_v20, %v990_v8  ;;  %v1691_v26 = vpop.f32.mrb[31].mxu1  ;;  %v1755_v27 = vpop.f32.mrb[31].mxu0  ;;  %vm1150_vm6 = vcmp.ge.f32.partialorder %v1092_v14, 0.0 }
 0x136   : > { %v1692_v28 = vadd.f32 %v1691_v26, %v1690_v19  ;;  %v995_v31 = vadd.f32 %v1689_v52, %v890_v18  ;;  %v914_v27 = vadd.f32 %v2182_v36, %v2199_v62 }
 0x137   : > { %vm1151_vm7 = vcmp.ge.f32.partialorder %v1095_v23, 0.0  ;;  %v1169_v32 = vmul.f32 0.2, %v1095_v23  ;;  %v1186_v33 = vsel %vm1150_vm6, %v1092_v14, %v1168_v21 }
 0x138   : > { %v998_v24 = vadd.f32 %v1692_v28, %v893_v22 }
 0x139   : > { %v1187_v58 = vsel %vm1151_vm7, %v1095_v23, %v1169_v32 }
 0x13a   : > { %v1543_v35 = vpack.c.bf16 %v1187_v58, %v1186_v33  ;;  %v1693_v37 = vpop.f32.mrb[32].mxu1  ;;  %v1099_v29 = vpop.f32.mrb[32].mxu0  ;;  %v917_v58 = vadd.f32 %v2184_v41, %v2199_v62 }
 0x13b   : > { %v1100_v38 = vadd.f32 %v1099_v29, %v995_v31  ;;  %v1694_v39 = vpop.f32.mrb[33].mxu1  ;;  %v1758_v42 = vpop.f32.mrb[33].mxu0 }
 0x13c   : > { %1576 = vst [vmem:[%s2221_s30 + $0x10] sm:$0xff] %v1543_v35   ;;  %v1695_v2 = vadd.f32 %v1694_v39, %v1693_v37  ;;  %v1696_v44 = vpop.f32.mrb[34].mxu1  ;;  %v1102_v45 = vpop.f32.mrb[34].mxu0 }
 0x13d   : > { %v1170_v34 = vmul.f32 0.2, %v1100_v38  ;;  %v1103_v47 = vadd.f32 %v1102_v45, %v998_v24  ;;  %v1697_v49 = vpop.f32.mrb[35].mxu1  ;;  %v1759_v50 = vpop.f32.mrb[35].mxu0  ;;  %vm1152_vm8 = vcmp.ge.f32.partialorder %v1100_v38, 0.0 }
 0x13e   : > { %v1698_v40 = vadd.f32 %v1697_v49, %v1696_v44  ;;  %v1003_v54 = vadd.f32 %v1695_v2, %v898_v43 }
 0x13f   : > { %vm1153_vm9 = vcmp.ge.f32.partialorder %v1103_v47, 0.0  ;;  %v1171_v55 = vmul.f32 0.2, %v1103_v47  ;;  %v1188_v57 = vsel %vm1152_vm8, %v1100_v38, %v1170_v34 }
 0x140   : > { %v1006_v56 = vadd.f32 %v1698_v40, %v901_v51 }
 0x141   : > { %v1189_v10 = vsel %vm1153_vm9, %v1103_v47, %v1171_v55  ;;  %v922_v47 = vadd.f32 %v2188_v48, %v2199_v62 }
 0x142   : > { %v1548_v59 = vpack.c.bf16 %v1189_v10, %v1188_v57  ;;  %v1699_v60 = vpop.f32.mrb[36].mxu1  ;;  %v1107_v61 = vpop.f32.mrb[36].mxu0 }
 0x143   : > { %v1108_v63 = vadd.f32 %v1107_v61, %v1003_v54  ;;  %v1700_v0 = vpop.f32.mrb[37].mxu1  ;;  %v1762_v3 = vpop.f32.mrb[37].mxu0 }
 0x144   : > { %1577 = vst [vmem:[%s2221_s30 + $0x18] sm:$0xff] %v1548_v59   ;;  %v1701_v17 = vadd.f32 %v1700_v0, %v1699_v60  ;;  %v1702_v6 = vpop.f32.mrb[38].mxu1  ;;  %v1110_v7 = vpop.f32.mrb[38].mxu0 }
 0x145   : > { %v1172_v8 = vmul.f32 0.2, %v1108_v63  ;;  %v1111_v9 = vadd.f32 %v1110_v7, %v1006_v56  ;;  %v1703_v46 = vpop.f32.mrb[39].mxu1  ;;  %v1763_v11 = vpop.f32.mrb[39].mxu0  ;;  %vm1154_vm10 = vcmp.ge.f32.partialorder %v1108_v63, 0.0  ;;  %v925_v56 = vadd.f32 %v2192_v53, %v2199_v62 }
 0x146   : > { %v1704_v13 = vadd.f32 %v1703_v46, %v1702_v6  ;;  %v1011_v14 = vadd.f32 %v1701_v17, %v906_v5 }
 0x147   : > { %vm1155_vm11 = vcmp.ge.f32.partialorder %v1111_v9, 0.0  ;;  %v1173_v15 = vmul.f32 0.2, %v1111_v9  ;;  %v1190_v18 = vsel %vm1154_vm10, %v1108_v63, %v1172_v8 }
 0x148   : > { %v1014_v16 = vadd.f32 %v1704_v13, %v909_v12 }
 0x149   : > { %v1191_v25 = vsel %vm1155_vm11, %v1111_v9, %v1173_v15 }
 0x14a   : > { %v1553_v52 = vpack.c.bf16 %v1191_v25, %v1190_v18  ;;  %v1705_v19 = vpop.f32.mrb[40].mxu1  ;;  %v1115_v20 = vpop.f32.mrb[40].mxu0 }
 0x14b   : > { %v1116_v21 = vadd.f32 %v1115_v20, %v1011_v14  ;;  %v1706_v23 = vpop.f32.mrb[41].mxu1  ;;  %v1766_v26 = vpop.f32.mrb[41].mxu0 }
 0x14c   : > { %1578 = vst [vmem:[%s2221_s30 + $0x20] sm:$0xff] %v1553_v52   ;;  %v1707_v30 = vadd.f32 %v1706_v23, %v1705_v19  ;;  %v1708_v22 = vpop.f32.mrb[42].mxu1  ;;  %v1118_v28 = vpop.f32.mrb[42].mxu0 }
 0x14d   : > { %v1174_v31 = vmul.f32 0.2, %v1116_v21  ;;  %v1119_v32 = vadd.f32 %v1118_v28, %v1014_v16  ;;  %v1709_v24 = vpop.f32.mrb[43].mxu1  ;;  %v1767_v33 = vpop.f32.mrb[43].mxu0  ;;  %vm1156_vm12 = vcmp.ge.f32.partialorder %v1116_v21, 0.0 }
 0x14e   : > { %v1710_v35 = vadd.f32 %v1709_v24, %v1708_v22  ;;  %v1019_v37 = vadd.f32 %v1707_v30, %v914_v27 }
 0x14f   : > { %vm1157_vm13 = vcmp.ge.f32.partialorder %v1119_v32, 0.0  ;;  %v1175_v29 = vmul.f32 0.2, %v1119_v32  ;;  %v1192_v39 = vsel %vm1156_vm12, %v1116_v21, %v1174_v31 }
 0x150   : > { %v1022_v38 = vadd.f32 %v1710_v35, %v917_v58 }
 0x151   : > { %v1193_v36 = vsel %vm1157_vm13, %v1119_v32, %v1175_v29 }
 0x152   : > { %v1558_v42 = vpack.c.bf16 %v1193_v36, %v1192_v39  ;;  %v1711_v43 = vpop.f32.mrb[44].mxu1  ;;  %v1123_v2 = vpop.f32.mrb[44].mxu0 }
 0x153   : > { %v1124_v44 = vadd.f32 %v1123_v2, %v1019_v37  ;;  %v1712_v45 = vpop.f32.mrb[45].mxu1  ;;  %v1770_v34 = vpop.f32.mrb[45].mxu0 }
 0x154   : > { %1579 = vst [vmem:[%s2221_s30 + $0x28] sm:$0xff] %v1558_v42   ;;  %v1713_v41 = vadd.f32 %v1712_v45, %v1711_v43  ;;  %v1714_v49 = vpop.f32.mrb[46].mxu1  ;;  %v1126_v50 = vpop.f32.mrb[46].mxu0 }
 0x155   : > { %v1176_v51 = vmul.f32 0.2, %v1124_v44  ;;  %v1127_v40 = vadd.f32 %v1126_v50, %v1022_v38  ;;  %v1715_v54 = vpop.f32.mrb[47].mxu1  ;;  %v1771_v55 = vpop.f32.mrb[47].mxu0  ;;  %vm1158_vm14 = vcmp.ge.f32.partialorder %v1124_v44, 0.0 }
 0x156   : > { %v1716_v57 = vadd.f32 %v1715_v54, %v1714_v49  ;;  %v1027_v10 = vadd.f32 %v1713_v41, %v922_v47 }
 0x157   : > { %vm1159_vm15 = vcmp.ge.f32.partialorder %v1127_v40, 0.0  ;;  %v1177_v59 = vmul.f32 0.2, %v1127_v40  ;;  %v1194_v61 = vsel %vm1158_vm14, %v1124_v44, %v1176_v51 }
 0x158   : > { %v1030_v60 = vadd.f32 %v1716_v57, %v925_v56 }
 0x159   : > { %v1195_v48 = vsel %vm1159_vm15, %v1127_v40, %v1177_v59 }
 0x15a   : > { %v1563_v63 = vpack.c.bf16 %v1195_v48, %v1194_v61  ;;  %v1717_v0 = vpop.f32.mrb[48].mxu1  ;;  %v1131_v3 = vpop.f32.mrb[48].mxu0 }
 0x15b   : > { %v1132_v5 = vadd.f32 %v1131_v3, %v1027_v10  ;;  %v1718_v17 = vpop.f32.mrb[49].mxu1  ;;  %v1774_v6 = vpop.f32.mrb[49].mxu0 }
 0x15c   : > { %1580 = vst [vmem:[%s2221_s30 + $0x30] sm:$0xff] %v1563_v63   ;;  %v1719_v7 = vadd.f32 %v1718_v17, %v1717_v0  ;;  %v1720_v8 = vpop.f32.mrb[50].mxu1  ;;  %v1134_v9 = vpop.f32.mrb[50].mxu0 }
 0x15d   : > { %v1178_v46 = vmul.f32 0.2, %v1132_v5  ;;  %v1135_v53 = vadd.f32 %v1134_v9, %v1030_v60  ;;  %v1721_v62 = vpop.f32.mrb[51].mxu1  ;;  %v1775_v11 = vpop.f32.mrb[51].mxu0  ;;  %vm1160_vm0 = vcmp.ge.f32.partialorder %v1132_v5, 0.0 }
 0x15e   : > { %v1722_v12 = vadd.f32 %v1721_v62, %v1720_v8  ;;  %v1035_v13 = vadd.f32 %v1719_v7, %v2202_v1 }
 0x15f   : > { %vm1161_vm1 = vcmp.ge.f32.partialorder %v1135_v53, 0.0  ;;  %v1179_v14 = vmul.f32 0.2, %v1135_v53  ;;  %v1196_v16 = vsel %vm1160_vm0, %v1132_v5, %v1178_v46 }
 0x160   : > { %v1038_v15 = vadd.f32 %v1722_v12, %v2207_v4 }
 0x161   : > { %v1197_v18 = vsel %vm1161_vm1, %v1135_v53, %v1179_v14 }
 0x162   : > { %v1568_v25 = vpack.c.bf16 %v1197_v18, %v1196_v16  ;;  %v1139_v52 = vpop.f32.mrb[52].mxu0 }
 0x163   : > { %v1140_v19 = vadd.f32 %v1139_v52, %v1035_v13  ;;  %v1778_v20 = vpop.f32.mrb[53].mxu0 }
 0x164   : > { %1581 = vst [vmem:[%s2221_s30 + $0x38] sm:$0xff] %v1568_v25   ;;  %v1142_v21 = vpop.f32.mrb[54].mxu0 }
 0x165   : > { %v1180_v23 = vmul.f32 0.2, %v1140_v19  ;;  %v1143_v26 = vadd.f32 %v1142_v21, %v1038_v15  ;;  %v1779_v27 = vpop.f32.mrb[55].mxu0  ;;  %vm1162_vm2 = vcmp.ge.f32.partialorder %v1140_v19, 0.0 }
 0x167   : > { %vm1163_vm3 = vcmp.ge.f32.partialorder %v1143_v26, 0.0  ;;  %v1181_v30 = vmul.f32 0.2, %v1143_v26  ;;  %v1198_v1 = vsel %vm1162_vm2, %v1140_v19, %v1180_v23 }
 0x169   : > { %v1199_v22 = vsel %vm1163_vm3, %v1143_v26, %v1181_v30 }
 0x16a   : > { %v1573_v28 = vpack.c.bf16 %v1199_v22, %v1198_v1 }
 0x16c   : > { %1582 = vst [vmem:[%s2221_s30 + $0x40] sm:$0xff] %v1573_v28  }
 0x16d PF: > { %s13_s14 = sadd.s32 1, %s1944_s14   ;;  %s2271_s12 = smov %s1940_s13 }
 0x16e   : > { %p10_p5 = scmp.ge.s32.totalorder %s13_s14, 4   ;;  %s2272_s13 = smov %s2274_s15 }
 0x170   :  { %12 = sbr.rel (!%p10_p5) target bundleno = 2 (0x2), region = 68 }

// kernel: encoder_forward.6
= control target key start
LH: loop header
LB: loop body
LE: loop exit
PB: predicated region body
PF: predicated region fallthrough
CT: control target
= control target key end

     0   :  { %s2942_s12 = smov 0   ;;  %s2944_s13 = smov 0   ;;  %s3605_s0 = inlined_call_operand.vmem [shape: bf16[72,1152], index: 0, kind: input, shape index: {}]   ;;  %s3606_s1 = inlined_call_operand.vmem [shape: bf16[1152,256], index: 1, kind: input, shape index: {}]   ;;  %s3607_s2 = inlined_call_operand.vmem [shape: f32[1,256], index: 2, kind: input, shape index: {}]   ;;  %s3608_s3 = inlined_call_operand.vmem [shape: bf16[72,256], index: 3, kind: output, shape index: {}]  }
   0x1   :  { %s2946_s14 = smov 0   ;;  %s2948_s15 = smov 0  }
   0x2   :  { %s2950_s16 = smov 0  }
   0x3 LB: > { %s22_s17 = sadd.s32 1, %s2914_s15  ;;  %s2284_s18 = sadd.s32 4294967295, %s2918_s16   ;;  %s2918_s16 = sphi %s2950_s16, %s13_s16   ;;  %s2914_s15 = sphi %s2948_s15, %s3613_s15   ;;  %s2910_s14 = sphi %s2946_s14, %s3612_s14   ;;  %s2906_s13 = sphi %s2944_s13, %s3611_s13   ;;  %s2902_s12 = sphi %s2942_s12, %s3610_s12  }
   0x4   : > { %p23_p0 = scmp.ge.s32.totalorder %s22_s17, 2  ;;  %p65_p1 = scmp.ne.s32.totalorder %s2906_s13, %s2902_s12 }
   0x5   : > { %p66_p2 = scmp.eq.s32.totalorder %s2918_s16, 0  ;;  %p123_p4 = scmp.eq.s32.totalorder %s2284_s18, 1 }
   0x6   : > { %s3615_s17 = smov (%p23_p0, %s22_s17), 0  ;;  %s58_s20 = sadd.s32 1, %s2906_s13 }
   0x7   : > { %p67_p3 = por %p66_p2, %p65_p1  ;;  %s55_s19 = ssub.s32 %s2914_s15, %s3615_s17 }
   0x8   : > { %p56_p5 = scmp.eq.s32.totalorder %s55_s19, 0  ;;  %p2977_p6 = por %p123_p4, %p65_p1 }
   0x9   : > { %p2288_p7 = scmp.ge.s32.totalorder %s2918_s16, 2 }
   0xa   : > { %s2982_s22 = scalar_select %p56_p5, %s2906_s13, %s58_s20  }
   0xb   : > { %155 = sbr.rel (%p2288_p7) target bundleno = 118 (0x76), region = 20 }
  0x12   : > { %158 = sbr.rel (!%p67_p3) target bundleno = 118 (0x76), region = 24  ;;  %s160_s23 = sand.u32 (%p67_p3), 1, %s2906_s13  }
  0x13   : > { %s2289_s24 = sshll.u32 (%p67_p3), %s2914_s15, 2  ;;  %s2702_s25 = smul.u32 (%p67_p3), 576, %s160_s23 }
  0x14   : > { %s2990_s28 = scalar_lea.vmem (%p67_p3), %s3606_s1, %s2289_s24 }
  0x15   : > { %v180_v0 = vld [vmem:[%s2990_s28] sm:$0xf] (%p67_p3)  ;;  %v182_v1 = vld [vmem:[%s2990_s28 + $0x8] sm:$0xf] (%p67_p3)  ;;  %v184_v2 = vld [vmem:[%s2990_s28 + $0x10] sm:$0xf] (%p67_p3) }
  0x16   : > { %v186_v3 = vld [vmem:[%s2990_s28 + $0x18] sm:$0xf] (%p67_p3)  ;;  %v188_v4 = vld [vmem:[%s2990_s28 + $0x20] sm:$0xf] (%p67_p3)  ;;  %s2997_s29 = scalar_lea.vmem (%p67_p3), [#allocation2], %s2702_s25 }
  0x17   : > { %181 = vst [vmem:[%s2997_s29] sm:$0xf] (%p67_p3), %v180_v0  ;;  %183 = vst [vmem:[%s2997_s29 + $0x4] sm:$0xf] (%p67_p3), %v182_v1  ;;  %v190_v5 = vld [vmem:[%s2990_s28 + $0x28] sm:$0xf] (%p67_p3) }
  0x18   : > { %185 = vst [vmem:[%s2997_s29 + $0x8] sm:$0xf] (%p67_p3), %v184_v2  ;;  %187 = vst [vmem:[%s2997_s29 + $0xc] sm:$0xf] (%p67_p3), %v186_v3  ;;  %v192_v6 = vld [vmem:[%s2990_s28 + $0x30] sm:$0xf] (%p67_p3) }
  0x19   : > { %189 = vst [vmem:[%s2997_s29 + $0x10] sm:$0xf] %v188_v4  ;;  %v194_v7 = vld [vmem:[%s2990_s28 + $0x38] sm:$0xf]  ;;  %191 = vst [vmem:[%s2997_s29 + $0x14] sm:$0xf] %v190_v5 }
  0x1a   : > { %193 = vst [vmem:[%s2997_s29 + $0x18] sm:$0xf] %v192_v6  ;;  %195 = vst [vmem:[%s2997_s29 + $0x1c] sm:$0xf] %v194_v7  ;;  %v196_v8 = vld [vmem:[%s2990_s28 + $0x40] sm:$0xf] }
  0x1b   : > { %v198_v9 = vld [vmem:[%s2990_s28 + $0x48] sm:$0xf]  ;;  %v200_v10 = vld [vmem:[%s2990_s28 + $0x50] sm:$0xf]  ;;  %197 = vst [vmem:[%s2997_s29 + $0x20] sm:$0xf] %v196_v8 }
  0x1c   : > { %199 = vst [vmem:[%s2997_s29 + $0x24] sm:$0xf] %v198_v9  ;;  %201 = vst [vmem:[%s2997_s29 + $0x28] sm:$0xf] %v200_v10  ;;  %v202_v11 = vld [vmem:[%s2990_s28 + $0x58] sm:$0xf] }
  0x1d   : > { %v204_v12 = vld [vmem:[%s2990_s28 + $0x60] sm:$0xf]  ;;  %v206_v13 = vld [vmem:[%s2990_s28 + $0x68] sm:$0xf]  ;;  %203 = vst [vmem:[%s2997_s29 + $0x2c] sm:$0xf] %v202_v11 }
  0x1e   : > { %205 = vst [vmem:[%s2997_s29 + $0x30] sm:$0xf] %v204_v12  ;;  %207 = vst [vmem:[%s2997_s29 + $0x34] sm:$0xf] %v206_v13  ;;  %v208_v14 = vld [vmem:[%s2990_s28 + $0x70] sm:$0xf] }
  0x1f   : > { %v210_v15 = vld [vmem:[%s2990_s28 + $0x78] sm:$0xf]  ;;  %v212_v16 = vld [vmem:[%s2990_s28 + $0x80] sm:$0xf]  ;;  %209 = vst [vmem:[%s2997_s29 + $0x38] sm:$0xf] %v208_v14 }
  0x20   : > { %211 = vst [vmem:[%s2997_s29 + $0x3c] sm:$0xf] %v210_v15  ;;  %213 = vst [vmem:[%s2997_s29 + $0x40] sm:$0xf] %v212_v16  ;;  %v214_v17 = vld [vmem:[%s2990_s28 + $0x88] sm:$0xf] }
  0x21   : > { %v216_v18 = vld [vmem:[%s2990_s28 + $0x90] sm:$0xf]  ;;  %v218_v19 = vld [vmem:[%s2990_s28 + $0x98] sm:$0xf]  ;;  %215 = vst [vmem:[%s2997_s29 + $0x44] sm:$0xf] %v214_v17 }
  0x22   : > { %217 = vst [vmem:[%s2997_s29 + $0x48] sm:$0xf] %v216_v18  ;;  %219 = vst [vmem:[%s2997_s29 + $0x4c] sm:$0xf] %v218_v19  ;;  %v220_v20 = vld [vmem:[%s2990_s28 + $0xa0] sm:$0xf] }
  0x23   : > { %v222_v21 = vld [vmem:[%s2990_s28 + $0xa8] sm:$0xf]  ;;  %v224_v22 = vld [vmem:[%s2990_s28 + $0xb0] sm:$0xf]  ;;  %221 = vst [vmem:[%s2997_s29 + $0x50] sm:$0xf] %v220_v20 }
  0x24   : > { %223 = vst [vmem:[%s2997_s29 + $0x54] sm:$0xf] %v222_v21  ;;  %225 = vst [vmem:[%s2997_s29 + $0x58] sm:$0xf] %v224_v22  ;;  %v226_v23 = vld [vmem:[%s2990_s28 + $0xb8] sm:$0xf] }
  0x25   : > { %v228_v24 = vld [vmem:[%s2990_s28 + $0xc0] sm:$0xf]  ;;  %v230_v25 = vld [vmem:[%s2990_s28 + $0xc8] sm:$0xf]  ;;  %227 = vst [vmem:[%s2997_s29 + $0x5c] sm:$0xf] %v226_v23 }
  0x26   : > { %229 = vst [vmem:[%s2997_s29 + $0x60] sm:$0xf] %v228_v24  ;;  %231 = vst [vmem:[%s2997_s29 + $0x64] sm:$0xf] %v230_v25  ;;  %v232_v26 = vld [vmem:[%s2990_s28 + $0xd0] sm:$0xf] }
  0x27   : > { %v234_v27 = vld [vmem:[%s2990_s28 + $0xd8] sm:$0xf]  ;;  %v236_v28 = vld [vmem:[%s2990_s28 + $0xe0] sm:$0xf]  ;;  %233 = vst [vmem:[%s2997_s29 + $0x68] sm:$0xf] %v232_v26 }
  0x28   : > { %235 = vst [vmem:[%s2997_s29 + $0x6c] sm:$0xf] %v234_v27  ;;  %237 = vst [vmem:[%s2997_s29 + $0x70] sm:$0xf] %v236_v28  ;;  %v238_v29 = vld [vmem:[%s2990_s28 + $0xe8] sm:$0xf] }
  0x29   : > { %v240_v30 = vld [vmem:[%s2990_s28 + $0xf0] sm:$0xf]  ;;  %v242_v31 = vld [vmem:[%s2990_s28 + $0xf8] sm:$0xf]  ;;  %239 = vst [vmem:[%s2997_s29 + $0x74] sm:$0xf] %v238_v29 }
  0x2a   : > { %241 = vst [vmem:[%s2997_s29 + $0x78] sm:$0xf] %v240_v30  ;;  %243 = vst [vmem:[%s2997_s29 + $0x7c] sm:$0xf] %v242_v31  ;;  %v244_v32 = vld [vmem:[%s2990_s28 + $0x100] sm:$0xf] }
  0x2b   : > { %v246_v33 = vld [vmem:[%s2990_s28 + $0x108] sm:$0xf]  ;;  %v248_v34 = vld [vmem:[%s2990_s28 + $0x110] sm:$0xf]  ;;  %245 = vst [vmem:[%s2997_s29 + $0x80] sm:$0xf] %v244_v32 }
  0x2c   : > { %247 = vst [vmem:[%s2997_s29 + $0x84] sm:$0xf] %v246_v33  ;;  %249 = vst [vmem:[%s2997_s29 + $0x88] sm:$0xf] %v248_v34  ;;  %v250_v35 = vld [vmem:[%s2990_s28 + $0x118] sm:$0xf] }
  0x2d   : > { %v252_v36 = vld [vmem:[%s2990_s28 + $0x120] sm:$0xf]  ;;  %v254_v37 = vld [vmem:[%s2990_s28 + $0x128] sm:$0xf]  ;;  %251 = vst [vmem:[%s2997_s29 + $0x8c] sm:$0xf] %v250_v35 }
  0x2e   : > { %253 = vst [vmem:[%s2997_s29 + $0x90] sm:$0xf] %v252_v36  ;;  %255 = vst [vmem:[%s2997_s29 + $0x94] sm:$0xf] %v254_v37  ;;  %v256_v38 = vld [vmem:[%s2990_s28 + $0x130] sm:$0xf] }
  0x2f   : > { %v258_v39 = vld [vmem:[%s2990_s28 + $0x138] sm:$0xf]  ;;  %v260_v40 = vld [vmem:[%s2990_s28 + $0x140] sm:$0xf]  ;;  %257 = vst [vmem:[%s2997_s29 + $0x98] sm:$0xf] %v256_v38 }
  0x30   : > { %259 = vst [vmem:[%s2997_s29 + $0x9c] sm:$0xf] %v258_v39  ;;  %261 = vst [vmem:[%s2997_s29 + $0xa0] sm:$0xf] %v260_v40  ;;  %v262_v41 = vld [vmem:[%s2990_s28 + $0x148] sm:$0xf] }
  0x31   : > { %v264_v42 = vld [vmem:[%s2990_s28 + $0x150] sm:$0xf]  ;;  %v266_v43 = vld [vmem:[%s2990_s28 + $0x158] sm:$0xf]  ;;  %263 = vst [vmem:[%s2997_s29 + $0xa4] sm:$0xf] %v262_v41 }
  0x32   : > { %265 = vst [vmem:[%s2997_s29 + $0xa8] sm:$0xf] %v264_v42  ;;  %267 = vst [vmem:[%s2997_s29 + $0xac] sm:$0xf] %v266_v43  ;;  %v268_v44 = vld [vmem:[%s2990_s28 + $0x160] sm:$0xf] }
  0x33   : > { %v270_v45 = vld [vmem:[%s2990_s28 + $0x168] sm:$0xf]  ;;  %v272_v46 = vld [vmem:[%s2990_s28 + $0x170] sm:$0xf]  ;;  %269 = vst [vmem:[%s2997_s29 + $0xb0] sm:$0xf] %v268_v44 }
  0x34   : > { %271 = vst [vmem:[%s2997_s29 + $0xb4] sm:$0xf] %v270_v45  ;;  %273 = vst [vmem:[%s2997_s29 + $0xb8] sm:$0xf] %v272_v46  ;;  %v274_v47 = vld [vmem:[%s2990_s28 + $0x178] sm:$0xf] }
  0x35   : > { %v276_v48 = vld [vmem:[%s2990_s28 + $0x180] sm:$0xf]  ;;  %v278_v49 = vld [vmem:[%s2990_s28 + $0x188] sm:$0xf]  ;;  %275 = vst [vmem:[%s2997_s29 + $0xbc] sm:$0xf] %v274_v47 }
  0x36   : > { %277 = vst [vmem:[%s2997_s29 + $0xc0] sm:$0xf] %v276_v48  ;;  %279 = vst [vmem:[%s2997_s29 + $0xc4] sm:$0xf] %v278_v49  ;;  %v280_v50 = vld [vmem:[%s2990_s28 + $0x190] sm:$0xf] }
  0x37   : > { %v282_v51 = vld [vmem:[%s2990_s28 + $0x198] sm:$0xf]  ;;  %v284_v52 = vld [vmem:[%s2990_s28 + $0x1a0] sm:$0xf]  ;;  %281 = vst [vmem:[%s2997_s29 + $0xc8] sm:$0xf] %v280_v50 }
  0x38   : > { %283 = vst [vmem:[%s2997_s29 + $0xcc] sm:$0xf] %v282_v51  ;;  %285 = vst [vmem:[%s2997_s29 + $0xd0] sm:$0xf] %v284_v52  ;;  %v286_v53 = vld [vmem:[%s2990_s28 + $0x1a8] sm:$0xf] }
  0x39   : > { %v288_v54 = vld [vmem:[%s2990_s28 + $0x1b0] sm:$0xf]  ;;  %v290_v55 = vld [vmem:[%s2990_s28 + $0x1b8] sm:$0xf]  ;;  %287 = vst [vmem:[%s2997_s29 + $0xd4] sm:$0xf] %v286_v53 }
  0x3a   : > { %289 = vst [vmem:[%s2997_s29 + $0xd8] sm:$0xf] %v288_v54  ;;  %291 = vst [vmem:[%s2997_s29 + $0xdc] sm:$0xf] %v290_v55  ;;  %v292_v56 = vld [vmem:[%s2990_s28 + $0x1c0] sm:$0xf] }
  0x3b   : > { %v294_v57 = vld [vmem:[%s2990_s28 + $0x1c8] sm:$0xf]  ;;  %v296_v58 = vld [vmem:[%s2990_s28 + $0x1d0] sm:$0xf]  ;;  %293 = vst [vmem:[%s2997_s29 + $0xe0] sm:$0xf] %v292_v56 }
  0x3c   : > { %295 = vst [vmem:[%s2997_s29 + $0xe4] sm:$0xf] %v294_v57  ;;  %297 = vst [vmem:[%s2997_s29 + $0xe8] sm:$0xf] %v296_v58  ;;  %v298_v59 = vld [vmem:[%s2990_s28 + $0x1d8] sm:$0xf] }
  0x3d   : > { %v300_v60 = vld [vmem:[%s2990_s28 + $0x1e0] sm:$0xf]  ;;  %v302_v61 = vld [vmem:[%s2990_s28 + $0x1e8] sm:$0xf]  ;;  %299 = vst [vmem:[%s2997_s29 + $0xec] sm:$0xf] %v298_v59 }
  0x3e   : > { %301 = vst [vmem:[%s2997_s29 + $0xf0] sm:$0xf] %v300_v60  ;;  %303 = vst [vmem:[%s2997_s29 + $0xf4] sm:$0xf] %v302_v61  ;;  %v304_v62 = vld [vmem:[%s2990_s28 + $0x1f0] sm:$0xf] }
  0x3f   : > { %v306_v63 = vld [vmem:[%s2990_s28 + $0x1f8] sm:$0xf]  ;;  %v308_v0 = vld [vmem:[%s2990_s28 + $0x200] sm:$0xf]  ;;  %305 = vst [vmem:[%s2997_s29 + $0xf8] sm:$0xf] %v304_v62 }
  0x40   : > { %307 = vst [vmem:[%s2997_s29 + $0xfc] sm:$0xf] %v306_v63  ;;  %309 = vst [vmem:[%s2997_s29 + $0x100] sm:$0xf] %v308_v0  ;;  %v310_v1 = vld [vmem:[%s2990_s28 + $0x208] sm:$0xf] }
  0x41   : > { %v312_v2 = vld [vmem:[%s2990_s28 + $0x210] sm:$0xf]  ;;  %v314_v3 = vld [vmem:[%s2990_s28 + $0x218] sm:$0xf]  ;;  %311 = vst [vmem:[%s2997_s29 + $0x104] sm:$0xf] %v310_v1 }
  0x42   : > { %313 = vst [vmem:[%s2997_s29 + $0x108] sm:$0xf] %v312_v2  ;;  %315 = vst [vmem:[%s2997_s29 + $0x10c] sm:$0xf] %v314_v3  ;;  %v316_v4 = vld [vmem:[%s2990_s28 + $0x220] sm:$0xf] }
  0x43   : > { %v318_v5 = vld [vmem:[%s2990_s28 + $0x228] sm:$0xf]  ;;  %v320_v6 = vld [vmem:[%s2990_s28 + $0x230] sm:$0xf]  ;;  %317 = vst [vmem:[%s2997_s29 + $0x110] sm:$0xf] %v316_v4 }
  0x44   : > { %319 = vst [vmem:[%s2997_s29 + $0x114] sm:$0xf] %v318_v5  ;;  %321 = vst [vmem:[%s2997_s29 + $0x118] sm:$0xf] %v320_v6  ;;  %v322_v7 = vld [vmem:[%s2990_s28 + $0x238] sm:$0xf] }
  0x45   : > { %v324_v8 = vld [vmem:[%s2990_s28 + $0x240] sm:$0xf]  ;;  %v326_v9 = vld [vmem:[%s2990_s28 + $0x248] sm:$0xf]  ;;  %323 = vst [vmem:[%s2997_s29 + $0x11c] sm:$0xf] %v322_v7 }
  0x46   : > { %325 = vst [vmem:[%s2997_s29 + $0x120] sm:$0xf] %v324_v8  ;;  %327 = vst [vmem:[%s2997_s29 + $0x124] sm:$0xf] %v326_v9  ;;  %v328_v10 = vld [vmem:[%s2990_s28 + $0x250] sm:$0xf] }
  0x47   : > { %v330_v11 = vld [vmem:[%s2990_s28 + $0x258] sm:$0xf]  ;;  %v332_v12 = vld [vmem:[%s2990_s28 + $0x260] sm:$0xf]  ;;  %329 = vst [vmem:[%s2997_s29 + $0x128] sm:$0xf] %v328_v10 }
  0x48   : > { %331 = vst [vmem:[%s2997_s29 + $0x12c] sm:$0xf] %v330_v11  ;;  %333 = vst [vmem:[%s2997_s29 + $0x130] sm:$0xf] %v332_v12  ;;  %v334_v13 = vld [vmem:[%s2990_s28 + $0x268] sm:$0xf] }
  0x49   : > { %v336_v14 = vld [vmem:[%s2990_s28 + $0x270] sm:$0xf]  ;;  %v338_v15 = vld [vmem:[%s2990_s28 + $0x278] sm:$0xf]  ;;  %335 = vst [vmem:[%s2997_s29 + $0x134] sm:$0xf] %v334_v13 }
  0x4a   : > { %337 = vst [vmem:[%s2997_s29 + $0x138] sm:$0xf] %v336_v14  ;;  %339 = vst [vmem:[%s2997_s29 + $0x13c] sm:$0xf] %v338_v15  ;;  %v340_v16 = vld [vmem:[%s2990_s28 + $0x280] sm:$0xf] }
  0x4b   : > { %v342_v17 = vld [vmem:[%s2990_s28 + $0x288] sm:$0xf]  ;;  %v344_v18 = vld [vmem:[%s2990_s28 + $0x290] sm:$0xf]  ;;  %341 = vst [vmem:[%s2997_s29 + $0x140] sm:$0xf] %v340_v16 }
  0x4c   : > { %343 = vst [vmem:[%s2997_s29 + $0x144] sm:$0xf] %v342_v17  ;;  %345 = vst [vmem:[%s2997_s29 + $0x148] sm:$0xf] %v344_v18  ;;  %v346_v19 = vld [vmem:[%s2990_s28 + $0x298] sm:$0xf] }
  0x4d   : > { %v348_v20 = vld [vmem:[%s2990_s28 + $0x2a0] sm:$0xf]  ;;  %v350_v21 = vld [vmem:[%s2990_s28 + $0x2a8] sm:$0xf]  ;;  %347 = vst [vmem:[%s2997_s29 + $0x14c] sm:$0xf] %v346_v19 }
  0x4e   : > { %349 = vst [vmem:[%s2997_s29 + $0x150] sm:$0xf] %v348_v20  ;;  %351 = vst [vmem:[%s2997_s29 + $0x154] sm:$0xf] %v350_v21  ;;  %v352_v22 = vld [vmem:[%s2990_s28 + $0x2b0] sm:$0xf] }
  0x4f   : > { %v354_v23 = vld [vmem:[%s2990_s28 + $0x2b8] sm:$0xf]  ;;  %v356_v24 = vld [vmem:[%s2990_s28 + $0x2c0] sm:$0xf]  ;;  %353 = vst [vmem:[%s2997_s29 + $0x158] sm:$0xf] %v352_v22 }
  0x50   : > { %355 = vst [vmem:[%s2997_s29 + $0x15c] sm:$0xf] %v354_v23  ;;  %357 = vst [vmem:[%s2997_s29 + $0x160] sm:$0xf] %v356_v24  ;;  %v358_v25 = vld [vmem:[%s2990_s28 + $0x2c8] sm:$0xf] }
  0x51   : > { %v360_v26 = vld [vmem:[%s2990_s28 + $0x2d0] sm:$0xf]  ;;  %v362_v27 = vld [vmem:[%s2990_s28 + $0x2d8] sm:$0xf]  ;;  %359 = vst [vmem:[%s2997_s29 + $0x164] sm:$0xf] %v358_v25 }
  0x52   : > { %361 = vst [vmem:[%s2997_s29 + $0x168] sm:$0xf] %v360_v26  ;;  %363 = vst [vmem:[%s2997_s29 + $0x16c] sm:$0xf] %v362_v27  ;;  %v364_v28 = vld [vmem:[%s2990_s28 + $0x2e0] sm:$0xf] }
  0x53   : > { %v366_v29 = vld [vmem:[%s2990_s28 + $0x2e8] sm:$0xf]  ;;  %v368_v30 = vld [vmem:[%s2990_s28 + $0x2f0] sm:$0xf]  ;;  %365 = vst [vmem:[%s2997_s29 + $0x170] sm:$0xf] %v364_v28 }
  0x54   : > { %367 = vst [vmem:[%s2997_s29 + $0x174] sm:$0xf] %v366_v29  ;;  %369 = vst [vmem:[%s2997_s29 + $0x178] sm:$0xf] %v368_v30  ;;  %v370_v31 = vld [vmem:[%s2990_s28 + $0x2f8] sm:$0xf] }
  0x55   : > { %v372_v32 = vld [vmem:[%s2990_s28 + $0x300] sm:$0xf]  ;;  %v374_v33 = vld [vmem:[%s2990_s28 + $0x308] sm:$0xf]  ;;  %371 = vst [vmem:[%s2997_s29 + $0x17c] sm:$0xf] %v370_v31 }
  0x56   : > { %373 = vst [vmem:[%s2997_s29 + $0x180] sm:$0xf] %v372_v32  ;;  %375 = vst [vmem:[%s2997_s29 + $0x184] sm:$0xf] %v374_v33  ;;  %v376_v34 = vld [vmem:[%s2990_s28 + $0x310] sm:$0xf] }
  0x57   : > { %v378_v35 = vld [vmem:[%s2990_s28 + $0x318] sm:$0xf]  ;;  %v380_v36 = vld [vmem:[%s2990_s28 + $0x320] sm:$0xf]  ;;  %377 = vst [vmem:[%s2997_s29 + $0x188] sm:$0xf] %v376_v34 }
  0x58   : > { %379 = vst [vmem:[%s2997_s29 + $0x18c] sm:$0xf] %v378_v35  ;;  %381 = vst [vmem:[%s2997_s29 + $0x190] sm:$0xf] %v380_v36  ;;  %v382_v37 = vld [vmem:[%s2990_s28 + $0x328] sm:$0xf] }
  0x59   : > { %v384_v38 = vld [vmem:[%s2990_s28 + $0x330] sm:$0xf]  ;;  %v386_v39 = vld [vmem:[%s2990_s28 + $0x338] sm:$0xf]  ;;  %383 = vst [vmem:[%s2997_s29 + $0x194] sm:$0xf] %v382_v37 }
  0x5a   : > { %385 = vst [vmem:[%s2997_s29 + $0x198] sm:$0xf] %v384_v38  ;;  %387 = vst [vmem:[%s2997_s29 + $0x19c] sm:$0xf] %v386_v39  ;;  %v388_v40 = vld [vmem:[%s2990_s28 + $0x340] sm:$0xf] }
  0x5b   : > { %v390_v41 = vld [vmem:[%s2990_s28 + $0x348] sm:$0xf]  ;;  %v392_v42 = vld [vmem:[%s2990_s28 + $0x350] sm:$0xf]  ;;  %389 = vst [vmem:[%s2997_s29 + $0x1a0] sm:$0xf] %v388_v40 }
  0x5c   : > { %391 = vst [vmem:[%s2997_s29 + $0x1a4] sm:$0xf] %v390_v41  ;;  %393 = vst [vmem:[%s2997_s29 + $0x1a8] sm:$0xf] %v392_v42  ;;  %v394_v43 = vld [vmem:[%s2990_s28 + $0x358] sm:$0xf] }
  0x5d   : > { %v396_v44 = vld [vmem:[%s2990_s28 + $0x360] sm:$0xf]  ;;  %v398_v45 = vld [vmem:[%s2990_s28 + $0x368] sm:$0xf]  ;;  %395 = vst [vmem:[%s2997_s29 + $0x1ac] sm:$0xf] %v394_v43 }
  0x5e   : > { %397 = vst [vmem:[%s2997_s29 + $0x1b0] sm:$0xf] %v396_v44  ;;  %399 = vst [vmem:[%s2997_s29 + $0x1b4] sm:$0xf] %v398_v45  ;;  %v400_v46 = vld [vmem:[%s2990_s28 + $0x370] sm:$0xf] }
  0x5f   : > { %v402_v47 = vld [vmem:[%s2990_s28 + $0x378] sm:$0xf]  ;;  %v404_v48 = vld [vmem:[%s2990_s28 + $0x380] sm:$0xf]  ;;  %401 = vst [vmem:[%s2997_s29 + $0x1b8] sm:$0xf] %v400_v46 }
  0x60   : > { %403 = vst [vmem:[%s2997_s29 + $0x1bc] sm:$0xf] %v402_v47  ;;  %405 = vst [vmem:[%s2997_s29 + $0x1c0] sm:$0xf] %v404_v48  ;;  %v406_v49 = vld [vmem:[%s2990_s28 + $0x388] sm:$0xf] }
  0x61   : > { %v408_v50 = vld [vmem:[%s2990_s28 + $0x390] sm:$0xf]  ;;  %v410_v51 = vld [vmem:[%s2990_s28 + $0x398] sm:$0xf]  ;;  %407 = vst [vmem:[%s2997_s29 + $0x1c4] sm:$0xf] %v406_v49 }
  0x62   : > { %409 = vst [vmem:[%s2997_s29 + $0x1c8] sm:$0xf] %v408_v50  ;;  %411 = vst [vmem:[%s2997_s29 + $0x1cc] sm:$0xf] %v410_v51  ;;  %v412_v52 = vld [vmem:[%s2990_s28 + $0x3a0] sm:$0xf] }
  0x63   : > { %v414_v53 = vld [vmem:[%s2990_s28 + $0x3a8] sm:$0xf]  ;;  %v416_v54 = vld [vmem:[%s2990_s28 + $0x3b0] sm:$0xf]  ;;  %413 = vst [vmem:[%s2997_s29 + $0x1d0] sm:$0xf] %v412_v52 }
  0x64   : > { %415 = vst [vmem:[%s2997_s29 + $0x1d4] sm:$0xf] %v414_v53  ;;  %417 = vst [vmem:[%s2997_s29 + $0x1d8] sm:$0xf] %v416_v54  ;;  %v418_v55 = vld [vmem:[%s2990_s28 + $0x3b8] sm:$0xf] }
  0x65   : > { %v420_v56 = vld [vmem:[%s2990_s28 + $0x3c0] sm:$0xf]  ;;  %v422_v57 = vld [vmem:[%s2990_s28 + $0x3c8] sm:$0xf]  ;;  %419 = vst [vmem:[%s2997_s29 + $0x1dc] sm:$0xf] %v418_v55 }
  0x66   : > { %421 = vst [vmem:[%s2997_s29 + $0x1e0] sm:$0xf] %v420_v56  ;;  %423 = vst [vmem:[%s2997_s29 + $0x1e4] sm:$0xf] %v422_v57  ;;  %v424_v58 = vld [vmem:[%s2990_s28 + $0x3d0] sm:$0xf] }
  0x67   : > { %v426_v59 = vld [vmem:[%s2990_s28 + $0x3d8] sm:$0xf]  ;;  %v428_v60 = vld [vmem:[%s2990_s28 + $0x3e0] sm:$0xf]  ;;  %425 = vst [vmem:[%s2997_s29 + $0x1e8] sm:$0xf] %v424_v58 }
  0x68   : > { %427 = vst [vmem:[%s2997_s29 + $0x1ec] sm:$0xf] %v426_v59  ;;  %429 = vst [vmem:[%s2997_s29 + $0x1f0] sm:$0xf] %v428_v60  ;;  %v430_v61 = vld [vmem:[%s2990_s28 + $0x3e8] sm:$0xf] }
  0x69   : > { %v432_v62 = vld [vmem:[%s2990_s28 + $0x3f0] sm:$0xf]  ;;  %v434_v63 = vld [vmem:[%s2990_s28 + $0x3f8] sm:$0xf]  ;;  %431 = vst [vmem:[%s2997_s29 + $0x1f4] sm:$0xf] %v430_v61 }
  0x6a   : > { %433 = vst [vmem:[%s2997_s29 + $0x1f8] sm:$0xf] %v432_v62  ;;  %435 = vst [vmem:[%s2997_s29 + $0x1fc] sm:$0xf] %v434_v63  ;;  %v436_v0 = vld [vmem:[%s2990_s28 + $0x400] sm:$0xf] }
  0x6b   : > { %v438_v1 = vld [vmem:[%s2990_s28 + $0x408] sm:$0xf]  ;;  %v440_v2 = vld [vmem:[%s2990_s28 + $0x410] sm:$0xf]  ;;  %437 = vst [vmem:[%s2997_s29 + $0x200] sm:$0xf] %v436_v0 }
  0x6c   : > { %439 = vst [vmem:[%s2997_s29 + $0x204] sm:$0xf] %v438_v1  ;;  %441 = vst [vmem:[%s2997_s29 + $0x208] sm:$0xf] %v440_v2  ;;  %v442_v3 = vld [vmem:[%s2990_s28 + $0x418] sm:$0xf] }
  0x6d   : > { %v444_v4 = vld [vmem:[%s2990_s28 + $0x420] sm:$0xf]  ;;  %v446_v5 = vld [vmem:[%s2990_s28 + $0x428] sm:$0xf]  ;;  %443 = vst [vmem:[%s2997_s29 + $0x20c] sm:$0xf] %v442_v3 }
  0x6e   : > { %445 = vst [vmem:[%s2997_s29 + $0x210] sm:$0xf] %v444_v4  ;;  %447 = vst [vmem:[%s2997_s29 + $0x214] sm:$0xf] %v446_v5  ;;  %v448_v6 = vld [vmem:[%s2990_s28 + $0x430] sm:$0xf] }
  0x6f   : > { %v450_v7 = vld [vmem:[%s2990_s28 + $0x438] sm:$0xf]  ;;  %v452_v8 = vld [vmem:[%s2990_s28 + $0x440] sm:$0xf]  ;;  %449 = vst [vmem:[%s2997_s29 + $0x218] sm:$0xf] %v448_v6 }
  0x70   : > { %451 = vst [vmem:[%s2997_s29 + $0x21c] sm:$0xf] %v450_v7  ;;  %453 = vst [vmem:[%s2997_s29 + $0x220] sm:$0xf] %v452_v8  ;;  %v454_v9 = vld [vmem:[%s2990_s28 + $0x448] sm:$0xf] }
  0x71   : > { %v456_v10 = vld [vmem:[%s2990_s28 + $0x450] sm:$0xf]  ;;  %v458_v11 = vld [vmem:[%s2990_s28 + $0x458] sm:$0xf]  ;;  %455 = vst [vmem:[%s2997_s29 + $0x224] sm:$0xf] %v454_v9 }
  0x72   : > { %457 = vst [vmem:[%s2997_s29 + $0x228] sm:$0xf] %v456_v10  ;;  %459 = vst [vmem:[%s2997_s29 + $0x22c] sm:$0xf] %v458_v11  ;;  %v460_v12 = vld [vmem:[%s2990_s28 + $0x460] sm:$0xf] }
  0x73   : > { %v462_v13 = vld [vmem:[%s2990_s28 + $0x468] sm:$0xf]  ;;  %v464_v14 = vld [vmem:[%s2990_s28 + $0x470] sm:$0xf]  ;;  %461 = vst [vmem:[%s2997_s29 + $0x230] sm:$0xf] %v460_v12 }
  0x74   : > { %463 = vst [vmem:[%s2997_s29 + $0x234] sm:$0xf] %v462_v13  ;;  %465 = vst [vmem:[%s2997_s29 + $0x238] sm:$0xf] %v464_v14  ;;  %v466_v15 = vld [vmem:[%s2990_s28 + $0x478] sm:$0xf] }
  0x75   : > { %467 = vst [vmem:[%s2997_s29 + $0x23c] sm:$0xf] %v466_v15 }
  0x76 PF: > { %p2290_p8 = scmp.ge.s32.totalorder %s2918_s16, 1  ;;  %p783_p9 = scmp.lt.s32.totalorder %s2918_s16, 3 }
  0x78   : > { %p784_p10 = pnand %p2290_p8, %p783_p9 }
  0x79   : > { %s790_s30 = sand.u32 (!%p784_p10), 1, %s2902_s12   ;;  %v2781_v16 = vld [vmem:[%s3605_s0 + $0x4] ss:$36 sps:$4 sm:$0xff] (!%p784_p10)   ;;  %v2784_v17 = vld [vmem:[%s3605_s0 + $0xc] ss:$36 sps:$4 sm:$0xff] (!%p784_p10)   ;;  %vm2921_vm0 = vmmov (!%p784_p10), 0  }
  0x7a   : > { %787 = sbr.rel (%p784_p10) target bundleno = 486 (0x1e6), region = 69  ;;  %1709 = vmatprep.mubr.bf16.mxu0 (!%p784_p10), %v2781_v16  ;;  %1781 = vmatprep.mubr.bf16.mxu1 (!%p784_p10), %v2784_v17  ;;  %v2779_v48 = vld [vmem:[%s3605_s0] ss:$36 sps:$4 sm:$0xff] (!%p784_p10)   ;;  %v2782_v50 = vld [vmem:[%s3605_s0 + $0x8] ss:$36 sps:$4 sm:$0xff] (!%p784_p10)   ;;  %p828_p11 = scmp.lt.s32.totalorder (!%p784_p10), %s2910_s14, 1 }
  0x7b   : > { %s2703_s4 = smul.u32 (!%p784_p10), 576, %s790_s30  ;;  %v2789_v52 = vld [vmem:[%s3605_s0 + $0x4c] ss:$36 sps:$4 sm:$0xff] (!%p784_p10)   ;;  %v2791_v57 = vld [vmem:[%s3605_s0 + $0x54] ss:$36 sps:$4 sm:$0xff] (!%p784_p10)  }
  0x7c   : > { %v2793_v58 = vld [vmem:[%s3605_s0 + $0x48] ss:$36 sps:$4 sm:$0xff] (!%p784_p10)   ;;  %v2794_v59 = vld [vmem:[%s3605_s0 + $0x50] ss:$36 sps:$4 sm:$0xff] (!%p784_p10)   ;;  %v2803_v3 = vld [vmem:[%s3605_s0 + $0x9c] ss:$36 sps:$4 sm:$0xff] (!%p784_p10)  }
  0x7d   : > { %s3293_s9 = scalar_lea.vmem (!%p784_p10), [#allocation2], %s2703_s4  ;;  %v2801_v2 = vld [vmem:[%s3605_s0 + $0x94] ss:$36 sps:$4 sm:$0xff] (!%p784_p10)   ;;  %v2815_v14 = vld [vmem:[%s3605_s0 + $0xdc] ss:$36 sps:$4 sm:$0xff] (!%p784_p10)   ;;  %s2704_s5 = smul.u32 (!%p784_p10), 36, %s790_s30 }
  0x7e   : > { %v2747_v18 = vld [vmem:[%s3293_s9 + $0x40] sm:$0xff] (!%p784_p10)   ;;  %v2751_v22 = vld [vmem:[%s3293_s9 + $0x48] sm:$0xff] (!%p784_p10)   ;;  %v2755_v26 = vld [vmem:[%s3293_s9 + $0x50] sm:$0xff] (!%p784_p10)  }
  0x7f   : > { %v2748_v19 = vld [vmem:[%s3293_s9 + $0xc0] sm:$0xff] (!%p784_p10)   ;;  %2453 = vmatprep.subr.bf16.mxu0 (!%p784_p10), %v2747_v18  ;;  %v2752_v23 = vld [vmem:[%s3293_s9 + $0xc8] sm:$0xff] (!%p784_p10)   ;;  %v2756_v27 = vld [vmem:[%s3293_s9 + $0xd0] sm:$0xff] (!%p784_p10)   ;;  %s3565_s12 = scalar_lea.vmem (!%p784_p10), [#allocation3], %s2704_s5 }
  0x80   : > { %v2749_v20 = vld [vmem:[%s3293_s9] sm:$0xff] (!%p784_p10)   ;;  %2499 = vmatprep.subr.bf16.mxu1 (!%p784_p10), %v2748_v19  ;;  %v2753_v24 = vld [vmem:[%s3293_s9 + $0x8] sm:$0xff] (!%p784_p10)   ;;  %v2757_v28 = vld [vmem:[%s3293_s9 + $0x10] sm:$0xff] (!%p784_p10)  }
  0x81   : > { %v2750_v21 = vld [vmem:[%s3293_s9 + $0x80] sm:$0xff]   ;;  %2454 = vmatpush3.bf16.msra.mxu0 %v2749_v20  ;;  %v2754_v25 = vld [vmem:[%s3293_s9 + $0x88] sm:$0xff]   ;;  %v2758_v29 = vld [vmem:[%s3293_s9 + $0x90] sm:$0xff]   ;;  %s829_s27 = scalar_select %p828_p11, %s2910_s14, 1 }
  0x82   : > { %2500 = vmatpush3.bf16.msra.mxu1 %v2750_v21  ;;  %2455 = vmatprep.subr.bf16.mxu0 %v2751_v22  ;;  %v2759_v30 = vld [vmem:[%s3293_s9 + $0x58] sm:$0xff]   ;;  %v2763_v34 = vld [vmem:[%s3293_s9 + $0x60] sm:$0xff]   ;;  %v2767_v38 = vld [vmem:[%s3293_s9 + $0x68] sm:$0xff]   ;;  %s2418_s30 = sshll.u32 (%p2977_p6), %s2910_s14, 2 }
  0x83   : > { %2501 = vmatprep.subr.bf16.mxu1 %v2752_v23  ;;  %v2760_v31 = vld [vmem:[%s3293_s9 + $0xd8] sm:$0xff]   ;;  %v2764_v35 = vld [vmem:[%s3293_s9 + $0xe0] sm:$0xff]   ;;  %v2768_v39 = vld [vmem:[%s3293_s9 + $0xe8] sm:$0xff]   ;;  %s830_s4 = scalar_lea.vmem %s3607_s2, %s829_s27  ;;  %s2121_s8 = scalar_lea.vmem (%p2977_p6), %s3608_s3, %s2418_s30 }
  0x84   : > { %v2761_v32 = vld [vmem:[%s3293_s9 + $0x18] sm:$0xff]   ;;  %v2765_v36 = vld [vmem:[%s3293_s9 + $0x20] sm:$0xff]   ;;  %v2769_v40 = vld [vmem:[%s3293_s9 + $0x28] sm:$0xff]  }
  0x85   : > { %2456 = vmatpush3.bf16.msra.mxu0 %v2753_v24  ;;  %v2762_v33 = vld [vmem:[%s3293_s9 + $0x98] sm:$0xff]   ;;  %v2766_v37 = vld [vmem:[%s3293_s9 + $0xa0] sm:$0xff]   ;;  %v2770_v41 = vld [vmem:[%s3293_s9 + $0xa8] sm:$0xff]  }
  0x86   : > { %2502 = vmatpush3.bf16.msra.mxu1 %v2754_v25  ;;  %2457 = vmatprep.subr.bf16.mxu0 %v2755_v26  ;;  %v2771_v42 = vld [vmem:[%s3293_s9 + $0x70] sm:$0xff]   ;;  %v2775_v46 = vld [vmem:[%s3293_s9 + $0x78] sm:$0xff]   ;;  %v2785_v53 = vld [vmem:[%s3293_s9 + $0x140] sm:$0xff]  }
  0x87   : > { %2503 = vmatprep.subr.bf16.mxu1 %v2756_v27  ;;  %v2772_v43 = vld [vmem:[%s3293_s9 + $0xf0] sm:$0xff]   ;;  %v2776_v47 = vld [vmem:[%s3293_s9 + $0xf8] sm:$0xff]   ;;  %v2786_v54 = vld [vmem:[%s3293_s9 + $0x100] sm:$0xff]  }
  0x88   : > { %v2773_v44 = vld [vmem:[%s3293_s9 + $0x30] sm:$0xff]   ;;  %v2777_v49 = vld [vmem:[%s3293_s9 + $0x38] sm:$0xff]   ;;  %v2787_v55 = vld [vmem:[%s3293_s9 + $0x148] sm:$0xff]  }
  0x89   : > { %2458 = vmatpush3.bf16.msra.mxu0 %v2757_v28  ;;  %v2774_v45 = vld [vmem:[%s3293_s9 + $0xb0] sm:$0xff]   ;;  %v2778_v51 = vld [vmem:[%s3293_s9 + $0xb8] sm:$0xff]   ;;  %v2788_v56 = vld [vmem:[%s3293_s9 + $0x108] sm:$0xff]  }
  0x8a   : > { %2504 = vmatpush3.bf16.msra.mxu1 %v2758_v29  ;;  %2459 = vmatprep.subr.bf16.mxu0 %v2759_v30  ;;  %v2795_v60 = vld [vmem:[%s3293_s9 + $0x1c0] sm:$0xff]   ;;  %v2797_v62 = vld [vmem:[%s3293_s9 + $0x150] sm:$0xff]   ;;  %v2799_v0 = vld [vmem:[%s3293_s9 + $0x1c8] sm:$0xff]  }
  0x8b   : > { %2505 = vmatprep.subr.bf16.mxu1 %v2760_v31  ;;  %v2796_v61 = vld [vmem:[%s3293_s9 + $0x180] sm:$0xff]   ;;  %v2798_v63 = vld [vmem:[%s3293_s9 + $0x110] sm:$0xff]   ;;  %v2800_v1 = vld [vmem:[%s3293_s9 + $0x188] sm:$0xff]  }
  0x8c   : > { %v2805_v4 = vld [vmem:[%s3293_s9 + $0x158] sm:$0xff]   ;;  %v2806_v5 = vld [vmem:[%s3605_s0 + $0x90] ss:$36 sps:$4 sm:$0xff]   ;;  %v2811_v10 = vld [vmem:[%s3293_s9 + $0x160] sm:$0xff]  }
  0x8d   : > { %2460 = vmatpush3.bf16.msra.mxu0 %v2761_v32  ;;  %v2807_v6 = vld [vmem:[%s3605_s0 + $0x98] ss:$36 sps:$4 sm:$0xff]   ;;  %v2809_v8 = vld [vmem:[%s3293_s9 + $0x1d0] sm:$0xff]   ;;  %v2813_v12 = vld [vmem:[%s3293_s9 + $0x120] sm:$0xff]  }
  0x8e   : > { %2506 = vmatpush3.bf16.msra.mxu1 %v2762_v33  ;;  %2461 = vmatprep.subr.bf16.mxu0 %v2763_v34  ;;  %v2808_v7 = vld [vmem:[%s3293_s9 + $0x118] sm:$0xff]   ;;  %v2810_v9 = vld [vmem:[%s3293_s9 + $0x190] sm:$0xff]   ;;  %v2817_v15 = vld [vmem:[%s3605_s0 + $0xe4] ss:$36 sps:$4 sm:$0xff]  }
  0x8f   : > { %2507 = vmatprep.subr.bf16.mxu1 %v2764_v35  ;;  %v2812_v11 = vld [vmem:[%s3293_s9 + $0x1d8] sm:$0xff]   ;;  %v2820_v17 = vld [vmem:[%s3605_s0 + $0xe0] ss:$36 sps:$4 sm:$0xff]   ;;  %v2822_v19 = vld [vmem:[%s3293_s9 + $0x168] sm:$0xff]  }
  0x90   : > { %v2814_v13 = vld [vmem:[%s3293_s9 + $0x198] sm:$0xff]   ;;  %v2821_v18 = vld [vmem:[%s3293_s9 + $0x1e0] sm:$0xff]   ;;  %v2824_v21 = vld [vmem:[%s3293_s9 + $0x128] sm:$0xff]  }
  0x91   : > { %2462 = vmatpush3.bf16.msra.mxu0 %v2765_v36  ;;  %v2819_v16 = vld [vmem:[%s3605_s0 + $0xd8] ss:$36 sps:$4 sm:$0xff]   ;;  %v2823_v20 = vld [vmem:[%s3293_s9 + $0x1a0] sm:$0xff]   ;;  %v2825_v22 = vld [vmem:[%s3293_s9 + $0x1e8] sm:$0xff]  }
  0x92   : > { %2508 = vmatpush3.bf16.msra.mxu1 %v2766_v37  ;;  %2463 = vmatprep.subr.bf16.mxu0 %v2767_v38  ;;  %v2826_v23 = vld [vmem:[%s3293_s9 + $0x1a8] sm:$0xff]   ;;  %v2827_v24 = vld [vmem:[%s3293_s9 + $0x170] sm:$0xff]   ;;  %v873_v25 = vld [vmem:[%s3605_s0 + $0x120] sm:$0xff] }
  0x93   : > { %2509 = vmatprep.subr.bf16.mxu1 %v2768_v39  ;;  %v2329_v26 = vcombine.high %v873_v25, %v873_v25  ;;  %v874_v27 = vld [vmem:[%s3605_s0 + $0x128] sm:$0xff]  ;;  %v2328_v28 = vcombine.low %v873_v25, %v873_v25  ;;  %v2830_v30 = vld [vmem:[%s3293_s9 + $0x130] sm:$0xff]   ;;  %v2835_v34 = vld [vmem:[%s3293_s9 + $0x178] sm:$0xff]  }
  0x94   : > { %v2331_v29 = vcombine.high %v874_v27, %v874_v27  ;;  %v2330_v31 = vcombine.low %v874_v27, %v874_v27  ;;  %v2833_v32 = vld [vmem:[%s3293_s9 + $0x1f0] sm:$0xff]   ;;  %v2836_v35 = vld [vmem:[%s3293_s9 + $0x138] sm:$0xff]  }
  0x95   : > { %2464 = vmatpush3.bf16.msra.mxu0 %v2769_v40  ;;  %v2834_v33 = vld [vmem:[%s3293_s9 + $0x1b0] sm:$0xff]   ;;  %v2837_v36 = vld [vmem:[%s3293_s9 + $0x1f8] sm:$0xff]   ;;  %v2920_v40 = vmov 0.0  }
  0x96   : > { %2510 = vmatpush3.bf16.msra.mxu1 %v2770_v41  ;;  %2465 = vmatprep.subr.bf16.mxu0 %v2771_v42  ;;  %v2838_v37 = vld [vmem:[%s3293_s9 + $0x1b8] sm:$0xff]   ;;  %v2839_v38 = vld [vmem:[%s3605_s0 + $0x10] ss:$36 sps:$4 sm:$0xff]  }
  0x97   : > { %2511 = vmatprep.subr.bf16.mxu1 %v2772_v43  ;;  %v2841_v39 = vld [vmem:[%s3605_s0 + $0x14] ss:$36 sps:$4 sm:$0xff]   ;;  %v2844_v42 = vld [vmem:[%s3605_s0 + $0x1c] ss:$36 sps:$4 sm:$0xff]  }
  0x98   : > { %v2842_v41 = vld [vmem:[%s3605_s0 + $0x18] ss:$36 sps:$4 sm:$0xff]   ;;  %v2845_v43 = vld [vmem:[%s3293_s9 + $0x200] sm:$0xff]  }
  0x99   : > { %2466 = vmatpush3.bf16.msra.mxu0 %v2773_v44  ;;  %v2846_v44 = vld [vmem:[%s3293_s9 + $0x208] sm:$0xff]  }
  0x9a   : > { %2512 = vmatpush3.bf16.msra.mxu1 %v2774_v45  ;;  %2467 = vmatprep.subr.bf16.mxu0 %v2775_v46  ;;  %v2847_v45 = vld [vmem:[%s3605_s0 + $0x5c] ss:$36 sps:$4 sm:$0xff]   ;;  %v2849_v46 = vld [vmem:[%s3605_s0 + $0x64] ss:$36 sps:$4 sm:$0xff]  }
  0x9b   : > { %2513 = vmatprep.subr.bf16.mxu1 %v2776_v47  ;;  %v2851_v47 = vld [vmem:[%s3605_s0 + $0x58] ss:$36 sps:$4 sm:$0xff]  }
  0x9d   : > { %2468 = vmatpush3.bf16.msra.mxu0 %v2777_v49  ;;  %v2853_v49 = vld [vmem:[%s3293_s9 + $0x210] sm:$0xff]  }
  0x9e   : > { %2514 = vmatpush3.bf16.msra.mxu1 %v2778_v51  ;;  %2545 = vmatprep.subr.bf16.mxu0 %v2785_v53  ;;  %v2856_v51 = vld [vmem:[%s3605_s0 + $0xac] ss:$36 sps:$4 sm:$0xff]   ;;  %v2858_v53 = vld [vmem:[%s3605_s0 + $0xa0] ss:$36 sps:$4 sm:$0xff]  }
  0x9f   : > { %2591 = vmatprep.subr.bf16.mxu1 %v2795_v60  ;;  %v876_v60 = vld [vmem:[%s3605_s0 + $0x138] sm:$0xff] }
  0xa0   : > { %1710 = vmatmul.mubr.bf16.vlgmr.msra.gmra.mrb[0].mxu0 %v2779_v48  ;;  %v2852_v48 = vld [vmem:[%s3605_s0 + $0x60] ss:$36 sps:$4 sm:$0xff]  }
  0xa1   : > { %1782 = vmatmul.mubr.bf16.vlgmr.msra.gmra.mrb[0].mxu1 %v2782_v50  ;;  %2546 = vmatpush3.bf16.msra.mxu0 %v2786_v54  ;;  %v2854_v50 = vld [vmem:[%s3605_s0 + $0xa4] ss:$36 sps:$4 sm:$0xff]  }
  0xa2   : > { %2547 = vmatprep.subr.bf16.mxu0 %v2787_v55  ;;  %1717 = vmatprep.mubr.bf16.mxu0 %v2789_v52  ;;  %v2860_v52 = vld [vmem:[%s3293_s9 + $0x218] sm:$0xff]   ;;  %v2859_v54 = vld [vmem:[%s3605_s0 + $0xa8] ss:$36 sps:$4 sm:$0xff]   ;;  %v2861_v55 = vld [vmem:[%s3293_s9 + $0x220] sm:$0xff]  }
  0xa3   : > { %1789 = vmatprep.mubr.bf16.mxu1 %v2791_v57  ;;  %2592 = vmatpush3.bf16.msra.mxu1 %v2796_v61  ;;  %v2864_v57 = vld [vmem:[%s3605_s0 + $0xf4] ss:$36 sps:$4 sm:$0xff]   ;;  %v2866_v61 = vld [vmem:[%s3605_s0 + $0xe8] ss:$36 sps:$4 sm:$0xff]  }
  0xa4   : > { %2593 = vmatprep.subr.bf16.mxu1 %v2799_v0  ;;  %v2335_v0 = vcombine.high %v876_v60, %v876_v60 }
  0xa5   : > { %2548 = vmatpush3.bf16.msra.mxu0 %v2788_v56  ;;  %v2862_v56 = vld [vmem:[%s3605_s0 + $0xec] ss:$36 sps:$4 sm:$0xff]  }
  0xa6   : > { %2549 = vmatprep.subr.bf16.mxu0 %v2797_v62  ;;  %v2867_v62 = vld [vmem:[%s3605_s0 + $0xf0] ss:$36 sps:$4 sm:$0xff]  }
  0xa7   : > { %2594 = vmatpush3.bf16.msra.mxu1 %v2800_v1  ;;  %v2871_v1 = vld [vmem:[%s3293_s9 + $0x230] sm:$0xff]  }
  0xa8   : > { %1718 = vmatmul.mubr.bf16.gmra.mrb[4].mxu0 %v2793_v58  ;;  %2595 = vmatprep.subr.bf16.mxu1 %v2809_v8  ;;  %v2868_v58 = vld [vmem:[%s3293_s9 + $0x228] sm:$0xff]   ;;  %v2878_v8 = vld [vmem:[%s3605_s0 + $0x140] ss:$0 sps:$4 sm:$0xff]  }
  0xa9   : > { %1790 = vmatmul.mubr.bf16.gmra.mrb[4].mxu1 %v2794_v59  ;;  %2550 = vmatpush3.bf16.msra.mxu0 %v2798_v63  ;;  %v875_v59 = vld [vmem:[%s3605_s0 + $0x130] sm:$0xff] }
  0xaa   : > { %1725 = vmatprep.mubr.bf16.mxu0 %v2801_v2  ;;  %1797 = vmatprep.mubr.bf16.mxu1 %v2803_v3  ;;  %v2333_v63 = vcombine.high %v875_v59, %v875_v59  ;;  %v2874_v2 = vld [vmem:[%s3293_s9 + $0x238] sm:$0xff]   ;;  %v2332_v3 = vcombine.low %v875_v59, %v875_v59 }
  0xab   : > { %2551 = vmatprep.subr.bf16.mxu0 %v2805_v4  ;;  %2596 = vmatpush3.bf16.msra.mxu1 %v2810_v9  ;;  %v2334_v4 = vcombine.low %v876_v60, %v876_v60  ;;  %v2879_v9 = vld [vmem:[%s3605_s0 + $0xb0] ss:$36 sps:$4 sm:$0xff]  }
  0xac   : > { %2597 = vmatprep.subr.bf16.mxu1 %v2812_v11  ;;  %v3510_v11 = vld [vmem:[%s830_s4] ss:$0 sm:$0xff] }
  0xad   : > { %2552 = vmatpush3.bf16.msra.mxu0 %v2808_v7  ;;  %v2877_v7 = vld [vmem:[%s3605_s0 + $0x68] ss:$36 sps:$4 sm:$0xff]  }
  0xae   : > { %2553 = vmatprep.subr.bf16.mxu0 %v2811_v10 }
  0xaf   : > { %2598 = vmatpush3.bf16.msra.mxu1 %v2814_v13 }
  0xb0   : > { %1726 = vmatmul.mubr.bf16.gmra.mrb[8].mxu0 %v2806_v5  ;;  %2599 = vmatprep.subr.bf16.mxu1 %v2821_v18  ;;  %v2875_v5 = vld [vmem:[%s3605_s0 + $0x20] ss:$36 sps:$4 sm:$0xff]  }
  0xb1   : > { %1798 = vmatmul.mubr.bf16.gmra.mrb[8].mxu1 %v2807_v6  ;;  %2554 = vmatpush3.bf16.msra.mxu0 %v2813_v12  ;;  %v2876_v6 = vld [vmem:[%s3605_s0 + $0xf8] ss:$36 sps:$4 sm:$0xff]  }
  0xb2   : > { %1733 = vmatprep.mubr.bf16.mxu0 %v2815_v14  ;;  %1805 = vmatprep.mubr.bf16.mxu1 %v2817_v15 }
  0xb3   : > { %2555 = vmatprep.subr.bf16.mxu0 %v2822_v19  ;;  %2600 = vmatpush3.bf16.msra.mxu1 %v2823_v20 }
  0xb4   : > { %2601 = vmatprep.subr.bf16.mxu1 %v2825_v22 }
  0xb5   : > { %2556 = vmatpush3.bf16.msra.mxu0 %v2824_v21 }
  0xb6   : > { %2557 = vmatprep.subr.bf16.mxu0 %v2827_v24 }
  0xb7   : > { %2602 = vmatpush3.bf16.msra.mxu1 %v2826_v23 }
  0xb8   : > { %1734 = vmatmul.mubr.bf16.gmra.mrb[12].mxu0 %v2819_v16  ;;  %2603 = vmatprep.subr.bf16.mxu1 %v2833_v32 }
  0xb9   : > { %1806 = vmatmul.mubr.bf16.gmra.mrb[12].mxu1 %v2820_v17  ;;  %1741 = vmatprep.mubr.bf16.mxu0 %v2329_v26 }
  0xba   : > { %1813 = vmatprep.mubr.bf16.mxu1 %v2331_v29  ;;  %2558 = vmatpush3.bf16.msra.mxu0 %v2830_v30 }
  0xbb   : > { %2604 = vmatpush3.bf16.msra.mxu1 %v2834_v33  ;;  %2559 = vmatprep.subr.bf16.mxu0 %v2835_v34 }
  0xbc   : > { %2605 = vmatprep.subr.bf16.mxu1 %v2837_v36 }
  0xbe   : > { %2560 = vmatpush3.bf16.msra.mxu0 %v2836_v35 }
  0xbf   : > { %2650 = vmatprep.subr.bf16.mxu0 %v2920_v40  ;;  %2606 = vmatpush3.bf16.msra.mxu1 %v2838_v37 }
  0xc0   : > { %1742 = vmatmul.mubr.bf16.gmra.mrb[16].mxu0 %v2328_v28  ;;  %2686 = vmatprep.subr.bf16.mxu1 %v2920_v40 }
  0xc1   : > { %1814 = vmatmul.mubr.bf16.gmra.mrb[16].mxu1 %v2330_v31  ;;  %1853 = vmatprep.mubr.bf16.mxu0 %v2841_v39 }
  0xc2   : > { %1925 = vmatprep.mubr.bf16.mxu1 %v2844_v42 }
  0xc8   : > { %1854 = vmatmul.mubr.bf16.vlgmr.msra.gmra.mrb[20].mxu0 %v2839_v38 }
  0xc9   : > { %1926 = vmatmul.mubr.bf16.vlgmr.msra.gmra.mrb[20].mxu1 %v2842_v41  ;;  %2651 = vmatpush3.bf16.msra.mxu0 %v2845_v43 }
  0xca   : > { %2652 = vmatprep.subr.bf16.mxu0 %v2920_v40  ;;  %1861 = vmatprep.mubr.bf16.mxu0 %v2847_v45 }
  0xcb   : > { %1933 = vmatprep.mubr.bf16.mxu1 %v2849_v46  ;;  %2694 = vmatpush3.bf16.msra.mxu1 %v2845_v43 }
  0xcc   : > { %2687 = vmatprep.subr.bf16.mxu1 %v2920_v40 }
  0xcd   : > { %2653 = vmatpush3.bf16.msra.mxu0 %v2846_v44 }
  0xce   : > { %2654 = vmatprep.subr.bf16.mxu0 %v2920_v40 }
  0xcf   : > { %2695 = vmatpush3.bf16.msra.mxu1 %v2846_v44 }
  0xd0   : > { %1862 = vmatmul.mubr.bf16.gmra.mrb[24].mxu0 %v2851_v47  ;;  %2688 = vmatprep.subr.bf16.mxu1 %v2920_v40 }
  0xd1   : > { %1934 = vmatmul.mubr.bf16.gmra.mrb[24].mxu1 %v2852_v48  ;;  %2655 = vmatpush3.bf16.msra.mxu0 %v2853_v49 }
  0xd2   : > { %1869 = vmatprep.mubr.bf16.mxu0 %v2854_v50  ;;  %1941 = vmatprep.mubr.bf16.mxu1 %v2856_v51 }
  0xd3   : > { %2656 = vmatprep.subr.bf16.mxu0 %v2920_v40  ;;  %2696 = vmatpush3.bf16.msra.mxu1 %v2853_v49 }
  0xd4   : > { %2689 = vmatprep.subr.bf16.mxu1 %v2920_v40 }
  0xd5   : > { %2657 = vmatpush3.bf16.msra.mxu0 %v2860_v52 }
  0xd6   : > { %2658 = vmatprep.subr.bf16.mxu0 %v2920_v40 }
  0xd7   : > { %2697 = vmatpush3.bf16.msra.mxu1 %v2860_v52 }
  0xd8   : > { %1870 = vmatmul.mubr.bf16.gmra.mrb[28].mxu0 %v2858_v53  ;;  %2690 = vmatprep.subr.bf16.mxu1 %v2920_v40 }
  0xd9   : > { %1942 = vmatmul.mubr.bf16.gmra.mrb[28].mxu1 %v2859_v54  ;;  %2659 = vmatpush3.bf16.msra.mxu0 %v2861_v55 }
  0xda   : > { %1877 = vmatprep.mubr.bf16.mxu0 %v2862_v56  ;;  %1949 = vmatprep.mubr.bf16.mxu1 %v2864_v57 }
  0xdb   : > { %2698 = vmatpush3.bf16.msra.mxu1 %v2861_v55  ;;  %2660 = vmatprep.subr.bf16.mxu0 %v2920_v40 }
  0xdc   : > { %2691 = vmatprep.subr.bf16.mxu1 %v2920_v40 }
  0xdd   : > { %2661 = vmatpush3.bf16.msra.mxu0 %v2868_v58 }
  0xde   : > { %2662 = vmatprep.subr.bf16.mxu0 %v2920_v40 }
  0xdf   : > { %2699 = vmatpush3.bf16.msra.mxu1 %v2868_v58 }
  0xe0   : > { %1878 = vmatmul.mubr.bf16.gmra.mrb[32].mxu0 %v2866_v61  ;;  %2692 = vmatprep.subr.bf16.mxu1 %v2920_v40 }
  0xe1   : > { %1950 = vmatmul.mubr.bf16.gmra.mrb[32].mxu1 %v2867_v62  ;;  %1885 = vmatprep.mubr.bf16.mxu0 %v2333_v63 }
  0xe2   : > { %1957 = vmatprep.mubr.bf16.mxu1 %v2335_v0  ;;  %2663 = vmatpush3.bf16.msra.mxu0 %v2871_v1 }
  0xe3   : > { %2700 = vmatpush3.bf16.msra.mxu1 %v2871_v1  ;;  %2664 = vmatprep.subr.bf16.mxu0 %v2920_v40 }
  0xe4   : > { %2693 = vmatprep.subr.bf16.mxu1 %v2920_v40 }
  0xe6   : > { %2665 = vmatpush3.bf16.msra.mxu0 %v2874_v2 }
  0xe7   : > { %2701 = vmatpush3.bf16.msra.mxu1 %v2874_v2 }
  0xe8   : > { %1886 = vmatmul.mubr.bf16.gmra.mrb[36].mxu0 %v2332_v3 }
  0xe9   : > { %1958 = vmatmul.mubr.bf16.gmra.mrb[36].mxu1 %v2334_v4  ;;  %2666 = vmatprep.mubr.msk.bf16.mxu0 %vm2921_vm0, %v2920_v40 }
  0xea   : > { %2678 = vmatprep.mubr.msk.bf16.mxu1 %vm2921_vm0, %v2920_v40 }
  0xf0   : > { %2667 = vmatmul.mubr.bf16.vlgmr.msra.gmra.mrb[40].mxu0 %v2875_v5 }
  0xf1   : > { %2679 = vmatmul.mubr.bf16.vlgmr.msra.gmra.mrb[40].mxu1 %v2876_v6  ;;  %2670 = vmatprep.mubr.msk.bf16.mxu0 %vm2921_vm0, %v2920_v40 }
  0xf2   : > { %2682 = vmatprep.mubr.msk.bf16.mxu1 %vm2921_vm0, %v2920_v40 }
  0xf8   : > { %2671 = vmatmul.mubr.bf16.gmra.mrb[44].mxu0 %v2877_v7 }
  0xf9   : > { %2683 = vmatmul.mubr.bf16.gmra.mrb[44].mxu1 %v2878_v8  ;;  %2674 = vmatprep.mubr.msk.bf16.mxu0 %vm2921_vm0, %v2920_v40 }
 0x100   : > { %2675 = vmatmul.mubr.bf16.gmra.mrb[48].mxu0 %v2879_v9 }
 0x173   : > { %v2469_v10 = vpop.f32.mrb[0].mxu0 }
 0x174   : > { %v2470_v12 = vpop.f32.mrb[1].mxu0  ;;  %v2515_v13 = vpop.f32.mrb[0].mxu1 }
 0x175   : > { %v2471_v14 = vadd.f32 %v2470_v12, %v2469_v10  ;;  %v2472_v15 = vpop.f32.mrb[2].mxu0  ;;  %v2516_v16 = vpop.f32.mrb[1].mxu1 }
 0x176   : > { %v2473_v17 = vpop.f32.mrb[3].mxu0  ;;  %v2517_v18 = vadd.f32 %v2516_v16, %v2515_v13  ;;  %v2518_v19 = vpop.f32.mrb[2].mxu1 }
 0x177   : > { %v1712_v20 = vadd.f32 %v2471_v14, %v3510_v11  ;;  %v2474_v21 = vadd.f32 %v2473_v17, %v2472_v15  ;;  %v2519_v22 = vpop.f32.mrb[3].mxu1 }
 0x178   : > { %v2520_v23 = vadd.f32 %v2519_v22, %v2518_v19 }
 0x179   : > { %v1715_v24 = vadd.f32 %v2474_v21, %v3510_v11  ;;  %v3514_v25 = vadd.f32 %v2517_v18, %v1712_v20 }
 0x17b   : > { %v3516_v26 = vadd.f32 %v2520_v23, %v1715_v24  ;;  %v2475_v27 = vpop.f32.mrb[4].mxu0 }
 0x17c   : > { %v2476_v28 = vpop.f32.mrb[5].mxu0  ;;  %v2521_v29 = vpop.f32.mrb[4].mxu1 }
 0x17d   : > { %v2477_v30 = vadd.f32 %v2476_v28, %v2475_v27  ;;  %v2478_v31 = vpop.f32.mrb[6].mxu0  ;;  %v2522_v32 = vpop.f32.mrb[5].mxu1 }
 0x17e   : > { %v2479_v33 = vpop.f32.mrb[7].mxu0  ;;  %v2523_v34 = vadd.f32 %v2522_v32, %v2521_v29  ;;  %v2524_v35 = vpop.f32.mrb[6].mxu1 }
 0x17f   : > { %v1720_v36 = vadd.f32 %v2477_v30, %v3510_v11  ;;  %v2480_v37 = vadd.f32 %v2479_v33, %v2478_v31  ;;  %v2525_v38 = vpop.f32.mrb[7].mxu1 }
 0x180   : > { %v2526_v39 = vadd.f32 %v2525_v38, %v2524_v35 }
 0x181   : > { %v1723_v40 = vadd.f32 %v2480_v37, %v3510_v11  ;;  %v3520_v41 = vadd.f32 %v2523_v34, %v1720_v36 }
 0x183   : > { %v3522_v42 = vadd.f32 %v2526_v39, %v1723_v40  ;;  %v2481_v43 = vpop.f32.mrb[8].mxu0 }
 0x184   : > { %v2482_v44 = vpop.f32.mrb[9].mxu0  ;;  %v2527_v45 = vpop.f32.mrb[8].mxu1 }
 0x185   : > { %v2483_v46 = vadd.f32 %v2482_v44, %v2481_v43  ;;  %v2484_v47 = vpop.f32.mrb[10].mxu0  ;;  %v2528_v48 = vpop.f32.mrb[9].mxu1 }
 0x186   : > { %v2485_v49 = vpop.f32.mrb[11].mxu0  ;;  %v2529_v50 = vadd.f32 %v2528_v48, %v2527_v45  ;;  %v2530_v51 = vpop.f32.mrb[10].mxu1 }
 0x187   : > { %v1728_v52 = vadd.f32 %v2483_v46, %v3510_v11  ;;  %v2486_v53 = vadd.f32 %v2485_v49, %v2484_v47  ;;  %v2531_v54 = vpop.f32.mrb[11].mxu1 }
 0x188   : > { %v2532_v55 = vadd.f32 %v2531_v54, %v2530_v51 }
 0x189   : > { %v1731_v56 = vadd.f32 %v2486_v53, %v3510_v11  ;;  %v3526_v57 = vadd.f32 %v2529_v50, %v1728_v52 }
 0x18b   : > { %v3528_v58 = vadd.f32 %v2532_v55, %v1731_v56  ;;  %v2487_v59 = vpop.f32.mrb[12].mxu0 }
 0x18c   : > { %v2488_v60 = vpop.f32.mrb[13].mxu0  ;;  %v2533_v61 = vpop.f32.mrb[12].mxu1 }
 0x18d   : > { %v2489_v62 = vadd.f32 %v2488_v60, %v2487_v59  ;;  %v2490_v63 = vpop.f32.mrb[14].mxu0  ;;  %v2534_v0 = vpop.f32.mrb[13].mxu1 }
 0x18e   : > { %v2491_v1 = vpop.f32.mrb[15].mxu0  ;;  %v2535_v2 = vadd.f32 %v2534_v0, %v2533_v61  ;;  %v2536_v3 = vpop.f32.mrb[14].mxu1 }
 0x18f   : > { %v1736_v4 = vadd.f32 %v2489_v62, %v3510_v11  ;;  %v2492_v5 = vadd.f32 %v2491_v1, %v2490_v63  ;;  %v2537_v6 = vpop.f32.mrb[15].mxu1 }
 0x190   : > { %v2538_v7 = vadd.f32 %v2537_v6, %v2536_v3 }
 0x191   : > { %v1739_v8 = vadd.f32 %v2492_v5, %v3510_v11  ;;  %v3532_v9 = vadd.f32 %v2535_v2, %v1736_v4 }
 0x193   : > { %v3534_v10 = vadd.f32 %v2538_v7, %v1739_v8  ;;  %v2493_v12 = vpop.f32.mrb[16].mxu0 }
 0x194   : > { %v2539_v13 = vpop.f32.mrb[16].mxu1  ;;  %v2494_v14 = vpop.f32.mrb[17].mxu0 }
 0x195   : > { %v2540_v15 = vpop.f32.mrb[17].mxu1  ;;  %v2495_v16 = vadd.f32 %v2494_v14, %v2493_v12  ;;  %v2496_v17 = vpop.f32.mrb[18].mxu0 }
 0x196   : > { %v2541_v18 = vadd.f32 %v2540_v15, %v2539_v13  ;;  %v2542_v19 = vpop.f32.mrb[18].mxu1  ;;  %v2497_v20 = vpop.f32.mrb[19].mxu0 }
 0x197   : > { %v2543_v21 = vpop.f32.mrb[19].mxu1  ;;  %v1744_v22 = vadd.f32 %v2495_v16, %v3510_v11 }
 0x199   : > { %v3537_v23 = vadd.f32 %v2541_v18, %v1744_v22 }
 0x19b   : > { %v2561_v24 = vpop.f32.mrb[20].mxu0 }
 0x19c   : > { %v2562_v27 = vpop.f32.mrb[21].mxu0  ;;  %v2607_v28 = vpop.f32.mrb[20].mxu1 }
 0x19d   : > { %v2563_v29 = vadd.f32 %v2562_v27, %v2561_v24  ;;  %v2564_v30 = vpop.f32.mrb[22].mxu0  ;;  %v2608_v31 = vpop.f32.mrb[21].mxu1 }
 0x19e   : > { %v2565_v32 = vpop.f32.mrb[23].mxu0  ;;  %v2609_v33 = vadd.f32 %v2608_v31, %v2607_v28  ;;  %v2610_v34 = vpop.f32.mrb[22].mxu1 }
 0x19f   : > { %v1856_v35 = vadd.f32 %v2563_v29, %v3514_v25  ;;  %v2566_v36 = vadd.f32 %v2565_v32, %v2564_v30  ;;  %v2611_v37 = vpop.f32.mrb[23].mxu1 }
 0x1a0   : > { %v2612_v38 = vadd.f32 %v2611_v37, %v2610_v34 }
 0x1a1   : > { %v1859_v39 = vadd.f32 %v2566_v36, %v3516_v26  ;;  %v3541_v40 = vadd.f32 %v2609_v33, %v1856_v35 }
 0x1a3   : > { %v2567_v11 = vpop.f32.mrb[24].mxu0  ;;  %v3543_v43 = vadd.f32 %v2612_v38, %v1859_v39 }
 0x1a4   : > { %v2568_v44 = vpop.f32.mrb[25].mxu0  ;;  %v2613_v45 = vpop.f32.mrb[24].mxu1 }
 0x1a5   : > { %v2569_v46 = vadd.f32 %v2568_v44, %v2567_v11  ;;  %v2570_v47 = vpop.f32.mrb[26].mxu0  ;;  %v2614_v48 = vpop.f32.mrb[25].mxu1 }
 0x1a6   : > { %v2571_v49 = vpop.f32.mrb[27].mxu0  ;;  %v2615_v50 = vadd.f32 %v2614_v48, %v2613_v45  ;;  %v2616_v51 = vpop.f32.mrb[26].mxu1 }
 0x1a7   : > { %v1864_v25 = vadd.f32 %v2569_v46, %v3520_v41  ;;  %v2572_v52 = vadd.f32 %v2571_v49, %v2570_v47  ;;  %v2617_v53 = vpop.f32.mrb[27].mxu1 }
 0x1a8   : > { %v2618_v54 = vadd.f32 %v2617_v53, %v2616_v51 }
 0x1a9   : > { %v1867_v26 = vadd.f32 %v2572_v52, %v3522_v42  ;;  %v3547_v55 = vadd.f32 %v2615_v50, %v1864_v25 }
 0x1ab   : > { %v2573_v56 = vpop.f32.mrb[28].mxu0  ;;  %v3549_v59 = vadd.f32 %v2618_v54, %v1867_v26 }
 0x1ac   : > { %v2574_v60 = vpop.f32.mrb[29].mxu0  ;;  %v2619_v61 = vpop.f32.mrb[28].mxu1 }
 0x1ad   : > { %v2575_v62 = vadd.f32 %v2574_v60, %v2573_v56  ;;  %v2576_v63 = vpop.f32.mrb[30].mxu0  ;;  %v2620_v0 = vpop.f32.mrb[29].mxu1 }
 0x1ae   : > { %v2577_v1 = vpop.f32.mrb[31].mxu0  ;;  %v2621_v2 = vadd.f32 %v2620_v0, %v2619_v61  ;;  %v2622_v3 = vpop.f32.mrb[30].mxu1 }
 0x1af   : > { %v1872_v41 = vadd.f32 %v2575_v62, %v3526_v57  ;;  %v2578_v4 = vadd.f32 %v2577_v1, %v2576_v63  ;;  %v2623_v5 = vpop.f32.mrb[31].mxu1 }
 0x1b0   : > { %v2624_v6 = vadd.f32 %v2623_v5, %v2622_v3 }
 0x1b1   : > { %v1875_v42 = vadd.f32 %v2578_v4, %v3528_v58  ;;  %v3553_v7 = vadd.f32 %v2621_v2, %v1872_v41 }
 0x1b3   : > { %v2579_v8 = vpop.f32.mrb[32].mxu0  ;;  %v3555_v12 = vadd.f32 %v2624_v6, %v1875_v42 }
 0x1b4   : > { %v2580_v13 = vpop.f32.mrb[33].mxu0  ;;  %v2625_v14 = vpop.f32.mrb[32].mxu1 }
 0x1b5   : > { %v2581_v15 = vadd.f32 %v2580_v13, %v2579_v8  ;;  %v2582_v16 = vpop.f32.mrb[34].mxu0  ;;  %v2626_v17 = vpop.f32.mrb[33].mxu1 }
 0x1b6   : > { %v2583_v18 = vpop.f32.mrb[35].mxu0  ;;  %v2627_v19 = vadd.f32 %v2626_v17, %v2625_v14  ;;  %v2628_v20 = vpop.f32.mrb[34].mxu1 }
 0x1b7   : > { %v1880_v57 = vadd.f32 %v2581_v15, %v3532_v9  ;;  %v2584_v21 = vadd.f32 %v2583_v18, %v2582_v16  ;;  %v2629_v22 = vpop.f32.mrb[35].mxu1 }
 0x1b8   : > { %v2630_v24 = vadd.f32 %v2629_v22, %v2628_v20 }
 0x1b9   : > { %v1883_v58 = vadd.f32 %v2584_v21, %v3534_v10  ;;  %v1952_v27 = vadd.f32 %v2627_v19, %v1880_v57 }
 0x1bb   : > { %v2585_v28 = vpop.f32.mrb[36].mxu0  ;;  %v1955_v29 = vadd.f32 %v2630_v24, %v1883_v58 }
 0x1bc   : > { %v2586_v30 = vpop.f32.mrb[37].mxu0  ;;  %v2631_v31 = vpop.f32.mrb[36].mxu1 }
 0x1bd   : > { %v2587_v32 = vadd.f32 %v2586_v30, %v2585_v28  ;;  %v2588_v33 = vpop.f32.mrb[38].mxu0  ;;  %v2632_v34 = vpop.f32.mrb[37].mxu1 }
 0x1be   : > { %v2589_v35 = vpop.f32.mrb[39].mxu0  ;;  %v2633_v36 = vadd.f32 %v2632_v34, %v2631_v31  ;;  %v2634_v37 = vpop.f32.mrb[38].mxu1 }
 0x1bf   : > { %v1888_v38 = vadd.f32 %v2587_v32, %v3537_v23  ;;  %v2635_v9 = vpop.f32.mrb[39].mxu1 }
 0x1c1   : > { %v1960_v39 = vadd.f32 %v2633_v36, %v1888_v38 }
 0x1c3   : > { %v1999_v11 = vpop.f32.mrb[40].mxu0 }
 0x1c4   : > { %v2000_v44 = vadd.f32 %v1999_v11, %v3541_v40  ;;  %v2023_v10 = vpop.f32.mrb[40].mxu1  ;;  %v2668_v45 = vpop.f32.mrb[41].mxu0 }
 0x1c5   : > { %v2024_v46 = vadd.f32 %v2023_v10, %v1952_v27  ;;  %v2680_v47 = vpop.f32.mrb[41].mxu1  ;;  %v2002_v48 = vpop.f32.mrb[42].mxu0 }
 0x1c6   : > { %v2046_v49 = vmul.f32 0.2, %v2000_v44  ;;  %v2003_v50 = vadd.f32 %v2002_v48, %v3543_v43  ;;  %v2026_v51 = vpop.f32.mrb[42].mxu1  ;;  %v2669_v25 = vpop.f32.mrb[43].mxu0  ;;  %vm2037_vm1 = vcmp.ge.f32.partialorder %v2000_v44, 0.0 }
 0x1c7   : > { %v2052_v52 = vmul.f32 0.2, %v2024_v46  ;;  %v2027_v23 = vadd.f32 %v2026_v51, %v1955_v29  ;;  %v2681_v53 = vpop.f32.mrb[43].mxu1  ;;  %vm2043_vm2 = vcmp.ge.f32.partialorder %v2024_v46, 0.0 }
 0x1c8   : > { %vm2038_vm3 = vcmp.ge.f32.partialorder %v2003_v50, 0.0  ;;  %v2047_v54 = vmul.f32 0.2, %v2003_v50  ;;  %v2055_v26 = vsel %vm2037_vm1, %v2000_v44, %v2046_v49 }
 0x1c9   : > { %vm2044_vm4 = vcmp.ge.f32.partialorder %v2027_v23, 0.0  ;;  %v2053_v40 = vmul.f32 0.2, %v2027_v23  ;;  %v2061_v60 = vsel %vm2043_vm2, %v2024_v46, %v2052_v52 }
 0x1ca   : > { %v2056_v56 = vsel %vm2038_vm3, %v2003_v50, %v2047_v54 }
 0x1cb   : > { %v2433_v61 = vpack.c.bf16 %v2056_v56, %v2055_v26  ;;  %v2062_v62 = vsel %vm2044_vm4, %v2027_v23, %v2053_v40  ;;  %v2007_v63 = vpop.f32.mrb[44].mxu0 }
 0x1cc   : > { %v2448_v0 = vpack.c.bf16 %v2062_v62, %v2061_v60  ;;  %v2008_v43 = vadd.f32 %v2007_v63, %v3547_v55  ;;  %v2031_v1 = vpop.f32.mrb[44].mxu1  ;;  %v2672_v2 = vpop.f32.mrb[45].mxu0 }
 0x1cd   : > { %2434 = vst [vmem:[%s3565_s12] sm:$0xff] %v2433_v61   ;;  %v2032_v3 = vadd.f32 %v2031_v1, %v1960_v39  ;;  %v2010_v41 = vpop.f32.mrb[46].mxu0  ;;  %v2684_v4 = vpop.f32.mrb[45].mxu1 }
 0x1ce   : > { %2452 = vst [vmem:[%s3565_s12 + $0x18] sm:$0xff] %v2448_v0   ;;  %v2048_v5 = vmul.f32 0.2, %v2008_v43  ;;  %v2011_v6 = vadd.f32 %v2010_v41, %v3549_v59  ;;  %v2673_v42 = vpop.f32.mrb[47].mxu0  ;;  %v2034_v8 = vpop.f32.mrb[46].mxu1  ;;  %vm2039_vm5 = vcmp.ge.f32.partialorder %v2008_v43, 0.0 }
 0x1cf   : > { %vm2045_vm6 = vcmp.ge.f32.partialorder %v2032_v3, 0.0  ;;  %v2054_v55 = vmul.f32 0.2, %v2032_v3  ;;  %v2685_v13 = vpop.f32.mrb[47].mxu1 }
 0x1d0   : > { %vm2040_vm7 = vcmp.ge.f32.partialorder %v2011_v6, 0.0  ;;  %v2049_v14 = vmul.f32 0.2, %v2011_v6  ;;  %v2057_v16 = vsel %vm2039_vm5, %v2008_v43, %v2048_v5 }
 0x1d1   : > { %v2063_v15 = vsel %vm2045_vm6, %v2032_v3, %v2054_v55 }
 0x1d2   : > { %v2429_v17 = vpack.c.bf16 %v2063_v15, %v2063_v15  ;;  %v2058_v18 = vsel %vm2040_vm7, %v2011_v6, %v2049_v14 }
 0x1d3   : > { %v2438_v19 = vpack.c.bf16 %v2058_v18, %v2057_v16  ;;  %v2015_v20 = vpop.f32.mrb[48].mxu0 }
 0x1d4   : > { %2109 = vst [vmem:[%s3565_s12 + $0x20] sm:$0xf] %v2429_v17  ;;  %v2016_v57 = vadd.f32 %v2015_v20, %v3553_v7  ;;  %v2676_v59 = vpop.f32.mrb[49].mxu0  ;;  %v2137_v7 = vld [vmem:[%s3565_s12] sm:$0xf] (%p2977_p6) }
 0x1d5   : > { %2450 = vst [vmem:[%s3565_s12 + $0x8] sm:$0xff] %v2438_v19   ;;  %v2018_v21 = vpop.f32.mrb[50].mxu0  ;;  %2138 = vst [vmem:[%s2121_s8] sm:$0xf] (%p2977_p6), %v2137_v7  ;;  %v2149_v35 = vld [vmem:[%s3565_s12 + $0x18] sm:$0xf] (%p2977_p6) }
 0x1d6   : > { %v2050_v22 = vmul.f32 0.2, %v2016_v57  ;;  %v2019_v24 = vadd.f32 %v2018_v21, %v3555_v12  ;;  %v2677_v58 = vpop.f32.mrb[51].mxu0  ;;  %vm2041_vm8 = vcmp.ge.f32.partialorder %v2016_v57, 0.0  ;;  %v2139_v12 = vld [vmem:[%s3565_s12 + $0x4] sm:$0xf] (%p2977_p6) }
 0x1d7   : > { %2116 = sbr.rel (!%p2977_p6) target bundleno = 486 (0x1e6), region = 77  ;;  %2140 = vst [vmem:[%s2121_s8 + $0x8] sm:$0xf] (%p2977_p6), %v2139_v12  ;;  %v2151_v36 = vld [vmem:[%s3565_s12 + $0x1c] sm:$0xf] (%p2977_p6) }
 0x1d8   : > { %vm2042_vm9 = vcmp.ge.f32.partialorder %v2019_v24, 0.0  ;;  %v2051_v27 = vmul.f32 0.2, %v2019_v24  ;;  %v2059_v28 = vsel %vm2041_vm8, %v2016_v57, %v2050_v22  ;;  %2150 = vst [vmem:[%s2121_s8 + $0x30] sm:$0xf] (%p2977_p6), %v2149_v35 }
 0x1d9   : > { %2152 = vst [vmem:[%s2121_s8 + $0x38] sm:$0xf] (%p2977_p6), %v2151_v36 }
 0x1da   : > { %v2060_v29 = vsel %vm2042_vm9, %v2019_v24, %v2051_v27 }
 0x1db   : > { %v2443_v30 = vpack.c.bf16 %v2060_v29, %v2059_v28  ;;  %v2153_v37 = vld [vmem:[%s3565_s12 + $0x20] sm:$0xf] (%p2977_p6) }
 0x1dc   : > { %v2141_v31 = vld [vmem:[%s3565_s12 + $0x8] sm:$0xf] (%p2977_p6)  ;;  %v2143_v32 = vld [vmem:[%s3565_s12 + $0xc] sm:$0xf] (%p2977_p6)  ;;  %2154 = vst [vmem:[%s2121_s8 + $0x40] sm:$0xf] (%p2977_p6), %v2153_v37 }
 0x1dd   : > { %2451 = vst [vmem:[%s3565_s12 + $0x10] sm:$0xff] %v2443_v30   ;;  %2142 = vst [vmem:[%s2121_s8 + $0x10] sm:$0xf] (%p2977_p6), %v2141_v31 }
 0x1de   : > { %2144 = vst [vmem:[%s2121_s8 + $0x18] sm:$0xf] %v2143_v32 }
 0x1e4   : > { %v2145_v33 = vld [vmem:[%s3565_s12 + $0x10] sm:$0xf]  ;;  %v2147_v34 = vld [vmem:[%s3565_s12 + $0x14] sm:$0xf] }
 0x1e5   : > { %2146 = vst [vmem:[%s2121_s8 + $0x20] sm:$0xf] %v2145_v33  ;;  %2148 = vst [vmem:[%s2121_s8 + $0x28] sm:$0xf] %v2147_v34 }
 0x1e6 PF: > { %s13_s16 = sadd.s32 1, %s2918_s16   ;;  %s3610_s12 = smov %s2906_s13 }
 0x1e7   : > { %p10_p12 = scmp.ge.s32.totalorder %s13_s16, 4   ;;  %s3611_s13 = smov %s2982_s22 }
 0x1e8   : > { %s3612_s14 = smov %s2914_s15  ;;  %s3613_s15 = smov %s3615_s17 }
 0x1e9   :  { %12 = sbr.rel (!%p10_p12) target bundleno = 3 (0x3), region = 155 }

// kernel: encoder_forward.7
= control target key start
LH: loop header
LB: loop body
LE: loop exit
PB: predicated region body
PF: predicated region fallthrough
CT: control target
= control target key end

     0   :  { %vm4639_vm10 = vcmask 1040384   ;;  %s25287_s0 = inlined_call_operand.vmem [shape: bf16[18,2304], index: 0, kind: input, shape index: {}]   ;;  %s25288_s1 = inlined_call_operand.vmem [shape: bf16[2304,512], index: 1, kind: input, shape index: {}]   ;;  %s25289_s2 = inlined_call_operand.vmem [shape: f32[1,512], index: 2, kind: input, shape index: {}]   ;;  %s25290_s3 = inlined_call_operand.vmem [shape: bf16[9,512,512], index: 3, kind: input, shape index: {}]   ;;  %s25291_s4 = inlined_call_operand.vmem [shape: f32[1,512], index: 4, kind: input, shape index: {}]   ;;  %s25292_s5 = inlined_call_operand.vmem [shape: f32[512,32], index: 5, kind: input, shape index: {}]   ;;  %s25293_s6 = inlined_call_operand.vmem [shape: f32[1,32], index: 6, kind: input, shape index: {}]   ;;  %s25294_s7 = inlined_call_operand.hbm [shape: f32[2,32], index: 7, kind: output, shape index: {}]  }
   0x1   :  { %v16589_v0 = vld [vmem:[%s25288_s1 + $0x4] ss:$16 sps:$4 sm:$0xff]   ;;  %v16591_v1 = vld [vmem:[%s25288_s1 + $0xc] ss:$16 sps:$4 sm:$0xff]   ;;  %v16593_v2 = vld [vmem:[%s25288_s1] ss:$16 sps:$4 sm:$0xff]  }
   0x2   :  { %3685 = vmatprep.subr.bf16.mxu0 %v16589_v0  ;;  %v16594_v3 = vld [vmem:[%s25288_s1 + $0x8] ss:$16 sps:$4 sm:$0xff]   ;;  %4144 = vmatprep.subr.bf16.mxu1 %v16591_v1  ;;  %v16595_v4 = vld [vmem:[%s25288_s1 + $0x24] ss:$16 sps:$4 sm:$0xff]   ;;  %v16597_v5 = vld [vmem:[%s25288_s1 + $0x2c] ss:$16 sps:$4 sm:$0xff]  }
   0x3   :  { %3686 = vmatpush1.bf16.msra.mxu0 %v16593_v2  ;;  %4145 = vmatpush1.bf16.msra.mxu1 %v16594_v3  ;;  %v16599_v6 = vld [vmem:[%s25288_s1 + $0x20] ss:$16 sps:$4 sm:$0xff]   ;;  %v16600_v7 = vld [vmem:[%s25288_s1 + $0x28] ss:$16 sps:$4 sm:$0xff]   ;;  %v16601_v8 = vld [vmem:[%s25288_s1 + $0x44] ss:$16 sps:$4 sm:$0xff]  }
   0x4   :  { %3687 = vmatprep.subr.bf16.mxu0 %v16595_v4  ;;  %4146 = vmatprep.subr.bf16.mxu1 %v16597_v5  ;;  %v16603_v9 = vld [vmem:[%s25288_s1 + $0x4c] ss:$16 sps:$4 sm:$0xff]   ;;  %v16605_v10 = vld [vmem:[%s25288_s1 + $0x40] ss:$16 sps:$4 sm:$0xff]   ;;  %v16606_v11 = vld [vmem:[%s25288_s1 + $0x48] ss:$16 sps:$4 sm:$0xff]  }
   0x5   :  { %v16607_v12 = vld [vmem:[%s25288_s1 + $0x64] ss:$16 sps:$4 sm:$0xff]   ;;  %v16609_v13 = vld [vmem:[%s25288_s1 + $0x6c] ss:$16 sps:$4 sm:$0xff]   ;;  %v16611_v14 = vld [vmem:[%s25288_s1 + $0x60] ss:$16 sps:$4 sm:$0xff]  }
   0x6   :  { %v16612_v15 = vld [vmem:[%s25288_s1 + $0x68] ss:$16 sps:$4 sm:$0xff]   ;;  %v16613_v16 = vld [vmem:[%s25288_s1 + $0x84] ss:$16 sps:$4 sm:$0xff]   ;;  %v16615_v17 = vld [vmem:[%s25288_s1 + $0x8c] ss:$16 sps:$4 sm:$0xff]  }
   0x7   :  { %3688 = vmatpush1.bf16.msra.mxu0 %v16599_v6  ;;  %4147 = vmatpush1.bf16.msra.mxu1 %v16600_v7  ;;  %v16617_v18 = vld [vmem:[%s25288_s1 + $0x80] ss:$16 sps:$4 sm:$0xff]   ;;  %v16618_v19 = vld [vmem:[%s25288_s1 + $0x88] ss:$16 sps:$4 sm:$0xff]   ;;  %v16619_v20 = vld [vmem:[%s25288_s1 + $0xa4] ss:$16 sps:$4 sm:$0xff]  }
   0x8   :  { %3689 = vmatprep.subr.bf16.mxu0 %v16601_v8  ;;  %4148 = vmatprep.subr.bf16.mxu1 %v16603_v9  ;;  %v16621_v21 = vld [vmem:[%s25288_s1 + $0xac] ss:$16 sps:$4 sm:$0xff]   ;;  %v16623_v22 = vld [vmem:[%s25288_s1 + $0xa0] ss:$16 sps:$4 sm:$0xff]   ;;  %v16624_v23 = vld [vmem:[%s25288_s1 + $0xa8] ss:$16 sps:$4 sm:$0xff]  }
   0x9   :  { %v16625_v24 = vld [vmem:[%s25288_s1 + $0xc4] ss:$16 sps:$4 sm:$0xff]   ;;  %v16627_v25 = vld [vmem:[%s25288_s1 + $0xcc] ss:$16 sps:$4 sm:$0xff]   ;;  %v16629_v26 = vld [vmem:[%s25288_s1 + $0xc0] ss:$16 sps:$4 sm:$0xff]  }
   0xa   :  { %v16630_v27 = vld [vmem:[%s25288_s1 + $0xc8] ss:$16 sps:$4 sm:$0xff]   ;;  %v16631_v28 = vld [vmem:[%s25288_s1 + $0xe4] ss:$16 sps:$4 sm:$0xff]   ;;  %v16633_v29 = vld [vmem:[%s25288_s1 + $0xec] ss:$16 sps:$4 sm:$0xff]  }
   0xb   :  { %3690 = vmatpush1.bf16.msra.mxu0 %v16605_v10  ;;  %4149 = vmatpush1.bf16.msra.mxu1 %v16606_v11  ;;  %v16635_v30 = vld [vmem:[%s25288_s1 + $0xe0] ss:$16 sps:$4 sm:$0xff]   ;;  %v16636_v31 = vld [vmem:[%s25288_s1 + $0xe8] ss:$16 sps:$4 sm:$0xff]   ;;  %v16637_v32 = vld [vmem:[%s25288_s1 + $0x104] ss:$16 sps:$4 sm:$0xff]  }
   0xc   :  { %3691 = vmatprep.subr.bf16.mxu0 %v16607_v12  ;;  %4150 = vmatprep.subr.bf16.mxu1 %v16609_v13  ;;  %v16639_v33 = vld [vmem:[%s25288_s1 + $0x10c] ss:$16 sps:$4 sm:$0xff]   ;;  %v16641_v34 = vld [vmem:[%s25288_s1 + $0x100] ss:$16 sps:$4 sm:$0xff]   ;;  %v16642_v35 = vld [vmem:[%s25288_s1 + $0x108] ss:$16 sps:$4 sm:$0xff]  }
   0xd   :  { %v16643_v36 = vld [vmem:[%s25288_s1 + $0x124] ss:$16 sps:$4 sm:$0xff]   ;;  %v16645_v37 = vld [vmem:[%s25288_s1 + $0x12c] ss:$16 sps:$4 sm:$0xff]   ;;  %v16647_v38 = vld [vmem:[%s25288_s1 + $0x120] ss:$16 sps:$4 sm:$0xff]  }
   0xe   :  { %v16648_v39 = vld [vmem:[%s25288_s1 + $0x128] ss:$16 sps:$4 sm:$0xff]   ;;  %v16649_v40 = vld [vmem:[%s25288_s1 + $0x144] ss:$16 sps:$4 sm:$0xff]   ;;  %v16651_v41 = vld [vmem:[%s25288_s1 + $0x14c] ss:$16 sps:$4 sm:$0xff]  }
   0xf   :  { %3692 = vmatpush1.bf16.msra.mxu0 %v16611_v14  ;;  %4151 = vmatpush1.bf16.msra.mxu1 %v16612_v15  ;;  %v16653_v42 = vld [vmem:[%s25288_s1 + $0x140] ss:$16 sps:$4 sm:$0xff]   ;;  %v16654_v43 = vld [vmem:[%s25288_s1 + $0x148] ss:$16 sps:$4 sm:$0xff]   ;;  %v16655_v44 = vld [vmem:[%s25288_s1 + $0x164] ss:$16 sps:$4 sm:$0xff]  }
  0x10   :  { %3693 = vmatprep.subr.bf16.mxu0 %v16613_v16  ;;  %4152 = vmatprep.subr.bf16.mxu1 %v16615_v17  ;;  %v16657_v45 = vld [vmem:[%s25288_s1 + $0x16c] ss:$16 sps:$4 sm:$0xff]   ;;  %v16659_v46 = vld [vmem:[%s25288_s1 + $0x160] ss:$16 sps:$4 sm:$0xff]   ;;  %v16660_v47 = vld [vmem:[%s25288_s1 + $0x168] ss:$16 sps:$4 sm:$0xff]  }
  0x11   :  { %v16687_v48 = vld [vmem:[%s25287_s0 + $0x4] ss:$72 sps:$4 sm:$0xff]   ;;  %v16665_v51 = vld [vmem:[%s25288_s1 + $0x180] ss:$16 sps:$4 sm:$0xff]   ;;  %v16666_v52 = vld [vmem:[%s25288_s1 + $0x188] ss:$16 sps:$4 sm:$0xff]  }
  0x12   :  { %v16661_v49 = vld [vmem:[%s25288_s1 + $0x184] ss:$16 sps:$4 sm:$0xff]   ;;  %v16663_v50 = vld [vmem:[%s25288_s1 + $0x18c] ss:$16 sps:$4 sm:$0xff]   ;;  %3717 = vmatprep.mubr.bf16.mxu0 %v16687_v48  ;;  %4176 = vmatprep.mubr.bf16.mxu1 %v16687_v48  ;;  %v16671_v55 = vld [vmem:[%s25288_s1 + $0x1a0] ss:$16 sps:$4 sm:$0xff]  }
  0x13   :  { %3694 = vmatpush1.bf16.msra.mxu0 %v16617_v18  ;;  %4153 = vmatpush1.bf16.msra.mxu1 %v16618_v19  ;;  %v16667_v53 = vld [vmem:[%s25288_s1 + $0x1a4] ss:$16 sps:$4 sm:$0xff]   ;;  %v16669_v54 = vld [vmem:[%s25288_s1 + $0x1ac] ss:$16 sps:$4 sm:$0xff]   ;;  %v16672_v56 = vld [vmem:[%s25288_s1 + $0x1a8] ss:$16 sps:$4 sm:$0xff]  }
  0x14   :  { %3695 = vmatprep.subr.bf16.mxu0 %v16619_v20  ;;  %4154 = vmatprep.subr.bf16.mxu1 %v16621_v21  ;;  %v16673_v57 = vld [vmem:[%s25288_s1 + $0x1c4] ss:$16 sps:$4 sm:$0xff]   ;;  %v16675_v58 = vld [vmem:[%s25288_s1 + $0x1cc] ss:$16 sps:$4 sm:$0xff]   ;;  %v16677_v59 = vld [vmem:[%s25288_s1 + $0x1c0] ss:$16 sps:$4 sm:$0xff]  }
  0x15   :  { %v16678_v60 = vld [vmem:[%s25288_s1 + $0x1c8] ss:$16 sps:$4 sm:$0xff]   ;;  %v16679_v61 = vld [vmem:[%s25288_s1 + $0x1e4] ss:$16 sps:$4 sm:$0xff]   ;;  %v16681_v62 = vld [vmem:[%s25288_s1 + $0x1ec] ss:$16 sps:$4 sm:$0xff]  }
  0x16   :  { %v16683_v63 = vld [vmem:[%s25288_s1 + $0x1e0] ss:$16 sps:$4 sm:$0xff]   ;;  %v16684_v0 = vld [vmem:[%s25288_s1 + $0x1e8] ss:$16 sps:$4 sm:$0xff]   ;;  %v16690_v1 = vld [vmem:[%s25288_s1 + $0x204] ss:$16 sps:$4 sm:$0xff]  }
  0x17   :  { %3696 = vmatpush1.bf16.msra.mxu0 %v16623_v22  ;;  %4155 = vmatpush1.bf16.msra.mxu1 %v16624_v23  ;;  %v16693_v2 = vld [vmem:[%s25288_s1 + $0x20c] ss:$16 sps:$4 sm:$0xff]   ;;  %v16685_v3 = vld [vmem:[%s25287_s0] ss:$72 sps:$4 sm:$0xff]   ;;  %v16696_v6 = vld [vmem:[%s25288_s1 + $0x224] ss:$16 sps:$4 sm:$0xff]  }
  0x18   :  { %3697 = vmatprep.subr.bf16.mxu0 %v16625_v24  ;;  %4156 = vmatprep.subr.bf16.mxu1 %v16627_v25  ;;  %v16688_v4 = vld [vmem:[%s25288_s1 + $0x200] ss:$16 sps:$4 sm:$0xff]   ;;  %v16691_v5 = vld [vmem:[%s25288_s1 + $0x208] ss:$16 sps:$4 sm:$0xff]   ;;  %v16699_v7 = vld [vmem:[%s25288_s1 + $0x22c] ss:$16 sps:$4 sm:$0xff]  }
  0x19   :  { %v16694_v8 = vld [vmem:[%s25288_s1 + $0x220] ss:$16 sps:$4 sm:$0xff]   ;;  %v16697_v9 = vld [vmem:[%s25288_s1 + $0x228] ss:$16 sps:$4 sm:$0xff]   ;;  %v16702_v10 = vld [vmem:[%s25288_s1 + $0x244] ss:$16 sps:$4 sm:$0xff]  }
  0x1a   :  { %v16705_v11 = vld [vmem:[%s25288_s1 + $0x24c] ss:$16 sps:$4 sm:$0xff]   ;;  %v16700_v12 = vld [vmem:[%s25288_s1 + $0x240] ss:$16 sps:$4 sm:$0xff]   ;;  %v16703_v13 = vld [vmem:[%s25288_s1 + $0x248] ss:$16 sps:$4 sm:$0xff]  }
  0x1b   :  { %3698 = vmatpush1.bf16.msra.mxu0 %v16629_v26  ;;  %4157 = vmatpush1.bf16.msra.mxu1 %v16630_v27  ;;  %v16708_v14 = vld [vmem:[%s25288_s1 + $0x264] ss:$16 sps:$4 sm:$0xff]   ;;  %v16711_v15 = vld [vmem:[%s25288_s1 + $0x26c] ss:$16 sps:$4 sm:$0xff]   ;;  %v16706_v16 = vld [vmem:[%s25288_s1 + $0x260] ss:$16 sps:$4 sm:$0xff]  }
  0x1c   :  { %3699 = vmatprep.subr.bf16.mxu0 %v16631_v28  ;;  %4158 = vmatprep.subr.bf16.mxu1 %v16633_v29  ;;  %v16709_v17 = vld [vmem:[%s25288_s1 + $0x268] ss:$16 sps:$4 sm:$0xff]   ;;  %v16714_v18 = vld [vmem:[%s25288_s1 + $0x284] ss:$16 sps:$4 sm:$0xff]   ;;  %v16717_v19 = vld [vmem:[%s25288_s1 + $0x28c] ss:$16 sps:$4 sm:$0xff]  }
  0x1d   :  { %v16712_v20 = vld [vmem:[%s25288_s1 + $0x280] ss:$16 sps:$4 sm:$0xff]   ;;  %v16715_v21 = vld [vmem:[%s25288_s1 + $0x288] ss:$16 sps:$4 sm:$0xff]   ;;  %v16720_v22 = vld [vmem:[%s25288_s1 + $0x2a4] ss:$16 sps:$4 sm:$0xff]  }
  0x1e   :  { %v16723_v23 = vld [vmem:[%s25288_s1 + $0x2ac] ss:$16 sps:$4 sm:$0xff]   ;;  %v45_v24 = vld [vmem:[%s25287_s0 + $0x90] sm:$0x11]  ;;  %v16721_v28 = vld [vmem:[%s25288_s1 + $0x2a8] ss:$16 sps:$4 sm:$0xff]  }
  0x1f   :  { %3700 = vmatpush1.bf16.msra.mxu0 %v16635_v30  ;;  %4159 = vmatpush1.bf16.msra.mxu1 %v16636_v31  ;;  %v13544_v25 = vcombine.high %v45_v24, %v45_v24  ;;  %v16718_v26 = vld [vmem:[%s25288_s1 + $0x2a0] ss:$16 sps:$4 sm:$0xff]   ;;  %v13543_v27 = vcombine.low %v45_v24, %v45_v24  ;;  %v16726_v29 = vld [vmem:[%s25288_s1 + $0x2c4] ss:$16 sps:$4 sm:$0xff]   ;;  %v16729_v30 = vld [vmem:[%s25288_s1 + $0x2cc] ss:$16 sps:$4 sm:$0xff]  }
  0x20   :  { %3701 = vmatprep.subr.bf16.mxu0 %v16637_v32  ;;  %4160 = vmatprep.subr.bf16.mxu1 %v16639_v33  ;;  %v16724_v31 = vld [vmem:[%s25288_s1 + $0x2c0] ss:$16 sps:$4 sm:$0xff]   ;;  %v16727_v32 = vld [vmem:[%s25288_s1 + $0x2c8] ss:$16 sps:$4 sm:$0xff]   ;;  %v16788_v33 = vld [vmem:[%s25287_s0 + $0xc] ss:$72 sps:$4 sm:$0xff]  }
  0x21   :  { %v16748_v48 = vld [vmem:[%s25288_s1 + $0x340] ss:$16 sps:$4 sm:$0xff]   ;;  %v16889_v24 = vld [vmem:[%s25287_s0 + $0x14] ss:$72 sps:$4 sm:$0xff]  }
  0x23   :  { %3702 = vmatpush1.bf16.msra.mxu0 %v16641_v34  ;;  %4161 = vmatpush1.bf16.msra.mxu1 %v16642_v35  ;;  %v16732_v34 = vld [vmem:[%s25288_s1 + $0x2e4] ss:$16 sps:$4 sm:$0xff]   ;;  %v16735_v35 = vld [vmem:[%s25288_s1 + $0x2ec] ss:$16 sps:$4 sm:$0xff]  }
  0x24   :  { %3703 = vmatprep.subr.bf16.mxu0 %v16643_v36  ;;  %4162 = vmatprep.subr.bf16.mxu1 %v16645_v37  ;;  %v16730_v36 = vld [vmem:[%s25288_s1 + $0x2e0] ss:$16 sps:$4 sm:$0xff]   ;;  %v16733_v37 = vld [vmem:[%s25288_s1 + $0x2e8] ss:$16 sps:$4 sm:$0xff]  }
  0x27   :  { %3704 = vmatpush1.bf16.msra.mxu0 %v16647_v38  ;;  %4163 = vmatpush1.bf16.msra.mxu1 %v16648_v39  ;;  %v16738_v38 = vld [vmem:[%s25288_s1 + $0x304] ss:$16 sps:$4 sm:$0xff]   ;;  %v16741_v39 = vld [vmem:[%s25288_s1 + $0x30c] ss:$16 sps:$4 sm:$0xff]  }
  0x28   :  { %3705 = vmatprep.subr.bf16.mxu0 %v16649_v40  ;;  %4164 = vmatprep.subr.bf16.mxu1 %v16651_v41  ;;  %v16736_v40 = vld [vmem:[%s25288_s1 + $0x300] ss:$16 sps:$4 sm:$0xff]   ;;  %v16739_v41 = vld [vmem:[%s25288_s1 + $0x308] ss:$16 sps:$4 sm:$0xff]  }
  0x2b   :  { %3706 = vmatpush1.bf16.msra.mxu0 %v16653_v42  ;;  %4165 = vmatpush1.bf16.msra.mxu1 %v16654_v43  ;;  %v16744_v42 = vld [vmem:[%s25288_s1 + $0x324] ss:$16 sps:$4 sm:$0xff]   ;;  %v16747_v43 = vld [vmem:[%s25288_s1 + $0x32c] ss:$16 sps:$4 sm:$0xff]  }
  0x2c   :  { %3707 = vmatprep.subr.bf16.mxu0 %v16655_v44  ;;  %4166 = vmatprep.subr.bf16.mxu1 %v16657_v45  ;;  %v16742_v44 = vld [vmem:[%s25288_s1 + $0x320] ss:$16 sps:$4 sm:$0xff]   ;;  %v16745_v45 = vld [vmem:[%s25288_s1 + $0x328] ss:$16 sps:$4 sm:$0xff]  }
  0x2f   :  { %3708 = vmatpush1.bf16.msra.mxu0 %v16659_v46  ;;  %4167 = vmatpush1.bf16.msra.mxu1 %v16660_v47  ;;  %v16750_v46 = vld [vmem:[%s25288_s1 + $0x344] ss:$16 sps:$4 sm:$0xff]   ;;  %v16753_v47 = vld [vmem:[%s25288_s1 + $0x34c] ss:$16 sps:$4 sm:$0xff]  }
  0x30   :  { %3709 = vmatprep.subr.bf16.mxu0 %v16661_v49  ;;  %4168 = vmatprep.subr.bf16.mxu1 %v16663_v50  ;;  %v16751_v49 = vld [vmem:[%s25288_s1 + $0x348] ss:$16 sps:$4 sm:$0xff]   ;;  %v16756_v50 = vld [vmem:[%s25288_s1 + $0x364] ss:$16 sps:$4 sm:$0xff]  }
  0x33   :  { %3710 = vmatpush1.bf16.msra.mxu0 %v16665_v51  ;;  %4169 = vmatpush1.bf16.msra.mxu1 %v16666_v52  ;;  %v16759_v51 = vld [vmem:[%s25288_s1 + $0x36c] ss:$16 sps:$4 sm:$0xff]   ;;  %v16754_v52 = vld [vmem:[%s25288_s1 + $0x360] ss:$16 sps:$4 sm:$0xff]  }
  0x34   :  { %3711 = vmatprep.subr.bf16.mxu0 %v16667_v53  ;;  %4170 = vmatprep.subr.bf16.mxu1 %v16669_v54  ;;  %v16757_v53 = vld [vmem:[%s25288_s1 + $0x368] ss:$16 sps:$4 sm:$0xff]   ;;  %v16762_v54 = vld [vmem:[%s25288_s1 + $0x384] ss:$16 sps:$4 sm:$0xff]  }
  0x37   :  { %3712 = vmatpush1.bf16.msra.mxu0 %v16671_v55  ;;  %4171 = vmatpush1.bf16.msra.mxu1 %v16672_v56  ;;  %v16765_v55 = vld [vmem:[%s25288_s1 + $0x38c] ss:$16 sps:$4 sm:$0xff]   ;;  %v16760_v56 = vld [vmem:[%s25288_s1 + $0x380] ss:$16 sps:$4 sm:$0xff]  }
  0x38   :  { %3713 = vmatprep.subr.bf16.mxu0 %v16673_v57  ;;  %4172 = vmatprep.subr.bf16.mxu1 %v16675_v58  ;;  %v16763_v57 = vld [vmem:[%s25288_s1 + $0x388] ss:$16 sps:$4 sm:$0xff]   ;;  %v16768_v58 = vld [vmem:[%s25288_s1 + $0x3a4] ss:$16 sps:$4 sm:$0xff]  }
  0x3b   :  { %3714 = vmatpush1.bf16.msra.mxu0 %v16677_v59  ;;  %4173 = vmatpush1.bf16.msra.mxu1 %v16678_v60  ;;  %v16771_v59 = vld [vmem:[%s25288_s1 + $0x3ac] ss:$16 sps:$4 sm:$0xff]   ;;  %v16766_v60 = vld [vmem:[%s25288_s1 + $0x3a0] ss:$16 sps:$4 sm:$0xff]  }
  0x3c   :  { %3715 = vmatprep.subr.bf16.mxu0 %v16679_v61  ;;  %4174 = vmatprep.subr.bf16.mxu1 %v16681_v62  ;;  %v16769_v61 = vld [vmem:[%s25288_s1 + $0x3a8] ss:$16 sps:$4 sm:$0xff]   ;;  %v16775_v62 = vld [vmem:[%s25288_s1 + $0x3c4] ss:$16 sps:$4 sm:$0xff]  }
  0x3f   :  { %3716 = vmatpush1.bf16.msra.mxu0 %v16683_v63  ;;  %4175 = vmatpush1.bf16.msra.mxu1 %v16684_v0  ;;  %v16778_v63 = vld [vmem:[%s25288_s1 + $0x3cc] ss:$16 sps:$4 sm:$0xff]   ;;  %v16773_v0 = vld [vmem:[%s25288_s1 + $0x3c0] ss:$16 sps:$4 sm:$0xff]  }
  0x40   :  { %3736 = vmatprep.subr.bf16.mxu0 %v16690_v1  ;;  %4195 = vmatprep.subr.bf16.mxu1 %v16693_v2  ;;  %v16776_v1 = vld [vmem:[%s25288_s1 + $0x3c8] ss:$16 sps:$4 sm:$0xff]   ;;  %v16782_v2 = vld [vmem:[%s25288_s1 + $0x3e4] ss:$16 sps:$4 sm:$0xff]  }
  0x42   :  { %3718 = vmatmul.mubr.bf16.vlgmr.msra.gmra.mrb[0].mxu0 %v16685_v3  ;;  %4177 = vmatmul.mubr.bf16.vlgmr.msra.gmra.mrb[0].mxu1 %v16685_v3  ;;  %v16785_v3 = vld [vmem:[%s25288_s1 + $0x3ec] ss:$16 sps:$4 sm:$0xff]  }
  0x43   :  { %3737 = vmatpush1.bf16.msra.mxu0 %v16688_v4  ;;  %4196 = vmatpush1.bf16.msra.mxu1 %v16691_v5  ;;  %v16780_v4 = vld [vmem:[%s25288_s1 + $0x3e0] ss:$16 sps:$4 sm:$0xff]   ;;  %v16783_v5 = vld [vmem:[%s25288_s1 + $0x3e8] ss:$16 sps:$4 sm:$0xff]  }
  0x44   :  { %3738 = vmatprep.subr.bf16.mxu0 %v16696_v6  ;;  %4197 = vmatprep.subr.bf16.mxu1 %v16699_v7  ;;  %v16791_v6 = vld [vmem:[%s25288_s1 + $0x404] ss:$16 sps:$4 sm:$0xff]   ;;  %v16794_v7 = vld [vmem:[%s25288_s1 + $0x40c] ss:$16 sps:$4 sm:$0xff]  }
  0x45   :  { %3727 = vmatprep.mubr.bf16.mxu0 %v13544_v25  ;;  %4186 = vmatprep.mubr.bf16.mxu1 %v13544_v25  ;;  %v16807_v25 = vld [vmem:[%s25288_s1 + $0x460] ss:$16 sps:$4 sm:$0xff]  }
  0x47   :  { %3739 = vmatpush1.bf16.msra.mxu0 %v16694_v8  ;;  %4198 = vmatpush1.bf16.msra.mxu1 %v16697_v9  ;;  %v16786_v8 = vld [vmem:[%s25287_s0 + $0x8] ss:$72 sps:$4 sm:$0xff]   ;;  %v46_v9 = vld [vmem:[%s25287_s0 + $0x98] sm:$0x11] }
  0x48   :  { %3740 = vmatprep.subr.bf16.mxu0 %v16702_v10  ;;  %4199 = vmatprep.subr.bf16.mxu1 %v16705_v11  ;;  %v16789_v10 = vld [vmem:[%s25288_s1 + $0x400] ss:$16 sps:$4 sm:$0xff]   ;;  %v16792_v11 = vld [vmem:[%s25288_s1 + $0x408] ss:$16 sps:$4 sm:$0xff]  }
  0x4a   :  { %3728 = vmatmul.mubr.bf16.gmra.mrb[4].mxu0 %v13543_v27  ;;  %4187 = vmatmul.mubr.bf16.gmra.mrb[4].mxu1 %v13543_v27  ;;  %v16815_v27 = vld [vmem:[%s25288_s1 + $0x484] ss:$16 sps:$4 sm:$0xff]  }
  0x4b   :  { %3741 = vmatpush1.bf16.msra.mxu0 %v16700_v12  ;;  %4200 = vmatpush1.bf16.msra.mxu1 %v16703_v13  ;;  %v16797_v12 = vld [vmem:[%s25288_s1 + $0x424] ss:$16 sps:$4 sm:$0xff]   ;;  %v16800_v13 = vld [vmem:[%s25288_s1 + $0x42c] ss:$16 sps:$4 sm:$0xff]  }
  0x4c   :  { %3742 = vmatprep.subr.bf16.mxu0 %v16708_v14  ;;  %4201 = vmatprep.subr.bf16.mxu1 %v16711_v15  ;;  %v13546_v14 = vcombine.high %v46_v9, %v46_v9  ;;  %v16795_v15 = vld [vmem:[%s25288_s1 + $0x420] ss:$16 sps:$4 sm:$0xff]  }
  0x4d   :  { %3768 = vmatprep.mubr.bf16.mxu0 %v16788_v33  ;;  %4227 = vmatprep.mubr.bf16.mxu1 %v16788_v33  ;;  %v16819_v33 = vld [vmem:[%s25288_s1 + $0x4a0] ss:$16 sps:$4 sm:$0xff]  }
  0x4f   :  { %3743 = vmatpush1.bf16.msra.mxu0 %v16706_v16  ;;  %4202 = vmatpush1.bf16.msra.mxu1 %v16709_v17  ;;  %v16798_v16 = vld [vmem:[%s25288_s1 + $0x428] ss:$16 sps:$4 sm:$0xff]   ;;  %v16803_v17 = vld [vmem:[%s25288_s1 + $0x444] ss:$16 sps:$4 sm:$0xff]  }
  0x50   :  { %3744 = vmatprep.subr.bf16.mxu0 %v16714_v18  ;;  %4203 = vmatprep.subr.bf16.mxu1 %v16717_v19  ;;  %v16806_v18 = vld [vmem:[%s25288_s1 + $0x44c] ss:$16 sps:$4 sm:$0xff]   ;;  %v13545_v19 = vcombine.low %v46_v9, %v46_v9  ;;  %v16881_v9 = vld [vmem:[%s25288_s1 + $0x5e0] ss:$16 sps:$4 sm:$0xff]  }
  0x53   :  { %3745 = vmatpush1.bf16.msra.mxu0 %v16712_v20  ;;  %4204 = vmatpush1.bf16.msra.mxu1 %v16715_v21  ;;  %v16801_v20 = vld [vmem:[%s25288_s1 + $0x440] ss:$16 sps:$4 sm:$0xff]   ;;  %v16804_v21 = vld [vmem:[%s25288_s1 + $0x448] ss:$16 sps:$4 sm:$0xff]  }
  0x54   :  { %3746 = vmatprep.subr.bf16.mxu0 %v16720_v22  ;;  %4205 = vmatprep.subr.bf16.mxu1 %v16723_v23  ;;  %v16809_v22 = vld [vmem:[%s25288_s1 + $0x464] ss:$16 sps:$4 sm:$0xff]   ;;  %v16812_v23 = vld [vmem:[%s25288_s1 + $0x46c] ss:$16 sps:$4 sm:$0xff]  }
  0x57   :  { %3747 = vmatpush1.bf16.msra.mxu0 %v16718_v26  ;;  %4206 = vmatpush1.bf16.msra.mxu1 %v16721_v28  ;;  %v16810_v26 = vld [vmem:[%s25288_s1 + $0x468] ss:$16 sps:$4 sm:$0xff]   ;;  %v16818_v28 = vld [vmem:[%s25288_s1 + $0x48c] ss:$16 sps:$4 sm:$0xff]  }
  0x58   :  { %3748 = vmatprep.subr.bf16.mxu0 %v16726_v29  ;;  %4207 = vmatprep.subr.bf16.mxu1 %v16729_v30  ;;  %v16813_v29 = vld [vmem:[%s25288_s1 + $0x480] ss:$16 sps:$4 sm:$0xff]   ;;  %v16816_v30 = vld [vmem:[%s25288_s1 + $0x488] ss:$16 sps:$4 sm:$0xff]  }
  0x5b   :  { %3749 = vmatpush1.bf16.msra.mxu0 %v16724_v31  ;;  %4208 = vmatpush1.bf16.msra.mxu1 %v16727_v32  ;;  %v16821_v31 = vld [vmem:[%s25288_s1 + $0x4a4] ss:$16 sps:$4 sm:$0xff]   ;;  %v16824_v32 = vld [vmem:[%s25288_s1 + $0x4ac] ss:$16 sps:$4 sm:$0xff]  }
  0x5c   :  { %3750 = vmatprep.subr.bf16.mxu0 %v16732_v34  ;;  %4209 = vmatprep.subr.bf16.mxu1 %v16735_v35  ;;  %v16822_v34 = vld [vmem:[%s25288_s1 + $0x4a8] ss:$16 sps:$4 sm:$0xff]   ;;  %v16827_v35 = vld [vmem:[%s25288_s1 + $0x4c4] ss:$16 sps:$4 sm:$0xff]  }
  0x5f   :  { %3751 = vmatpush1.bf16.msra.mxu0 %v16730_v36  ;;  %4210 = vmatpush1.bf16.msra.mxu1 %v16733_v37  ;;  %v16830_v36 = vld [vmem:[%s25288_s1 + $0x4cc] ss:$16 sps:$4 sm:$0xff]   ;;  %v16825_v37 = vld [vmem:[%s25288_s1 + $0x4c0] ss:$16 sps:$4 sm:$0xff]  }
  0x60   :  { %3752 = vmatprep.subr.bf16.mxu0 %v16738_v38  ;;  %4211 = vmatprep.subr.bf16.mxu1 %v16741_v39  ;;  %v16828_v38 = vld [vmem:[%s25288_s1 + $0x4c8] ss:$16 sps:$4 sm:$0xff]   ;;  %v16833_v39 = vld [vmem:[%s25288_s1 + $0x4e4] ss:$16 sps:$4 sm:$0xff]  }
  0x63   :  { %3753 = vmatpush1.bf16.msra.mxu0 %v16736_v40  ;;  %4212 = vmatpush1.bf16.msra.mxu1 %v16739_v41  ;;  %v16836_v40 = vld [vmem:[%s25288_s1 + $0x4ec] ss:$16 sps:$4 sm:$0xff]   ;;  %v16831_v41 = vld [vmem:[%s25288_s1 + $0x4e0] ss:$16 sps:$4 sm:$0xff]  }
  0x64   :  { %3754 = vmatprep.subr.bf16.mxu0 %v16744_v42  ;;  %4213 = vmatprep.subr.bf16.mxu1 %v16747_v43  ;;  %v16834_v42 = vld [vmem:[%s25288_s1 + $0x4e8] ss:$16 sps:$4 sm:$0xff]   ;;  %v16839_v43 = vld [vmem:[%s25288_s1 + $0x504] ss:$16 sps:$4 sm:$0xff]  }
  0x67   :  { %3755 = vmatpush1.bf16.msra.mxu0 %v16742_v44  ;;  %4214 = vmatpush1.bf16.msra.mxu1 %v16745_v45  ;;  %v16842_v44 = vld [vmem:[%s25288_s1 + $0x50c] ss:$16 sps:$4 sm:$0xff]   ;;  %v16837_v45 = vld [vmem:[%s25288_s1 + $0x500] ss:$16 sps:$4 sm:$0xff]  }
  0x68   :  { %3756 = vmatprep.subr.bf16.mxu0 %v16750_v46  ;;  %4215 = vmatprep.subr.bf16.mxu1 %v16753_v47  ;;  %v16840_v46 = vld [vmem:[%s25288_s1 + $0x508] ss:$16 sps:$4 sm:$0xff]   ;;  %v16845_v47 = vld [vmem:[%s25288_s1 + $0x524] ss:$16 sps:$4 sm:$0xff]  }
  0x6b   :  { %3757 = vmatpush1.bf16.msra.mxu0 %v16748_v48  ;;  %4216 = vmatpush1.bf16.msra.mxu1 %v16751_v49  ;;  %v16848_v48 = vld [vmem:[%s25288_s1 + $0x52c] ss:$16 sps:$4 sm:$0xff]   ;;  %v16843_v49 = vld [vmem:[%s25288_s1 + $0x520] ss:$16 sps:$4 sm:$0xff]  }
  0x6c   :  { %3758 = vmatprep.subr.bf16.mxu0 %v16756_v50  ;;  %4217 = vmatprep.subr.bf16.mxu1 %v16759_v51  ;;  %v16846_v50 = vld [vmem:[%s25288_s1 + $0x528] ss:$16 sps:$4 sm:$0xff]   ;;  %v16851_v51 = vld [vmem:[%s25288_s1 + $0x544] ss:$16 sps:$4 sm:$0xff]  }
  0x6f   :  { %3759 = vmatpush1.bf16.msra.mxu0 %v16754_v52  ;;  %4218 = vmatpush1.bf16.msra.mxu1 %v16757_v53  ;;  %v16854_v52 = vld [vmem:[%s25288_s1 + $0x54c] ss:$16 sps:$4 sm:$0xff]   ;;  %v16849_v53 = vld [vmem:[%s25288_s1 + $0x540] ss:$16 sps:$4 sm:$0xff]  }
  0x70   :  { %3760 = vmatprep.subr.bf16.mxu0 %v16762_v54  ;;  %4219 = vmatprep.subr.bf16.mxu1 %v16765_v55  ;;  %v16852_v54 = vld [vmem:[%s25288_s1 + $0x548] ss:$16 sps:$4 sm:$0xff]   ;;  %v16857_v55 = vld [vmem:[%s25288_s1 + $0x564] ss:$16 sps:$4 sm:$0xff]  }
  0x73   :  { %3761 = vmatpush1.bf16.msra.mxu0 %v16760_v56  ;;  %4220 = vmatpush1.bf16.msra.mxu1 %v16763_v57  ;;  %v16860_v56 = vld [vmem:[%s25288_s1 + $0x56c] ss:$16 sps:$4 sm:$0xff]   ;;  %v16855_v57 = vld [vmem:[%s25288_s1 + $0x560] ss:$16 sps:$4 sm:$0xff]  }
  0x74   :  { %3762 = vmatprep.subr.bf16.mxu0 %v16768_v58  ;;  %4221 = vmatprep.subr.bf16.mxu1 %v16771_v59  ;;  %v16858_v58 = vld [vmem:[%s25288_s1 + $0x568] ss:$16 sps:$4 sm:$0xff]   ;;  %v16863_v59 = vld [vmem:[%s25288_s1 + $0x584] ss:$16 sps:$4 sm:$0xff]  }
  0x77   :  { %3763 = vmatpush1.bf16.msra.mxu0 %v16766_v60  ;;  %4222 = vmatpush1.bf16.msra.mxu1 %v16769_v61  ;;  %v16866_v60 = vld [vmem:[%s25288_s1 + $0x58c] ss:$16 sps:$4 sm:$0xff]   ;;  %v16861_v61 = vld [vmem:[%s25288_s1 + $0x580] ss:$16 sps:$4 sm:$0xff]  }
  0x78   :  { %3764 = vmatprep.subr.bf16.mxu0 %v16775_v62  ;;  %4223 = vmatprep.subr.bf16.mxu1 %v16778_v63  ;;  %v16864_v62 = vld [vmem:[%s25288_s1 + $0x588] ss:$16 sps:$4 sm:$0xff]   ;;  %v16869_v63 = vld [vmem:[%s25288_s1 + $0x5a4] ss:$16 sps:$4 sm:$0xff]  }
  0x7b   :  { %3765 = vmatpush1.bf16.msra.mxu0 %v16773_v0  ;;  %4224 = vmatpush1.bf16.msra.mxu1 %v16776_v1  ;;  %v16872_v0 = vld [vmem:[%s25288_s1 + $0x5ac] ss:$16 sps:$4 sm:$0xff]   ;;  %v16867_v1 = vld [vmem:[%s25288_s1 + $0x5a0] ss:$16 sps:$4 sm:$0xff]  }
  0x7c   :  { %3766 = vmatprep.subr.bf16.mxu0 %v16782_v2  ;;  %4225 = vmatprep.subr.bf16.mxu1 %v16785_v3  ;;  %v16870_v2 = vld [vmem:[%s25288_s1 + $0x5a8] ss:$16 sps:$4 sm:$0xff]   ;;  %v16876_v3 = vld [vmem:[%s25288_s1 + $0x5c4] ss:$16 sps:$4 sm:$0xff]  }
  0x7f   :  { %3767 = vmatpush1.bf16.msra.mxu0 %v16780_v4  ;;  %4226 = vmatpush1.bf16.msra.mxu1 %v16783_v5  ;;  %v16879_v4 = vld [vmem:[%s25288_s1 + $0x5cc] ss:$16 sps:$4 sm:$0xff]   ;;  %v16874_v5 = vld [vmem:[%s25288_s1 + $0x5c0] ss:$16 sps:$4 sm:$0xff]  }
  0x80   :  { %3787 = vmatprep.subr.bf16.mxu0 %v16791_v6  ;;  %4246 = vmatprep.subr.bf16.mxu1 %v16794_v7  ;;  %v16877_v6 = vld [vmem:[%s25288_s1 + $0x5c8] ss:$16 sps:$4 sm:$0xff]   ;;  %v16883_v7 = vld [vmem:[%s25288_s1 + $0x5e4] ss:$16 sps:$4 sm:$0xff]  }
  0x82   :  { %3769 = vmatmul.mubr.bf16.vlgmr.msra.gmra.mrb[0].mxu0 %v16786_v8  ;;  %4228 = vmatmul.mubr.bf16.vlgmr.msra.gmra.mrb[0].mxu1 %v16786_v8  ;;  %v16886_v8 = vld [vmem:[%s25288_s1 + $0x5ec] ss:$16 sps:$4 sm:$0xff]  }
  0x83   :  { %3788 = vmatpush1.bf16.msra.mxu0 %v16789_v10  ;;  %4247 = vmatpush1.bf16.msra.mxu1 %v16792_v11  ;;  %v16884_v10 = vld [vmem:[%s25288_s1 + $0x5e8] ss:$16 sps:$4 sm:$0xff]   ;;  %v16892_v11 = vld [vmem:[%s25288_s1 + $0x604] ss:$16 sps:$4 sm:$0xff]  }
  0x84   :  { %3789 = vmatprep.subr.bf16.mxu0 %v16797_v12  ;;  %4248 = vmatprep.subr.bf16.mxu1 %v16800_v13  ;;  %v16895_v12 = vld [vmem:[%s25288_s1 + $0x60c] ss:$16 sps:$4 sm:$0xff]   ;;  %v16887_v13 = vld [vmem:[%s25287_s0 + $0x10] ss:$72 sps:$4 sm:$0xff]  }
  0x85   :  { %3778 = vmatprep.mubr.bf16.mxu0 %v13546_v14  ;;  %4237 = vmatprep.mubr.bf16.mxu1 %v13546_v14  ;;  %v16890_v14 = vld [vmem:[%s25288_s1 + $0x600] ss:$16 sps:$4 sm:$0xff]  }
  0x87   :  { %3790 = vmatpush1.bf16.msra.mxu0 %v16795_v15  ;;  %4249 = vmatpush1.bf16.msra.mxu1 %v16798_v16  ;;  %v47_v15 = vld [vmem:[%s25287_s0 + $0xa0] sm:$0x11]  ;;  %v16893_v16 = vld [vmem:[%s25288_s1 + $0x608] ss:$16 sps:$4 sm:$0xff]  }
  0x88   :  { %3791 = vmatprep.subr.bf16.mxu0 %v16803_v17  ;;  %4250 = vmatprep.subr.bf16.mxu1 %v16806_v18  ;;  %v16898_v17 = vld [vmem:[%s25288_s1 + $0x624] ss:$16 sps:$4 sm:$0xff]   ;;  %v16901_v18 = vld [vmem:[%s25288_s1 + $0x62c] ss:$16 sps:$4 sm:$0xff]  }
  0x8a   :  { %3779 = vmatmul.mubr.bf16.gmra.mrb[4].mxu0 %v13545_v19  ;;  %4238 = vmatmul.mubr.bf16.gmra.mrb[4].mxu1 %v13545_v19  ;;  %v13548_v19 = vcombine.high %v47_v15, %v47_v15 }
  0x8b   :  { %3792 = vmatpush1.bf16.msra.mxu0 %v16801_v20  ;;  %4251 = vmatpush1.bf16.msra.mxu1 %v16804_v21  ;;  %v16896_v20 = vld [vmem:[%s25288_s1 + $0x620] ss:$16 sps:$4 sm:$0xff]   ;;  %v16899_v21 = vld [vmem:[%s25288_s1 + $0x628] ss:$16 sps:$4 sm:$0xff]  }
  0x8c   :  { %3793 = vmatprep.subr.bf16.mxu0 %v16809_v22  ;;  %4252 = vmatprep.subr.bf16.mxu1 %v16812_v23  ;;  %v16904_v22 = vld [vmem:[%s25288_s1 + $0x644] ss:$16 sps:$4 sm:$0xff]   ;;  %v16907_v23 = vld [vmem:[%s25288_s1 + $0x64c] ss:$16 sps:$4 sm:$0xff]  }
  0x8d   :  { %3819 = vmatprep.mubr.bf16.mxu0 %v16889_v24  ;;  %4278 = vmatprep.mubr.bf16.mxu1 %v16889_v24  ;;  %v16902_v24 = vld [vmem:[%s25288_s1 + $0x640] ss:$16 sps:$4 sm:$0xff]  }
  0x8f   :  { %3794 = vmatpush1.bf16.msra.mxu0 %v16807_v25  ;;  %4253 = vmatpush1.bf16.msra.mxu1 %v16810_v26  ;;  %v13547_v25 = vcombine.low %v47_v15, %v47_v15  ;;  %v16905_v26 = vld [vmem:[%s25288_s1 + $0x648] ss:$16 sps:$4 sm:$0xff]  }
  0x90   :  { %3795 = vmatprep.subr.bf16.mxu0 %v16815_v27  ;;  %4254 = vmatprep.subr.bf16.mxu1 %v16818_v28  ;;  %v16910_v27 = vld [vmem:[%s25288_s1 + $0x664] ss:$16 sps:$4 sm:$0xff]   ;;  %v16913_v28 = vld [vmem:[%s25288_s1 + $0x66c] ss:$16 sps:$4 sm:$0xff]   ;;  %v16985_v15 = vld [vmem:[%s25288_s1 + $0x7e8] ss:$16 sps:$4 sm:$0xff]  }
  0x93   :  { %3796 = vmatpush1.bf16.msra.mxu0 %v16813_v29  ;;  %4255 = vmatpush1.bf16.msra.mxu1 %v16816_v30  ;;  %v16990_v29 = vld [vmem:[%s25287_s0 + $0x1c] ss:$72 sps:$4 sm:$0xff]   ;;  %v16908_v30 = vld [vmem:[%s25288_s1 + $0x660] ss:$16 sps:$4 sm:$0xff]  }
  0x94   :  { %3797 = vmatprep.subr.bf16.mxu0 %v16821_v31  ;;  %4256 = vmatprep.subr.bf16.mxu1 %v16824_v32  ;;  %v16911_v31 = vld [vmem:[%s25288_s1 + $0x668] ss:$16 sps:$4 sm:$0xff]   ;;  %v16916_v32 = vld [vmem:[%s25288_s1 + $0x684] ss:$16 sps:$4 sm:$0xff]  }
  0x97   :  { %3798 = vmatpush1.bf16.msra.mxu0 %v16819_v33  ;;  %4257 = vmatpush1.bf16.msra.mxu1 %v16822_v34  ;;  %v16919_v33 = vld [vmem:[%s25288_s1 + $0x68c] ss:$16 sps:$4 sm:$0xff]   ;;  %v16914_v34 = vld [vmem:[%s25288_s1 + $0x680] ss:$16 sps:$4 sm:$0xff]  }
  0x98   :  { %3799 = vmatprep.subr.bf16.mxu0 %v16827_v35  ;;  %4258 = vmatprep.subr.bf16.mxu1 %v16830_v36  ;;  %v16917_v35 = vld [vmem:[%s25288_s1 + $0x688] ss:$16 sps:$4 sm:$0xff]   ;;  %v16922_v36 = vld [vmem:[%s25288_s1 + $0x6a4] ss:$16 sps:$4 sm:$0xff]  }
  0x9b   :  { %3800 = vmatpush1.bf16.msra.mxu0 %v16825_v37  ;;  %4259 = vmatpush1.bf16.msra.mxu1 %v16828_v38  ;;  %v16925_v37 = vld [vmem:[%s25288_s1 + $0x6ac] ss:$16 sps:$4 sm:$0xff]   ;;  %v16920_v38 = vld [vmem:[%s25288_s1 + $0x6a0] ss:$16 sps:$4 sm:$0xff]  }
  0x9c   :  { %3801 = vmatprep.subr.bf16.mxu0 %v16833_v39  ;;  %4260 = vmatprep.subr.bf16.mxu1 %v16836_v40  ;;  %v16923_v39 = vld [vmem:[%s25288_s1 + $0x6a8] ss:$16 sps:$4 sm:$0xff]   ;;  %v16928_v40 = vld [vmem:[%s25288_s1 + $0x6c4] ss:$16 sps:$4 sm:$0xff]  }
  0x9f   :  { %3802 = vmatpush1.bf16.msra.mxu0 %v16831_v41  ;;  %4261 = vmatpush1.bf16.msra.mxu1 %v16834_v42  ;;  %v16931_v41 = vld [vmem:[%s25288_s1 + $0x6cc] ss:$16 sps:$4 sm:$0xff]   ;;  %v16926_v42 = vld [vmem:[%s25288_s1 + $0x6c0] ss:$16 sps:$4 sm:$0xff]  }
  0xa0   :  { %3803 = vmatprep.subr.bf16.mxu0 %v16839_v43  ;;  %4262 = vmatprep.subr.bf16.mxu1 %v16842_v44  ;;  %v16929_v43 = vld [vmem:[%s25288_s1 + $0x6c8] ss:$16 sps:$4 sm:$0xff]   ;;  %v16934_v44 = vld [vmem:[%s25288_s1 + $0x6e4] ss:$16 sps:$4 sm:$0xff]  }
  0xa3   :  { %3804 = vmatpush1.bf16.msra.mxu0 %v16837_v45  ;;  %4263 = vmatpush1.bf16.msra.mxu1 %v16840_v46  ;;  %v16937_v45 = vld [vmem:[%s25288_s1 + $0x6ec] ss:$16 sps:$4 sm:$0xff]   ;;  %v16932_v46 = vld [vmem:[%s25288_s1 + $0x6e0] ss:$16 sps:$4 sm:$0xff]  }
  0xa4   :  { %3805 = vmatprep.subr.bf16.mxu0 %v16845_v47  ;;  %4264 = vmatprep.subr.bf16.mxu1 %v16848_v48  ;;  %v16935_v47 = vld [vmem:[%s25288_s1 + $0x6e8] ss:$16 sps:$4 sm:$0xff]   ;;  %v16940_v48 = vld [vmem:[%s25288_s1 + $0x704] ss:$16 sps:$4 sm:$0xff]  }
  0xa7   :  { %3806 = vmatpush1.bf16.msra.mxu0 %v16843_v49  ;;  %4265 = vmatpush1.bf16.msra.mxu1 %v16846_v50  ;;  %v16943_v49 = vld [vmem:[%s25288_s1 + $0x70c] ss:$16 sps:$4 sm:$0xff]   ;;  %v16938_v50 = vld [vmem:[%s25288_s1 + $0x700] ss:$16 sps:$4 sm:$0xff]  }
  0xa8   :  { %3807 = vmatprep.subr.bf16.mxu0 %v16851_v51  ;;  %4266 = vmatprep.subr.bf16.mxu1 %v16854_v52  ;;  %v16941_v51 = vld [vmem:[%s25288_s1 + $0x708] ss:$16 sps:$4 sm:$0xff]   ;;  %v16946_v52 = vld [vmem:[%s25288_s1 + $0x724] ss:$16 sps:$4 sm:$0xff]  }
  0xab   :  { %3808 = vmatpush1.bf16.msra.mxu0 %v16849_v53  ;;  %4267 = vmatpush1.bf16.msra.mxu1 %v16852_v54  ;;  %v16949_v53 = vld [vmem:[%s25288_s1 + $0x72c] ss:$16 sps:$4 sm:$0xff]   ;;  %v16944_v54 = vld [vmem:[%s25288_s1 + $0x720] ss:$16 sps:$4 sm:$0xff]  }
  0xac   :  { %3809 = vmatprep.subr.bf16.mxu0 %v16857_v55  ;;  %4268 = vmatprep.subr.bf16.mxu1 %v16860_v56  ;;  %v16947_v55 = vld [vmem:[%s25288_s1 + $0x728] ss:$16 sps:$4 sm:$0xff]   ;;  %v16952_v56 = vld [vmem:[%s25288_s1 + $0x744] ss:$16 sps:$4 sm:$0xff]  }
  0xaf   :  { %3810 = vmatpush1.bf16.msra.mxu0 %v16855_v57  ;;  %4269 = vmatpush1.bf16.msra.mxu1 %v16858_v58  ;;  %v16955_v57 = vld [vmem:[%s25288_s1 + $0x74c] ss:$16 sps:$4 sm:$0xff]   ;;  %v16950_v58 = vld [vmem:[%s25288_s1 + $0x740] ss:$16 sps:$4 sm:$0xff]  }
  0xb0   :  { %3811 = vmatprep.subr.bf16.mxu0 %v16863_v59  ;;  %4270 = vmatprep.subr.bf16.mxu1 %v16866_v60  ;;  %v16953_v59 = vld [vmem:[%s25288_s1 + $0x748] ss:$16 sps:$4 sm:$0xff]   ;;  %v16958_v60 = vld [vmem:[%s25288_s1 + $0x764] ss:$16 sps:$4 sm:$0xff]  }
  0xb3   :  { %3812 = vmatpush1.bf16.msra.mxu0 %v16861_v61  ;;  %4271 = vmatpush1.bf16.msra.mxu1 %v16864_v62  ;;  %v16961_v61 = vld [vmem:[%s25288_s1 + $0x76c] ss:$16 sps:$4 sm:$0xff]   ;;  %v16956_v62 = vld [vmem:[%s25288_s1 + $0x760] ss:$16 sps:$4 sm:$0xff]  }
  0xb4   :  { %3813 = vmatprep.subr.bf16.mxu0 %v16869_v63  ;;  %4272 = vmatprep.subr.bf16.mxu1 %v16872_v0  ;;  %v16959_v63 = vld [vmem:[%s25288_s1 + $0x768] ss:$16 sps:$4 sm:$0xff]   ;;  %v16964_v0 = vld [vmem:[%s25288_s1 + $0x784] ss:$16 sps:$4 sm:$0xff]  }
  0xb7   :  { %3814 = vmatpush1.bf16.msra.mxu0 %v16867_v1  ;;  %4273 = vmatpush1.bf16.msra.mxu1 %v16870_v2  ;;  %v16967_v1 = vld [vmem:[%s25288_s1 + $0x78c] ss:$16 sps:$4 sm:$0xff]   ;;  %v16962_v2 = vld [vmem:[%s25288_s1 + $0x780] ss:$16 sps:$4 sm:$0xff]  }
  0xb8   :  { %3815 = vmatprep.subr.bf16.mxu0 %v16876_v3  ;;  %4274 = vmatprep.subr.bf16.mxu1 %v16879_v4  ;;  %v16965_v3 = vld [vmem:[%s25288_s1 + $0x788] ss:$16 sps:$4 sm:$0xff]   ;;  %v16970_v4 = vld [vmem:[%s25288_s1 + $0x7a4] ss:$16 sps:$4 sm:$0xff]  }
  0xbb   :  { %3816 = vmatpush1.bf16.msra.mxu0 %v16874_v5  ;;  %4275 = vmatpush1.bf16.msra.mxu1 %v16877_v6  ;;  %v16973_v5 = vld [vmem:[%s25288_s1 + $0x7ac] ss:$16 sps:$4 sm:$0xff]   ;;  %v16968_v6 = vld [vmem:[%s25288_s1 + $0x7a0] ss:$16 sps:$4 sm:$0xff]  }
  0xbc   :  { %3817 = vmatprep.subr.bf16.mxu0 %v16883_v7  ;;  %4276 = vmatprep.subr.bf16.mxu1 %v16886_v8  ;;  %v16971_v7 = vld [vmem:[%s25288_s1 + $0x7a8] ss:$16 sps:$4 sm:$0xff]   ;;  %v16977_v8 = vld [vmem:[%s25288_s1 + $0x7c4] ss:$16 sps:$4 sm:$0xff]  }
  0xbf   :  { %3818 = vmatpush1.bf16.msra.mxu0 %v16881_v9  ;;  %4277 = vmatpush1.bf16.msra.mxu1 %v16884_v10  ;;  %v16980_v9 = vld [vmem:[%s25288_s1 + $0x7cc] ss:$16 sps:$4 sm:$0xff]   ;;  %v16975_v10 = vld [vmem:[%s25288_s1 + $0x7c0] ss:$16 sps:$4 sm:$0xff]  }
  0xc0   :  { %3838 = vmatprep.subr.bf16.mxu0 %v16892_v11  ;;  %4297 = vmatprep.subr.bf16.mxu1 %v16895_v12  ;;  %v16978_v11 = vld [vmem:[%s25288_s1 + $0x7c8] ss:$16 sps:$4 sm:$0xff]   ;;  %v16984_v12 = vld [vmem:[%s25288_s1 + $0x7e4] ss:$16 sps:$4 sm:$0xff]  }
  0xc2   :  { %3820 = vmatmul.mubr.bf16.vlgmr.msra.gmra.mrb[0].mxu0 %v16887_v13  ;;  %4279 = vmatmul.mubr.bf16.vlgmr.msra.gmra.mrb[0].mxu1 %v16887_v13  ;;  %v16987_v13 = vld [vmem:[%s25288_s1 + $0x7ec] ss:$16 sps:$4 sm:$0xff]  }
  0xc3   :  { %3839 = vmatpush1.bf16.msra.mxu0 %v16890_v14  ;;  %4298 = vmatpush1.bf16.msra.mxu1 %v16893_v16  ;;  %v16982_v14 = vld [vmem:[%s25288_s1 + $0x7e0] ss:$16 sps:$4 sm:$0xff]   ;;  %v16993_v16 = vld [vmem:[%s25288_s1 + $0x804] ss:$16 sps:$4 sm:$0xff]  }
  0xc4   :  { %3840 = vmatprep.subr.bf16.mxu0 %v16898_v17  ;;  %4299 = vmatprep.subr.bf16.mxu1 %v16901_v18  ;;  %v16996_v17 = vld [vmem:[%s25288_s1 + $0x80c] ss:$16 sps:$4 sm:$0xff]   ;;  %v16988_v18 = vld [vmem:[%s25287_s0 + $0x18] ss:$72 sps:$4 sm:$0xff]  }
  0xc5   :  { %3829 = vmatprep.mubr.bf16.mxu0 %v13548_v19  ;;  %4288 = vmatprep.mubr.bf16.mxu1 %v13548_v19  ;;  %v16991_v19 = vld [vmem:[%s25288_s1 + $0x800] ss:$16 sps:$4 sm:$0xff]  }
  0xc7   :  { %3841 = vmatpush1.bf16.msra.mxu0 %v16896_v20  ;;  %4300 = vmatpush1.bf16.msra.mxu1 %v16899_v21  ;;  %v16994_v20 = vld [vmem:[%s25288_s1 + $0x808] ss:$16 sps:$4 sm:$0xff]  }
  0xc8   :  { %3842 = vmatprep.subr.bf16.mxu0 %v16904_v22  ;;  %4301 = vmatprep.subr.bf16.mxu1 %v16907_v23  ;;  %v48_v21 = vld [vmem:[%s25287_s0 + $0xa8] sm:$0x11]  ;;  %v16999_v22 = vld [vmem:[%s25288_s1 + $0x824] ss:$16 sps:$4 sm:$0xff]  }
  0xc9   :  { %v17002_v23 = vld [vmem:[%s25288_s1 + $0x82c] ss:$16 sps:$4 sm:$0xff]  }
  0xca   :  { %3830 = vmatmul.mubr.bf16.gmra.mrb[4].mxu0 %v13547_v25  ;;  %4289 = vmatmul.mubr.bf16.gmra.mrb[4].mxu1 %v13547_v25  ;;  %v16997_v25 = vld [vmem:[%s25288_s1 + $0x820] ss:$16 sps:$4 sm:$0xff]  }
  0xcb   :  { %3843 = vmatpush1.bf16.msra.mxu0 %v16902_v24  ;;  %4302 = vmatpush1.bf16.msra.mxu1 %v16905_v26  ;;  %v13550_v24 = vcombine.high %v48_v21, %v48_v21  ;;  %v17000_v26 = vld [vmem:[%s25288_s1 + $0x828] ss:$16 sps:$4 sm:$0xff]  }
  0xcc   :  { %3844 = vmatprep.subr.bf16.mxu0 %v16910_v27  ;;  %4303 = vmatprep.subr.bf16.mxu1 %v16913_v28  ;;  %v17005_v27 = vld [vmem:[%s25288_s1 + $0x844] ss:$16 sps:$4 sm:$0xff]   ;;  %v17008_v28 = vld [vmem:[%s25288_s1 + $0x84c] ss:$16 sps:$4 sm:$0xff]  }
  0xcd   :  { %3870 = vmatprep.mubr.bf16.mxu0 %v16990_v29  ;;  %4329 = vmatprep.mubr.bf16.mxu1 %v16990_v29  ;;  %v17003_v29 = vld [vmem:[%s25288_s1 + $0x840] ss:$16 sps:$4 sm:$0xff]  }
  0xcf   :  { %3845 = vmatpush1.bf16.msra.mxu0 %v16908_v30  ;;  %4304 = vmatpush1.bf16.msra.mxu1 %v16911_v31  ;;  %v13549_v30 = vcombine.low %v48_v21, %v48_v21  ;;  %v17006_v31 = vld [vmem:[%s25288_s1 + $0x848] ss:$16 sps:$4 sm:$0xff]   ;;  %v17094_v21 = vld [vmem:[%s25288_s1 + $0xa04] ss:$16 sps:$4 sm:$0xff]  }
  0xd0   :  { %3846 = vmatprep.subr.bf16.mxu0 %v16916_v32  ;;  %4305 = vmatprep.subr.bf16.mxu1 %v16919_v33  ;;  %v17011_v32 = vld [vmem:[%s25288_s1 + $0x864] ss:$16 sps:$4 sm:$0xff]   ;;  %v17014_v33 = vld [vmem:[%s25288_s1 + $0x86c] ss:$16 sps:$4 sm:$0xff]  }
  0xd3   :  { %3847 = vmatpush1.bf16.msra.mxu0 %v16914_v34  ;;  %4306 = vmatpush1.bf16.msra.mxu1 %v16917_v35  ;;  %v17091_v34 = vld [vmem:[%s25287_s0 + $0x24] ss:$72 sps:$4 sm:$0xff]   ;;  %v17009_v35 = vld [vmem:[%s25288_s1 + $0x860] ss:$16 sps:$4 sm:$0xff]  }
  0xd4   :  { %3848 = vmatprep.subr.bf16.mxu0 %v16922_v36  ;;  %4307 = vmatprep.subr.bf16.mxu1 %v16925_v37  ;;  %v17012_v36 = vld [vmem:[%s25288_s1 + $0x868] ss:$16 sps:$4 sm:$0xff]   ;;  %v17017_v37 = vld [vmem:[%s25288_s1 + $0x884] ss:$16 sps:$4 sm:$0xff]  }
  0xd7   :  { %3849 = vmatpush1.bf16.msra.mxu0 %v16920_v38  ;;  %4308 = vmatpush1.bf16.msra.mxu1 %v16923_v39  ;;  %v17020_v38 = vld [vmem:[%s25288_s1 + $0x88c] ss:$16 sps:$4 sm:$0xff]   ;;  %v17015_v39 = vld [vmem:[%s25288_s1 + $0x880] ss:$16 sps:$4 sm:$0xff]  }
  0xd8   :  { %3850 = vmatprep.subr.bf16.mxu0 %v16928_v40  ;;  %4309 = vmatprep.subr.bf16.mxu1 %v16931_v41  ;;  %v17018_v40 = vld [vmem:[%s25288_s1 + $0x888] ss:$16 sps:$4 sm:$0xff]   ;;  %v17023_v41 = vld [vmem:[%s25288_s1 + $0x8a4] ss:$16 sps:$4 sm:$0xff]  }
  0xdb   :  { %3851 = vmatpush1.bf16.msra.mxu0 %v16926_v42  ;;  %4310 = vmatpush1.bf16.msra.mxu1 %v16929_v43  ;;  %v17026_v42 = vld [vmem:[%s25288_s1 + $0x8ac] ss:$16 sps:$4 sm:$0xff]   ;;  %v17021_v43 = vld [vmem:[%s25288_s1 + $0x8a0] ss:$16 sps:$4 sm:$0xff]  }
  0xdc   :  { %3852 = vmatprep.subr.bf16.mxu0 %v16934_v44  ;;  %4311 = vmatprep.subr.bf16.mxu1 %v16937_v45  ;;  %v17024_v44 = vld [vmem:[%s25288_s1 + $0x8a8] ss:$16 sps:$4 sm:$0xff]   ;;  %v17029_v45 = vld [vmem:[%s25288_s1 + $0x8c4] ss:$16 sps:$4 sm:$0xff]  }
  0xdf   :  { %3853 = vmatpush1.bf16.msra.mxu0 %v16932_v46  ;;  %4312 = vmatpush1.bf16.msra.mxu1 %v16935_v47  ;;  %v17032_v46 = vld [vmem:[%s25288_s1 + $0x8cc] ss:$16 sps:$4 sm:$0xff]   ;;  %v17027_v47 = vld [vmem:[%s25288_s1 + $0x8c0] ss:$16 sps:$4 sm:$0xff]  }
  0xe0   :  { %3854 = vmatprep.subr.bf16.mxu0 %v16940_v48  ;;  %4313 = vmatprep.subr.bf16.mxu1 %v16943_v49  ;;  %v17030_v48 = vld [vmem:[%s25288_s1 + $0x8c8] ss:$16 sps:$4 sm:$0xff]   ;;  %v17035_v49 = vld [vmem:[%s25288_s1 + $0x8e4] ss:$16 sps:$4 sm:$0xff]  }
  0xe3   :  { %3855 = vmatpush1.bf16.msra.mxu0 %v16938_v50  ;;  %4314 = vmatpush1.bf16.msra.mxu1 %v16941_v51  ;;  %v17038_v50 = vld [vmem:[%s25288_s1 + $0x8ec] ss:$16 sps:$4 sm:$0xff]   ;;  %v17033_v51 = vld [vmem:[%s25288_s1 + $0x8e0] ss:$16 sps:$4 sm:$0xff]  }
  0xe4   :  { %3856 = vmatprep.subr.bf16.mxu0 %v16946_v52  ;;  %4315 = vmatprep.subr.bf16.mxu1 %v16949_v53  ;;  %v17036_v52 = vld [vmem:[%s25288_s1 + $0x8e8] ss:$16 sps:$4 sm:$0xff]   ;;  %v17041_v53 = vld [vmem:[%s25288_s1 + $0x904] ss:$16 sps:$4 sm:$0xff]  }
  0xe7   :  { %3857 = vmatpush1.bf16.msra.mxu0 %v16944_v54  ;;  %4316 = vmatpush1.bf16.msra.mxu1 %v16947_v55  ;;  %v17044_v54 = vld [vmem:[%s25288_s1 + $0x90c] ss:$16 sps:$4 sm:$0xff]   ;;  %v17039_v55 = vld [vmem:[%s25288_s1 + $0x900] ss:$16 sps:$4 sm:$0xff]  }
  0xe8   :  { %3858 = vmatprep.subr.bf16.mxu0 %v16952_v56  ;;  %4317 = vmatprep.subr.bf16.mxu1 %v16955_v57  ;;  %v17042_v56 = vld [vmem:[%s25288_s1 + $0x908] ss:$16 sps:$4 sm:$0xff]   ;;  %v17047_v57 = vld [vmem:[%s25288_s1 + $0x924] ss:$16 sps:$4 sm:$0xff]  }
  0xeb   :  { %3859 = vmatpush1.bf16.msra.mxu0 %v16950_v58  ;;  %4318 = vmatpush1.bf16.msra.mxu1 %v16953_v59  ;;  %v17050_v58 = vld [vmem:[%s25288_s1 + $0x92c] ss:$16 sps:$4 sm:$0xff]   ;;  %v17045_v59 = vld [vmem:[%s25288_s1 + $0x920] ss:$16 sps:$4 sm:$0xff]  }
  0xec   :  { %3860 = vmatprep.subr.bf16.mxu0 %v16958_v60  ;;  %4319 = vmatprep.subr.bf16.mxu1 %v16961_v61  ;;  %v17048_v60 = vld [vmem:[%s25288_s1 + $0x928] ss:$16 sps:$4 sm:$0xff]   ;;  %v17053_v61 = vld [vmem:[%s25288_s1 + $0x944] ss:$16 sps:$4 sm:$0xff]  }
  0xef   :  { %3861 = vmatpush1.bf16.msra.mxu0 %v16956_v62  ;;  %4320 = vmatpush1.bf16.msra.mxu1 %v16959_v63  ;;  %v17056_v62 = vld [vmem:[%s25288_s1 + $0x94c] ss:$16 sps:$4 sm:$0xff]   ;;  %v17051_v63 = vld [vmem:[%s25288_s1 + $0x940] ss:$16 sps:$4 sm:$0xff]  }
  0xf0   :  { %3862 = vmatprep.subr.bf16.mxu0 %v16964_v0  ;;  %4321 = vmatprep.subr.bf16.mxu1 %v16967_v1  ;;  %v17054_v0 = vld [vmem:[%s25288_s1 + $0x948] ss:$16 sps:$4 sm:$0xff]   ;;  %v17059_v1 = vld [vmem:[%s25288_s1 + $0x964] ss:$16 sps:$4 sm:$0xff]  }
  0xf3   :  { %3863 = vmatpush1.bf16.msra.mxu0 %v16962_v2  ;;  %4322 = vmatpush1.bf16.msra.mxu1 %v16965_v3  ;;  %v17062_v2 = vld [vmem:[%s25288_s1 + $0x96c] ss:$16 sps:$4 sm:$0xff]   ;;  %v17057_v3 = vld [vmem:[%s25288_s1 + $0x960] ss:$16 sps:$4 sm:$0xff]  }
  0xf4   :  { %3864 = vmatprep.subr.bf16.mxu0 %v16970_v4  ;;  %4323 = vmatprep.subr.bf16.mxu1 %v16973_v5  ;;  %v17060_v4 = vld [vmem:[%s25288_s1 + $0x968] ss:$16 sps:$4 sm:$0xff]   ;;  %v17065_v5 = vld [vmem:[%s25288_s1 + $0x984] ss:$16 sps:$4 sm:$0xff]  }
  0xf7   :  { %3865 = vmatpush1.bf16.msra.mxu0 %v16968_v6  ;;  %4324 = vmatpush1.bf16.msra.mxu1 %v16971_v7  ;;  %v17068_v6 = vld [vmem:[%s25288_s1 + $0x98c] ss:$16 sps:$4 sm:$0xff]   ;;  %v17063_v7 = vld [vmem:[%s25288_s1 + $0x980] ss:$16 sps:$4 sm:$0xff]  }
  0xf8   :  { %3866 = vmatprep.subr.bf16.mxu0 %v16977_v8  ;;  %4325 = vmatprep.subr.bf16.mxu1 %v16980_v9  ;;  %v17066_v8 = vld [vmem:[%s25288_s1 + $0x988] ss:$16 sps:$4 sm:$0xff]   ;;  %v17071_v9 = vld [vmem:[%s25288_s1 + $0x9a4] ss:$16 sps:$4 sm:$0xff]  }
  0xfb   :  { %3867 = vmatpush1.bf16.msra.mxu0 %v16975_v10  ;;  %4326 = vmatpush1.bf16.msra.mxu1 %v16978_v11  ;;  %v17074_v10 = vld [vmem:[%s25288_s1 + $0x9ac] ss:$16 sps:$4 sm:$0xff]   ;;  %v17069_v11 = vld [vmem:[%s25288_s1 + $0x9a0] ss:$16 sps:$4 sm:$0xff]  }
  0xfc   :  { %3868 = vmatprep.subr.bf16.mxu0 %v16984_v12  ;;  %4327 = vmatprep.subr.bf16.mxu1 %v16987_v13  ;;  %v17072_v12 = vld [vmem:[%s25288_s1 + $0x9a8] ss:$16 sps:$4 sm:$0xff]   ;;  %v17078_v13 = vld [vmem:[%s25288_s1 + $0x9c4] ss:$16 sps:$4 sm:$0xff]  }
  0xff   :  { %3869 = vmatpush1.bf16.msra.mxu0 %v16982_v14  ;;  %4328 = vmatpush1.bf16.msra.mxu1 %v16985_v15  ;;  %v17081_v14 = vld [vmem:[%s25288_s1 + $0x9cc] ss:$16 sps:$4 sm:$0xff]   ;;  %v17076_v15 = vld [vmem:[%s25288_s1 + $0x9c0] ss:$16 sps:$4 sm:$0xff]  }
 0x100   :  { %3889 = vmatprep.subr.bf16.mxu0 %v16993_v16  ;;  %4348 = vmatprep.subr.bf16.mxu1 %v16996_v17  ;;  %v17079_v16 = vld [vmem:[%s25288_s1 + $0x9c8] ss:$16 sps:$4 sm:$0xff]   ;;  %v17085_v17 = vld [vmem:[%s25288_s1 + $0x9e4] ss:$16 sps:$4 sm:$0xff]  }
 0x102   :  { %3871 = vmatmul.mubr.bf16.vlgmr.msra.gmra.mrb[0].mxu0 %v16988_v18  ;;  %4330 = vmatmul.mubr.bf16.vlgmr.msra.gmra.mrb[0].mxu1 %v16988_v18  ;;  %v17088_v18 = vld [vmem:[%s25288_s1 + $0x9ec] ss:$16 sps:$4 sm:$0xff]  }
 0x103   :  { %3890 = vmatpush1.bf16.msra.mxu0 %v16991_v19  ;;  %4349 = vmatpush1.bf16.msra.mxu1 %v16994_v20  ;;  %v17083_v19 = vld [vmem:[%s25288_s1 + $0x9e0] ss:$16 sps:$4 sm:$0xff]   ;;  %v17086_v20 = vld [vmem:[%s25288_s1 + $0x9e8] ss:$16 sps:$4 sm:$0xff]  }
 0x104   :  { %3891 = vmatprep.subr.bf16.mxu0 %v16999_v22  ;;  %4350 = vmatprep.subr.bf16.mxu1 %v17002_v23  ;;  %v17089_v22 = vld [vmem:[%s25287_s0 + $0x20] ss:$72 sps:$4 sm:$0xff]   ;;  %v17097_v23 = vld [vmem:[%s25288_s1 + $0xa0c] ss:$16 sps:$4 sm:$0xff]  }
 0x105   :  { %3880 = vmatprep.mubr.bf16.mxu0 %v13550_v24  ;;  %4339 = vmatprep.mubr.bf16.mxu1 %v13550_v24  ;;  %v49_v24 = vld [vmem:[%s25287_s0 + $0xb0] sm:$0x11] }
 0x107   :  { %3892 = vmatpush1.bf16.msra.mxu0 %v16997_v25  ;;  %4351 = vmatpush1.bf16.msra.mxu1 %v17000_v26  ;;  %v17092_v25 = vld [vmem:[%s25288_s1 + $0xa00] ss:$16 sps:$4 sm:$0xff]   ;;  %v17095_v26 = vld [vmem:[%s25288_s1 + $0xa08] ss:$16 sps:$4 sm:$0xff]  }
 0x108   :  { %3893 = vmatprep.subr.bf16.mxu0 %v17005_v27  ;;  %4352 = vmatprep.subr.bf16.mxu1 %v17008_v28  ;;  %v17100_v27 = vld [vmem:[%s25288_s1 + $0xa24] ss:$16 sps:$4 sm:$0xff]   ;;  %v17103_v28 = vld [vmem:[%s25288_s1 + $0xa2c] ss:$16 sps:$4 sm:$0xff]  }
 0x10a   :  { %3881 = vmatmul.mubr.bf16.gmra.mrb[4].mxu0 %v13549_v30  ;;  %4340 = vmatmul.mubr.bf16.gmra.mrb[4].mxu1 %v13549_v30  ;;  %v17098_v30 = vld [vmem:[%s25288_s1 + $0xa20] ss:$16 sps:$4 sm:$0xff]  }
 0x10b   :  { %3894 = vmatpush1.bf16.msra.mxu0 %v17003_v29  ;;  %4353 = vmatpush1.bf16.msra.mxu1 %v17006_v31  ;;  %v13552_v29 = vcombine.high %v49_v24, %v49_v24  ;;  %v17101_v31 = vld [vmem:[%s25288_s1 + $0xa28] ss:$16 sps:$4 sm:$0xff]  }
 0x10c   :  { %3895 = vmatprep.subr.bf16.mxu0 %v17011_v32  ;;  %4354 = vmatprep.subr.bf16.mxu1 %v17014_v33  ;;  %v17106_v32 = vld [vmem:[%s25288_s1 + $0xa44] ss:$16 sps:$4 sm:$0xff]   ;;  %v17109_v33 = vld [vmem:[%s25288_s1 + $0xa4c] ss:$16 sps:$4 sm:$0xff]  }
 0x10d   :  { %3921 = vmatprep.mubr.bf16.mxu0 %v17091_v34  ;;  %4380 = vmatprep.mubr.bf16.mxu1 %v17091_v34  ;;  %v17104_v34 = vld [vmem:[%s25288_s1 + $0xa40] ss:$16 sps:$4 sm:$0xff]  }
 0x10f   :  { %3896 = vmatpush1.bf16.msra.mxu0 %v17009_v35  ;;  %4355 = vmatpush1.bf16.msra.mxu1 %v17012_v36  ;;  %v13551_v35 = vcombine.low %v49_v24, %v49_v24  ;;  %v17107_v36 = vld [vmem:[%s25288_s1 + $0xa48] ss:$16 sps:$4 sm:$0xff]   ;;  %v17184_v24 = vld [vmem:[%s25288_s1 + $0xbe0] ss:$16 sps:$4 sm:$0xff]  }
 0x110   :  { %3897 = vmatprep.subr.bf16.mxu0 %v17017_v37  ;;  %4356 = vmatprep.subr.bf16.mxu1 %v17020_v38  ;;  %v17112_v37 = vld [vmem:[%s25288_s1 + $0xa64] ss:$16 sps:$4 sm:$0xff]   ;;  %v17115_v38 = vld [vmem:[%s25288_s1 + $0xa6c] ss:$16 sps:$4 sm:$0xff]  }
 0x113   :  { %3898 = vmatpush1.bf16.msra.mxu0 %v17015_v39  ;;  %4357 = vmatpush1.bf16.msra.mxu1 %v17018_v40  ;;  %v17192_v39 = vld [vmem:[%s25287_s0 + $0x2c] ss:$72 sps:$4 sm:$0xff]   ;;  %v17110_v40 = vld [vmem:[%s25288_s1 + $0xa60] ss:$16 sps:$4 sm:$0xff]  }
 0x114   :  { %3899 = vmatprep.subr.bf16.mxu0 %v17023_v41  ;;  %4358 = vmatprep.subr.bf16.mxu1 %v17026_v42  ;;  %v17113_v41 = vld [vmem:[%s25288_s1 + $0xa68] ss:$16 sps:$4 sm:$0xff]   ;;  %v17118_v42 = vld [vmem:[%s25288_s1 + $0xa84] ss:$16 sps:$4 sm:$0xff]  }
 0x117   :  { %3900 = vmatpush1.bf16.msra.mxu0 %v17021_v43  ;;  %4359 = vmatpush1.bf16.msra.mxu1 %v17024_v44  ;;  %v17121_v43 = vld [vmem:[%s25288_s1 + $0xa8c] ss:$16 sps:$4 sm:$0xff]   ;;  %v17116_v44 = vld [vmem:[%s25288_s1 + $0xa80] ss:$16 sps:$4 sm:$0xff]  }
 0x118   :  { %3901 = vmatprep.subr.bf16.mxu0 %v17029_v45  ;;  %4360 = vmatprep.subr.bf16.mxu1 %v17032_v46  ;;  %v17119_v45 = vld [vmem:[%s25288_s1 + $0xa88] ss:$16 sps:$4 sm:$0xff]   ;;  %v17124_v46 = vld [vmem:[%s25288_s1 + $0xaa4] ss:$16 sps:$4 sm:$0xff]  }
 0x11b   :  { %3902 = vmatpush1.bf16.msra.mxu0 %v17027_v47  ;;  %4361 = vmatpush1.bf16.msra.mxu1 %v17030_v48  ;;  %v17127_v47 = vld [vmem:[%s25288_s1 + $0xaac] ss:$16 sps:$4 sm:$0xff]   ;;  %v17122_v48 = vld [vmem:[%s25288_s1 + $0xaa0] ss:$16 sps:$4 sm:$0xff]  }
 0x11c   :  { %3903 = vmatprep.subr.bf16.mxu0 %v17035_v49  ;;  %4362 = vmatprep.subr.bf16.mxu1 %v17038_v50  ;;  %v17125_v49 = vld [vmem:[%s25288_s1 + $0xaa8] ss:$16 sps:$4 sm:$0xff]   ;;  %v17130_v50 = vld [vmem:[%s25288_s1 + $0xac4] ss:$16 sps:$4 sm:$0xff]  }
 0x11f   :  { %3904 = vmatpush1.bf16.msra.mxu0 %v17033_v51  ;;  %4363 = vmatpush1.bf16.msra.mxu1 %v17036_v52  ;;  %v17133_v51 = vld [vmem:[%s25288_s1 + $0xacc] ss:$16 sps:$4 sm:$0xff]   ;;  %v17128_v52 = vld [vmem:[%s25288_s1 + $0xac0] ss:$16 sps:$4 sm:$0xff]  }
 0x120   :  { %3905 = vmatprep.subr.bf16.mxu0 %v17041_v53  ;;  %4364 = vmatprep.subr.bf16.mxu1 %v17044_v54  ;;  %v17131_v53 = vld [vmem:[%s25288_s1 + $0xac8] ss:$16 sps:$4 sm:$0xff]   ;;  %v17136_v54 = vld [vmem:[%s25288_s1 + $0xae4] ss:$16 sps:$4 sm:$0xff]  }
 0x123   :  { %3906 = vmatpush1.bf16.msra.mxu0 %v17039_v55  ;;  %4365 = vmatpush1.bf16.msra.mxu1 %v17042_v56  ;;  %v17139_v55 = vld [vmem:[%s25288_s1 + $0xaec] ss:$16 sps:$4 sm:$0xff]   ;;  %v17134_v56 = vld [vmem:[%s25288_s1 + $0xae0] ss:$16 sps:$4 sm:$0xff]  }
 0x124   :  { %3907 = vmatprep.subr.bf16.mxu0 %v17047_v57  ;;  %4366 = vmatprep.subr.bf16.mxu1 %v17050_v58  ;;  %v17137_v57 = vld [vmem:[%s25288_s1 + $0xae8] ss:$16 sps:$4 sm:$0xff]   ;;  %v17142_v58 = vld [vmem:[%s25288_s1 + $0xb04] ss:$16 sps:$4 sm:$0xff]  }
 0x127   :  { %3908 = vmatpush1.bf16.msra.mxu0 %v17045_v59  ;;  %4367 = vmatpush1.bf16.msra.mxu1 %v17048_v60  ;;  %v17145_v59 = vld [vmem:[%s25288_s1 + $0xb0c] ss:$16 sps:$4 sm:$0xff]   ;;  %v17140_v60 = vld [vmem:[%s25288_s1 + $0xb00] ss:$16 sps:$4 sm:$0xff]  }
 0x128   :  { %3909 = vmatprep.subr.bf16.mxu0 %v17053_v61  ;;  %4368 = vmatprep.subr.bf16.mxu1 %v17056_v62  ;;  %v17143_v61 = vld [vmem:[%s25288_s1 + $0xb08] ss:$16 sps:$4 sm:$0xff]   ;;  %v17148_v62 = vld [vmem:[%s25288_s1 + $0xb24] ss:$16 sps:$4 sm:$0xff]  }
 0x12b   :  { %3910 = vmatpush1.bf16.msra.mxu0 %v17051_v63  ;;  %4369 = vmatpush1.bf16.msra.mxu1 %v17054_v0  ;;  %v17151_v63 = vld [vmem:[%s25288_s1 + $0xb2c] ss:$16 sps:$4 sm:$0xff]   ;;  %v17146_v0 = vld [vmem:[%s25288_s1 + $0xb20] ss:$16 sps:$4 sm:$0xff]  }
 0x12c   :  { %3911 = vmatprep.subr.bf16.mxu0 %v17059_v1  ;;  %4370 = vmatprep.subr.bf16.mxu1 %v17062_v2  ;;  %v17149_v1 = vld [vmem:[%s25288_s1 + $0xb28] ss:$16 sps:$4 sm:$0xff]   ;;  %v17154_v2 = vld [vmem:[%s25288_s1 + $0xb44] ss:$16 sps:$4 sm:$0xff]  }
 0x12f   :  { %3912 = vmatpush1.bf16.msra.mxu0 %v17057_v3  ;;  %4371 = vmatpush1.bf16.msra.mxu1 %v17060_v4  ;;  %v17157_v3 = vld [vmem:[%s25288_s1 + $0xb4c] ss:$16 sps:$4 sm:$0xff]   ;;  %v17152_v4 = vld [vmem:[%s25288_s1 + $0xb40] ss:$16 sps:$4 sm:$0xff]  }
 0x130   :  { %3913 = vmatprep.subr.bf16.mxu0 %v17065_v5  ;;  %4372 = vmatprep.subr.bf16.mxu1 %v17068_v6  ;;  %v17155_v5 = vld [vmem:[%s25288_s1 + $0xb48] ss:$16 sps:$4 sm:$0xff]   ;;  %v17160_v6 = vld [vmem:[%s25288_s1 + $0xb64] ss:$16 sps:$4 sm:$0xff]  }
 0x133   :  { %3914 = vmatpush1.bf16.msra.mxu0 %v17063_v7  ;;  %4373 = vmatpush1.bf16.msra.mxu1 %v17066_v8  ;;  %v17163_v7 = vld [vmem:[%s25288_s1 + $0xb6c] ss:$16 sps:$4 sm:$0xff]   ;;  %v17158_v8 = vld [vmem:[%s25288_s1 + $0xb60] ss:$16 sps:$4 sm:$0xff]  }
 0x134   :  { %3915 = vmatprep.subr.bf16.mxu0 %v17071_v9  ;;  %4374 = vmatprep.subr.bf16.mxu1 %v17074_v10  ;;  %v17161_v9 = vld [vmem:[%s25288_s1 + $0xb68] ss:$16 sps:$4 sm:$0xff]   ;;  %v17166_v10 = vld [vmem:[%s25288_s1 + $0xb84] ss:$16 sps:$4 sm:$0xff]  }
 0x137   :  { %3916 = vmatpush1.bf16.msra.mxu0 %v17069_v11  ;;  %4375 = vmatpush1.bf16.msra.mxu1 %v17072_v12  ;;  %v17169_v11 = vld [vmem:[%s25288_s1 + $0xb8c] ss:$16 sps:$4 sm:$0xff]   ;;  %v17164_v12 = vld [vmem:[%s25288_s1 + $0xb80] ss:$16 sps:$4 sm:$0xff]  }
 0x138   :  { %3917 = vmatprep.subr.bf16.mxu0 %v17078_v13  ;;  %4376 = vmatprep.subr.bf16.mxu1 %v17081_v14  ;;  %v17167_v13 = vld [vmem:[%s25288_s1 + $0xb88] ss:$16 sps:$4 sm:$0xff]   ;;  %v17172_v14 = vld [vmem:[%s25288_s1 + $0xba4] ss:$16 sps:$4 sm:$0xff]  }
 0x13b   :  { %3918 = vmatpush1.bf16.msra.mxu0 %v17076_v15  ;;  %4377 = vmatpush1.bf16.msra.mxu1 %v17079_v16  ;;  %v17175_v15 = vld [vmem:[%s25288_s1 + $0xbac] ss:$16 sps:$4 sm:$0xff]   ;;  %v17170_v16 = vld [vmem:[%s25288_s1 + $0xba0] ss:$16 sps:$4 sm:$0xff]  }
 0x13c   :  { %3919 = vmatprep.subr.bf16.mxu0 %v17085_v17  ;;  %4378 = vmatprep.subr.bf16.mxu1 %v17088_v18  ;;  %v17173_v17 = vld [vmem:[%s25288_s1 + $0xba8] ss:$16 sps:$4 sm:$0xff]   ;;  %v17179_v18 = vld [vmem:[%s25288_s1 + $0xbc4] ss:$16 sps:$4 sm:$0xff]  }
 0x13f   :  { %3920 = vmatpush1.bf16.msra.mxu0 %v17083_v19  ;;  %4379 = vmatpush1.bf16.msra.mxu1 %v17086_v20  ;;  %v17182_v19 = vld [vmem:[%s25288_s1 + $0xbcc] ss:$16 sps:$4 sm:$0xff]   ;;  %v17177_v20 = vld [vmem:[%s25288_s1 + $0xbc0] ss:$16 sps:$4 sm:$0xff]  }
 0x140   :  { %3940 = vmatprep.subr.bf16.mxu0 %v17094_v21  ;;  %4399 = vmatprep.subr.bf16.mxu1 %v17097_v23  ;;  %v17180_v21 = vld [vmem:[%s25288_s1 + $0xbc8] ss:$16 sps:$4 sm:$0xff]   ;;  %v17189_v23 = vld [vmem:[%s25288_s1 + $0xbec] ss:$16 sps:$4 sm:$0xff]  }
 0x142   :  { %3922 = vmatmul.mubr.bf16.vlgmr.msra.gmra.mrb[0].mxu0 %v17089_v22  ;;  %4381 = vmatmul.mubr.bf16.vlgmr.msra.gmra.mrb[0].mxu1 %v17089_v22  ;;  %v17186_v22 = vld [vmem:[%s25288_s1 + $0xbe4] ss:$16 sps:$4 sm:$0xff]  }
 0x143   :  { %3941 = vmatpush1.bf16.msra.mxu0 %v17092_v25  ;;  %4400 = vmatpush1.bf16.msra.mxu1 %v17095_v26  ;;  %v17187_v25 = vld [vmem:[%s25288_s1 + $0xbe8] ss:$16 sps:$4 sm:$0xff]   ;;  %v17195_v26 = vld [vmem:[%s25288_s1 + $0xc04] ss:$16 sps:$4 sm:$0xff]  }
 0x144   :  { %3942 = vmatprep.subr.bf16.mxu0 %v17100_v27  ;;  %4401 = vmatprep.subr.bf16.mxu1 %v17103_v28  ;;  %v17190_v27 = vld [vmem:[%s25287_s0 + $0x28] ss:$72 sps:$4 sm:$0xff]   ;;  %v17198_v28 = vld [vmem:[%s25288_s1 + $0xc0c] ss:$16 sps:$4 sm:$0xff]  }
 0x145   :  { %3931 = vmatprep.mubr.bf16.mxu0 %v13552_v29  ;;  %4390 = vmatprep.mubr.bf16.mxu1 %v13552_v29  ;;  %v50_v29 = vld [vmem:[%s25287_s0 + $0xb8] sm:$0x11] }
 0x147   :  { %3943 = vmatpush1.bf16.msra.mxu0 %v17098_v30  ;;  %4402 = vmatpush1.bf16.msra.mxu1 %v17101_v31  ;;  %v17193_v30 = vld [vmem:[%s25288_s1 + $0xc00] ss:$16 sps:$4 sm:$0xff]   ;;  %v17196_v31 = vld [vmem:[%s25288_s1 + $0xc08] ss:$16 sps:$4 sm:$0xff]  }
 0x148   :  { %3944 = vmatprep.subr.bf16.mxu0 %v17106_v32  ;;  %4403 = vmatprep.subr.bf16.mxu1 %v17109_v33  ;;  %v17201_v32 = vld [vmem:[%s25288_s1 + $0xc24] ss:$16 sps:$4 sm:$0xff]   ;;  %v17204_v33 = vld [vmem:[%s25288_s1 + $0xc2c] ss:$16 sps:$4 sm:$0xff]  }
 0x14a   :  { %3932 = vmatmul.mubr.bf16.gmra.mrb[4].mxu0 %v13551_v35  ;;  %4391 = vmatmul.mubr.bf16.gmra.mrb[4].mxu1 %v13551_v35  ;;  %v17199_v35 = vld [vmem:[%s25288_s1 + $0xc20] ss:$16 sps:$4 sm:$0xff]  }
 0x14b   :  { %3945 = vmatpush1.bf16.msra.mxu0 %v17104_v34  ;;  %4404 = vmatpush1.bf16.msra.mxu1 %v17107_v36  ;;  %v13554_v34 = vcombine.high %v50_v29, %v50_v29  ;;  %v17202_v36 = vld [vmem:[%s25288_s1 + $0xc28] ss:$16 sps:$4 sm:$0xff]  }
 0x14c   :  { %3946 = vmatprep.subr.bf16.mxu0 %v17112_v37  ;;  %4405 = vmatprep.subr.bf16.mxu1 %v17115_v38  ;;  %v17207_v37 = vld [vmem:[%s25288_s1 + $0xc44] ss:$16 sps:$4 sm:$0xff]   ;;  %v17210_v38 = vld [vmem:[%s25288_s1 + $0xc4c] ss:$16 sps:$4 sm:$0xff]  }
 0x14d   :  { %3972 = vmatprep.mubr.bf16.mxu0 %v17192_v39  ;;  %4431 = vmatprep.mubr.bf16.mxu1 %v17192_v39  ;;  %v17205_v39 = vld [vmem:[%s25288_s1 + $0xc40] ss:$16 sps:$4 sm:$0xff]  }
 0x14f   :  { %3947 = vmatpush1.bf16.msra.mxu0 %v17110_v40  ;;  %4406 = vmatpush1.bf16.msra.mxu1 %v17113_v41  ;;  %v13553_v40 = vcombine.low %v50_v29, %v50_v29  ;;  %v17208_v41 = vld [vmem:[%s25288_s1 + $0xc48] ss:$16 sps:$4 sm:$0xff]   ;;  %v17285_v29 = vld [vmem:[%s25288_s1 + $0xde0] ss:$16 sps:$4 sm:$0xff]  }
 0x150   :  { %3948 = vmatprep.subr.bf16.mxu0 %v17118_v42  ;;  %4407 = vmatprep.subr.bf16.mxu1 %v17121_v43  ;;  %v17213_v42 = vld [vmem:[%s25288_s1 + $0xc64] ss:$16 sps:$4 sm:$0xff]   ;;  %v17216_v43 = vld [vmem:[%s25288_s1 + $0xc6c] ss:$16 sps:$4 sm:$0xff]  }
 0x153   :  { %3949 = vmatpush1.bf16.msra.mxu0 %v17116_v44  ;;  %4408 = vmatpush1.bf16.msra.mxu1 %v17119_v45  ;;  %v17293_v44 = vld [vmem:[%s25287_s0 + $0x34] ss:$72 sps:$4 sm:$0xff]   ;;  %v17211_v45 = vld [vmem:[%s25288_s1 + $0xc60] ss:$16 sps:$4 sm:$0xff]  }
 0x154   :  { %3950 = vmatprep.subr.bf16.mxu0 %v17124_v46  ;;  %4409 = vmatprep.subr.bf16.mxu1 %v17127_v47  ;;  %v17214_v46 = vld [vmem:[%s25288_s1 + $0xc68] ss:$16 sps:$4 sm:$0xff]   ;;  %v17219_v47 = vld [vmem:[%s25288_s1 + $0xc84] ss:$16 sps:$4 sm:$0xff]  }
 0x157   :  { %3951 = vmatpush1.bf16.msra.mxu0 %v17122_v48  ;;  %4410 = vmatpush1.bf16.msra.mxu1 %v17125_v49  ;;  %v17222_v48 = vld [vmem:[%s25288_s1 + $0xc8c] ss:$16 sps:$4 sm:$0xff]   ;;  %v17217_v49 = vld [vmem:[%s25288_s1 + $0xc80] ss:$16 sps:$4 sm:$0xff]  }
 0x158   :  { %3952 = vmatprep.subr.bf16.mxu0 %v17130_v50  ;;  %4411 = vmatprep.subr.bf16.mxu1 %v17133_v51  ;;  %v17220_v50 = vld [vmem:[%s25288_s1 + $0xc88] ss:$16 sps:$4 sm:$0xff]   ;;  %v17225_v51 = vld [vmem:[%s25288_s1 + $0xca4] ss:$16 sps:$4 sm:$0xff]  }
 0x15b   :  { %3953 = vmatpush1.bf16.msra.mxu0 %v17128_v52  ;;  %4412 = vmatpush1.bf16.msra.mxu1 %v17131_v53  ;;  %v17228_v52 = vld [vmem:[%s25288_s1 + $0xcac] ss:$16 sps:$4 sm:$0xff]   ;;  %v17223_v53 = vld [vmem:[%s25288_s1 + $0xca0] ss:$16 sps:$4 sm:$0xff]  }
 0x15c   :  { %3954 = vmatprep.subr.bf16.mxu0 %v17136_v54  ;;  %4413 = vmatprep.subr.bf16.mxu1 %v17139_v55  ;;  %v17226_v54 = vld [vmem:[%s25288_s1 + $0xca8] ss:$16 sps:$4 sm:$0xff]   ;;  %v17231_v55 = vld [vmem:[%s25288_s1 + $0xcc4] ss:$16 sps:$4 sm:$0xff]  }
 0x15f   :  { %3955 = vmatpush1.bf16.msra.mxu0 %v17134_v56  ;;  %4414 = vmatpush1.bf16.msra.mxu1 %v17137_v57  ;;  %v17234_v56 = vld [vmem:[%s25288_s1 + $0xccc] ss:$16 sps:$4 sm:$0xff]   ;;  %v17229_v57 = vld [vmem:[%s25288_s1 + $0xcc0] ss:$16 sps:$4 sm:$0xff]  }
 0x160   :  { %3956 = vmatprep.subr.bf16.mxu0 %v17142_v58  ;;  %4415 = vmatprep.subr.bf16.mxu1 %v17145_v59  ;;  %v17232_v58 = vld [vmem:[%s25288_s1 + $0xcc8] ss:$16 sps:$4 sm:$0xff]   ;;  %v17237_v59 = vld [vmem:[%s25288_s1 + $0xce4] ss:$16 sps:$4 sm:$0xff]  }
 0x163   :  { %3957 = vmatpush1.bf16.msra.mxu0 %v17140_v60  ;;  %4416 = vmatpush1.bf16.msra.mxu1 %v17143_v61  ;;  %v17240_v60 = vld [vmem:[%s25288_s1 + $0xcec] ss:$16 sps:$4 sm:$0xff]   ;;  %v17235_v61 = vld [vmem:[%s25288_s1 + $0xce0] ss:$16 sps:$4 sm:$0xff]  }
 0x164   :  { %3958 = vmatprep.subr.bf16.mxu0 %v17148_v62  ;;  %4417 = vmatprep.subr.bf16.mxu1 %v17151_v63  ;;  %v17238_v62 = vld [vmem:[%s25288_s1 + $0xce8] ss:$16 sps:$4 sm:$0xff]   ;;  %v17243_v63 = vld [vmem:[%s25288_s1 + $0xd04] ss:$16 sps:$4 sm:$0xff]  }
 0x167   :  { %3959 = vmatpush1.bf16.msra.mxu0 %v17146_v0  ;;  %4418 = vmatpush1.bf16.msra.mxu1 %v17149_v1  ;;  %v17246_v0 = vld [vmem:[%s25288_s1 + $0xd0c] ss:$16 sps:$4 sm:$0xff]   ;;  %v17241_v1 = vld [vmem:[%s25288_s1 + $0xd00] ss:$16 sps:$4 sm:$0xff]  }
 0x168   :  { %3960 = vmatprep.subr.bf16.mxu0 %v17154_v2  ;;  %4419 = vmatprep.subr.bf16.mxu1 %v17157_v3  ;;  %v17244_v2 = vld [vmem:[%s25288_s1 + $0xd08] ss:$16 sps:$4 sm:$0xff]   ;;  %v17249_v3 = vld [vmem:[%s25288_s1 + $0xd24] ss:$16 sps:$4 sm:$0xff]  }
 0x16b   :  { %3961 = vmatpush1.bf16.msra.mxu0 %v17152_v4  ;;  %4420 = vmatpush1.bf16.msra.mxu1 %v17155_v5  ;;  %v17252_v4 = vld [vmem:[%s25288_s1 + $0xd2c] ss:$16 sps:$4 sm:$0xff]   ;;  %v17247_v5 = vld [vmem:[%s25288_s1 + $0xd20] ss:$16 sps:$4 sm:$0xff]  }
 0x16c   :  { %3962 = vmatprep.subr.bf16.mxu0 %v17160_v6  ;;  %4421 = vmatprep.subr.bf16.mxu1 %v17163_v7  ;;  %v17250_v6 = vld [vmem:[%s25288_s1 + $0xd28] ss:$16 sps:$4 sm:$0xff]   ;;  %v17255_v7 = vld [vmem:[%s25288_s1 + $0xd44] ss:$16 sps:$4 sm:$0xff]  }
 0x16f   :  { %3963 = vmatpush1.bf16.msra.mxu0 %v17158_v8  ;;  %4422 = vmatpush1.bf16.msra.mxu1 %v17161_v9  ;;  %v17258_v8 = vld [vmem:[%s25288_s1 + $0xd4c] ss:$16 sps:$4 sm:$0xff]   ;;  %v17253_v9 = vld [vmem:[%s25288_s1 + $0xd40] ss:$16 sps:$4 sm:$0xff]  }
 0x170   :  { %3964 = vmatprep.subr.bf16.mxu0 %v17166_v10  ;;  %4423 = vmatprep.subr.bf16.mxu1 %v17169_v11  ;;  %v17256_v10 = vld [vmem:[%s25288_s1 + $0xd48] ss:$16 sps:$4 sm:$0xff]   ;;  %v17261_v11 = vld [vmem:[%s25288_s1 + $0xd64] ss:$16 sps:$4 sm:$0xff]  }
 0x173   :  { %3965 = vmatpush1.bf16.msra.mxu0 %v17164_v12  ;;  %4424 = vmatpush1.bf16.msra.mxu1 %v17167_v13  ;;  %v17264_v12 = vld [vmem:[%s25288_s1 + $0xd6c] ss:$16 sps:$4 sm:$0xff]   ;;  %v17259_v13 = vld [vmem:[%s25288_s1 + $0xd60] ss:$16 sps:$4 sm:$0xff]  }
 0x174   :  { %3966 = vmatprep.subr.bf16.mxu0 %v17172_v14  ;;  %4425 = vmatprep.subr.bf16.mxu1 %v17175_v15  ;;  %v17262_v14 = vld [vmem:[%s25288_s1 + $0xd68] ss:$16 sps:$4 sm:$0xff]   ;;  %v17267_v15 = vld [vmem:[%s25288_s1 + $0xd84] ss:$16 sps:$4 sm:$0xff]  }
 0x177   :  { %3967 = vmatpush1.bf16.msra.mxu0 %v17170_v16  ;;  %4426 = vmatpush1.bf16.msra.mxu1 %v17173_v17  ;;  %v17270_v16 = vld [vmem:[%s25288_s1 + $0xd8c] ss:$16 sps:$4 sm:$0xff]   ;;  %v17265_v17 = vld [vmem:[%s25288_s1 + $0xd80] ss:$16 sps:$4 sm:$0xff]  }
 0x178   :  { %3968 = vmatprep.subr.bf16.mxu0 %v17179_v18  ;;  %4427 = vmatprep.subr.bf16.mxu1 %v17182_v19  ;;  %v17268_v18 = vld [vmem:[%s25288_s1 + $0xd88] ss:$16 sps:$4 sm:$0xff]   ;;  %v17273_v19 = vld [vmem:[%s25288_s1 + $0xda4] ss:$16 sps:$4 sm:$0xff]  }
 0x17b   :  { %3969 = vmatpush1.bf16.msra.mxu0 %v17177_v20  ;;  %4428 = vmatpush1.bf16.msra.mxu1 %v17180_v21  ;;  %v17276_v20 = vld [vmem:[%s25288_s1 + $0xdac] ss:$16 sps:$4 sm:$0xff]   ;;  %v17271_v21 = vld [vmem:[%s25288_s1 + $0xda0] ss:$16 sps:$4 sm:$0xff]  }
 0x17c   :  { %3970 = vmatprep.subr.bf16.mxu0 %v17186_v22  ;;  %4429 = vmatprep.subr.bf16.mxu1 %v17189_v23  ;;  %v17274_v22 = vld [vmem:[%s25288_s1 + $0xda8] ss:$16 sps:$4 sm:$0xff]   ;;  %v17280_v23 = vld [vmem:[%s25288_s1 + $0xdc4] ss:$16 sps:$4 sm:$0xff]  }
 0x17f   :  { %3971 = vmatpush1.bf16.msra.mxu0 %v17184_v24  ;;  %4430 = vmatpush1.bf16.msra.mxu1 %v17187_v25  ;;  %v17283_v24 = vld [vmem:[%s25288_s1 + $0xdcc] ss:$16 sps:$4 sm:$0xff]   ;;  %v17278_v25 = vld [vmem:[%s25288_s1 + $0xdc0] ss:$16 sps:$4 sm:$0xff]  }
 0x180   :  { %3991 = vmatprep.subr.bf16.mxu0 %v17195_v26  ;;  %4450 = vmatprep.subr.bf16.mxu1 %v17198_v28  ;;  %v17281_v26 = vld [vmem:[%s25288_s1 + $0xdc8] ss:$16 sps:$4 sm:$0xff]   ;;  %v17290_v28 = vld [vmem:[%s25288_s1 + $0xdec] ss:$16 sps:$4 sm:$0xff]  }
 0x182   :  { %3973 = vmatmul.mubr.bf16.vlgmr.msra.gmra.mrb[0].mxu0 %v17190_v27  ;;  %4432 = vmatmul.mubr.bf16.vlgmr.msra.gmra.mrb[0].mxu1 %v17190_v27  ;;  %v17287_v27 = vld [vmem:[%s25288_s1 + $0xde4] ss:$16 sps:$4 sm:$0xff]  }
 0x183   :  { %3992 = vmatpush1.bf16.msra.mxu0 %v17193_v30  ;;  %4451 = vmatpush1.bf16.msra.mxu1 %v17196_v31  ;;  %v17288_v30 = vld [vmem:[%s25288_s1 + $0xde8] ss:$16 sps:$4 sm:$0xff]   ;;  %v17296_v31 = vld [vmem:[%s25288_s1 + $0xe04] ss:$16 sps:$4 sm:$0xff]  }
 0x184   :  { %3993 = vmatprep.subr.bf16.mxu0 %v17201_v32  ;;  %4452 = vmatprep.subr.bf16.mxu1 %v17204_v33  ;;  %v17291_v32 = vld [vmem:[%s25287_s0 + $0x30] ss:$72 sps:$4 sm:$0xff]   ;;  %v17299_v33 = vld [vmem:[%s25288_s1 + $0xe0c] ss:$16 sps:$4 sm:$0xff]  }
 0x185   :  { %3982 = vmatprep.mubr.bf16.mxu0 %v13554_v34  ;;  %4441 = vmatprep.mubr.bf16.mxu1 %v13554_v34  ;;  %v51_v34 = vld [vmem:[%s25287_s0 + $0xc0] sm:$0x11] }
 0x187   :  { %3994 = vmatpush1.bf16.msra.mxu0 %v17199_v35  ;;  %4453 = vmatpush1.bf16.msra.mxu1 %v17202_v36  ;;  %v17294_v35 = vld [vmem:[%s25288_s1 + $0xe00] ss:$16 sps:$4 sm:$0xff]   ;;  %v17297_v36 = vld [vmem:[%s25288_s1 + $0xe08] ss:$16 sps:$4 sm:$0xff]  }
 0x188   :  { %3995 = vmatprep.subr.bf16.mxu0 %v17207_v37  ;;  %4454 = vmatprep.subr.bf16.mxu1 %v17210_v38  ;;  %v17302_v37 = vld [vmem:[%s25288_s1 + $0xe24] ss:$16 sps:$4 sm:$0xff]   ;;  %v17305_v38 = vld [vmem:[%s25288_s1 + $0xe2c] ss:$16 sps:$4 sm:$0xff]  }
 0x18a   :  { %3983 = vmatmul.mubr.bf16.gmra.mrb[4].mxu0 %v13553_v40  ;;  %4442 = vmatmul.mubr.bf16.gmra.mrb[4].mxu1 %v13553_v40  ;;  %v17303_v40 = vld [vmem:[%s25288_s1 + $0xe28] ss:$16 sps:$4 sm:$0xff]  }
 0x18b   :  { %3996 = vmatpush1.bf16.msra.mxu0 %v17205_v39  ;;  %4455 = vmatpush1.bf16.msra.mxu1 %v17208_v41  ;;  %v17300_v39 = vld [vmem:[%s25288_s1 + $0xe20] ss:$16 sps:$4 sm:$0xff]   ;;  %v13556_v41 = vcombine.high %v51_v34, %v51_v34 }
 0x18c   :  { %3997 = vmatprep.subr.bf16.mxu0 %v17213_v42  ;;  %4456 = vmatprep.subr.bf16.mxu1 %v17216_v43  ;;  %v17308_v42 = vld [vmem:[%s25288_s1 + $0xe44] ss:$16 sps:$4 sm:$0xff]   ;;  %v17311_v43 = vld [vmem:[%s25288_s1 + $0xe4c] ss:$16 sps:$4 sm:$0xff]  }
 0x18d   :  { %4023 = vmatprep.mubr.bf16.mxu0 %v17293_v44  ;;  %4482 = vmatprep.mubr.bf16.mxu1 %v17293_v44  ;;  %v17306_v44 = vld [vmem:[%s25288_s1 + $0xe40] ss:$16 sps:$4 sm:$0xff]  }
 0x18f   :  { %3998 = vmatpush1.bf16.msra.mxu0 %v17211_v45  ;;  %4457 = vmatpush1.bf16.msra.mxu1 %v17214_v46  ;;  %v17309_v45 = vld [vmem:[%s25288_s1 + $0xe48] ss:$16 sps:$4 sm:$0xff]   ;;  %v17314_v46 = vld [vmem:[%s25288_s1 + $0xe64] ss:$16 sps:$4 sm:$0xff]  }
 0x190   :  { %3999 = vmatprep.subr.bf16.mxu0 %v17219_v47  ;;  %4458 = vmatprep.subr.bf16.mxu1 %v17222_v48  ;;  %v17317_v47 = vld [vmem:[%s25288_s1 + $0xe6c] ss:$16 sps:$4 sm:$0xff]   ;;  %v13555_v48 = vcombine.low %v51_v34, %v51_v34  ;;  %v17386_v34 = vld [vmem:[%s25288_s1 + $0xfe0] ss:$16 sps:$4 sm:$0xff]  }
 0x193   :  { %4000 = vmatpush1.bf16.msra.mxu0 %v17217_v49  ;;  %4459 = vmatpush1.bf16.msra.mxu1 %v17220_v50  ;;  %v17394_v49 = vld [vmem:[%s25287_s0 + $0x3c] ss:$72 sps:$4 sm:$0xff]   ;;  %v17312_v50 = vld [vmem:[%s25288_s1 + $0xe60] ss:$16 sps:$4 sm:$0xff]  }
 0x194   :  { %4001 = vmatprep.subr.bf16.mxu0 %v17225_v51  ;;  %4460 = vmatprep.subr.bf16.mxu1 %v17228_v52  ;;  %v17315_v51 = vld [vmem:[%s25288_s1 + $0xe68] ss:$16 sps:$4 sm:$0xff]   ;;  %v17320_v52 = vld [vmem:[%s25288_s1 + $0xe84] ss:$16 sps:$4 sm:$0xff]  }
 0x197   :  { %4002 = vmatpush1.bf16.msra.mxu0 %v17223_v53  ;;  %4461 = vmatpush1.bf16.msra.mxu1 %v17226_v54  ;;  %v17323_v53 = vld [vmem:[%s25288_s1 + $0xe8c] ss:$16 sps:$4 sm:$0xff]   ;;  %v17318_v54 = vld [vmem:[%s25288_s1 + $0xe80] ss:$16 sps:$4 sm:$0xff]  }
 0x198   :  { %4003 = vmatprep.subr.bf16.mxu0 %v17231_v55  ;;  %4462 = vmatprep.subr.bf16.mxu1 %v17234_v56  ;;  %v17321_v55 = vld [vmem:[%s25288_s1 + $0xe88] ss:$16 sps:$4 sm:$0xff]   ;;  %v17326_v56 = vld [vmem:[%s25288_s1 + $0xea4] ss:$16 sps:$4 sm:$0xff]  }
 0x19b   :  { %4004 = vmatpush1.bf16.msra.mxu0 %v17229_v57  ;;  %4463 = vmatpush1.bf16.msra.mxu1 %v17232_v58  ;;  %v17329_v57 = vld [vmem:[%s25288_s1 + $0xeac] ss:$16 sps:$4 sm:$0xff]   ;;  %v17324_v58 = vld [vmem:[%s25288_s1 + $0xea0] ss:$16 sps:$4 sm:$0xff]  }
 0x19c   :  { %4005 = vmatprep.subr.bf16.mxu0 %v17237_v59  ;;  %4464 = vmatprep.subr.bf16.mxu1 %v17240_v60  ;;  %v17327_v59 = vld [vmem:[%s25288_s1 + $0xea8] ss:$16 sps:$4 sm:$0xff]   ;;  %v17332_v60 = vld [vmem:[%s25288_s1 + $0xec4] ss:$16 sps:$4 sm:$0xff]  }
 0x19f   :  { %4006 = vmatpush1.bf16.msra.mxu0 %v17235_v61  ;;  %4465 = vmatpush1.bf16.msra.mxu1 %v17238_v62  ;;  %v17335_v61 = vld [vmem:[%s25288_s1 + $0xecc] ss:$16 sps:$4 sm:$0xff]   ;;  %v17330_v62 = vld [vmem:[%s25288_s1 + $0xec0] ss:$16 sps:$4 sm:$0xff]  }
 0x1a0   :  { %4007 = vmatprep.subr.bf16.mxu0 %v17243_v63  ;;  %4466 = vmatprep.subr.bf16.mxu1 %v17246_v0  ;;  %v17333_v63 = vld [vmem:[%s25288_s1 + $0xec8] ss:$16 sps:$4 sm:$0xff]   ;;  %v17338_v0 = vld [vmem:[%s25288_s1 + $0xee4] ss:$16 sps:$4 sm:$0xff]  }
 0x1a3   :  { %4008 = vmatpush1.bf16.msra.mxu0 %v17241_v1  ;;  %4467 = vmatpush1.bf16.msra.mxu1 %v17244_v2  ;;  %v17341_v1 = vld [vmem:[%s25288_s1 + $0xeec] ss:$16 sps:$4 sm:$0xff]   ;;  %v17336_v2 = vld [vmem:[%s25288_s1 + $0xee0] ss:$16 sps:$4 sm:$0xff]  }
 0x1a4   :  { %4009 = vmatprep.subr.bf16.mxu0 %v17249_v3  ;;  %4468 = vmatprep.subr.bf16.mxu1 %v17252_v4  ;;  %v17339_v3 = vld [vmem:[%s25288_s1 + $0xee8] ss:$16 sps:$4 sm:$0xff]   ;;  %v17344_v4 = vld [vmem:[%s25288_s1 + $0xf04] ss:$16 sps:$4 sm:$0xff]  }
 0x1a7   :  { %4010 = vmatpush1.bf16.msra.mxu0 %v17247_v5  ;;  %4469 = vmatpush1.bf16.msra.mxu1 %v17250_v6  ;;  %v17347_v5 = vld [vmem:[%s25288_s1 + $0xf0c] ss:$16 sps:$4 sm:$0xff]   ;;  %v17342_v6 = vld [vmem:[%s25288_s1 + $0xf00] ss:$16 sps:$4 sm:$0xff]  }
 0x1a8   :  { %4011 = vmatprep.subr.bf16.mxu0 %v17255_v7  ;;  %4470 = vmatprep.subr.bf16.mxu1 %v17258_v8  ;;  %v17345_v7 = vld [vmem:[%s25288_s1 + $0xf08] ss:$16 sps:$4 sm:$0xff]   ;;  %v17350_v8 = vld [vmem:[%s25288_s1 + $0xf24] ss:$16 sps:$4 sm:$0xff]  }
 0x1ab   :  { %4012 = vmatpush1.bf16.msra.mxu0 %v17253_v9  ;;  %4471 = vmatpush1.bf16.msra.mxu1 %v17256_v10  ;;  %v17353_v9 = vld [vmem:[%s25288_s1 + $0xf2c] ss:$16 sps:$4 sm:$0xff]   ;;  %v17348_v10 = vld [vmem:[%s25288_s1 + $0xf20] ss:$16 sps:$4 sm:$0xff]  }
 0x1ac   :  { %4013 = vmatprep.subr.bf16.mxu0 %v17261_v11  ;;  %4472 = vmatprep.subr.bf16.mxu1 %v17264_v12  ;;  %v17351_v11 = vld [vmem:[%s25288_s1 + $0xf28] ss:$16 sps:$4 sm:$0xff]   ;;  %v17356_v12 = vld [vmem:[%s25288_s1 + $0xf44] ss:$16 sps:$4 sm:$0xff]  }
 0x1af   :  { %4014 = vmatpush1.bf16.msra.mxu0 %v17259_v13  ;;  %4473 = vmatpush1.bf16.msra.mxu1 %v17262_v14  ;;  %v17359_v13 = vld [vmem:[%s25288_s1 + $0xf4c] ss:$16 sps:$4 sm:$0xff]   ;;  %v17354_v14 = vld [vmem:[%s25288_s1 + $0xf40] ss:$16 sps:$4 sm:$0xff]  }
 0x1b0   :  { %4015 = vmatprep.subr.bf16.mxu0 %v17267_v15  ;;  %4474 = vmatprep.subr.bf16.mxu1 %v17270_v16  ;;  %v17357_v15 = vld [vmem:[%s25288_s1 + $0xf48] ss:$16 sps:$4 sm:$0xff]   ;;  %v17362_v16 = vld [vmem:[%s25288_s1 + $0xf64] ss:$16 sps:$4 sm:$0xff]  }
 0x1b3   :  { %4016 = vmatpush1.bf16.msra.mxu0 %v17265_v17  ;;  %4475 = vmatpush1.bf16.msra.mxu1 %v17268_v18  ;;  %v17365_v17 = vld [vmem:[%s25288_s1 + $0xf6c] ss:$16 sps:$4 sm:$0xff]   ;;  %v17360_v18 = vld [vmem:[%s25288_s1 + $0xf60] ss:$16 sps:$4 sm:$0xff]  }
 0x1b4   :  { %4017 = vmatprep.subr.bf16.mxu0 %v17273_v19  ;;  %4476 = vmatprep.subr.bf16.mxu1 %v17276_v20  ;;  %v17363_v19 = vld [vmem:[%s25288_s1 + $0xf68] ss:$16 sps:$4 sm:$0xff]   ;;  %v17368_v20 = vld [vmem:[%s25288_s1 + $0xf84] ss:$16 sps:$4 sm:$0xff]  }
 0x1b7   :  { %4018 = vmatpush1.bf16.msra.mxu0 %v17271_v21  ;;  %4477 = vmatpush1.bf16.msra.mxu1 %v17274_v22  ;;  %v17371_v21 = vld [vmem:[%s25288_s1 + $0xf8c] ss:$16 sps:$4 sm:$0xff]   ;;  %v17366_v22 = vld [vmem:[%s25288_s1 + $0xf80] ss:$16 sps:$4 sm:$0xff]  }
 0x1b8   :  { %4019 = vmatprep.subr.bf16.mxu0 %v17280_v23  ;;  %4478 = vmatprep.subr.bf16.mxu1 %v17283_v24  ;;  %v17369_v23 = vld [vmem:[%s25288_s1 + $0xf88] ss:$16 sps:$4 sm:$0xff]   ;;  %v17374_v24 = vld [vmem:[%s25288_s1 + $0xfa4] ss:$16 sps:$4 sm:$0xff]  }
 0x1bb   :  { %4020 = vmatpush1.bf16.msra.mxu0 %v17278_v25  ;;  %4479 = vmatpush1.bf16.msra.mxu1 %v17281_v26  ;;  %v17377_v25 = vld [vmem:[%s25288_s1 + $0xfac] ss:$16 sps:$4 sm:$0xff]   ;;  %v17372_v26 = vld [vmem:[%s25288_s1 + $0xfa0] ss:$16 sps:$4 sm:$0xff]  }
 0x1bc   :  { %4021 = vmatprep.subr.bf16.mxu0 %v17287_v27  ;;  %4480 = vmatprep.subr.bf16.mxu1 %v17290_v28  ;;  %v17375_v27 = vld [vmem:[%s25288_s1 + $0xfa8] ss:$16 sps:$4 sm:$0xff]   ;;  %v17381_v28 = vld [vmem:[%s25288_s1 + $0xfc4] ss:$16 sps:$4 sm:$0xff]  }
 0x1bf   :  { %4022 = vmatpush1.bf16.msra.mxu0 %v17285_v29  ;;  %4481 = vmatpush1.bf16.msra.mxu1 %v17288_v30  ;;  %v17384_v29 = vld [vmem:[%s25288_s1 + $0xfcc] ss:$16 sps:$4 sm:$0xff]   ;;  %v17379_v30 = vld [vmem:[%s25288_s1 + $0xfc0] ss:$16 sps:$4 sm:$0xff]  }
 0x1c0   :  { %4042 = vmatprep.subr.bf16.mxu0 %v17296_v31  ;;  %4501 = vmatprep.subr.bf16.mxu1 %v17299_v33  ;;  %v17382_v31 = vld [vmem:[%s25288_s1 + $0xfc8] ss:$16 sps:$4 sm:$0xff]   ;;  %v17391_v33 = vld [vmem:[%s25288_s1 + $0xfec] ss:$16 sps:$4 sm:$0xff]  }
 0x1c2   :  { %4024 = vmatmul.mubr.bf16.vlgmr.msra.gmra.mrb[0].mxu0 %v17291_v32  ;;  %4483 = vmatmul.mubr.bf16.vlgmr.msra.gmra.mrb[0].mxu1 %v17291_v32  ;;  %v17388_v32 = vld [vmem:[%s25288_s1 + $0xfe4] ss:$16 sps:$4 sm:$0xff]  }
 0x1c3   :  { %4043 = vmatpush1.bf16.msra.mxu0 %v17294_v35  ;;  %4502 = vmatpush1.bf16.msra.mxu1 %v17297_v36  ;;  %v17389_v35 = vld [vmem:[%s25288_s1 + $0xfe8] ss:$16 sps:$4 sm:$0xff]   ;;  %v17397_v36 = vld [vmem:[%s25288_s1 + $0x1004] ss:$16 sps:$4 sm:$0xff]  }
 0x1c4   :  { %4044 = vmatprep.subr.bf16.mxu0 %v17302_v37  ;;  %4503 = vmatprep.subr.bf16.mxu1 %v17305_v38  ;;  %v17400_v37 = vld [vmem:[%s25288_s1 + $0x100c] ss:$16 sps:$4 sm:$0xff]   ;;  %v17392_v38 = vld [vmem:[%s25287_s0 + $0x38] ss:$72 sps:$4 sm:$0xff]  }
 0x1c5   :  { %4033 = vmatprep.mubr.bf16.mxu0 %v13556_v41  ;;  %4492 = vmatprep.mubr.bf16.mxu1 %v13556_v41  ;;  %v17398_v41 = vld [vmem:[%s25288_s1 + $0x1008] ss:$16 sps:$4 sm:$0xff]  }
 0x1c7   :  { %4045 = vmatpush1.bf16.msra.mxu0 %v17300_v39  ;;  %4504 = vmatpush1.bf16.msra.mxu1 %v17303_v40  ;;  %v52_v39 = vld [vmem:[%s25287_s0 + $0xc8] sm:$0x11]  ;;  %v17395_v40 = vld [vmem:[%s25288_s1 + $0x1000] ss:$16 sps:$4 sm:$0xff]  }
 0x1c8   :  { %4046 = vmatprep.subr.bf16.mxu0 %v17308_v42  ;;  %4505 = vmatprep.subr.bf16.mxu1 %v17311_v43  ;;  %v17403_v42 = vld [vmem:[%s25288_s1 + $0x1024] ss:$16 sps:$4 sm:$0xff]   ;;  %v17406_v43 = vld [vmem:[%s25288_s1 + $0x102c] ss:$16 sps:$4 sm:$0xff]  }
 0x1ca   :  { %4034 = vmatmul.mubr.bf16.gmra.mrb[4].mxu0 %v13555_v48  ;;  %4493 = vmatmul.mubr.bf16.gmra.mrb[4].mxu1 %v13555_v48  ;;  %v17412_v48 = vld [vmem:[%s25288_s1 + $0x104c] ss:$16 sps:$4 sm:$0xff]  }
 0x1cb   :  { %4047 = vmatpush1.bf16.msra.mxu0 %v17306_v44  ;;  %4506 = vmatpush1.bf16.msra.mxu1 %v17309_v45  ;;  %v17401_v44 = vld [vmem:[%s25288_s1 + $0x1020] ss:$16 sps:$4 sm:$0xff]   ;;  %v17404_v45 = vld [vmem:[%s25288_s1 + $0x1028] ss:$16 sps:$4 sm:$0xff]  }
 0x1cc   :  { %4048 = vmatprep.subr.bf16.mxu0 %v17314_v46  ;;  %4507 = vmatprep.subr.bf16.mxu1 %v17317_v47  ;;  %v13558_v46 = vcombine.high %v52_v39, %v52_v39  ;;  %v17409_v47 = vld [vmem:[%s25288_s1 + $0x1044] ss:$16 sps:$4 sm:$0xff]  }
 0x1cd   :  { %4074 = vmatprep.mubr.bf16.mxu0 %v17394_v49  ;;  %4533 = vmatprep.mubr.bf16.mxu1 %v17394_v49  ;;  %v17407_v49 = vld [vmem:[%s25288_s1 + $0x1040] ss:$16 sps:$4 sm:$0xff]  }
 0x1cf   :  { %4049 = vmatpush1.bf16.msra.mxu0 %v17312_v50  ;;  %4508 = vmatpush1.bf16.msra.mxu1 %v17315_v51  ;;  %v17410_v50 = vld [vmem:[%s25288_s1 + $0x1048] ss:$16 sps:$4 sm:$0xff]   ;;  %v17415_v51 = vld [vmem:[%s25288_s1 + $0x1064] ss:$16 sps:$4 sm:$0xff]  }
 0x1d0   :  { %4050 = vmatprep.subr.bf16.mxu0 %v17320_v52  ;;  %4509 = vmatprep.subr.bf16.mxu1 %v17323_v53  ;;  %v17418_v52 = vld [vmem:[%s25288_s1 + $0x106c] ss:$16 sps:$4 sm:$0xff]   ;;  %v13557_v53 = vcombine.low %v52_v39, %v52_v39  ;;  %v17487_v39 = vld [vmem:[%s25288_s1 + $0x11e0] ss:$16 sps:$4 sm:$0xff]  }
 0x1d3   :  { %4051 = vmatpush1.bf16.msra.mxu0 %v17318_v54  ;;  %4510 = vmatpush1.bf16.msra.mxu1 %v17321_v55  ;;  %v17495_v54 = vld [vmem:[%s25287_s0 + $0x44] ss:$72 sps:$4 sm:$0xff]   ;;  %v17413_v55 = vld [vmem:[%s25288_s1 + $0x1060] ss:$16 sps:$4 sm:$0xff]  }
 0x1d4   :  { %4052 = vmatprep.subr.bf16.mxu0 %v17326_v56  ;;  %4511 = vmatprep.subr.bf16.mxu1 %v17329_v57  ;;  %v17416_v56 = vld [vmem:[%s25288_s1 + $0x1068] ss:$16 sps:$4 sm:$0xff]   ;;  %v17421_v57 = vld [vmem:[%s25288_s1 + $0x1084] ss:$16 sps:$4 sm:$0xff]  }
 0x1d7   :  { %4053 = vmatpush1.bf16.msra.mxu0 %v17324_v58  ;;  %4512 = vmatpush1.bf16.msra.mxu1 %v17327_v59  ;;  %v17424_v58 = vld [vmem:[%s25288_s1 + $0x108c] ss:$16 sps:$4 sm:$0xff]   ;;  %v17419_v59 = vld [vmem:[%s25288_s1 + $0x1080] ss:$16 sps:$4 sm:$0xff]  }
 0x1d8   :  { %4054 = vmatprep.subr.bf16.mxu0 %v17332_v60  ;;  %4513 = vmatprep.subr.bf16.mxu1 %v17335_v61  ;;  %v17422_v60 = vld [vmem:[%s25288_s1 + $0x1088] ss:$16 sps:$4 sm:$0xff]   ;;  %v17427_v61 = vld [vmem:[%s25288_s1 + $0x10a4] ss:$16 sps:$4 sm:$0xff]  }
 0x1db   :  { %4055 = vmatpush1.bf16.msra.mxu0 %v17330_v62  ;;  %4514 = vmatpush1.bf16.msra.mxu1 %v17333_v63  ;;  %v17430_v62 = vld [vmem:[%s25288_s1 + $0x10ac] ss:$16 sps:$4 sm:$0xff]   ;;  %v17425_v63 = vld [vmem:[%s25288_s1 + $0x10a0] ss:$16 sps:$4 sm:$0xff]  }
 0x1dc   :  { %4056 = vmatprep.subr.bf16.mxu0 %v17338_v0  ;;  %4515 = vmatprep.subr.bf16.mxu1 %v17341_v1  ;;  %v17428_v0 = vld [vmem:[%s25288_s1 + $0x10a8] ss:$16 sps:$4 sm:$0xff]   ;;  %v17433_v1 = vld [vmem:[%s25288_s1 + $0x10c4] ss:$16 sps:$4 sm:$0xff]  }
 0x1df   :  { %4057 = vmatpush1.bf16.msra.mxu0 %v17336_v2  ;;  %4516 = vmatpush1.bf16.msra.mxu1 %v17339_v3  ;;  %v17436_v2 = vld [vmem:[%s25288_s1 + $0x10cc] ss:$16 sps:$4 sm:$0xff]   ;;  %v17431_v3 = vld [vmem:[%s25288_s1 + $0x10c0] ss:$16 sps:$4 sm:$0xff]  }
 0x1e0   :  { %4058 = vmatprep.subr.bf16.mxu0 %v17344_v4  ;;  %4517 = vmatprep.subr.bf16.mxu1 %v17347_v5  ;;  %v17434_v4 = vld [vmem:[%s25288_s1 + $0x10c8] ss:$16 sps:$4 sm:$0xff]   ;;  %v17439_v5 = vld [vmem:[%s25288_s1 + $0x10e4] ss:$16 sps:$4 sm:$0xff]  }
 0x1e3   :  { %4059 = vmatpush1.bf16.msra.mxu0 %v17342_v6  ;;  %4518 = vmatpush1.bf16.msra.mxu1 %v17345_v7  ;;  %v17442_v6 = vld [vmem:[%s25288_s1 + $0x10ec] ss:$16 sps:$4 sm:$0xff]   ;;  %v17437_v7 = vld [vmem:[%s25288_s1 + $0x10e0] ss:$16 sps:$4 sm:$0xff]  }
 0x1e4   :  { %4060 = vmatprep.subr.bf16.mxu0 %v17350_v8  ;;  %4519 = vmatprep.subr.bf16.mxu1 %v17353_v9  ;;  %v17440_v8 = vld [vmem:[%s25288_s1 + $0x10e8] ss:$16 sps:$4 sm:$0xff]   ;;  %v17445_v9 = vld [vmem:[%s25288_s1 + $0x1104] ss:$16 sps:$4 sm:$0xff]  }
 0x1e7   :  { %4061 = vmatpush1.bf16.msra.mxu0 %v17348_v10  ;;  %4520 = vmatpush1.bf16.msra.mxu1 %v17351_v11  ;;  %v17448_v10 = vld [vmem:[%s25288_s1 + $0x110c] ss:$16 sps:$4 sm:$0xff]   ;;  %v17443_v11 = vld [vmem:[%s25288_s1 + $0x1100] ss:$16 sps:$4 sm:$0xff]  }
 0x1e8   :  { %4062 = vmatprep.subr.bf16.mxu0 %v17356_v12  ;;  %4521 = vmatprep.subr.bf16.mxu1 %v17359_v13  ;;  %v17446_v12 = vld [vmem:[%s25288_s1 + $0x1108] ss:$16 sps:$4 sm:$0xff]   ;;  %v17451_v13 = vld [vmem:[%s25288_s1 + $0x1124] ss:$16 sps:$4 sm:$0xff]  }
 0x1eb   :  { %4063 = vmatpush1.bf16.msra.mxu0 %v17354_v14  ;;  %4522 = vmatpush1.bf16.msra.mxu1 %v17357_v15  ;;  %v17454_v14 = vld [vmem:[%s25288_s1 + $0x112c] ss:$16 sps:$4 sm:$0xff]   ;;  %v17449_v15 = vld [vmem:[%s25288_s1 + $0x1120] ss:$16 sps:$4 sm:$0xff]  }
 0x1ec   :  { %4064 = vmatprep.subr.bf16.mxu0 %v17362_v16  ;;  %4523 = vmatprep.subr.bf16.mxu1 %v17365_v17  ;;  %v17452_v16 = vld [vmem:[%s25288_s1 + $0x1128] ss:$16 sps:$4 sm:$0xff]   ;;  %v17457_v17 = vld [vmem:[%s25288_s1 + $0x1144] ss:$16 sps:$4 sm:$0xff]  }
 0x1ef   :  { %4065 = vmatpush1.bf16.msra.mxu0 %v17360_v18  ;;  %4524 = vmatpush1.bf16.msra.mxu1 %v17363_v19  ;;  %v17460_v18 = vld [vmem:[%s25288_s1 + $0x114c] ss:$16 sps:$4 sm:$0xff]   ;;  %v17455_v19 = vld [vmem:[%s25288_s1 + $0x1140] ss:$16 sps:$4 sm:$0xff]  }
 0x1f0   :  { %4066 = vmatprep.subr.bf16.mxu0 %v17368_v20  ;;  %4525 = vmatprep.subr.bf16.mxu1 %v17371_v21  ;;  %v17458_v20 = vld [vmem:[%s25288_s1 + $0x1148] ss:$16 sps:$4 sm:$0xff]   ;;  %v17463_v21 = vld [vmem:[%s25288_s1 + $0x1164] ss:$16 sps:$4 sm:$0xff]  }
 0x1f3   :  { %4067 = vmatpush1.bf16.msra.mxu0 %v17366_v22  ;;  %4526 = vmatpush1.bf16.msra.mxu1 %v17369_v23  ;;  %v17466_v22 = vld [vmem:[%s25288_s1 + $0x116c] ss:$16 sps:$4 sm:$0xff]   ;;  %v17461_v23 = vld [vmem:[%s25288_s1 + $0x1160] ss:$16 sps:$4 sm:$0xff]  }
 0x1f4   :  { %4068 = vmatprep.subr.bf16.mxu0 %v17374_v24  ;;  %4527 = vmatprep.subr.bf16.mxu1 %v17377_v25  ;;  %v17464_v24 = vld [vmem:[%s25288_s1 + $0x1168] ss:$16 sps:$4 sm:$0xff]   ;;  %v17469_v25 = vld [vmem:[%s25288_s1 + $0x1184] ss:$16 sps:$4 sm:$0xff]  }
 0x1f7   :  { %4069 = vmatpush1.bf16.msra.mxu0 %v17372_v26  ;;  %4528 = vmatpush1.bf16.msra.mxu1 %v17375_v27  ;;  %v17472_v26 = vld [vmem:[%s25288_s1 + $0x118c] ss:$16 sps:$4 sm:$0xff]   ;;  %v17467_v27 = vld [vmem:[%s25288_s1 + $0x1180] ss:$16 sps:$4 sm:$0xff]  }
 0x1f8   :  { %4070 = vmatprep.subr.bf16.mxu0 %v17381_v28  ;;  %4529 = vmatprep.subr.bf16.mxu1 %v17384_v29  ;;  %v17470_v28 = vld [vmem:[%s25288_s1 + $0x1188] ss:$16 sps:$4 sm:$0xff]   ;;  %v17475_v29 = vld [vmem:[%s25288_s1 + $0x11a4] ss:$16 sps:$4 sm:$0xff]  }
 0x1fb   :  { %4071 = vmatpush1.bf16.msra.mxu0 %v17379_v30  ;;  %4530 = vmatpush1.bf16.msra.mxu1 %v17382_v31  ;;  %v17478_v30 = vld [vmem:[%s25288_s1 + $0x11ac] ss:$16 sps:$4 sm:$0xff]   ;;  %v17473_v31 = vld [vmem:[%s25288_s1 + $0x11a0] ss:$16 sps:$4 sm:$0xff]  }
 0x1fc   :  { %4072 = vmatprep.subr.bf16.mxu0 %v17388_v32  ;;  %4531 = vmatprep.subr.bf16.mxu1 %v17391_v33  ;;  %v17476_v32 = vld [vmem:[%s25288_s1 + $0x11a8] ss:$16 sps:$4 sm:$0xff]   ;;  %v17483_v33 = vld [vmem:[%s25288_s1 + $0x11c4] ss:$16 sps:$4 sm:$0xff]  }
 0x1ff   :  { %4073 = vmatpush1.bf16.msra.mxu0 %v17386_v34  ;;  %4532 = vmatpush1.bf16.msra.mxu1 %v17389_v35  ;;  %v17486_v34 = vld [vmem:[%s25288_s1 + $0x11cc] ss:$16 sps:$4 sm:$0xff]   ;;  %v17481_v35 = vld [vmem:[%s25288_s1 + $0x11c0] ss:$16 sps:$4 sm:$0xff]  }
 0x200   :  { %4093 = vmatprep.subr.bf16.mxu0 %v17397_v36  ;;  %4552 = vmatprep.subr.bf16.mxu1 %v17400_v37  ;;  %v17484_v36 = vld [vmem:[%s25288_s1 + $0x11c8] ss:$16 sps:$4 sm:$0xff]   ;;  %v17489_v37 = vld [vmem:[%s25288_s1 + $0x11e4] ss:$16 sps:$4 sm:$0xff]  }
 0x202   :  { %4075 = vmatmul.mubr.bf16.vlgmr.msra.gmra.mrb[0].mxu0 %v17392_v38  ;;  %4534 = vmatmul.mubr.bf16.vlgmr.msra.gmra.mrb[0].mxu1 %v17392_v38  ;;  %v17492_v38 = vld [vmem:[%s25288_s1 + $0x11ec] ss:$16 sps:$4 sm:$0xff]  }
 0x203   :  { %4094 = vmatpush1.bf16.msra.mxu0 %v17395_v40  ;;  %4553 = vmatpush1.bf16.msra.mxu1 %v17398_v41  ;;  %v17490_v40 = vld [vmem:[%s25288_s1 + $0x11e8] ss:$16 sps:$4 sm:$0xff]   ;;  %v53_v41 = vld [vmem:[%s25287_s0 + $0xd0] sm:$0x11] }
 0x204   :  { %4095 = vmatprep.subr.bf16.mxu0 %v17403_v42  ;;  %4554 = vmatprep.subr.bf16.mxu1 %v17406_v43  ;;  %v17500_v42 = vld [vmem:[%s25290_s3 + $0x404] ss:$16 sps:$4 sm:$0xff]  }
 0x205   :  { %4084 = vmatprep.mubr.bf16.mxu0 %v13558_v46  ;;  %4543 = vmatprep.mubr.bf16.mxu1 %v13558_v46  ;;  %v17503_v43 = vld [vmem:[%s25290_s3 + $0x604] ss:$16 sps:$4 sm:$0xff]   ;;  %v17501_v46 = vld [vmem:[%s25290_s3 + $0x600] ss:$16 sps:$4 sm:$0xff]  }
 0x207   :  { %4096 = vmatpush1.bf16.msra.mxu0 %v17401_v44  ;;  %4555 = vmatpush1.bf16.msra.mxu1 %v17404_v45  ;;  %v17493_v44 = vld [vmem:[%s25287_s0 + $0x40] ss:$72 sps:$4 sm:$0xff]  }
 0x208   :  { %4097 = vmatprep.subr.bf16.mxu0 %v17409_v47  ;;  %4556 = vmatprep.subr.bf16.mxu1 %v17412_v48  ;;  %v17498_v45 = vld [vmem:[%s25290_s3 + $0x400] ss:$16 sps:$4 sm:$0xff]   ;;  %v13560_v47 = vcombine.high %v53_v41, %v53_v41  ;;  %v17506_v48 = vld [vmem:[%s25290_s3 + $0x424] ss:$16 sps:$4 sm:$0xff]  }
 0x20a   :  { %4085 = vmatmul.mubr.bf16.gmra.mrb[4].mxu0 %v13557_v53  ;;  %4544 = vmatmul.mubr.bf16.gmra.mrb[4].mxu1 %v13557_v53  ;;  %v17515_v53 = vld [vmem:[%s25290_s3 + $0x644] ss:$16 sps:$4 sm:$0xff]  }
 0x20b   :  { %4098 = vmatpush1.bf16.msra.mxu0 %v17407_v49  ;;  %4557 = vmatpush1.bf16.msra.mxu1 %v17410_v50  ;;  %v17509_v49 = vld [vmem:[%s25290_s3 + $0x624] ss:$16 sps:$4 sm:$0xff]   ;;  %v17504_v50 = vld [vmem:[%s25290_s3 + $0x420] ss:$16 sps:$4 sm:$0xff]  }
 0x20c   :  { %4099 = vmatprep.subr.bf16.mxu0 %v17415_v51  ;;  %4558 = vmatprep.subr.bf16.mxu1 %v17418_v52  ;;  %v17507_v51 = vld [vmem:[%s25290_s3 + $0x620] ss:$16 sps:$4 sm:$0xff]   ;;  %v17512_v52 = vld [vmem:[%s25290_s3 + $0x444] ss:$16 sps:$4 sm:$0xff]  }
 0x20d   :  { %4125 = vmatprep.mubr.bf16.mxu0 %v17495_v54  ;;  %4584 = vmatprep.mubr.bf16.mxu1 %v17495_v54  ;;  %v13559_v54 = vcombine.low %v53_v41, %v53_v41  ;;  %v17590_v41 = vld [vmem:[%s25290_s3 + $0x5e4] ss:$16 sps:$4 sm:$0xff]  }
 0x20f   :  { %4100 = vmatpush1.bf16.msra.mxu0 %v17413_v55  ;;  %4559 = vmatpush1.bf16.msra.mxu1 %v17416_v56  ;;  %v17510_v55 = vld [vmem:[%s25290_s3 + $0x440] ss:$16 sps:$4 sm:$0xff]  }
 0x210   :  { %4101 = vmatprep.subr.bf16.mxu0 %v17421_v57  ;;  %4560 = vmatprep.subr.bf16.mxu1 %v17424_v58  ;;  %v17513_v56 = vld [vmem:[%s25290_s3 + $0x640] ss:$16 sps:$4 sm:$0xff]   ;;  %v17518_v57 = vld [vmem:[%s25290_s3 + $0x464] ss:$16 sps:$4 sm:$0xff]  }
 0x211   :  { %v17521_v58 = vld [vmem:[%s25290_s3 + $0x664] ss:$16 sps:$4 sm:$0xff]  }
 0x213   :  { %4102 = vmatpush1.bf16.msra.mxu0 %v17419_v59  ;;  %4561 = vmatpush1.bf16.msra.mxu1 %v17422_v60  ;;  %v17516_v59 = vld [vmem:[%s25290_s3 + $0x460] ss:$16 sps:$4 sm:$0xff]  }
 0x214   :  { %4103 = vmatprep.subr.bf16.mxu0 %v17427_v61  ;;  %4562 = vmatprep.subr.bf16.mxu1 %v17430_v62  ;;  %v17519_v60 = vld [vmem:[%s25290_s3 + $0x660] ss:$16 sps:$4 sm:$0xff]   ;;  %v17524_v61 = vld [vmem:[%s25290_s3 + $0x484] ss:$16 sps:$4 sm:$0xff]  }
 0x215   :  { %v17527_v62 = vld [vmem:[%s25290_s3 + $0x684] ss:$16 sps:$4 sm:$0xff]  }
 0x217   :  { %4104 = vmatpush1.bf16.msra.mxu0 %v17425_v63  ;;  %4563 = vmatpush1.bf16.msra.mxu1 %v17428_v0  ;;  %v17522_v63 = vld [vmem:[%s25290_s3 + $0x480] ss:$16 sps:$4 sm:$0xff]  }
 0x218   :  { %4105 = vmatprep.subr.bf16.mxu0 %v17433_v1  ;;  %4564 = vmatprep.subr.bf16.mxu1 %v17436_v2  ;;  %v17525_v0 = vld [vmem:[%s25290_s3 + $0x680] ss:$16 sps:$4 sm:$0xff]   ;;  %v17530_v1 = vld [vmem:[%s25290_s3 + $0x4a4] ss:$16 sps:$4 sm:$0xff]  }
 0x219   :  { %v17533_v2 = vld [vmem:[%s25290_s3 + $0x6a4] ss:$16 sps:$4 sm:$0xff]  }
 0x21b   :  { %4106 = vmatpush1.bf16.msra.mxu0 %v17431_v3  ;;  %4565 = vmatpush1.bf16.msra.mxu1 %v17434_v4  ;;  %v17528_v3 = vld [vmem:[%s25290_s3 + $0x4a0] ss:$16 sps:$4 sm:$0xff]  }
 0x21c   :  { %4107 = vmatprep.subr.bf16.mxu0 %v17439_v5  ;;  %4566 = vmatprep.subr.bf16.mxu1 %v17442_v6  ;;  %v17531_v4 = vld [vmem:[%s25290_s3 + $0x6a0] ss:$16 sps:$4 sm:$0xff]   ;;  %v17536_v5 = vld [vmem:[%s25290_s3 + $0x4c4] ss:$16 sps:$4 sm:$0xff]  }
 0x21d   :  { %v17539_v6 = vld [vmem:[%s25290_s3 + $0x6c4] ss:$16 sps:$4 sm:$0xff]  }
 0x21f   :  { %4108 = vmatpush1.bf16.msra.mxu0 %v17437_v7  ;;  %4567 = vmatpush1.bf16.msra.mxu1 %v17440_v8  ;;  %v17534_v7 = vld [vmem:[%s25290_s3 + $0x4c0] ss:$16 sps:$4 sm:$0xff]  }
 0x220   :  { %4109 = vmatprep.subr.bf16.mxu0 %v17445_v9  ;;  %4568 = vmatprep.subr.bf16.mxu1 %v17448_v10  ;;  %v17537_v8 = vld [vmem:[%s25290_s3 + $0x6c0] ss:$16 sps:$4 sm:$0xff]   ;;  %v17542_v9 = vld [vmem:[%s25290_s3 + $0x4e4] ss:$16 sps:$4 sm:$0xff]  }
 0x221   :  { %v17545_v10 = vld [vmem:[%s25290_s3 + $0x6e4] ss:$16 sps:$4 sm:$0xff]  }
 0x223   :  { %4110 = vmatpush1.bf16.msra.mxu0 %v17443_v11  ;;  %4569 = vmatpush1.bf16.msra.mxu1 %v17446_v12  ;;  %v17540_v11 = vld [vmem:[%s25290_s3 + $0x4e0] ss:$16 sps:$4 sm:$0xff]  }
 0x224   :  { %4111 = vmatprep.subr.bf16.mxu0 %v17451_v13  ;;  %4570 = vmatprep.subr.bf16.mxu1 %v17454_v14  ;;  %v17543_v12 = vld [vmem:[%s25290_s3 + $0x6e0] ss:$16 sps:$4 sm:$0xff]   ;;  %v17548_v13 = vld [vmem:[%s25290_s3 + $0x504] ss:$16 sps:$4 sm:$0xff]  }
 0x225   :  { %v17551_v14 = vld [vmem:[%s25290_s3 + $0x704] ss:$16 sps:$4 sm:$0xff]  }
 0x227   :  { %4112 = vmatpush1.bf16.msra.mxu0 %v17449_v15  ;;  %4571 = vmatpush1.bf16.msra.mxu1 %v17452_v16  ;;  %v17546_v15 = vld [vmem:[%s25290_s3 + $0x500] ss:$16 sps:$4 sm:$0xff]  }
 0x228   :  { %4113 = vmatprep.subr.bf16.mxu0 %v17457_v17  ;;  %4572 = vmatprep.subr.bf16.mxu1 %v17460_v18  ;;  %v17549_v16 = vld [vmem:[%s25290_s3 + $0x700] ss:$16 sps:$4 sm:$0xff]   ;;  %v17554_v17 = vld [vmem:[%s25290_s3 + $0x524] ss:$16 sps:$4 sm:$0xff]  }
 0x229   :  { %v17557_v18 = vld [vmem:[%s25290_s3 + $0x724] ss:$16 sps:$4 sm:$0xff]  }
 0x22b   :  { %4114 = vmatpush1.bf16.msra.mxu0 %v17455_v19  ;;  %4573 = vmatpush1.bf16.msra.mxu1 %v17458_v20  ;;  %v17552_v19 = vld [vmem:[%s25290_s3 + $0x520] ss:$16 sps:$4 sm:$0xff]  }
 0x22c   :  { %4115 = vmatprep.subr.bf16.mxu0 %v17463_v21  ;;  %4574 = vmatprep.subr.bf16.mxu1 %v17466_v22  ;;  %v17555_v20 = vld [vmem:[%s25290_s3 + $0x720] ss:$16 sps:$4 sm:$0xff]   ;;  %v17560_v21 = vld [vmem:[%s25290_s3 + $0x544] ss:$16 sps:$4 sm:$0xff]  }
 0x22d   :  { %v17563_v22 = vld [vmem:[%s25290_s3 + $0x744] ss:$16 sps:$4 sm:$0xff]  }
 0x22f   :  { %4116 = vmatpush1.bf16.msra.mxu0 %v17461_v23  ;;  %4575 = vmatpush1.bf16.msra.mxu1 %v17464_v24  ;;  %v17558_v23 = vld [vmem:[%s25290_s3 + $0x540] ss:$16 sps:$4 sm:$0xff]  }
 0x230   :  { %4117 = vmatprep.subr.bf16.mxu0 %v17469_v25  ;;  %4576 = vmatprep.subr.bf16.mxu1 %v17472_v26  ;;  %v17561_v24 = vld [vmem:[%s25290_s3 + $0x740] ss:$16 sps:$4 sm:$0xff]   ;;  %v17566_v25 = vld [vmem:[%s25290_s3 + $0x564] ss:$16 sps:$4 sm:$0xff]  }
 0x231   :  { %v17569_v26 = vld [vmem:[%s25290_s3 + $0x764] ss:$16 sps:$4 sm:$0xff]  }
 0x233   :  { %4118 = vmatpush1.bf16.msra.mxu0 %v17467_v27  ;;  %4577 = vmatpush1.bf16.msra.mxu1 %v17470_v28  ;;  %v17564_v27 = vld [vmem:[%s25290_s3 + $0x560] ss:$16 sps:$4 sm:$0xff]  }
 0x234   :  { %4119 = vmatprep.subr.bf16.mxu0 %v17475_v29  ;;  %4578 = vmatprep.subr.bf16.mxu1 %v17478_v30  ;;  %v17567_v28 = vld [vmem:[%s25290_s3 + $0x760] ss:$16 sps:$4 sm:$0xff]   ;;  %v17572_v29 = vld [vmem:[%s25290_s3 + $0x584] ss:$16 sps:$4 sm:$0xff]  }
 0x235   :  { %v17575_v30 = vld [vmem:[%s25290_s3 + $0x784] ss:$16 sps:$4 sm:$0xff]  }
 0x237   :  { %4120 = vmatpush1.bf16.msra.mxu0 %v17473_v31  ;;  %4579 = vmatpush1.bf16.msra.mxu1 %v17476_v32  ;;  %v17570_v31 = vld [vmem:[%s25290_s3 + $0x580] ss:$16 sps:$4 sm:$0xff]  }
 0x238   :  { %4121 = vmatprep.subr.bf16.mxu0 %v17483_v33  ;;  %4580 = vmatprep.subr.bf16.mxu1 %v17486_v34  ;;  %v17573_v32 = vld [vmem:[%s25290_s3 + $0x780] ss:$16 sps:$4 sm:$0xff]   ;;  %v17578_v33 = vld [vmem:[%s25290_s3 + $0x5a4] ss:$16 sps:$4 sm:$0xff]  }
 0x239   :  { %v17581_v34 = vld [vmem:[%s25290_s3 + $0x7a4] ss:$16 sps:$4 sm:$0xff]  }
 0x23b   :  { %4122 = vmatpush1.bf16.msra.mxu0 %v17481_v35  ;;  %4581 = vmatpush1.bf16.msra.mxu1 %v17484_v36  ;;  %v17576_v35 = vld [vmem:[%s25290_s3 + $0x5a0] ss:$16 sps:$4 sm:$0xff]  }
 0x23c   :  { %4123 = vmatprep.subr.bf16.mxu0 %v17489_v37  ;;  %4582 = vmatprep.subr.bf16.mxu1 %v17492_v38  ;;  %v17579_v36 = vld [vmem:[%s25290_s3 + $0x7a0] ss:$16 sps:$4 sm:$0xff]   ;;  %v17584_v37 = vld [vmem:[%s25290_s3 + $0x5c4] ss:$16 sps:$4 sm:$0xff]  }
 0x23d   :  { %v17587_v38 = vld [vmem:[%s25290_s3 + $0x7c4] ss:$16 sps:$4 sm:$0xff]  }
 0x23f   :  { %4124 = vmatpush1.bf16.msra.mxu0 %v17487_v39  ;;  %4583 = vmatpush1.bf16.msra.mxu1 %v17490_v40  ;;  %v17582_v39 = vld [vmem:[%s25290_s3 + $0x5c0] ss:$16 sps:$4 sm:$0xff]  }
 0x240   :  { %5577 = vmatprep.subr.bf16.mxu0 %v17500_v42  ;;  %5618 = vmatprep.subr.bf16.mxu1 %v17503_v43  ;;  %v17585_v40 = vld [vmem:[%s25290_s3 + $0x7c0] ss:$16 sps:$4 sm:$0xff]   ;;  %v17593_v42 = vld [vmem:[%s25290_s3 + $0x7e4] ss:$16 sps:$4 sm:$0xff]  }
 0x241   :  { %v17588_v43 = vld [vmem:[%s25290_s3 + $0x5e0] ss:$16 sps:$4 sm:$0xff]  }
 0x242   :  { %4126 = vmatmul.mubr.bf16.vlgmr.msra.gmra.mrb[0].mxu0 %v17493_v44  ;;  %4585 = vmatmul.mubr.bf16.vlgmr.msra.gmra.mrb[0].mxu1 %v17493_v44  ;;  %v17591_v44 = vld [vmem:[%s25290_s3 + $0x7e0] ss:$16 sps:$4 sm:$0xff]  }
 0x243   :  { %4135 = vmatprep.mubr.bf16.mxu0 %v13560_v47  ;;  %4594 = vmatprep.mubr.bf16.mxu1 %v13560_v47  ;;  %v632_v47 = vlaneseq }
 0x244   :  { %5578 = vmatpush1.bf16.msra.mxu0 %v17498_v45  ;;  %5619 = vmatpush1.bf16.msra.mxu1 %v17501_v46  ;;  %v17596_v45 = vld [vmem:[%s25290_s3 + $0x40c] ss:$16 sps:$4 sm:$0xff]  }
 0x245   :  { %5579 = vmatprep.subr.bf16.mxu0 %v17506_v48  ;;  %5620 = vmatprep.subr.bf16.mxu1 %v17509_v49  ;;  %v17599_v46 = vld [vmem:[%s25290_s3 + $0x60c] ss:$16 sps:$4 sm:$0xff]   ;;  %v21298_v48 = vshrl.u32 %v632_v47, 7  ;;  %v630_v49 = vld [vmem:[%s25289_s2] sm:$0xf] }
 0x248   :  { %5580 = vmatpush1.bf16.msra.mxu0 %v17504_v50  ;;  %5621 = vmatpush1.bf16.msra.mxu1 %v17507_v51  ;;  %v634_v50 = vsub.s32 0, %v21298_v48  ;;  %v642_v51 = vsub.s32 2, %v21298_v48 }
 0x249   :  { %5581 = vmatprep.subr.bf16.mxu0 %v17512_v52  ;;  %5622 = vmatprep.subr.bf16.mxu1 %v17515_v53  ;;  %v638_v52 = vsub.s32 1, %v21298_v48  ;;  %v646_v53 = vsub.s32 3, %v21298_v48 }
 0x24a   :  { %4136 = vmatmul.mubr.bf16.gmra.mrb[4].mxu0 %v13559_v54  ;;  %4595 = vmatmul.mubr.bf16.gmra.mrb[4].mxu1 %v13559_v54  ;;  %v635_v54 = vrot.slane %v630_v49, %v634_v50 }
 0x24c   :  { %5582 = vmatpush1.bf16.msra.mxu0 %v17510_v55  ;;  %5623 = vmatpush1.bf16.msra.mxu1 %v17513_v56  ;;  %v643_v55 = vrot.slane %v630_v49, %v642_v51  ;;  %v639_v56 = vrot.slane %v630_v49, %v638_v52 }
 0x24d   :  { %5583 = vmatprep.subr.bf16.mxu0 %v17518_v57  ;;  %5624 = vmatprep.subr.bf16.mxu1 %v17521_v58  ;;  %v647_v57 = vrot.slane %v630_v49, %v646_v53 }
 0x250   :  { %5584 = vmatpush1.bf16.msra.mxu0 %v17516_v59  ;;  %5625 = vmatpush1.bf16.msra.mxu1 %v17519_v60 }
 0x251   :  { %5585 = vmatprep.subr.bf16.mxu0 %v17524_v61  ;;  %5626 = vmatprep.subr.bf16.mxu1 %v17527_v62 }
 0x254   :  { %5586 = vmatpush1.bf16.msra.mxu0 %v17522_v63  ;;  %5627 = vmatpush1.bf16.msra.mxu1 %v17525_v0 }
 0x255   :  { %5587 = vmatprep.subr.bf16.mxu0 %v17530_v1  ;;  %5628 = vmatprep.subr.bf16.mxu1 %v17533_v2 }
 0x258   :  { %5588 = vmatpush1.bf16.msra.mxu0 %v17528_v3  ;;  %5629 = vmatpush1.bf16.msra.mxu1 %v17531_v4 }
 0x259   :  { %5589 = vmatprep.subr.bf16.mxu0 %v17536_v5  ;;  %5630 = vmatprep.subr.bf16.mxu1 %v17539_v6 }
 0x25c   :  { %5590 = vmatpush1.bf16.msra.mxu0 %v17534_v7  ;;  %5631 = vmatpush1.bf16.msra.mxu1 %v17537_v8 }
 0x25d   :  { %5591 = vmatprep.subr.bf16.mxu0 %v17542_v9  ;;  %5632 = vmatprep.subr.bf16.mxu1 %v17545_v10 }
 0x260   :  { %5592 = vmatpush1.bf16.msra.mxu0 %v17540_v11  ;;  %5633 = vmatpush1.bf16.msra.mxu1 %v17543_v12 }
 0x261   :  { %5593 = vmatprep.subr.bf16.mxu0 %v17548_v13  ;;  %5634 = vmatprep.subr.bf16.mxu1 %v17551_v14 }
 0x264   :  { %5594 = vmatpush1.bf16.msra.mxu0 %v17546_v15  ;;  %5635 = vmatpush1.bf16.msra.mxu1 %v17549_v16 }
 0x265   :  { %5595 = vmatprep.subr.bf16.mxu0 %v17554_v17  ;;  %5636 = vmatprep.subr.bf16.mxu1 %v17557_v18 }
 0x268   :  { %5596 = vmatpush1.bf16.msra.mxu0 %v17552_v19  ;;  %5637 = vmatpush1.bf16.msra.mxu1 %v17555_v20 }
 0x269   :  { %5597 = vmatprep.subr.bf16.mxu0 %v17560_v21  ;;  %5638 = vmatprep.subr.bf16.mxu1 %v17563_v22 }
 0x26c   :  { %5598 = vmatpush1.bf16.msra.mxu0 %v17558_v23  ;;  %5639 = vmatpush1.bf16.msra.mxu1 %v17561_v24 }
 0x26d   :  { %5599 = vmatprep.subr.bf16.mxu0 %v17566_v25  ;;  %5640 = vmatprep.subr.bf16.mxu1 %v17569_v26 }
 0x270   :  { %5600 = vmatpush1.bf16.msra.mxu0 %v17564_v27  ;;  %5641 = vmatpush1.bf16.msra.mxu1 %v17567_v28 }
 0x271   :  { %5601 = vmatprep.subr.bf16.mxu0 %v17572_v29  ;;  %5642 = vmatprep.subr.bf16.mxu1 %v17575_v30 }
 0x274   :  { %5602 = vmatpush1.bf16.msra.mxu0 %v17570_v31  ;;  %5643 = vmatpush1.bf16.msra.mxu1 %v17573_v32 }
 0x275   :  { %5603 = vmatprep.subr.bf16.mxu0 %v17578_v33  ;;  %5644 = vmatprep.subr.bf16.mxu1 %v17581_v34 }
 0x278   :  { %5604 = vmatpush1.bf16.msra.mxu0 %v17576_v35  ;;  %5645 = vmatpush1.bf16.msra.mxu1 %v17579_v36 }
 0x279   :  { %5605 = vmatprep.subr.bf16.mxu0 %v17584_v37  ;;  %5646 = vmatprep.subr.bf16.mxu1 %v17587_v38 }
 0x27c   :  { %5606 = vmatpush1.bf16.msra.mxu0 %v17582_v39  ;;  %5647 = vmatpush1.bf16.msra.mxu1 %v17585_v40 }
 0x27d   :  { %5607 = vmatprep.subr.bf16.mxu0 %v17590_v41  ;;  %5648 = vmatprep.subr.bf16.mxu1 %v17593_v42 }
 0x280   :  { %5608 = vmatpush1.bf16.msra.mxu0 %v17588_v43  ;;  %5649 = vmatpush1.bf16.msra.mxu1 %v17591_v44 }
 0x281   :  { %5659 = vmatprep.subr.bf16.mxu0 %v17596_v45  ;;  %5700 = vmatprep.subr.bf16.mxu1 %v17599_v46 }
 0x315   :  { %v4127_v58 = vpop.f32.mrb[0].mxu0  ;;  %v4586_v59 = vpop.f32.mrb[0].mxu1 }
 0x316   :  { %v16448_v60 = vadd.f32 %v4127_v58, %v635_v54  ;;  %v16454_v61 = vadd.f32 %v4586_v59, %v643_v55  ;;  %v4129_v62 = vpop.f32.mrb[1].mxu0  ;;  %v4588_v63 = vpop.f32.mrb[1].mxu1  ;;  %v17594_v59 = vld [vmem:[%s25290_s3 + $0x408] ss:$16 sps:$4 sm:$0xff]  }
 0x317   :  { %v16449_v0 = vadd.f32 %v4129_v62, %v639_v56  ;;  %v16455_v1 = vadd.f32 %v4588_v63, %v647_v57  ;;  %v4131_v2 = vpop.f32.mrb[2].mxu0  ;;  %v4590_v3 = vpop.f32.mrb[2].mxu1  ;;  %v17597_v62 = vld [vmem:[%s25290_s3 + $0x608] ss:$16 sps:$4 sm:$0xff]  }
 0x318   :  { %vm4603_vm0 = vcmp.ge.f32.partialorder %v16448_v60, 0.0  ;;  %v4615_v6 = vmul.f32 0.2, %v16448_v60  ;;  %vm4605_vm3 = vcmp.ge.f32.partialorder %v16454_v61, 0.0  ;;  %v16450_v7 = vadd.f32 %v4131_v2, %v635_v54  ;;  %v4133_v9 = vpop.f32.mrb[3].mxu0  ;;  %v4592_v10 = vpop.f32.mrb[3].mxu1 }
 0x319   :  { %vm4604_vm1 = vcmp.ge.f32.partialorder %v16449_v0, 0.0  ;;  %v4616_v4 = vmul.f32 0.2, %v16449_v0  ;;  %vm4606_vm2 = vcmp.ge.f32.partialorder %v16455_v1, 0.0  ;;  %v4618_v5 = vmul.f32 0.2, %v16455_v1 }
 0x31a   :  { %v16456_v8 = vadd.f32 %v4590_v3, %v643_v55  ;;  %v16451_v13 = vadd.f32 %v4133_v9, %v639_v56  ;;  %v16457_v14 = vadd.f32 %v4592_v10, %v647_v57  ;;  %v4617_v15 = vmul.f32 0.2, %v16454_v61  ;;  %v17605_v10 = vld [vmem:[%s25290_s3 + $0x62c] ss:$16 sps:$4 sm:$0xff]  }
 0x31b   :  { %v21315_v11 = vsel %vm4604_vm1, %v16449_v0, %v4616_v4  ;;  %v21317_v12 = vsel %vm4606_vm2, %v16455_v1, %v4618_v5  ;;  %vm4607_vm4 = vcmp.ge.f32.partialorder %v16450_v7, 0.0  ;;  %v4619_v16 = vmul.f32 0.2, %v16450_v7  ;;  %v17602_v5 = vld [vmem:[%s25290_s3 + $0x42c] ss:$16 sps:$4 sm:$0xff]  }
 0x31c   :  { %vm4609_vm5 = vcmp.ge.f32.partialorder %v16456_v8, 0.0  ;;  %vm4608_vm6 = vcmp.ge.f32.partialorder %v16451_v13, 0.0  ;;  %v4620_v17 = vmul.f32 0.2, %v16451_v13  ;;  %vm4610_vm7 = vcmp.ge.f32.partialorder %v16457_v14, 0.0 }
 0x31d   :  { %v4622_v18 = vmul.f32 0.2, %v16457_v14  ;;  %v4621_v19 = vmul.f32 0.2, %v16456_v8  ;;  %v4137_v20 = vpop.f32.mrb[4].mxu0  ;;  %v4596_v21 = vpop.f32.mrb[4].mxu1  ;;  %v21328_v38 = vsel %vm4603_vm0, %v16448_v60, %v4615_v6  ;;  %v21331_v39 = vsel %vm4607_vm4, %v16450_v7, %v4619_v16 }
 0x31e   :  { %v4781_v22 = vrot.slane %v21315_v11, 1  ;;  %v4783_v23 = vrot.slane %v21317_v12, 1  ;;  %v21321_v24 = vsel %vm4608_vm6, %v16451_v13, %v4620_v17  ;;  %v16452_v26 = vadd.f32 %v4137_v20, %v635_v54  ;;  %v4139_v28 = vpop.f32.mrb[5].mxu0  ;;  %v4598_v29 = vpop.f32.mrb[5].mxu1 }
 0x31f   :  { %v21323_v25 = vsel %vm4610_vm7, %v16457_v14, %v4622_v18  ;;  %v16458_v27 = vadd.f32 %v4596_v21, %v643_v55  ;;  %v16453_v30 = vadd.f32 %v4139_v28, %v639_v56  ;;  %v16459_v31 = vadd.f32 %v4598_v29, %v647_v57  ;;  %v4141_v32 = vpop.f32.mrb[6].mxu0  ;;  %v4600_v33 = vpop.f32.mrb[6].mxu1  ;;  %v17600_v21 = vld [vmem:[%s25290_s3 + $0x428] ss:$16 sps:$4 sm:$0xff]   ;;  %v17608_v28 = vld [vmem:[%s25290_s3 + $0x44c] ss:$16 sps:$4 sm:$0xff]  }
 0x320   :  { %v4793_v34 = vrot.slane %v21321_v24, 1  ;;  %v4795_v35 = vrot.slane %v21323_v25, 1  ;;  %vm4611_vm8 = vcmp.ge.f32.partialorder %v16452_v26, 0.0  ;;  %v4623_v36 = vmul.f32 0.2, %v16452_v26  ;;  %v4142_v43 = vpop.f32.mrb[7].mxu0 }
 0x321   :  { %vm4613_vm9 = vcmp.ge.f32.partialorder %v16458_v27, 0.0  ;;  %v4625_v37 = vmul.f32 0.2, %v16458_v27  ;;  %v21334_v40 = vsel %vm4609_vm5, %v16456_v8, %v4621_v19  ;;  %v4601_v44 = vpop.f32.mrb[7].mxu1  ;;  %v21343_v47 = vsel %vm4605_vm3, %v16454_v61, %v4617_v15  ;;  %v17606_v32 = vld [vmem:[%s25290_s3 + $0x448] ss:$16 sps:$4 sm:$0xff]  }
 0x322   :  { %v21336_v41 = vsel %vm4611_vm8, %v16452_v26, %v4623_v36  ;;  %v4801_v45 = vsel %vm4639_vm10, %v4781_v22, %v4793_v34  ;;  %v4803_v46 = vsel %vm4639_vm10, %v4783_v23, %v4795_v35  ;;  %v4624_v55 = vmul.f32 0.2, %v16453_v30  ;;  %v17603_v22 = vld [vmem:[%s25290_s3 + $0x628] ss:$16 sps:$4 sm:$0xff]  }
 0x323   :  { %v21338_v42 = vsel %vm4613_vm9, %v16458_v27, %v4625_v37  ;;  %v21348_v49 = vsel %vm4639_vm10, %v21331_v39, %v21336_v41  ;;  %vm4612_vm11 = vcmp.ge.f32.partialorder %v16453_v30, 0.0  ;;  %v4626_v56 = vmul.f32 0.2, %v16459_v31 }
 0x324   :  { %v21353_v54 = vsel %vm4639_vm10, %v21334_v40, %v21338_v42  ;;  %v4805_v57 = vpack.c.bf16 %v4801_v45, %v4801_v45  ;;  %v4807_v58 = vpack.c.bf16 %v4803_v46, %v4803_v46  ;;  %vm4614_vm12 = vcmp.ge.f32.partialorder %v16459_v31, 0.0  ;;  %v17609_v46 = vld [vmem:[%s25290_s3 + $0x648] ss:$16 sps:$4 sm:$0xff]  }
 0x325   :  { %v4780_v60 = vrot.slane %v21328_v38, 1  ;;  %v4792_v61 = vrot.slane %v21331_v39, 1  ;;  %v4782_v63 = vrot.slane %v21343_v47, 1  ;;  %v4794_v0 = vrot.slane %v21334_v40, 1 }
 0x326   :  { %5609 = vmatprep.mubr.bf16.mxu0 %v4805_v57  ;;  %5650 = vmatprep.mubr.bf16.mxu1 %v4807_v58  ;;  %v21368_v1 = vsel %vm4639_vm10, %v21315_v11, %v21321_v24  ;;  %v21373_v2 = vsel %vm4639_vm10, %v21317_v12, %v21323_v25  ;;  %v21375_v3 = vsel %vm4612_vm11, %v16453_v30, %v4624_v55  ;;  %v6546_v15 = vrot.slane %v21315_v11, 2  ;;  %v17614_v55 = vld [vmem:[%s25290_s3 + $0x46c] ss:$16 sps:$4 sm:$0xff]  }
 0x327   :  { %v4800_v4 = vsel %vm4639_vm10, %v4780_v60, %v4792_v61  ;;  %v21384_v6 = vsel %vm4639_vm10, %v21328_v38, %v21331_v39  ;;  %v21386_v7 = vsel %vm4614_vm12, %v16459_v31, %v4626_v56  ;;  %v4802_v9 = vsel %vm4639_vm10, %v4782_v63, %v4794_v0  ;;  %v17611_v31 = vld [vmem:[%s25290_s3 + $0x64c] ss:$16 sps:$4 sm:$0xff]  }
 0x328   :  { %v21388_v8 = vpack.c.bf16 %v4800_v4, %v4800_v4  ;;  %v21397_v13 = vsel %vm4639_vm10, %v21343_v47, %v21334_v40  ;;  %v21399_v14 = vpack.c.bf16 %v4802_v9, %v4802_v9  ;;  %v6554_v16 = vrot.slane %v21321_v24, 2 }
 0x329   :  { %v6548_v17 = vrot.slane %v21317_v12, 2  ;;  %v6556_v18 = vrot.slane %v21323_v25, 2  ;;  %v6545_v19 = vrot.slane %v21328_v38, 2  ;;  %v6553_v20 = vrot.slane %v21331_v39, 2 }
 0x32a   :  { %5610 = vmatmul.mubr.bf16.vlgmr.msra.gmra.mrb[8].mxu0 %v21388_v8  ;;  %5651 = vmatmul.mubr.bf16.vlgmr.msra.gmra.mrb[8].mxu1 %v21399_v14  ;;  %v21416_v23 = vsel %vm4639_vm10, %v6546_v15, %v6554_v16  ;;  %v21421_v26 = vsel %vm4639_vm10, %v21321_v24, %v21375_v3  ;;  %v21426_v27 = vsel %vm4639_vm10, %v21323_v25, %v21386_v7  ;;  %v6547_v33 = vrot.slane %v21343_v47, 2  ;;  %v17620_v15 = vld [vmem:[%s25290_s3 + $0x48c] ss:$16 sps:$4 sm:$0xff]  }
 0x32b   :  { %5660 = vmatpush1.bf16.msra.mxu0 %v17594_v59  ;;  %5701 = vmatpush1.bf16.msra.mxu1 %v17597_v62  ;;  %v21432_v29 = vsel %vm4639_vm10, %v6548_v17, %v6556_v18  ;;  %v21435_v30 = vsel %vm4639_vm10, %v6545_v19, %v6553_v20  ;;  %v6555_v34 = vrot.slane %v21334_v40, 2  ;;  %v7507_v35 = vrot.slane %v21315_v11, 3  ;;  %v17617_v59 = vld [vmem:[%s25290_s3 + $0x66c] ss:$16 sps:$4 sm:$0xff]   ;;  %v17618_v17 = vld [vmem:[%s25290_s3 + $0x488] ss:$16 sps:$4 sm:$0xff]  }
 0x32c   :  { %5691 = vmatprep.mubr.bf16.mxu0 %v4805_v57  ;;  %5732 = vmatprep.mubr.bf16.mxu1 %v4807_v58  ;;  %v7515_v36 = vrot.slane %v21321_v24, 3  ;;  %v7509_v37 = vrot.slane %v21317_v12, 3  ;;  %v7517_v43 = vrot.slane %v21323_v25, 3  ;;  %v7506_v44 = vrot.slane %v21328_v38, 3  ;;  %v17612_v58 = vld [vmem:[%s25290_s3 + $0x468] ss:$16 sps:$4 sm:$0xff]  }
 0x32d   :  { %5661 = vmatprep.subr.bf16.mxu0 %v17602_v5  ;;  %5702 = vmatprep.subr.bf16.mxu1 %v17605_v10  ;;  %v7514_v45 = vrot.slane %v21331_v39, 3  ;;  %v21458_v56 = vsel %vm4639_vm10, %v6547_v33, %v6555_v34  ;;  %v7508_v62 = vrot.slane %v21343_v47, 3  ;;  %v7516_v63 = vrot.slane %v21334_v40, 3  ;;  %v17615_v10 = vld [vmem:[%s25290_s3 + $0x668] ss:$16 sps:$4 sm:$0xff]  }
 0x32e   :  { %v21461_v57 = vsel %vm4639_vm10, %v7507_v35, %v7515_v36  ;;  %v21470_v60 = vsel %vm4639_vm10, %v7509_v37, %v7517_v43  ;;  %v8468_v0 = vrot.slane %v21315_v11, 4  ;;  %v8476_v4 = vrot.slane %v21321_v24, 4  ;;  %v17623_v18 = vld [vmem:[%s25290_s3 + $0x68c] ss:$16 sps:$4 sm:$0xff]   ;;  %v17621_v35 = vld [vmem:[%s25290_s3 + $0x688] ss:$16 sps:$4 sm:$0xff]  }
 0x32f   :  { %5662 = vmatpush1.bf16.msra.mxu0 %v17600_v21  ;;  %5703 = vmatpush1.bf16.msra.mxu1 %v17603_v22  ;;  %v21473_v61 = vsel %vm4639_vm10, %v7506_v44, %v7514_v45  ;;  %v8470_v5 = vrot.slane %v21317_v12, 4  ;;  %v8478_v9 = vrot.slane %v21323_v25, 4  ;;  %v21488_v16 = vsel %vm4639_vm10, %v7508_v62, %v7516_v63  ;;  %v17626_v36 = vld [vmem:[%s25290_s3 + $0x4ac] ss:$16 sps:$4 sm:$0xff]   ;;  %v17624_v44 = vld [vmem:[%s25290_s3 + $0x4a8] ss:$16 sps:$4 sm:$0xff]  }
 0x330   :  { %5663 = vmatprep.subr.bf16.mxu0 %v17608_v28  ;;  %5704 = vmatprep.subr.bf16.mxu1 %v17611_v31  ;;  %v21497_v19 = vsel %vm4639_vm10, %v8468_v0, %v8476_v4  ;;  %v8467_v21 = vrot.slane %v21328_v38, 4  ;;  %v8475_v22 = vrot.slane %v21331_v39, 4  ;;  %v8469_v28 = vrot.slane %v21343_v47, 4  ;;  %v17629_v37 = vld [vmem:[%s25290_s3 + $0x6ac] ss:$16 sps:$4 sm:$0xff]  }
 0x331   :  { %v21500_v20 = vsel %vm4639_vm10, %v8470_v5, %v8478_v9  ;;  %v8477_v31 = vrot.slane %v21334_v40, 4  ;;  %v9429_v33 = vrot.slane %v21315_v11, 5  ;;  %v9437_v34 = vrot.slane %v21321_v24, 5 }
 0x332   :  { %v9436_v62 = vrot.slane %v21331_v39, 5  ;;  %v9430_v63 = vrot.slane %v21343_v47, 5  ;;  %v9438_v0 = vrot.slane %v21334_v40, 5  ;;  %v10390_v5 = vrot.slane %v21315_v11, 6 }
 0x333   :  { %5664 = vmatpush1.bf16.msra.mxu0 %v17606_v32  ;;  %5705 = vmatpush1.bf16.msra.mxu1 %v17609_v46  ;;  %v21507_v32 = vsel %vm4639_vm10, %v8467_v21, %v8475_v22  ;;  %v21521_v43 = vsel %vm4639_vm10, %v8469_v28, %v8477_v31  ;;  %v21527_v45 = vsel %vm4639_vm10, %v9429_v33, %v9437_v34  ;;  %v9431_v46 = vrot.slane %v21317_v12, 5 }
 0x334   :  { %5665 = vmatprep.subr.bf16.mxu0 %v17614_v55  ;;  %5706 = vmatprep.subr.bf16.mxu1 %v17617_v59  ;;  %v9439_v55 = vrot.slane %v21323_v25, 5  ;;  %v17627_v59 = vld [vmem:[%s25290_s3 + $0x6a8] ss:$16 sps:$4 sm:$0xff]   ;;  %v10398_v9 = vrot.slane %v21321_v24, 6  ;;  %v21554_v21 = vsel %vm4639_vm10, %v9430_v63, %v9438_v0  ;;  %v11365_v24 = vrot.slane %v21386_v7, 7 }
 0x335   :  { %v10392_v28 = vrot.slane %v21317_v12, 6  ;;  %v10400_v31 = vrot.slane %v21323_v25, 6  ;;  %v10389_v33 = vrot.slane %v21328_v38, 6  ;;  %v10397_v34 = vrot.slane %v21331_v39, 6  ;;  %v17633_v25 = vld [vmem:[%s25290_s3 + $0x6c8] ss:$16 sps:$4 sm:$0xff]  }
 0x336   :  { %v21539_v4 = vsel %vm4639_vm10, %v9431_v46, %v9439_v55  ;;  %v21561_v22 = vsel %vm4639_vm10, %v10390_v5, %v10398_v9  ;;  %v11353_v46 = vrot.slane %v21317_v12, 7  ;;  %v11362_v55 = vrot.slane %v21336_v41, 7  ;;  %v17638_v39 = vld [vmem:[%s25290_s3 + $0x4ec] ss:$16 sps:$4 sm:$0xff]   ;;  %v17639_v63 = vld [vmem:[%s25290_s3 + $0x6e8] ss:$16 sps:$4 sm:$0xff]  }
 0x337   :  { %5666 = vmatpush1.bf16.msra.mxu0 %v17612_v58  ;;  %5707 = vmatpush1.bf16.msra.mxu1 %v17615_v10  ;;  %v9428_v58 = vrot.slane %v21328_v38, 5  ;;  %v11363_v10 = vrot.slane %v21375_v3, 7  ;;  %v17630_v3 = vld [vmem:[%s25290_s3 + $0x4c8] ss:$16 sps:$4 sm:$0xff]   ;;  %v21569_v7 = vsel %vm4639_vm10, %v10392_v28, %v10400_v31  ;;  %v17641_v12 = vld [vmem:[%s25290_s3 + $0x6ec] ss:$16 sps:$4 sm:$0xff]  }
 0x338   :  { %5667 = vmatprep.subr.bf16.mxu0 %v17620_v15  ;;  %5708 = vmatprep.subr.bf16.mxu1 %v17623_v18  ;;  %v17632_v15 = vld [vmem:[%s25290_s3 + $0x4cc] ss:$16 sps:$4 sm:$0xff]   ;;  %v17654_v31 = vld [vmem:[%s25290_s3 + $0x548] ss:$16 sps:$4 sm:$0xff]  }
 0x339   :  { %v17635_v18 = vld [vmem:[%s25290_s3 + $0x6cc] ss:$16 sps:$4 sm:$0xff]  }
 0x33a   :  { %v17644_v0 = vld [vmem:[%s25290_s3 + $0x50c] ss:$16 sps:$4 sm:$0xff]  }
 0x33b   :  { %5668 = vmatpush1.bf16.msra.mxu0 %v17618_v17  ;;  %5709 = vmatpush1.bf16.msra.mxu1 %v17621_v35  ;;  %v21551_v17 = vsel %vm4639_vm10, %v9428_v58, %v9436_v62  ;;  %v10391_v35 = vrot.slane %v21343_v47, 6  ;;  %v11352_v62 = vrot.slane %v21343_v47, 7  ;;  %v17647_v47 = vld [vmem:[%s25290_s3 + $0x70c] ss:$16 sps:$4 sm:$0xff]  }
 0x33c   :  { %5669 = vmatprep.subr.bf16.mxu0 %v17626_v36  ;;  %5710 = vmatprep.subr.bf16.mxu1 %v17629_v37  ;;  %v10399_v36 = vrot.slane %v21334_v40, 6  ;;  %v11351_v37 = vrot.slane %v21315_v11, 7  ;;  %v11364_v40 = vrot.slane %v21338_v42, 7  ;;  %v17636_v11 = vld [vmem:[%s25290_s3 + $0x4e8] ss:$16 sps:$4 sm:$0xff]   ;;  %v11350_v42 = vrot.slane %v21328_v38, 7 }
 0x33d   :  { %v17642_v38 = vld [vmem:[%s25290_s3 + $0x508] ss:$16 sps:$4 sm:$0xff]   ;;  %v17656_v28 = vld [vmem:[%s25290_s3 + $0x54c] ss:$16 sps:$4 sm:$0xff]  }
 0x33e   :  { %v21592_v41 = vsel %vm4639_vm10, %v10391_v35, %v10399_v36  ;;  %v21595_v58 = vsel %vm4639_vm10, %v11351_v37, %v11363_v10  ;;  %v21609_v5 = vsel %vm4639_vm10, %v11350_v42, %v11362_v55  ;;  %v21618_v9 = vsel %vm4639_vm10, %v11352_v62, %v11364_v40  ;;  %v17645_v10 = vld [vmem:[%s25290_s3 + $0x708] ss:$16 sps:$4 sm:$0xff]   ;;  %v17662_v35 = vld [vmem:[%s25290_s3 + $0x56c] ss:$16 sps:$4 sm:$0xff]  }
 0x33f   :  { %5670 = vmatpush1.bf16.msra.mxu0 %v17624_v44  ;;  %5711 = vmatpush1.bf16.msra.mxu1 %v17627_v59  ;;  %v21582_v44 = vsel %vm4639_vm10, %v10389_v33, %v10397_v34  ;;  %v21598_v59 = vsel %vm4639_vm10, %v11353_v46, %v11365_v24  ;;  %v17653_v24 = vld [vmem:[%s25290_s3 + $0x72c] ss:$16 sps:$4 sm:$0xff]   ;;  %v17657_v34 = vld [vmem:[%s25290_s3 + $0x748] ss:$16 sps:$4 sm:$0xff]  }
 0x340   :  { %5671 = vmatprep.subr.bf16.mxu0 %v17632_v15  ;;  %5712 = vmatprep.subr.bf16.mxu1 %v17635_v18  ;;  %v17650_v15 = vld [vmem:[%s25290_s3 + $0x52c] ss:$16 sps:$4 sm:$0xff]   ;;  %v17648_v18 = vld [vmem:[%s25290_s3 + $0x528] ss:$16 sps:$4 sm:$0xff]  }
 0x341   :  { %v17659_v33 = vld [vmem:[%s25290_s3 + $0x74c] ss:$16 sps:$4 sm:$0xff]   ;;  %v17660_v36 = vld [vmem:[%s25290_s3 + $0x568] ss:$16 sps:$4 sm:$0xff]  }
 0x342   :  { %v17665_v37 = vld [vmem:[%s25290_s3 + $0x76c] ss:$16 sps:$4 sm:$0xff]   ;;  %v17663_v46 = vld [vmem:[%s25290_s3 + $0x768] ss:$16 sps:$4 sm:$0xff]  }
 0x343   :  { %5672 = vmatpush1.bf16.msra.mxu0 %v17630_v3  ;;  %5713 = vmatpush1.bf16.msra.mxu1 %v17633_v25  ;;  %v17651_v3 = vld [vmem:[%s25290_s3 + $0x728] ss:$16 sps:$4 sm:$0xff]   ;;  %v17668_v55 = vld [vmem:[%s25290_s3 + $0x58c] ss:$16 sps:$4 sm:$0xff]  }
 0x344   :  { %5673 = vmatprep.subr.bf16.mxu0 %v17638_v39  ;;  %5714 = vmatprep.subr.bf16.mxu1 %v17641_v12  ;;  %v17666_v25 = vld [vmem:[%s25290_s3 + $0x588] ss:$16 sps:$4 sm:$0xff]   ;;  %v17671_v39 = vld [vmem:[%s25290_s3 + $0x78c] ss:$16 sps:$4 sm:$0xff]  }
 0x345   :  { %v17669_v40 = vld [vmem:[%s25290_s3 + $0x788] ss:$16 sps:$4 sm:$0xff]   ;;  %v17677_v42 = vld [vmem:[%s25290_s3 + $0x7ac] ss:$16 sps:$4 sm:$0xff]  }
 0x346   :  { %v17672_v12 = vld [vmem:[%s25290_s3 + $0x5a8] ss:$16 sps:$4 sm:$0xff]  }
 0x347   :  { %5674 = vmatpush1.bf16.msra.mxu0 %v17636_v11  ;;  %5715 = vmatpush1.bf16.msra.mxu1 %v17639_v63  ;;  %v17674_v11 = vld [vmem:[%s25290_s3 + $0x5ac] ss:$16 sps:$4 sm:$0xff]   ;;  %v17675_v62 = vld [vmem:[%s25290_s3 + $0x7a8] ss:$16 sps:$4 sm:$0xff]  }
 0x348   :  { %5675 = vmatprep.subr.bf16.mxu0 %v17644_v0  ;;  %5716 = vmatprep.subr.bf16.mxu1 %v17647_v47  ;;  %v17680_v63 = vld [vmem:[%s25290_s3 + $0x5cc] ss:$16 sps:$4 sm:$0xff]   ;;  %v17678_v0 = vld [vmem:[%s25290_s3 + $0x5c8] ss:$16 sps:$4 sm:$0xff]  }
 0x349   :  { %v17681_v47 = vld [vmem:[%s25290_s3 + $0x7c8] ss:$16 sps:$4 sm:$0xff]  }
 0x34b   :  { %5676 = vmatpush1.bf16.msra.mxu0 %v17642_v38  ;;  %5717 = vmatpush1.bf16.msra.mxu1 %v17645_v10  ;;  %v17683_v38 = vld [vmem:[%s25290_s3 + $0x7cc] ss:$16 sps:$4 sm:$0xff]  }
 0x34c   :  { %5677 = vmatprep.subr.bf16.mxu0 %v17650_v15  ;;  %5718 = vmatprep.subr.bf16.mxu1 %v17653_v24  ;;  %v17686_v10 = vld [vmem:[%s25290_s3 + $0x5ec] ss:$16 sps:$4 sm:$0xff]   ;;  %v17684_v15 = vld [vmem:[%s25290_s3 + $0x5e8] ss:$16 sps:$4 sm:$0xff]  }
 0x34d   :  { %v17687_v24 = vld [vmem:[%s25290_s3 + $0x7e8] ss:$16 sps:$4 sm:$0xff]  }
 0x34f   :  { %5678 = vmatpush1.bf16.msra.mxu0 %v17648_v18  ;;  %5719 = vmatpush1.bf16.msra.mxu1 %v17651_v3  ;;  %v17689_v18 = vld [vmem:[%s25290_s3 + $0x7ec] ss:$16 sps:$4 sm:$0xff]   ;;  %v17692_v3 = vld [vmem:[%s25290_s3 + $0x4] ss:$16 sps:$4 sm:$0xff]  }
 0x350   :  { %5679 = vmatprep.subr.bf16.mxu0 %v17656_v28  ;;  %5720 = vmatprep.subr.bf16.mxu1 %v17659_v33  ;;  %v17690_v28 = vld [vmem:[%s25290_s3] ss:$16 sps:$4 sm:$0xff]  }
 0x351   :  { %v17693_v33 = vld [vmem:[%s25290_s3 + $0x200] ss:$16 sps:$4 sm:$0xff]  }
 0x353   :  { %5680 = vmatpush1.bf16.msra.mxu0 %v17654_v31  ;;  %5721 = vmatpush1.bf16.msra.mxu1 %v17657_v34  ;;  %v17695_v31 = vld [vmem:[%s25290_s3 + $0x204] ss:$16 sps:$4 sm:$0xff]  }
 0x354   :  { %5681 = vmatprep.subr.bf16.mxu0 %v17662_v35  ;;  %5722 = vmatprep.subr.bf16.mxu1 %v17665_v37  ;;  %v17698_v34 = vld [vmem:[%s25290_s3 + $0x24] ss:$16 sps:$4 sm:$0xff]   ;;  %v21733_v37 = vpack.c.bf16 %v21373_v2, %v21373_v2 }
 0x355   :  { %v17701_v35 = vld [vmem:[%s25290_s3 + $0x224] ss:$16 sps:$4 sm:$0xff]  }
 0x356   :  { %v17707_v2 = vld [vmem:[%s25290_s3 + $0x244] ss:$16 sps:$4 sm:$0xff]  }
 0x357   :  { %5682 = vmatpush1.bf16.msra.mxu0 %v17660_v36  ;;  %5723 = vmatpush1.bf16.msra.mxu1 %v17663_v46  ;;  %v21728_v36 = vpack.c.bf16 %v21368_v1, %v21368_v1  ;;  %v17696_v46 = vld [vmem:[%s25290_s3 + $0x20] ss:$16 sps:$4 sm:$0xff]   ;;  %v17704_v1 = vld [vmem:[%s25290_s3 + $0x44] ss:$16 sps:$4 sm:$0xff]  }
 0x358   :  { %5683 = vmatprep.subr.bf16.mxu0 %v17668_v55  ;;  %5724 = vmatprep.subr.bf16.mxu1 %v17671_v39  ;;  %v17699_v55 = vld [vmem:[%s25290_s3 + $0x220] ss:$16 sps:$4 sm:$0xff]   ;;  %v17713_v39 = vld [vmem:[%s25290_s3 + $0x264] ss:$16 sps:$4 sm:$0xff]  }
 0x35b   :  { %5684 = vmatpush1.bf16.msra.mxu0 %v17666_v25  ;;  %5725 = vmatpush1.bf16.msra.mxu1 %v17669_v40  ;;  %v17710_v25 = vld [vmem:[%s25290_s3 + $0x64] ss:$16 sps:$4 sm:$0xff]  }
 0x35c   :  { %5685 = vmatprep.subr.bf16.mxu0 %v17674_v11  ;;  %5726 = vmatprep.subr.bf16.mxu1 %v17677_v42 }
 0x35f   :  { %5686 = vmatpush1.bf16.msra.mxu0 %v17672_v12  ;;  %5727 = vmatpush1.bf16.msra.mxu1 %v17675_v62 }
 0x360   :  { %5687 = vmatprep.subr.bf16.mxu0 %v17680_v63  ;;  %5728 = vmatprep.subr.bf16.mxu1 %v17683_v38 }
 0x363   :  { %5688 = vmatpush1.bf16.msra.mxu0 %v17678_v0  ;;  %5729 = vmatpush1.bf16.msra.mxu1 %v17681_v47 }
 0x364   :  { %5689 = vmatprep.subr.bf16.mxu0 %v17686_v10  ;;  %5730 = vmatprep.subr.bf16.mxu1 %v17689_v18 }
 0x367   :  { %5690 = vmatpush1.bf16.msra.mxu0 %v17684_v15  ;;  %5731 = vmatpush1.bf16.msra.mxu1 %v17687_v24 }
 0x368   :  { %6381 = vmatprep.subr.bf16.mxu0 %v17692_v3  ;;  %6422 = vmatprep.subr.bf16.mxu1 %v17695_v31 }
 0x36a   :  { %5692 = vmatmul.mubr.bf16.vlgmr.msra.gmra.mrb[12].mxu0 %v21388_v8  ;;  %5733 = vmatmul.mubr.bf16.vlgmr.msra.gmra.mrb[12].mxu1 %v21399_v14  ;;  %v17702_v8 = vld [vmem:[%s25290_s3 + $0x40] ss:$16 sps:$4 sm:$0xff]  }
 0x36b   :  { %6382 = vmatpush1.bf16.msra.mxu0 %v17690_v28  ;;  %6413 = vmatprep.mubr.bf16.mxu0 %v21728_v36  ;;  %v17705_v14 = vld [vmem:[%s25290_s3 + $0x240] ss:$16 sps:$4 sm:$0xff]  }
 0x36c   :  { %6423 = vmatpush1.bf16.msra.mxu1 %v17693_v33  ;;  %6454 = vmatprep.mubr.bf16.mxu1 %v21733_v37 }
 0x36d   :  { %6383 = vmatprep.subr.bf16.mxu0 %v17698_v34  ;;  %6424 = vmatprep.subr.bf16.mxu1 %v17701_v35 }
 0x36f   :  { %6384 = vmatpush1.bf16.msra.mxu0 %v17696_v46 }
 0x370   :  { %6425 = vmatpush1.bf16.msra.mxu1 %v17699_v55  ;;  %6385 = vmatprep.subr.bf16.mxu0 %v17704_v1 }
 0x371   :  { %6426 = vmatprep.subr.bf16.mxu1 %v17707_v2 }
 0x372   :  { %12 = vsyncpa [#allocation3], 0  ;;  %v17708_v40 = vld [vmem:[%s25290_s3 + $0x60] ss:$16 sps:$4 sm:$0xff]   ;;  %v17716_v12 = vld [vmem:[%s25290_s3 + $0x84] ss:$16 sps:$4 sm:$0xff]  }
 0x373   :  { %6386 = vmatpush1.bf16.msra.mxu0 %v17702_v8  ;;  %v17711_v11 = vld [vmem:[%s25290_s3 + $0x260] ss:$16 sps:$4 sm:$0xff]   ;;  %v17719_v42 = vld [vmem:[%s25290_s3 + $0x284] ss:$16 sps:$4 sm:$0xff]   ;;  %s19250_s26 = smov [#allocation2]   ;;  %vm13509_vm1 = vcmask 254976  }
 0x374   :  { %6427 = vmatpush1.bf16.msra.mxu1 %v17705_v14  ;;  %6387 = vmatprep.subr.bf16.mxu0 %v17710_v25  ;;  %v17714_v62 = vld [vmem:[%s25290_s3 + $0x80] ss:$16 sps:$4 sm:$0xff]   ;;  %v17722_v0 = vld [vmem:[%s25290_s3 + $0xa4] ss:$16 sps:$4 sm:$0xff]   ;;  %s13517_s27 = sshll.u32 %s19250_s26, 4  ;;  %s13518_s27 = int_to_ptr.vmem [resolvable:$true] %s13517_s27 }
 0x375   :  { %6428 = vmatprep.subr.bf16.mxu1 %v17713_v39  ;;  %v17717_v63 = vld [vmem:[%s25290_s3 + $0x280] ss:$16 sps:$4 sm:$0xff]   ;;  %v17725_v38 = vld [vmem:[%s25290_s3 + $0x2a4] ss:$16 sps:$4 sm:$0xff]   ;;  %s19226_s28 = scalar_lea.vmem %s13518_s27, 32  ;;  %p19231_p1 = scmp.lt.s32.totalorder %s13518_s27, %s13518_s27 }
 0x376   :  { %v17720_v47 = vld [vmem:[%s25290_s3 + $0xa0] ss:$16 sps:$4 sm:$0xff]   ;;  %v17728_v15 = vld [vmem:[%s25290_s3 + $0xc4] ss:$16 sps:$4 sm:$0xff]   ;;  %p19227_p0 = scmp.ne.s32.totalorder %s13518_s27, %s19226_s28  ;;  %p19232_p2 = scmp.lt.s32.totalorder %s19226_s28, %s19226_s28 }
 0x377   :  { %6388 = vmatpush1.bf16.msra.mxu0 %v17708_v40  ;;  %v17723_v10 = vld [vmem:[%s25290_s3 + $0x2a0] ss:$16 sps:$4 sm:$0xff]   ;;  %v17731_v18 = vld [vmem:[%s25290_s3 + $0x2c4] ss:$16 sps:$4 sm:$0xff]  }
 0x378   :  { %6429 = vmatpush1.bf16.msra.mxu1 %v17711_v11  ;;  %6389 = vmatprep.subr.bf16.mxu0 %v17716_v12  ;;  %v17726_v24 = vld [vmem:[%s25290_s3 + $0xc0] ss:$16 sps:$4 sm:$0xff]   ;;  %v17734_v28 = vld [vmem:[%s25290_s3 + $0xe4] ss:$16 sps:$4 sm:$0xff]   ;;  %p19233_p3 = por %p19232_p2, %p19231_p1 }
 0x379   :  { %6430 = vmatprep.subr.bf16.mxu1 %v17719_v42  ;;  %v17729_v3 = vld [vmem:[%s25290_s3 + $0x2c0] ss:$16 sps:$4 sm:$0xff]   ;;  %v17737_v31 = vld [vmem:[%s25290_s3 + $0x2e4] ss:$16 sps:$4 sm:$0xff]  }
 0x37a   :  { %v17732_v33 = vld [vmem:[%s25290_s3 + $0xe0] ss:$16 sps:$4 sm:$0xff]   ;;  %v17740_v35 = vld [vmem:[%s25290_s3 + $0x104] ss:$16 sps:$4 sm:$0xff]   ;;  %p19234_p4 = pnand %p19233_p3, %p19227_p0 }
 0x37b   :  { %6390 = vmatpush1.bf16.msra.mxu0 %v17714_v62  ;;  %v17735_v34 = vld [vmem:[%s25290_s3 + $0x2e0] ss:$16 sps:$4 sm:$0xff]   ;;  %v17743_v46 = vld [vmem:[%s25290_s3 + $0x304] ss:$16 sps:$4 sm:$0xff]  }
 0x37c   :  { %6431 = vmatpush1.bf16.msra.mxu1 %v17717_v63  ;;  %6391 = vmatprep.subr.bf16.mxu0 %v17722_v0  ;;  %v17738_v55 = vld [vmem:[%s25290_s3 + $0x100] ss:$16 sps:$4 sm:$0xff]   ;;  %v17746_v2 = vld [vmem:[%s25290_s3 + $0x124] ss:$16 sps:$4 sm:$0xff]  }
 0x37d   :  { %6432 = vmatprep.subr.bf16.mxu1 %v17725_v38  ;;  %v17741_v1 = vld [vmem:[%s25290_s3 + $0x300] ss:$16 sps:$4 sm:$0xff]   ;;  %v17749_v8 = vld [vmem:[%s25290_s3 + $0x324] ss:$16 sps:$4 sm:$0xff]  }
 0x37e   :  { %v17744_v14 = vld [vmem:[%s25290_s3 + $0x120] ss:$16 sps:$4 sm:$0xff]   ;;  %v17752_v39 = vld [vmem:[%s25290_s3 + $0x144] ss:$16 sps:$4 sm:$0xff]  }
 0x37f   :  { %6392 = vmatpush1.bf16.msra.mxu0 %v17720_v47  ;;  %v17747_v25 = vld [vmem:[%s25290_s3 + $0x320] ss:$16 sps:$4 sm:$0xff]   ;;  %v17755_v40 = vld [vmem:[%s25290_s3 + $0x344] ss:$16 sps:$4 sm:$0xff]  }
 0x380   :  { %6433 = vmatpush1.bf16.msra.mxu1 %v17723_v10  ;;  %6393 = vmatprep.subr.bf16.mxu0 %v17728_v15  ;;  %v17750_v11 = vld [vmem:[%s25290_s3 + $0x140] ss:$16 sps:$4 sm:$0xff]   ;;  %v17758_v42 = vld [vmem:[%s25290_s3 + $0x164] ss:$16 sps:$4 sm:$0xff]  }
 0x381   :  { %6434 = vmatprep.subr.bf16.mxu1 %v17731_v18  ;;  %v17753_v12 = vld [vmem:[%s25290_s3 + $0x340] ss:$16 sps:$4 sm:$0xff]   ;;  %v17761_v62 = vld [vmem:[%s25290_s3 + $0x364] ss:$16 sps:$4 sm:$0xff]  }
 0x382   :  { %v17756_v63 = vld [vmem:[%s25290_s3 + $0x160] ss:$16 sps:$4 sm:$0xff]   ;;  %v17764_v38 = vld [vmem:[%s25290_s3 + $0x184] ss:$16 sps:$4 sm:$0xff]  }
 0x383   :  { %6394 = vmatpush1.bf16.msra.mxu0 %v17726_v24  ;;  %v17759_v0 = vld [vmem:[%s25290_s3 + $0x360] ss:$16 sps:$4 sm:$0xff]   ;;  %v17767_v47 = vld [vmem:[%s25290_s3 + $0x384] ss:$16 sps:$4 sm:$0xff]  }
 0x384   :  { %6435 = vmatpush1.bf16.msra.mxu1 %v17729_v3  ;;  %6395 = vmatprep.subr.bf16.mxu0 %v17734_v28  ;;  %v17762_v10 = vld [vmem:[%s25290_s3 + $0x180] ss:$16 sps:$4 sm:$0xff]   ;;  %v17770_v18 = vld [vmem:[%s25290_s3 + $0x1a4] ss:$16 sps:$4 sm:$0xff]  }
 0x385   :  { %6436 = vmatprep.subr.bf16.mxu1 %v17737_v31  ;;  %v17765_v15 = vld [vmem:[%s25290_s3 + $0x380] ss:$16 sps:$4 sm:$0xff]   ;;  %v17773_v24 = vld [vmem:[%s25290_s3 + $0x3a4] ss:$16 sps:$4 sm:$0xff]  }
 0x386   :  { %v17768_v3 = vld [vmem:[%s25290_s3 + $0x1a0] ss:$16 sps:$4 sm:$0xff]   ;;  %v17776_v31 = vld [vmem:[%s25290_s3 + $0x1c4] ss:$16 sps:$4 sm:$0xff]  }
 0x387   :  { %6396 = vmatpush1.bf16.msra.mxu0 %v17732_v33  ;;  %v17771_v28 = vld [vmem:[%s25290_s3 + $0x3a0] ss:$16 sps:$4 sm:$0xff]   ;;  %v17779_v33 = vld [vmem:[%s25290_s3 + $0x3c4] ss:$16 sps:$4 sm:$0xff]  }
 0x388   :  { %6437 = vmatpush1.bf16.msra.mxu1 %v17735_v34  ;;  %6397 = vmatprep.subr.bf16.mxu0 %v17740_v35  ;;  %v17774_v34 = vld [vmem:[%s25290_s3 + $0x1c0] ss:$16 sps:$4 sm:$0xff]  }
 0x389   :  { %6438 = vmatprep.subr.bf16.mxu1 %v17743_v46  ;;  %v17777_v35 = vld [vmem:[%s25290_s3 + $0x3c0] ss:$16 sps:$4 sm:$0xff]   ;;  %v17782_v46 = vld [vmem:[%s25290_s3 + $0x1e4] ss:$16 sps:$4 sm:$0xff]  }
 0x38b   :  { %6398 = vmatpush1.bf16.msra.mxu0 %v17738_v55  ;;  %v17785_v55 = vld [vmem:[%s25290_s3 + $0x3e4] ss:$16 sps:$4 sm:$0xff]  }
 0x38c   :  { %6439 = vmatpush1.bf16.msra.mxu1 %v17741_v1  ;;  %6399 = vmatprep.subr.bf16.mxu0 %v17746_v2  ;;  %v17780_v1 = vld [vmem:[%s25290_s3 + $0x1e0] ss:$16 sps:$4 sm:$0xff]  }
 0x38d   :  { %6440 = vmatprep.subr.bf16.mxu1 %v17749_v8  ;;  %v17783_v2 = vld [vmem:[%s25290_s3 + $0x3e0] ss:$16 sps:$4 sm:$0xff]   ;;  %v17788_v8 = vld [vmem:[%s25290_s3 + $0xc] ss:$16 sps:$4 sm:$0xff]  }
 0x38f   :  { %6400 = vmatpush1.bf16.msra.mxu0 %v17744_v14  ;;  %v17791_v14 = vld [vmem:[%s25290_s3 + $0x20c] ss:$16 sps:$4 sm:$0xff]  }
 0x390   :  { %6441 = vmatpush1.bf16.msra.mxu1 %v17747_v25  ;;  %6401 = vmatprep.subr.bf16.mxu0 %v17752_v39  ;;  %v17786_v25 = vld [vmem:[%s25290_s3 + $0x8] ss:$16 sps:$4 sm:$0xff]   ;;  %v21922_v39 = vpack.c.bf16 %v21384_v6, %v21384_v6  ;;  %v17797_v6 = vld [vmem:[%s25290_s3 + $0x22c] ss:$16 sps:$4 sm:$0xff]  }
 0x391   :  { %6442 = vmatprep.subr.bf16.mxu1 %v17755_v40  ;;  %v17789_v40 = vld [vmem:[%s25290_s3 + $0x208] ss:$16 sps:$4 sm:$0xff]  }
 0x393   :  { %6402 = vmatpush1.bf16.msra.mxu0 %v17750_v11  ;;  %v21929_v11 = vpack.c.bf16 %v21397_v13, %v21397_v13  ;;  %v17795_v13 = vld [vmem:[%s25290_s3 + $0x228] ss:$16 sps:$4 sm:$0xff]  }
 0x394   :  { %6443 = vmatpush1.bf16.msra.mxu1 %v17753_v12  ;;  %6403 = vmatprep.subr.bf16.mxu0 %v17758_v42  ;;  %v17794_v12 = vld [vmem:[%s25290_s3 + $0x2c] ss:$16 sps:$4 sm:$0xff]   ;;  %v17792_v42 = vld [vmem:[%s25290_s3 + $0x28] ss:$16 sps:$4 sm:$0xff]  }
 0x395   :  { %6444 = vmatprep.subr.bf16.mxu1 %v17761_v62  ;;  %v17800_v62 = vld [vmem:[%s25290_s3 + $0x4c] ss:$16 sps:$4 sm:$0xff]  }
 0x397   :  { %6404 = vmatpush1.bf16.msra.mxu0 %v17756_v63  ;;  %v17803_v63 = vld [vmem:[%s25290_s3 + $0x24c] ss:$16 sps:$4 sm:$0xff]  }
 0x398   :  { %6445 = vmatpush1.bf16.msra.mxu1 %v17759_v0  ;;  %6405 = vmatprep.subr.bf16.mxu0 %v17764_v38  ;;  %v17801_v0 = vld [vmem:[%s25290_s3 + $0x248] ss:$16 sps:$4 sm:$0xff]   ;;  %v17809_v38 = vld [vmem:[%s25290_s3 + $0x26c] ss:$16 sps:$4 sm:$0xff]  }
 0x399   :  { %6446 = vmatprep.subr.bf16.mxu1 %v17767_v47  ;;  %v17804_v47 = vld [vmem:[%s25290_s3 + $0x68] ss:$16 sps:$4 sm:$0xff]  }
 0x39b   :  { %6406 = vmatpush1.bf16.msra.mxu0 %v17762_v10  ;;  %v17807_v10 = vld [vmem:[%s25290_s3 + $0x268] ss:$16 sps:$4 sm:$0xff]  }
 0x39c   :  { %6447 = vmatpush1.bf16.msra.mxu1 %v17765_v15  ;;  %6407 = vmatprep.subr.bf16.mxu0 %v17770_v18  ;;  %v17812_v15 = vld [vmem:[%s25290_s3 + $0x8c] ss:$16 sps:$4 sm:$0xff]  }
 0x39d   :  { %6448 = vmatprep.subr.bf16.mxu1 %v17773_v24  ;;  %v17815_v18 = vld [vmem:[%s25290_s3 + $0x28c] ss:$16 sps:$4 sm:$0xff]   ;;  %v17810_v24 = vld [vmem:[%s25290_s3 + $0x88] ss:$16 sps:$4 sm:$0xff]  }
 0x39f   :  { %6408 = vmatpush1.bf16.msra.mxu0 %v17768_v3  ;;  %v17813_v3 = vld [vmem:[%s25290_s3 + $0x288] ss:$16 sps:$4 sm:$0xff]  }
 0x3a0   :  { %6449 = vmatpush1.bf16.msra.mxu1 %v17771_v28  ;;  %6409 = vmatprep.subr.bf16.mxu0 %v17776_v31  ;;  %v17818_v28 = vld [vmem:[%s25290_s3 + $0xac] ss:$16 sps:$4 sm:$0xff]  }
 0x3a1   :  { %6450 = vmatprep.subr.bf16.mxu1 %v17779_v33  ;;  %v17821_v31 = vld [vmem:[%s25290_s3 + $0x2ac] ss:$16 sps:$4 sm:$0xff]   ;;  %v17816_v33 = vld [vmem:[%s25290_s3 + $0xa8] ss:$16 sps:$4 sm:$0xff]  }
 0x3a3   :  { %6410 = vmatpush1.bf16.msra.mxu0 %v17774_v34  ;;  %v17819_v34 = vld [vmem:[%s25290_s3 + $0x2a8] ss:$16 sps:$4 sm:$0xff]  }
 0x3a4   :  { %6451 = vmatpush1.bf16.msra.mxu1 %v17777_v35  ;;  %6411 = vmatprep.subr.bf16.mxu0 %v17782_v46  ;;  %v17824_v35 = vld [vmem:[%s25290_s3 + $0xcc] ss:$16 sps:$4 sm:$0xff]  }
 0x3a5   :  { %6452 = vmatprep.subr.bf16.mxu1 %v17785_v55  ;;  %v17827_v46 = vld [vmem:[%s25290_s3 + $0x2cc] ss:$16 sps:$4 sm:$0xff]   ;;  %v17822_v55 = vld [vmem:[%s25290_s3 + $0xc8] ss:$16 sps:$4 sm:$0xff]  }
 0x3a7   :  { %6412 = vmatpush1.bf16.msra.mxu0 %v17780_v1  ;;  %v17825_v1 = vld [vmem:[%s25290_s3 + $0x2c8] ss:$16 sps:$4 sm:$0xff]  }
 0x3a8   :  { %6453 = vmatpush1.bf16.msra.mxu1 %v17783_v2  ;;  %6463 = vmatprep.subr.bf16.mxu0 %v17788_v8  ;;  %v17830_v2 = vld [vmem:[%s25290_s3 + $0xec] ss:$16 sps:$4 sm:$0xff]  }
 0x3a9   :  { %6504 = vmatprep.subr.bf16.mxu1 %v17791_v14  ;;  %v17833_v8 = vld [vmem:[%s25290_s3 + $0x2ec] ss:$16 sps:$4 sm:$0xff]   ;;  %v17828_v14 = vld [vmem:[%s25290_s3 + $0xe8] ss:$16 sps:$4 sm:$0xff]  }
 0x3aa   :  { %6414 = vmatmul.mubr.bf16.vlgmr.msra.gmra.mrb[16].mxu0 %v21922_v39 }
 0x3ab   :  { %6455 = vmatmul.mubr.bf16.vlgmr.msra.gmra.mrb[16].mxu1 %v21929_v11  ;;  %6464 = vmatpush1.bf16.msra.mxu0 %v17786_v25  ;;  %v17831_v25 = vld [vmem:[%s25290_s3 + $0x2e8] ss:$16 sps:$4 sm:$0xff]  }
 0x3ac   :  { %6495 = vmatprep.mubr.bf16.mxu0 %v21728_v36  ;;  %6505 = vmatpush1.bf16.msra.mxu1 %v17789_v40  ;;  %v17798_v36 = vld [vmem:[%s25290_s3 + $0x48] ss:$16 sps:$4 sm:$0xff]   ;;  %v17836_v40 = vld [vmem:[%s25290_s3 + $0x10c] ss:$16 sps:$4 sm:$0xff]  }
 0x3ad   :  { %6536 = vmatprep.mubr.bf16.mxu1 %v21733_v37  ;;  %6465 = vmatprep.subr.bf16.mxu0 %v17794_v12  ;;  %v17806_v37 = vld [vmem:[%s25290_s3 + $0x6c] ss:$16 sps:$4 sm:$0xff]  }
 0x3ae   :  { %6506 = vmatprep.subr.bf16.mxu1 %v17797_v6  ;;  %v17839_v12 = vld [vmem:[%s25290_s3 + $0x30c] ss:$16 sps:$4 sm:$0xff]   ;;  %v17834_v6 = vld [vmem:[%s25290_s3 + $0x108] ss:$16 sps:$4 sm:$0xff]  }
 0x3af   :  { %6466 = vmatpush1.bf16.msra.mxu0 %v17792_v42  ;;  %v17837_v42 = vld [vmem:[%s25290_s3 + $0x308] ss:$16 sps:$4 sm:$0xff]  }
 0x3b0   :  { %6507 = vmatpush1.bf16.msra.mxu1 %v17795_v13  ;;  %6467 = vmatprep.subr.bf16.mxu0 %v17800_v62  ;;  %v17842_v13 = vld [vmem:[%s25290_s3 + $0x12c] ss:$16 sps:$4 sm:$0xff]  }
 0x3b1   :  { %6508 = vmatprep.subr.bf16.mxu1 %v17803_v63  ;;  %v17845_v62 = vld [vmem:[%s25290_s3 + $0x32c] ss:$16 sps:$4 sm:$0xff]   ;;  %v17840_v63 = vld [vmem:[%s25290_s3 + $0x128] ss:$16 sps:$4 sm:$0xff]  }
 0x3b3   :  { %6468 = vmatpush1.bf16.msra.mxu0 %v17798_v36  ;;  %v17843_v36 = vld [vmem:[%s25290_s3 + $0x328] ss:$16 sps:$4 sm:$0xff]  }
 0x3b4   :  { %6509 = vmatpush1.bf16.msra.mxu1 %v17801_v0  ;;  %6469 = vmatprep.subr.bf16.mxu0 %v17806_v37  ;;  %v17848_v0 = vld [vmem:[%s25290_s3 + $0x14c] ss:$16 sps:$4 sm:$0xff]  }
 0x3b5   :  { %6510 = vmatprep.subr.bf16.mxu1 %v17809_v38  ;;  %v17851_v37 = vld [vmem:[%s25290_s3 + $0x34c] ss:$16 sps:$4 sm:$0xff]   ;;  %v17846_v38 = vld [vmem:[%s25290_s3 + $0x148] ss:$16 sps:$4 sm:$0xff]  }
 0x3b7   :  { %6470 = vmatpush1.bf16.msra.mxu0 %v17804_v47  ;;  %v17849_v47 = vld [vmem:[%s25290_s3 + $0x348] ss:$16 sps:$4 sm:$0xff]  }
 0x3b8   :  { %6511 = vmatpush1.bf16.msra.mxu1 %v17807_v10  ;;  %6471 = vmatprep.subr.bf16.mxu0 %v17812_v15  ;;  %v17854_v10 = vld [vmem:[%s25290_s3 + $0x16c] ss:$16 sps:$4 sm:$0xff]  }
 0x3b9   :  { %6512 = vmatprep.subr.bf16.mxu1 %v17815_v18  ;;  %v17857_v15 = vld [vmem:[%s25290_s3 + $0x36c] ss:$16 sps:$4 sm:$0xff]   ;;  %v17852_v18 = vld [vmem:[%s25290_s3 + $0x168] ss:$16 sps:$4 sm:$0xff]  }
 0x3bb   :  { %6472 = vmatpush1.bf16.msra.mxu0 %v17810_v24  ;;  %v17855_v24 = vld [vmem:[%s25290_s3 + $0x368] ss:$16 sps:$4 sm:$0xff]  }
 0x3bc   :  { %6513 = vmatpush1.bf16.msra.mxu1 %v17813_v3  ;;  %6473 = vmatprep.subr.bf16.mxu0 %v17818_v28  ;;  %v17860_v3 = vld [vmem:[%s25290_s3 + $0x18c] ss:$16 sps:$4 sm:$0xff]  }
 0x3bd   :  { %6514 = vmatprep.subr.bf16.mxu1 %v17821_v31  ;;  %v17863_v28 = vld [vmem:[%s25290_s3 + $0x38c] ss:$16 sps:$4 sm:$0xff]   ;;  %v17858_v31 = vld [vmem:[%s25290_s3 + $0x188] ss:$16 sps:$4 sm:$0xff]  }
 0x3bf   :  { %6474 = vmatpush1.bf16.msra.mxu0 %v17816_v33  ;;  %v17861_v33 = vld [vmem:[%s25290_s3 + $0x388] ss:$16 sps:$4 sm:$0xff]  }
 0x3c0   :  { %6515 = vmatpush1.bf16.msra.mxu1 %v17819_v34  ;;  %6475 = vmatprep.subr.bf16.mxu0 %v17824_v35  ;;  %v17866_v34 = vld [vmem:[%s25290_s3 + $0x1ac] ss:$16 sps:$4 sm:$0xff]  }
 0x3c1   :  { %6516 = vmatprep.subr.bf16.mxu1 %v17827_v46  ;;  %v17869_v35 = vld [vmem:[%s25290_s3 + $0x3ac] ss:$16 sps:$4 sm:$0xff]   ;;  %v17864_v46 = vld [vmem:[%s25290_s3 + $0x1a8] ss:$16 sps:$4 sm:$0xff]  }
 0x3c3   :  { %6476 = vmatpush1.bf16.msra.mxu0 %v17822_v55  ;;  %v17867_v55 = vld [vmem:[%s25290_s3 + $0x3a8] ss:$16 sps:$4 sm:$0xff]  }
 0x3c4   :  { %6517 = vmatpush1.bf16.msra.mxu1 %v17825_v1  ;;  %6477 = vmatprep.subr.bf16.mxu0 %v17830_v2  ;;  %v17872_v1 = vld [vmem:[%s25290_s3 + $0x1cc] ss:$16 sps:$4 sm:$0xff]  }
 0x3c5   :  { %6518 = vmatprep.subr.bf16.mxu1 %v17833_v8  ;;  %v17875_v2 = vld [vmem:[%s25290_s3 + $0x3cc] ss:$16 sps:$4 sm:$0xff]   ;;  %v17870_v8 = vld [vmem:[%s25290_s3 + $0x1c8] ss:$16 sps:$4 sm:$0xff]  }
 0x3c7   :  { %6478 = vmatpush1.bf16.msra.mxu0 %v17828_v14  ;;  %v17873_v14 = vld [vmem:[%s25290_s3 + $0x3c8] ss:$16 sps:$4 sm:$0xff]  }
 0x3c8   :  { %6519 = vmatpush1.bf16.msra.mxu1 %v17831_v25  ;;  %6479 = vmatprep.subr.bf16.mxu0 %v17836_v40  ;;  %v17878_v25 = vld [vmem:[%s25290_s3 + $0x1ec] ss:$16 sps:$4 sm:$0xff]  }
 0x3c9   :  { %6520 = vmatprep.subr.bf16.mxu1 %v17839_v12  ;;  %v17881_v40 = vld [vmem:[%s25290_s3 + $0x3ec] ss:$16 sps:$4 sm:$0xff]   ;;  %v17876_v12 = vld [vmem:[%s25290_s3 + $0x1e8] ss:$16 sps:$4 sm:$0xff]  }
 0x3cb   :  { %6480 = vmatpush1.bf16.msra.mxu0 %v17834_v6  ;;  %v17879_v6 = vld [vmem:[%s25290_s3 + $0x3e8] ss:$16 sps:$4 sm:$0xff]  }
 0x3cc   :  { %6521 = vmatpush1.bf16.msra.mxu1 %v17837_v42  ;;  %6481 = vmatprep.subr.bf16.mxu0 %v17842_v13  ;;  %v17884_v42 = vld [vmem:[%s25290_s3 + $0x804] ss:$16 sps:$4 sm:$0xff]  }
 0x3cd   :  { %6522 = vmatprep.subr.bf16.mxu1 %v17845_v62  ;;  %v17887_v13 = vld [vmem:[%s25290_s3 + $0xa04] ss:$16 sps:$4 sm:$0xff]   ;;  %v17882_v62 = vld [vmem:[%s25290_s3 + $0x800] ss:$16 sps:$4 sm:$0xff]  }
 0x3cf   :  { %6482 = vmatpush1.bf16.msra.mxu0 %v17840_v63  ;;  %v17885_v63 = vld [vmem:[%s25290_s3 + $0xa00] ss:$16 sps:$4 sm:$0xff]  }
 0x3d0   :  { %6523 = vmatpush1.bf16.msra.mxu1 %v17843_v36  ;;  %6483 = vmatprep.subr.bf16.mxu0 %v17848_v0  ;;  %v17890_v36 = vld [vmem:[%s25290_s3 + $0x824] ss:$16 sps:$4 sm:$0xff]   ;;  %v22133_v0 = vpack.c.bf16 %v21416_v23, %v21416_v23  ;;  %v17891_v23 = vld [vmem:[%s25290_s3 + $0xa20] ss:$16 sps:$4 sm:$0xff]  }
 0x3d1   :  { %6524 = vmatprep.subr.bf16.mxu1 %v17851_v37  ;;  %v17893_v37 = vld [vmem:[%s25290_s3 + $0xa24] ss:$16 sps:$4 sm:$0xff]  }
 0x3d3   :  { %6484 = vmatpush1.bf16.msra.mxu0 %v17846_v38  ;;  %v22141_v38 = vpack.c.bf16 %v21432_v29, %v21432_v29  ;;  %v17899_v29 = vld [vmem:[%s25290_s3 + $0xa44] ss:$16 sps:$4 sm:$0xff]  }
 0x3d4   :  { %6525 = vmatpush1.bf16.msra.mxu1 %v17849_v47  ;;  %6485 = vmatprep.subr.bf16.mxu0 %v17854_v10  ;;  %v17888_v47 = vld [vmem:[%s25290_s3 + $0x820] ss:$16 sps:$4 sm:$0xff]  }
 0x3d5   :  { %6526 = vmatprep.subr.bf16.mxu1 %v17857_v15  ;;  %v17897_v10 = vld [vmem:[%s25290_s3 + $0xa40] ss:$16 sps:$4 sm:$0xff]   ;;  %v17902_v15 = vld [vmem:[%s25290_s3 + $0x864] ss:$16 sps:$4 sm:$0xff]  }
 0x3d7   :  { %6486 = vmatpush1.bf16.msra.mxu0 %v17852_v18  ;;  %v17905_v18 = vld [vmem:[%s25290_s3 + $0xa64] ss:$16 sps:$4 sm:$0xff]  }
 0x3d8   :  { %6527 = vmatpush1.bf16.msra.mxu1 %v17855_v24  ;;  %6487 = vmatprep.subr.bf16.mxu0 %v17860_v3  ;;  %v17900_v24 = vld [vmem:[%s25290_s3 + $0x860] ss:$16 sps:$4 sm:$0xff]  }
 0x3d9   :  { %6528 = vmatprep.subr.bf16.mxu1 %v17863_v28  ;;  %v17903_v3 = vld [vmem:[%s25290_s3 + $0xa60] ss:$16 sps:$4 sm:$0xff]   ;;  %v17908_v28 = vld [vmem:[%s25290_s3 + $0x884] ss:$16 sps:$4 sm:$0xff]  }
 0x3db   :  { %6488 = vmatpush1.bf16.msra.mxu0 %v17858_v31  ;;  %v17911_v31 = vld [vmem:[%s25290_s3 + $0xa84] ss:$16 sps:$4 sm:$0xff]  }
 0x3dc   :  { %6529 = vmatpush1.bf16.msra.mxu1 %v17861_v33  ;;  %6489 = vmatprep.subr.bf16.mxu0 %v17866_v34  ;;  %v17906_v33 = vld [vmem:[%s25290_s3 + $0x880] ss:$16 sps:$4 sm:$0xff]  }
 0x3dd   :  { %6530 = vmatprep.subr.bf16.mxu1 %v17869_v35  ;;  %v17909_v34 = vld [vmem:[%s25290_s3 + $0xa80] ss:$16 sps:$4 sm:$0xff]   ;;  %v17914_v35 = vld [vmem:[%s25290_s3 + $0x8a4] ss:$16 sps:$4 sm:$0xff]  }
 0x3df   :  { %6490 = vmatpush1.bf16.msra.mxu0 %v17864_v46  ;;  %v17917_v46 = vld [vmem:[%s25290_s3 + $0xaa4] ss:$16 sps:$4 sm:$0xff]  }
 0x3e0   :  { %6531 = vmatpush1.bf16.msra.mxu1 %v17867_v55  ;;  %6491 = vmatprep.subr.bf16.mxu0 %v17872_v1  ;;  %v17912_v55 = vld [vmem:[%s25290_s3 + $0x8a0] ss:$16 sps:$4 sm:$0xff]  }
 0x3e1   :  { %6532 = vmatprep.subr.bf16.mxu1 %v17875_v2  ;;  %v17915_v1 = vld [vmem:[%s25290_s3 + $0xaa0] ss:$16 sps:$4 sm:$0xff]   ;;  %v17920_v2 = vld [vmem:[%s25290_s3 + $0x8c4] ss:$16 sps:$4 sm:$0xff]  }
 0x3e3   :  { %6492 = vmatpush1.bf16.msra.mxu0 %v17870_v8 }
 0x3e4   :  { %6533 = vmatpush1.bf16.msra.mxu1 %v17873_v14  ;;  %6493 = vmatprep.subr.bf16.mxu0 %v17878_v25  ;;  %v17923_v14 = vld [vmem:[%s25290_s3 + $0xac4] ss:$16 sps:$4 sm:$0xff]  }
 0x3e5   :  { %6534 = vmatprep.subr.bf16.mxu1 %v17881_v40 }
 0x3e7   :  { %6494 = vmatpush1.bf16.msra.mxu0 %v17876_v12 }
 0x3e8   :  { %6535 = vmatpush1.bf16.msra.mxu1 %v17879_v6  ;;  %7338 = vmatprep.subr.bf16.mxu0 %v17884_v42 }
 0x3e9   :  { %7379 = vmatprep.subr.bf16.mxu1 %v17887_v13  ;;  %v17918_v13 = vld [vmem:[%s25290_s3 + $0x8c0] ss:$16 sps:$4 sm:$0xff]  }
 0x3ea   :  { %6496 = vmatmul.mubr.bf16.vlgmr.msra.gmra.mrb[20].mxu0 %v21922_v39  ;;  %v17896_v39 = vld [vmem:[%s25290_s3 + $0x844] ss:$16 sps:$4 sm:$0xff]  }
 0x3eb   :  { %6537 = vmatmul.mubr.bf16.vlgmr.msra.gmra.mrb[20].mxu1 %v21929_v11  ;;  %7339 = vmatpush1.bf16.msra.mxu0 %v17882_v62  ;;  %v17894_v11 = vld [vmem:[%s25290_s3 + $0x840] ss:$16 sps:$4 sm:$0xff]  }
 0x3ec   :  { %7370 = vmatprep.mubr.bf16.mxu0 %v22133_v0  ;;  %7380 = vmatpush1.bf16.msra.mxu1 %v17885_v63 }
 0x3ed   :  { %7411 = vmatprep.mubr.bf16.mxu1 %v22141_v38  ;;  %7340 = vmatprep.subr.bf16.mxu0 %v17890_v36 }
 0x3ee   :  { %7381 = vmatprep.subr.bf16.mxu1 %v17893_v37  ;;  %v17921_v37 = vld [vmem:[%s25290_s3 + $0xac0] ss:$16 sps:$4 sm:$0xff]  }
 0x3ef   :  { %7341 = vmatpush1.bf16.msra.mxu0 %v17888_v47  ;;  %v17926_v47 = vld [vmem:[%s25290_s3 + $0x8e4] ss:$16 sps:$4 sm:$0xff]  }
 0x3f0   :  { %7382 = vmatpush1.bf16.msra.mxu1 %v17891_v23  ;;  %7342 = vmatprep.subr.bf16.mxu0 %v17896_v39  ;;  %v17929_v39 = vld [vmem:[%s25290_s3 + $0xae4] ss:$16 sps:$4 sm:$0xff]  }
 0x3f1   :  { %7383 = vmatprep.subr.bf16.mxu1 %v17899_v29  ;;  %v17924_v29 = vld [vmem:[%s25290_s3 + $0x8e0] ss:$16 sps:$4 sm:$0xff]  }
 0x3f3   :  { %7343 = vmatpush1.bf16.msra.mxu0 %v17894_v11  ;;  %v17927_v11 = vld [vmem:[%s25290_s3 + $0xae0] ss:$16 sps:$4 sm:$0xff]  }
 0x3f4   :  { %7384 = vmatpush1.bf16.msra.mxu1 %v17897_v10  ;;  %7344 = vmatprep.subr.bf16.mxu0 %v17902_v15  ;;  %v17932_v10 = vld [vmem:[%s25290_s3 + $0x904] ss:$16 sps:$4 sm:$0xff]  }
 0x3f5   :  { %7385 = vmatprep.subr.bf16.mxu1 %v17905_v18  ;;  %v17935_v15 = vld [vmem:[%s25290_s3 + $0xb04] ss:$16 sps:$4 sm:$0xff]   ;;  %v17930_v18 = vld [vmem:[%s25290_s3 + $0x900] ss:$16 sps:$4 sm:$0xff]  }
 0x3f7   :  { %7345 = vmatpush1.bf16.msra.mxu0 %v17900_v24  ;;  %v17933_v24 = vld [vmem:[%s25290_s3 + $0xb00] ss:$16 sps:$4 sm:$0xff]  }
 0x3f8   :  { %7386 = vmatpush1.bf16.msra.mxu1 %v17903_v3  ;;  %7346 = vmatprep.subr.bf16.mxu0 %v17908_v28  ;;  %v17938_v3 = vld [vmem:[%s25290_s3 + $0x924] ss:$16 sps:$4 sm:$0xff]  }
 0x3f9   :  { %7387 = vmatprep.subr.bf16.mxu1 %v17911_v31  ;;  %v17941_v28 = vld [vmem:[%s25290_s3 + $0xb24] ss:$16 sps:$4 sm:$0xff]   ;;  %v17936_v31 = vld [vmem:[%s25290_s3 + $0x920] ss:$16 sps:$4 sm:$0xff]  }
 0x3fb   :  { %7347 = vmatpush1.bf16.msra.mxu0 %v17906_v33  ;;  %v17939_v33 = vld [vmem:[%s25290_s3 + $0xb20] ss:$16 sps:$4 sm:$0xff]  }
 0x3fc   :  { %7388 = vmatpush1.bf16.msra.mxu1 %v17909_v34  ;;  %7348 = vmatprep.subr.bf16.mxu0 %v17914_v35  ;;  %v17944_v34 = vld [vmem:[%s25290_s3 + $0x944] ss:$16 sps:$4 sm:$0xff]  }
 0x3fd   :  { %v5611_v8 = vpop.f32.mrb[8].mxu0  ;;  %7389 = vmatprep.subr.bf16.mxu1 %v17917_v46  ;;  %v5652_v25 = vpop.f32.mrb[8].mxu1  ;;  %v17947_v35 = vld [vmem:[%s25290_s3 + $0xb44] ss:$16 sps:$4 sm:$0xff]   ;;  %v17942_v46 = vld [vmem:[%s25290_s3 + $0x940] ss:$16 sps:$4 sm:$0xff]  }
 0x3fe   :  { %v5613_v40 = vpop.f32.mrb[9].mxu0  ;;  %v22205_v12 = vadd.f32 %v5652_v25, %v5611_v8  ;;  %v5654_v6 = vpop.f32.mrb[9].mxu1  ;;  %v17948_v8 = vld [vmem:[%s25290_s3 + $0x960] ss:$16 sps:$4 sm:$0xff]   ;;  %v17956_v25 = vld [vmem:[%s25290_s3 + $0x984] ss:$16 sps:$4 sm:$0xff]  }
 0x3ff   :  { %7349 = vmatpush1.bf16.msra.mxu0 %v17912_v55  ;;  %v5615_v42 = vpop.f32.mrb[10].mxu0  ;;  %v22210_v62 = vadd.f32 %v5654_v6, %v5613_v40  ;;  %v5656_v63 = vpop.f32.mrb[10].mxu1  ;;  %v17945_v55 = vld [vmem:[%s25290_s3 + $0xb40] ss:$16 sps:$4 sm:$0xff]   ;;  %v17959_v40 = vld [vmem:[%s25290_s3 + $0xb84] ss:$16 sps:$4 sm:$0xff]  }
 0x400   :  { %7390 = vmatpush1.bf16.msra.mxu1 %v17915_v1  ;;  %v5616_v36 = vpop.f32.mrb[11].mxu0  ;;  %7350 = vmatprep.subr.bf16.mxu0 %v17920_v2  ;;  %v5657_v23 = vpop.f32.mrb[11].mxu1  ;;  %v17950_v1 = vld [vmem:[%s25290_s3 + $0x964] ss:$16 sps:$4 sm:$0xff]   ;;  %v17954_v6 = vld [vmem:[%s25290_s3 + $0x980] ss:$16 sps:$4 sm:$0xff]  }
 0x401   :  { %7391 = vmatprep.subr.bf16.mxu1 %v17923_v14  ;;  %v17953_v2 = vld [vmem:[%s25290_s3 + $0xb64] ss:$16 sps:$4 sm:$0xff]   ;;  %v17951_v14 = vld [vmem:[%s25290_s3 + $0xb60] ss:$16 sps:$4 sm:$0xff]  }
 0x402   :  { %v17957_v42 = vld [vmem:[%s25290_s3 + $0xb80] ss:$16 sps:$4 sm:$0xff]   ;;  %v17965_v63 = vld [vmem:[%s25290_s3 + $0xba4] ss:$16 sps:$4 sm:$0xff]  }
 0x403   :  { %7351 = vmatpush1.bf16.msra.mxu0 %v17918_v13  ;;  %v17962_v13 = vld [vmem:[%s25290_s3 + $0x9a4] ss:$16 sps:$4 sm:$0xff]   ;;  %v17960_v36 = vld [vmem:[%s25290_s3 + $0x9a0] ss:$16 sps:$4 sm:$0xff]  }
 0x404   :  { %7392 = vmatpush1.bf16.msra.mxu1 %v17921_v37  ;;  %7352 = vmatprep.subr.bf16.mxu0 %v17926_v47  ;;  %v17963_v37 = vld [vmem:[%s25290_s3 + $0xba0] ss:$16 sps:$4 sm:$0xff]   ;;  %v17968_v47 = vld [vmem:[%s25290_s3 + $0x9c4] ss:$16 sps:$4 sm:$0xff]  }
 0x405   :  { %7393 = vmatprep.subr.bf16.mxu1 %v17929_v39  ;;  %v17971_v23 = vld [vmem:[%s25290_s3 + $0xbc4] ss:$16 sps:$4 sm:$0xff]   ;;  %v17966_v39 = vld [vmem:[%s25290_s3 + $0x9c0] ss:$16 sps:$4 sm:$0xff]  }
 0x407   :  { %7353 = vmatpush1.bf16.msra.mxu0 %v17924_v29  ;;  %v17969_v29 = vld [vmem:[%s25290_s3 + $0xbc0] ss:$16 sps:$4 sm:$0xff]  }
 0x408   :  { %7394 = vmatpush1.bf16.msra.mxu1 %v17927_v11  ;;  %7354 = vmatprep.subr.bf16.mxu0 %v17932_v10  ;;  %v17974_v11 = vld [vmem:[%s25290_s3 + $0x9e4] ss:$16 sps:$4 sm:$0xff]  }
 0x409   :  { %7395 = vmatprep.subr.bf16.mxu1 %v17935_v15  ;;  %v17977_v10 = vld [vmem:[%s25290_s3 + $0xbe4] ss:$16 sps:$4 sm:$0xff]   ;;  %v17972_v15 = vld [vmem:[%s25290_s3 + $0x9e0] ss:$16 sps:$4 sm:$0xff]  }
 0x40b   :  { %7355 = vmatpush1.bf16.msra.mxu0 %v17930_v18  ;;  %v17975_v18 = vld [vmem:[%s25290_s3 + $0xbe0] ss:$16 sps:$4 sm:$0xff]  }
 0x40c   :  { %7396 = vmatpush1.bf16.msra.mxu1 %v17933_v24  ;;  %7356 = vmatprep.subr.bf16.mxu0 %v17938_v3  ;;  %v17980_v24 = vld [vmem:[%s25290_s3 + $0x80c] ss:$16 sps:$4 sm:$0xff]  }
 0x40d   :  { %7397 = vmatprep.subr.bf16.mxu1 %v17941_v28  ;;  %v17983_v3 = vld [vmem:[%s25290_s3 + $0xa0c] ss:$16 sps:$4 sm:$0xff]   ;;  %v17978_v28 = vld [vmem:[%s25290_s3 + $0x808] ss:$16 sps:$4 sm:$0xff]  }
 0x40f   :  { %7357 = vmatpush1.bf16.msra.mxu0 %v17936_v31  ;;  %v22334_v31 = vpack.c.bf16 %v21435_v30, %v21435_v30  ;;  %v17989_v30 = vld [vmem:[%s25290_s3 + $0xa2c] ss:$16 sps:$4 sm:$0xff]  }
 0x410   :  { %7398 = vmatpush1.bf16.msra.mxu1 %v17939_v33  ;;  %7358 = vmatprep.subr.bf16.mxu0 %v17944_v34  ;;  %v17981_v33 = vld [vmem:[%s25290_s3 + $0xa08] ss:$16 sps:$4 sm:$0xff]   ;;  %v22341_v34 = vpack.c.bf16 %v21458_v56, %v21458_v56 }
 0x411   :  { %7399 = vmatprep.subr.bf16.mxu1 %v17947_v35  ;;  %v17986_v35 = vld [vmem:[%s25290_s3 + $0x82c] ss:$16 sps:$4 sm:$0xff]   ;;  %v17987_v56 = vld [vmem:[%s25290_s3 + $0xa28] ss:$16 sps:$4 sm:$0xff]  }
 0x413   :  { %7359 = vmatpush1.bf16.msra.mxu0 %v17942_v46  ;;  %v17984_v46 = vld [vmem:[%s25290_s3 + $0x828] ss:$16 sps:$4 sm:$0xff]  }
 0x414   :  { %7400 = vmatpush1.bf16.msra.mxu1 %v17945_v55  ;;  %7360 = vmatprep.subr.bf16.mxu0 %v17950_v1  ;;  %v17992_v55 = vld [vmem:[%s25290_s3 + $0x84c] ss:$16 sps:$4 sm:$0xff]  }
 0x415   :  { %7401 = vmatprep.subr.bf16.mxu1 %v17953_v2  ;;  %v17995_v1 = vld [vmem:[%s25290_s3 + $0xa4c] ss:$16 sps:$4 sm:$0xff]   ;;  %v17993_v2 = vld [vmem:[%s25290_s3 + $0xa48] ss:$16 sps:$4 sm:$0xff]  }
 0x417   :  { %7361 = vmatpush1.bf16.msra.mxu0 %v17948_v8  ;;  %v18001_v8 = vld [vmem:[%s25290_s3 + $0xa6c] ss:$16 sps:$4 sm:$0xff]  }
 0x418   :  { %7402 = vmatpush1.bf16.msra.mxu1 %v17951_v14  ;;  %7362 = vmatprep.subr.bf16.mxu0 %v17956_v25  ;;  %v17996_v14 = vld [vmem:[%s25290_s3 + $0x868] ss:$16 sps:$4 sm:$0xff]  }
 0x419   :  { %7403 = vmatprep.subr.bf16.mxu1 %v17959_v40  ;;  %v17999_v25 = vld [vmem:[%s25290_s3 + $0xa68] ss:$16 sps:$4 sm:$0xff]   ;;  %v18004_v40 = vld [vmem:[%s25290_s3 + $0x88c] ss:$16 sps:$4 sm:$0xff]  }
 0x41b   :  { %7363 = vmatpush1.bf16.msra.mxu0 %v17954_v6  ;;  %v18007_v6 = vld [vmem:[%s25290_s3 + $0xa8c] ss:$16 sps:$4 sm:$0xff]  }
 0x41c   :  { %7404 = vmatpush1.bf16.msra.mxu1 %v17957_v42  ;;  %7364 = vmatprep.subr.bf16.mxu0 %v17962_v13  ;;  %v18002_v42 = vld [vmem:[%s25290_s3 + $0x888] ss:$16 sps:$4 sm:$0xff]  }
 0x41d   :  { %7405 = vmatprep.subr.bf16.mxu1 %v17965_v63  ;;  %v18005_v13 = vld [vmem:[%s25290_s3 + $0xa88] ss:$16 sps:$4 sm:$0xff]   ;;  %v18010_v63 = vld [vmem:[%s25290_s3 + $0x8ac] ss:$16 sps:$4 sm:$0xff]  }
 0x41f   :  { %7365 = vmatpush1.bf16.msra.mxu0 %v17960_v36  ;;  %v18013_v36 = vld [vmem:[%s25290_s3 + $0xaac] ss:$16 sps:$4 sm:$0xff]  }
 0x420   :  { %7406 = vmatpush1.bf16.msra.mxu1 %v17963_v37  ;;  %7366 = vmatprep.subr.bf16.mxu0 %v17968_v47  ;;  %v18008_v37 = vld [vmem:[%s25290_s3 + $0x8a8] ss:$16 sps:$4 sm:$0xff]  }
 0x421   :  { %7407 = vmatprep.subr.bf16.mxu1 %v17971_v23  ;;  %v18011_v47 = vld [vmem:[%s25290_s3 + $0xaa8] ss:$16 sps:$4 sm:$0xff]   ;;  %v18016_v23 = vld [vmem:[%s25290_s3 + $0x8cc] ss:$16 sps:$4 sm:$0xff]  }
 0x423   :  { %7367 = vmatpush1.bf16.msra.mxu0 %v17966_v39 }
 0x424   :  { %7408 = vmatpush1.bf16.msra.mxu1 %v17969_v29  ;;  %7368 = vmatprep.subr.bf16.mxu0 %v17974_v11  ;;  %v18019_v29 = vld [vmem:[%s25290_s3 + $0xacc] ss:$16 sps:$4 sm:$0xff]  }
 0x425   :  { %7409 = vmatprep.subr.bf16.mxu1 %v17977_v10 }
 0x427   :  { %7369 = vmatpush1.bf16.msra.mxu0 %v17972_v15 }
 0x428   :  { %7410 = vmatpush1.bf16.msra.mxu1 %v17975_v18  ;;  %7420 = vmatprep.subr.bf16.mxu0 %v17980_v24 }
 0x429   :  { %7461 = vmatprep.subr.bf16.mxu1 %v17983_v3  ;;  %v18014_v3 = vld [vmem:[%s25290_s3 + $0x8c8] ss:$16 sps:$4 sm:$0xff]  }
 0x42a   :  { %7371 = vmatmul.mubr.bf16.vlgmr.msra.gmra.mrb[24].mxu0 %v22334_v31 }
 0x42b   :  { %7412 = vmatmul.mubr.bf16.vlgmr.msra.gmra.mrb[24].mxu1 %v22341_v34  ;;  %7421 = vmatpush1.bf16.msra.mxu0 %v17978_v28 }
 0x42c   :  { %7452 = vmatprep.mubr.bf16.mxu0 %v22133_v0  ;;  %7462 = vmatpush1.bf16.msra.mxu1 %v17981_v33  ;;  %v17990_v0 = vld [vmem:[%s25290_s3 + $0x848] ss:$16 sps:$4 sm:$0xff]  }
 0x42d   :  { %7493 = vmatprep.mubr.bf16.mxu1 %v22141_v38  ;;  %7422 = vmatprep.subr.bf16.mxu0 %v17986_v35  ;;  %v17998_v38 = vld [vmem:[%s25290_s3 + $0x86c] ss:$16 sps:$4 sm:$0xff]  }
 0x42e   :  { %7463 = vmatprep.subr.bf16.mxu1 %v17989_v30  ;;  %v18017_v30 = vld [vmem:[%s25290_s3 + $0xac8] ss:$16 sps:$4 sm:$0xff]  }
 0x42f   :  { %7423 = vmatpush1.bf16.msra.mxu0 %v17984_v46  ;;  %v18022_v46 = vld [vmem:[%s25290_s3 + $0x8ec] ss:$16 sps:$4 sm:$0xff]  }
 0x430   :  { %7464 = vmatpush1.bf16.msra.mxu1 %v17987_v56  ;;  %7424 = vmatprep.subr.bf16.mxu0 %v17992_v55  ;;  %v18025_v55 = vld [vmem:[%s25290_s3 + $0xaec] ss:$16 sps:$4 sm:$0xff]  }
 0x431   :  { %7465 = vmatprep.subr.bf16.mxu1 %v17995_v1  ;;  %v18020_v1 = vld [vmem:[%s25290_s3 + $0x8e8] ss:$16 sps:$4 sm:$0xff]  }
 0x433   :  { %7425 = vmatpush1.bf16.msra.mxu0 %v17990_v0  ;;  %v18023_v0 = vld [vmem:[%s25290_s3 + $0xae8] ss:$16 sps:$4 sm:$0xff]  }
 0x434   :  { %7466 = vmatpush1.bf16.msra.mxu1 %v17993_v2  ;;  %7426 = vmatprep.subr.bf16.mxu0 %v17998_v38  ;;  %v18028_v2 = vld [vmem:[%s25290_s3 + $0x90c] ss:$16 sps:$4 sm:$0xff]  }
 0x435   :  { %7467 = vmatprep.subr.bf16.mxu1 %v18001_v8  ;;  %v18031_v38 = vld [vmem:[%s25290_s3 + $0xb0c] ss:$16 sps:$4 sm:$0xff]   ;;  %v18026_v8 = vld [vmem:[%s25290_s3 + $0x908] ss:$16 sps:$4 sm:$0xff]  }
 0x437   :  { %7427 = vmatpush1.bf16.msra.mxu0 %v17996_v14  ;;  %v18029_v14 = vld [vmem:[%s25290_s3 + $0xb08] ss:$16 sps:$4 sm:$0xff]  }
 0x438   :  { %7468 = vmatpush1.bf16.msra.mxu1 %v17999_v25  ;;  %7428 = vmatprep.subr.bf16.mxu0 %v18004_v40  ;;  %v18034_v25 = vld [vmem:[%s25290_s3 + $0x92c] ss:$16 sps:$4 sm:$0xff]  }
 0x439   :  { %7469 = vmatprep.subr.bf16.mxu1 %v18007_v6  ;;  %v18037_v40 = vld [vmem:[%s25290_s3 + $0xb2c] ss:$16 sps:$4 sm:$0xff]   ;;  %v18032_v6 = vld [vmem:[%s25290_s3 + $0x928] ss:$16 sps:$4 sm:$0xff]  }
 0x43b   :  { %7429 = vmatpush1.bf16.msra.mxu0 %v18002_v42  ;;  %v18035_v42 = vld [vmem:[%s25290_s3 + $0xb28] ss:$16 sps:$4 sm:$0xff]  }
 0x43c   :  { %7470 = vmatpush1.bf16.msra.mxu1 %v18005_v13  ;;  %7430 = vmatprep.subr.bf16.mxu0 %v18010_v63  ;;  %v18040_v13 = vld [vmem:[%s25290_s3 + $0x94c] ss:$16 sps:$4 sm:$0xff]  }
 0x43d   :  { %v5693_v39 = vpop.f32.mrb[12].mxu0  ;;  %7471 = vmatprep.subr.bf16.mxu1 %v18013_v36  ;;  %v5734_v11 = vpop.f32.mrb[12].mxu1  ;;  %v18043_v63 = vld [vmem:[%s25290_s3 + $0xb4c] ss:$16 sps:$4 sm:$0xff]   ;;  %v18038_v36 = vld [vmem:[%s25290_s3 + $0x948] ss:$16 sps:$4 sm:$0xff]  }
 0x43e   :  { %v5695_v10 = vpop.f32.mrb[13].mxu0  ;;  %v22413_v15 = vadd.f32 %v5734_v11, %v5693_v39  ;;  %v5736_v18 = vpop.f32.mrb[13].mxu1  ;;  %v18044_v39 = vld [vmem:[%s25290_s3 + $0x968] ss:$16 sps:$4 sm:$0xff]   ;;  %v18052_v11 = vld [vmem:[%s25290_s3 + $0x98c] ss:$16 sps:$4 sm:$0xff]  }
 0x43f   :  { %v5697_v24 = vpop.f32.mrb[14].mxu0  ;;  %7431 = vmatpush1.bf16.msra.mxu0 %v18008_v37  ;;  %v22418_v28 = vadd.f32 %v5736_v18, %v5695_v10  ;;  %v5738_v33 = vpop.f32.mrb[14].mxu1  ;;  %v18041_v37 = vld [vmem:[%s25290_s3 + $0xb48] ss:$16 sps:$4 sm:$0xff]   ;;  %v18055_v10 = vld [vmem:[%s25290_s3 + $0xb8c] ss:$16 sps:$4 sm:$0xff]  }
 0x440   :  { %7472 = vmatpush1.bf16.msra.mxu1 %v18011_v47  ;;  %v5698_v35 = vpop.f32.mrb[15].mxu0  ;;  %7432 = vmatprep.subr.bf16.mxu0 %v18016_v23  ;;  %v5739_v56 = vpop.f32.mrb[15].mxu1  ;;  %v18046_v47 = vld [vmem:[%s25290_s3 + $0x96c] ss:$16 sps:$4 sm:$0xff]   ;;  %v18050_v18 = vld [vmem:[%s25290_s3 + $0x988] ss:$16 sps:$4 sm:$0xff]  }
 0x441   :  { %7473 = vmatprep.subr.bf16.mxu1 %v18019_v29  ;;  %v18049_v23 = vld [vmem:[%s25290_s3 + $0xb6c] ss:$16 sps:$4 sm:$0xff]   ;;  %v18047_v29 = vld [vmem:[%s25290_s3 + $0xb68] ss:$16 sps:$4 sm:$0xff]  }
 0x442   :  { %v18053_v24 = vld [vmem:[%s25290_s3 + $0xb88] ss:$16 sps:$4 sm:$0xff]   ;;  %v18061_v33 = vld [vmem:[%s25290_s3 + $0xbac] ss:$16 sps:$4 sm:$0xff]  }
 0x443   :  { %7433 = vmatpush1.bf16.msra.mxu0 %v18014_v3  ;;  %v18058_v3 = vld [vmem:[%s25290_s3 + $0x9ac] ss:$16 sps:$4 sm:$0xff]   ;;  %v18056_v35 = vld [vmem:[%s25290_s3 + $0x9a8] ss:$16 sps:$4 sm:$0xff]  }
 0x444   :  { %7474 = vmatpush1.bf16.msra.mxu1 %v18017_v30  ;;  %7434 = vmatprep.subr.bf16.mxu0 %v18022_v46  ;;  %v18059_v30 = vld [vmem:[%s25290_s3 + $0xba8] ss:$16 sps:$4 sm:$0xff]   ;;  %v18064_v46 = vld [vmem:[%s25290_s3 + $0x9cc] ss:$16 sps:$4 sm:$0xff]  }
 0x445   :  { %7475 = vmatprep.subr.bf16.mxu1 %v18025_v55  ;;  %v18067_v56 = vld [vmem:[%s25290_s3 + $0xbcc] ss:$16 sps:$4 sm:$0xff]   ;;  %v18062_v55 = vld [vmem:[%s25290_s3 + $0x9c8] ss:$16 sps:$4 sm:$0xff]  }
 0x447   :  { %7435 = vmatpush1.bf16.msra.mxu0 %v18020_v1  ;;  %v18065_v1 = vld [vmem:[%s25290_s3 + $0xbc8] ss:$16 sps:$4 sm:$0xff]  }
 0x448   :  { %7476 = vmatpush1.bf16.msra.mxu1 %v18023_v0  ;;  %7436 = vmatprep.subr.bf16.mxu0 %v18028_v2  ;;  %v18070_v0 = vld [vmem:[%s25290_s3 + $0x9ec] ss:$16 sps:$4 sm:$0xff]  }
 0x449   :  { %7477 = vmatprep.subr.bf16.mxu1 %v18031_v38  ;;  %v18073_v2 = vld [vmem:[%s25290_s3 + $0xbec] ss:$16 sps:$4 sm:$0xff]   ;;  %v18068_v38 = vld [vmem:[%s25290_s3 + $0x9e8] ss:$16 sps:$4 sm:$0xff]  }
 0x44b   :  { %7437 = vmatpush1.bf16.msra.mxu0 %v18026_v8  ;;  %v18071_v8 = vld [vmem:[%s25290_s3 + $0xbe8] ss:$16 sps:$4 sm:$0xff]  }
 0x44c   :  { %7478 = vmatpush1.bf16.msra.mxu1 %v18029_v14  ;;  %7438 = vmatprep.subr.bf16.mxu0 %v18034_v25  ;;  %v18076_v14 = vld [vmem:[%s25290_s3 + $0xc04] ss:$16 sps:$4 sm:$0xff]  }
 0x44d   :  { %7479 = vmatprep.subr.bf16.mxu1 %v18037_v40  ;;  %v18079_v25 = vld [vmem:[%s25290_s3 + $0xe04] ss:$16 sps:$4 sm:$0xff]   ;;  %v18074_v40 = vld [vmem:[%s25290_s3 + $0xc00] ss:$16 sps:$4 sm:$0xff]  }
 0x44f   :  { %7439 = vmatpush1.bf16.msra.mxu0 %v18032_v6  ;;  %v18077_v6 = vld [vmem:[%s25290_s3 + $0xe00] ss:$16 sps:$4 sm:$0xff]  }
 0x450   :  { %7480 = vmatpush1.bf16.msra.mxu1 %v18035_v42  ;;  %7440 = vmatprep.subr.bf16.mxu0 %v18040_v13  ;;  %v18082_v42 = vld [vmem:[%s25290_s3 + $0xc24] ss:$16 sps:$4 sm:$0xff]   ;;  %v22549_v13 = vpack.c.bf16 %v21461_v57, %v21461_v57  ;;  %v18083_v57 = vld [vmem:[%s25290_s3 + $0xe20] ss:$16 sps:$4 sm:$0xff]  }
 0x451   :  { %7481 = vmatprep.subr.bf16.mxu1 %v18043_v63  ;;  %v18085_v63 = vld [vmem:[%s25290_s3 + $0xe24] ss:$16 sps:$4 sm:$0xff]  }
 0x453   :  { %7441 = vmatpush1.bf16.msra.mxu0 %v18038_v36  ;;  %v22557_v36 = vpack.c.bf16 %v21470_v60, %v21470_v60  ;;  %v18091_v60 = vld [vmem:[%s25290_s3 + $0xe44] ss:$16 sps:$4 sm:$0xff]  }
 0x454   :  { %7482 = vmatpush1.bf16.msra.mxu1 %v18041_v37  ;;  %7442 = vmatprep.subr.bf16.mxu0 %v18046_v47  ;;  %v18080_v37 = vld [vmem:[%s25290_s3 + $0xc20] ss:$16 sps:$4 sm:$0xff]  }
 0x455   :  { %7483 = vmatprep.subr.bf16.mxu1 %v18049_v23  ;;  %v18089_v47 = vld [vmem:[%s25290_s3 + $0xe40] ss:$16 sps:$4 sm:$0xff]   ;;  %v18094_v23 = vld [vmem:[%s25290_s3 + $0xc64] ss:$16 sps:$4 sm:$0xff]  }
 0x457   :  { %7443 = vmatpush1.bf16.msra.mxu0 %v18044_v39  ;;  %v18097_v39 = vld [vmem:[%s25290_s3 + $0xe64] ss:$16 sps:$4 sm:$0xff]  }
 0x458   :  { %7484 = vmatpush1.bf16.msra.mxu1 %v18047_v29  ;;  %7444 = vmatprep.subr.bf16.mxu0 %v18052_v11  ;;  %v18092_v29 = vld [vmem:[%s25290_s3 + $0xc60] ss:$16 sps:$4 sm:$0xff]  }
 0x459   :  { %7485 = vmatprep.subr.bf16.mxu1 %v18055_v10  ;;  %v18095_v11 = vld [vmem:[%s25290_s3 + $0xe60] ss:$16 sps:$4 sm:$0xff]   ;;  %v18100_v10 = vld [vmem:[%s25290_s3 + $0xc84] ss:$16 sps:$4 sm:$0xff]  }
 0x45b   :  { %7445 = vmatpush1.bf16.msra.mxu0 %v18050_v18  ;;  %v18103_v18 = vld [vmem:[%s25290_s3 + $0xe84] ss:$16 sps:$4 sm:$0xff]  }
 0x45c   :  { %7486 = vmatpush1.bf16.msra.mxu1 %v18053_v24  ;;  %7446 = vmatprep.subr.bf16.mxu0 %v18058_v3  ;;  %v18098_v24 = vld [vmem:[%s25290_s3 + $0xc80] ss:$16 sps:$4 sm:$0xff]  }
 0x45d   :  { %7487 = vmatprep.subr.bf16.mxu1 %v18061_v33  ;;  %v18101_v3 = vld [vmem:[%s25290_s3 + $0xe80] ss:$16 sps:$4 sm:$0xff]   ;;  %v18106_v33 = vld [vmem:[%s25290_s3 + $0xca4] ss:$16 sps:$4 sm:$0xff]  }
 0x45f   :  { %7447 = vmatpush1.bf16.msra.mxu0 %v18056_v35  ;;  %v18109_v35 = vld [vmem:[%s25290_s3 + $0xea4] ss:$16 sps:$4 sm:$0xff]  }
 0x460   :  { %7488 = vmatpush1.bf16.msra.mxu1 %v18059_v30  ;;  %7448 = vmatprep.subr.bf16.mxu0 %v18064_v46  ;;  %v18104_v30 = vld [vmem:[%s25290_s3 + $0xca0] ss:$16 sps:$4 sm:$0xff]  }
 0x461   :  { %7489 = vmatprep.subr.bf16.mxu1 %v18067_v56  ;;  %v18107_v46 = vld [vmem:[%s25290_s3 + $0xea0] ss:$16 sps:$4 sm:$0xff]   ;;  %v18112_v56 = vld [vmem:[%s25290_s3 + $0xcc4] ss:$16 sps:$4 sm:$0xff]  }
 0x463   :  { %7449 = vmatpush1.bf16.msra.mxu0 %v18062_v55 }
 0x464   :  { %7490 = vmatpush1.bf16.msra.mxu1 %v18065_v1  ;;  %7450 = vmatprep.subr.bf16.mxu0 %v18070_v0  ;;  %v18115_v1 = vld [vmem:[%s25290_s3 + $0xec4] ss:$16 sps:$4 sm:$0xff]  }
 0x465   :  { %7491 = vmatprep.subr.bf16.mxu1 %v18073_v2 }
 0x467   :  { %7451 = vmatpush1.bf16.msra.mxu0 %v18068_v38 }
 0x468   :  { %7492 = vmatpush1.bf16.msra.mxu1 %v18071_v8  ;;  %8299 = vmatprep.subr.bf16.mxu0 %v18076_v14 }
 0x469   :  { %8340 = vmatprep.subr.bf16.mxu1 %v18079_v25 }
 0x46a   :  { %7453 = vmatmul.mubr.bf16.vlgmr.msra.gmra.mrb[28].mxu0 %v22334_v31  ;;  %v18088_v31 = vld [vmem:[%s25290_s3 + $0xc44] ss:$16 sps:$4 sm:$0xff]  }
 0x46b   :  { %7494 = vmatmul.mubr.bf16.vlgmr.msra.gmra.mrb[28].mxu1 %v22341_v34  ;;  %8300 = vmatpush1.bf16.msra.mxu0 %v18074_v40  ;;  %v18086_v34 = vld [vmem:[%s25290_s3 + $0xc40] ss:$16 sps:$4 sm:$0xff]  }
 0x46c   :  { %8331 = vmatprep.mubr.bf16.mxu0 %v22549_v13  ;;  %8341 = vmatpush1.bf16.msra.mxu1 %v18077_v6  ;;  %v18110_v40 = vld [vmem:[%s25290_s3 + $0xcc0] ss:$16 sps:$4 sm:$0xff]  }
 0x46d   :  { %8372 = vmatprep.mubr.bf16.mxu1 %v22557_v36  ;;  %8301 = vmatprep.subr.bf16.mxu0 %v18082_v42 }
 0x46e   :  { %8342 = vmatprep.subr.bf16.mxu1 %v18085_v63 }
 0x46f   :  { %8302 = vmatpush1.bf16.msra.mxu0 %v18080_v37 }
 0x470   :  { %8343 = vmatpush1.bf16.msra.mxu1 %v18083_v57  ;;  %8303 = vmatprep.subr.bf16.mxu0 %v18088_v31  ;;  %v18121_v31 = vld [vmem:[%s25290_s3 + $0xee4] ss:$16 sps:$4 sm:$0xff]  }
 0x471   :  { %8344 = vmatprep.subr.bf16.mxu1 %v18091_v60  ;;  %v18116_v60 = vld [vmem:[%s25290_s3 + $0xce0] ss:$16 sps:$4 sm:$0xff]  }
 0x473   :  { %8304 = vmatpush1.bf16.msra.mxu0 %v18086_v34  ;;  %v18119_v34 = vld [vmem:[%s25290_s3 + $0xee0] ss:$16 sps:$4 sm:$0xff]  }
 0x474   :  { %8345 = vmatpush1.bf16.msra.mxu1 %v18089_v47  ;;  %8305 = vmatprep.subr.bf16.mxu0 %v18094_v23  ;;  %v18124_v47 = vld [vmem:[%s25290_s3 + $0xd04] ss:$16 sps:$4 sm:$0xff]  }
 0x475   :  { %8346 = vmatprep.subr.bf16.mxu1 %v18097_v39  ;;  %v18127_v23 = vld [vmem:[%s25290_s3 + $0xf04] ss:$16 sps:$4 sm:$0xff]   ;;  %v18122_v39 = vld [vmem:[%s25290_s3 + $0xd00] ss:$16 sps:$4 sm:$0xff]  }
 0x477   :  { %8306 = vmatpush1.bf16.msra.mxu0 %v18092_v29  ;;  %v18125_v29 = vld [vmem:[%s25290_s3 + $0xf00] ss:$16 sps:$4 sm:$0xff]  }
 0x478   :  { %8347 = vmatpush1.bf16.msra.mxu1 %v18095_v11  ;;  %8307 = vmatprep.subr.bf16.mxu0 %v18100_v10  ;;  %v18130_v11 = vld [vmem:[%s25290_s3 + $0xd24] ss:$16 sps:$4 sm:$0xff]  }
 0x479   :  { %8348 = vmatprep.subr.bf16.mxu1 %v18103_v18  ;;  %v18133_v10 = vld [vmem:[%s25290_s3 + $0xf24] ss:$16 sps:$4 sm:$0xff]   ;;  %v18128_v18 = vld [vmem:[%s25290_s3 + $0xd20] ss:$16 sps:$4 sm:$0xff]  }
 0x47b   :  { %8308 = vmatpush1.bf16.msra.mxu0 %v18098_v24  ;;  %v18131_v24 = vld [vmem:[%s25290_s3 + $0xf20] ss:$16 sps:$4 sm:$0xff]  }
 0x47c   :  { %8349 = vmatpush1.bf16.msra.mxu1 %v18101_v3  ;;  %8309 = vmatprep.subr.bf16.mxu0 %v18106_v33  ;;  %v18136_v3 = vld [vmem:[%s25290_s3 + $0xd44] ss:$16 sps:$4 sm:$0xff]  }
 0x47d   :  { %v6415_v55 = vpop.f32.mrb[16].mxu0  ;;  %8350 = vmatprep.subr.bf16.mxu1 %v18109_v35  ;;  %v18139_v33 = vld [vmem:[%s25290_s3 + $0xf44] ss:$16 sps:$4 sm:$0xff]   ;;  %v18134_v35 = vld [vmem:[%s25290_s3 + $0xd40] ss:$16 sps:$4 sm:$0xff]  }
 0x47e   :  { %v6416_v0 = vadd.f32 %v6415_v55, %v22205_v12  ;;  %v6456_v2 = vpop.f32.mrb[16].mxu1  ;;  %v6417_v38 = vpop.f32.mrb[17].mxu0  ;;  %v18113_v12 = vld [vmem:[%s25290_s3 + $0xec0] ss:$16 sps:$4 sm:$0xff]  }
 0x47f   :  { %v6418_v8 = vadd.f32 %v6417_v38, %v22210_v62  ;;  %v6458_v14 = vpop.f32.mrb[17].mxu1  ;;  %v6419_v25 = vpop.f32.mrb[18].mxu0  ;;  %8310 = vmatpush1.bf16.msra.mxu0 %v18104_v30  ;;  %v18118_v62 = vld [vmem:[%s25290_s3 + $0xce4] ss:$16 sps:$4 sm:$0xff]   ;;  %v18137_v30 = vld [vmem:[%s25290_s3 + $0xf40] ss:$16 sps:$4 sm:$0xff]  }
 0x480   :  { %v22626_v6 = vadd.f32 %v6456_v2, %v6416_v0  ;;  %v6460_v42 = vpop.f32.mrb[18].mxu1  ;;  %8351 = vmatpush1.bf16.msra.mxu1 %v18107_v46  ;;  %v6420_v63 = vpop.f32.mrb[19].mxu0  ;;  %8311 = vmatprep.subr.bf16.mxu0 %v18112_v56  ;;  %v18142_v46 = vld [vmem:[%s25290_s3 + $0xd64] ss:$16 sps:$4 sm:$0xff]   ;;  %v18140_v55 = vld [vmem:[%s25290_s3 + $0xd60] ss:$16 sps:$4 sm:$0xff]  }
 0x481   :  { %v22634_v37 = vadd.f32 %v6458_v14, %v6418_v8  ;;  %v6461_v57 = vpop.f32.mrb[19].mxu1  ;;  %8352 = vmatprep.subr.bf16.mxu1 %v18115_v1  ;;  %v18145_v56 = vld [vmem:[%s25290_s3 + $0xf64] ss:$16 sps:$4 sm:$0xff]   ;;  %v18143_v1 = vld [vmem:[%s25290_s3 + $0xf60] ss:$16 sps:$4 sm:$0xff]  }
 0x482   :  { %v18148_v0 = vld [vmem:[%s25290_s3 + $0xd84] ss:$16 sps:$4 sm:$0xff]   ;;  %v18146_v38 = vld [vmem:[%s25290_s3 + $0xd80] ss:$16 sps:$4 sm:$0xff]  }
 0x483   :  { %8312 = vmatpush1.bf16.msra.mxu0 %v18110_v40  ;;  %v18151_v2 = vld [vmem:[%s25290_s3 + $0xf84] ss:$16 sps:$4 sm:$0xff]   ;;  %v18149_v8 = vld [vmem:[%s25290_s3 + $0xf80] ss:$16 sps:$4 sm:$0xff]  }
 0x484   :  { %8353 = vmatpush1.bf16.msra.mxu1 %v18113_v12  ;;  %8313 = vmatprep.subr.bf16.mxu0 %v18118_v62  ;;  %v18154_v14 = vld [vmem:[%s25290_s3 + $0xda4] ss:$16 sps:$4 sm:$0xff]   ;;  %v18152_v40 = vld [vmem:[%s25290_s3 + $0xda0] ss:$16 sps:$4 sm:$0xff]  }
 0x485   :  { %8354 = vmatprep.subr.bf16.mxu1 %v18121_v31  ;;  %v18157_v25 = vld [vmem:[%s25290_s3 + $0xfa4] ss:$16 sps:$4 sm:$0xff]   ;;  %v18155_v42 = vld [vmem:[%s25290_s3 + $0xfa0] ss:$16 sps:$4 sm:$0xff]  }
 0x486   :  { %v18160_v63 = vld [vmem:[%s25290_s3 + $0xdc4] ss:$16 sps:$4 sm:$0xff]   ;;  %v18158_v62 = vld [vmem:[%s25290_s3 + $0xdc0] ss:$16 sps:$4 sm:$0xff]  }
 0x487   :  { %8314 = vmatpush1.bf16.msra.mxu0 %v18116_v60  ;;  %v18163_v12 = vld [vmem:[%s25290_s3 + $0xfc4] ss:$16 sps:$4 sm:$0xff]   ;;  %v18161_v57 = vld [vmem:[%s25290_s3 + $0xfc0] ss:$16 sps:$4 sm:$0xff]  }
 0x488   :  { %8355 = vmatpush1.bf16.msra.mxu1 %v18119_v34  ;;  %8315 = vmatprep.subr.bf16.mxu0 %v18124_v47  ;;  %v18166_v31 = vld [vmem:[%s25290_s3 + $0xde4] ss:$16 sps:$4 sm:$0xff]   ;;  %v18164_v34 = vld [vmem:[%s25290_s3 + $0xde0] ss:$16 sps:$4 sm:$0xff]  }
 0x489   :  { %8356 = vmatprep.subr.bf16.mxu1 %v18127_v23  ;;  %v18169_v60 = vld [vmem:[%s25290_s3 + $0xfe4] ss:$16 sps:$4 sm:$0xff]   ;;  %v18167_v47 = vld [vmem:[%s25290_s3 + $0xfe0] ss:$16 sps:$4 sm:$0xff]   ;;  %v18172_v23 = vld [vmem:[%s25290_s3 + $0xc0c] ss:$16 sps:$4 sm:$0xff]  }
 0x48b   :  { %8316 = vmatpush1.bf16.msra.mxu0 %v18122_v39  ;;  %v18175_v39 = vld [vmem:[%s25290_s3 + $0xe0c] ss:$16 sps:$4 sm:$0xff]  }
 0x48c   :  { %8357 = vmatpush1.bf16.msra.mxu1 %v18125_v29  ;;  %8317 = vmatprep.subr.bf16.mxu0 %v18130_v11  ;;  %v18170_v29 = vld [vmem:[%s25290_s3 + $0xc08] ss:$16 sps:$4 sm:$0xff]   ;;  %v22752_v11 = vpack.c.bf16 %v21473_v61, %v21473_v61  ;;  %v18181_v61 = vld [vmem:[%s25290_s3 + $0xe2c] ss:$16 sps:$4 sm:$0xff]  }
 0x48d   :  { %8358 = vmatprep.subr.bf16.mxu1 %v18133_v10  ;;  %v18173_v10 = vld [vmem:[%s25290_s3 + $0xe08] ss:$16 sps:$4 sm:$0xff]  }
 0x48f   :  { %8318 = vmatpush1.bf16.msra.mxu0 %v18128_v18  ;;  %v22759_v18 = vpack.c.bf16 %v21488_v16, %v21488_v16  ;;  %v18179_v16 = vld [vmem:[%s25290_s3 + $0xe28] ss:$16 sps:$4 sm:$0xff]  }
 0x490   :  { %8359 = vmatpush1.bf16.msra.mxu1 %v18131_v24  ;;  %8319 = vmatprep.subr.bf16.mxu0 %v18136_v3  ;;  %v18178_v24 = vld [vmem:[%s25290_s3 + $0xc2c] ss:$16 sps:$4 sm:$0xff]   ;;  %v18176_v3 = vld [vmem:[%s25290_s3 + $0xc28] ss:$16 sps:$4 sm:$0xff]  }
 0x491   :  { %8360 = vmatprep.subr.bf16.mxu1 %v18139_v33  ;;  %v18184_v33 = vld [vmem:[%s25290_s3 + $0xc4c] ss:$16 sps:$4 sm:$0xff]  }
 0x493   :  { %8320 = vmatpush1.bf16.msra.mxu0 %v18134_v35  ;;  %v18187_v35 = vld [vmem:[%s25290_s3 + $0xe4c] ss:$16 sps:$4 sm:$0xff]  }
 0x494   :  { %8361 = vmatpush1.bf16.msra.mxu1 %v18137_v30  ;;  %8321 = vmatprep.subr.bf16.mxu0 %v18142_v46  ;;  %v18185_v30 = vld [vmem:[%s25290_s3 + $0xe48] ss:$16 sps:$4 sm:$0xff]   ;;  %v18193_v46 = vld [vmem:[%s25290_s3 + $0xe6c] ss:$16 sps:$4 sm:$0xff]  }
 0x495   :  { %8362 = vmatprep.subr.bf16.mxu1 %v18145_v56  ;;  %v18188_v56 = vld [vmem:[%s25290_s3 + $0xc68] ss:$16 sps:$4 sm:$0xff]  }
 0x497   :  { %8322 = vmatpush1.bf16.msra.mxu0 %v18140_v55  ;;  %v18191_v55 = vld [vmem:[%s25290_s3 + $0xe68] ss:$16 sps:$4 sm:$0xff]  }
 0x498   :  { %8363 = vmatpush1.bf16.msra.mxu1 %v18143_v1  ;;  %8323 = vmatprep.subr.bf16.mxu0 %v18148_v0  ;;  %v18196_v1 = vld [vmem:[%s25290_s3 + $0xc8c] ss:$16 sps:$4 sm:$0xff]  }
 0x499   :  { %8364 = vmatprep.subr.bf16.mxu1 %v18151_v2  ;;  %v18199_v0 = vld [vmem:[%s25290_s3 + $0xe8c] ss:$16 sps:$4 sm:$0xff]   ;;  %v18194_v2 = vld [vmem:[%s25290_s3 + $0xc88] ss:$16 sps:$4 sm:$0xff]  }
 0x49b   :  { %8324 = vmatpush1.bf16.msra.mxu0 %v18146_v38  ;;  %v18197_v38 = vld [vmem:[%s25290_s3 + $0xe88] ss:$16 sps:$4 sm:$0xff]  }
 0x49c   :  { %8365 = vmatpush1.bf16.msra.mxu1 %v18149_v8  ;;  %8325 = vmatprep.subr.bf16.mxu0 %v18154_v14  ;;  %v18202_v8 = vld [vmem:[%s25290_s3 + $0xcac] ss:$16 sps:$4 sm:$0xff]  }
 0x49d   :  { %8366 = vmatprep.subr.bf16.mxu1 %v18157_v25  ;;  %v18205_v14 = vld [vmem:[%s25290_s3 + $0xeac] ss:$16 sps:$4 sm:$0xff]   ;;  %v18200_v25 = vld [vmem:[%s25290_s3 + $0xca8] ss:$16 sps:$4 sm:$0xff]  }
 0x49f   :  { %8326 = vmatpush1.bf16.msra.mxu0 %v18152_v40  ;;  %v18203_v40 = vld [vmem:[%s25290_s3 + $0xea8] ss:$16 sps:$4 sm:$0xff]  }
 0x4a0   :  { %8367 = vmatpush1.bf16.msra.mxu1 %v18155_v42  ;;  %8327 = vmatprep.subr.bf16.mxu0 %v18160_v63  ;;  %v18208_v42 = vld [vmem:[%s25290_s3 + $0xccc] ss:$16 sps:$4 sm:$0xff]  }
 0x4a1   :  { %8368 = vmatprep.subr.bf16.mxu1 %v18163_v12  ;;  %v18211_v12 = vld [vmem:[%s25290_s3 + $0xecc] ss:$16 sps:$4 sm:$0xff]  }
 0x4a3   :  { %8328 = vmatpush1.bf16.msra.mxu0 %v18158_v62 }
 0x4a4   :  { %8369 = vmatpush1.bf16.msra.mxu1 %v18161_v57  ;;  %8329 = vmatprep.subr.bf16.mxu0 %v18166_v31 }
 0x4a5   :  { %8370 = vmatprep.subr.bf16.mxu1 %v18169_v60 }
 0x4a7   :  { %8330 = vmatpush1.bf16.msra.mxu0 %v18164_v34 }
 0x4a8   :  { %8371 = vmatpush1.bf16.msra.mxu1 %v18167_v47  ;;  %8381 = vmatprep.subr.bf16.mxu0 %v18172_v23  ;;  %v18206_v23 = vld [vmem:[%s25290_s3 + $0xcc8] ss:$16 sps:$4 sm:$0xff]  }
 0x4a9   :  { %8422 = vmatprep.subr.bf16.mxu1 %v18175_v39 }
 0x4aa   :  { %8332 = vmatmul.mubr.bf16.vlgmr.msra.gmra.mrb[32].mxu0 %v22752_v11 }
 0x4ab   :  { %8373 = vmatmul.mubr.bf16.vlgmr.msra.gmra.mrb[32].mxu1 %v22759_v18  ;;  %8382 = vmatpush1.bf16.msra.mxu0 %v18170_v29 }
 0x4ac   :  { %8413 = vmatprep.mubr.bf16.mxu0 %v22549_v13  ;;  %8423 = vmatpush1.bf16.msra.mxu1 %v18173_v10  ;;  %v18182_v13 = vld [vmem:[%s25290_s3 + $0xc48] ss:$16 sps:$4 sm:$0xff]  }
 0x4ad   :  { %8454 = vmatprep.mubr.bf16.mxu1 %v22557_v36  ;;  %8383 = vmatprep.subr.bf16.mxu0 %v18178_v24  ;;  %v18190_v36 = vld [vmem:[%s25290_s3 + $0xc6c] ss:$16 sps:$4 sm:$0xff]  }
 0x4ae   :  { %8424 = vmatprep.subr.bf16.mxu1 %v18181_v61 }
 0x4af   :  { %8384 = vmatpush1.bf16.msra.mxu0 %v18176_v3  ;;  %v18217_v3 = vld [vmem:[%s25290_s3 + $0xeec] ss:$16 sps:$4 sm:$0xff]  }
 0x4b0   :  { %8425 = vmatpush1.bf16.msra.mxu1 %v18179_v16  ;;  %8385 = vmatprep.subr.bf16.mxu0 %v18184_v33  ;;  %v18212_v16 = vld [vmem:[%s25290_s3 + $0xce8] ss:$16 sps:$4 sm:$0xff]  }
 0x4b1   :  { %8426 = vmatprep.subr.bf16.mxu1 %v18187_v35  ;;  %v18215_v33 = vld [vmem:[%s25290_s3 + $0xee8] ss:$16 sps:$4 sm:$0xff]   ;;  %v18220_v35 = vld [vmem:[%s25290_s3 + $0xd0c] ss:$16 sps:$4 sm:$0xff]  }
 0x4b3   :  { %8386 = vmatpush1.bf16.msra.mxu0 %v18182_v13  ;;  %v18223_v13 = vld [vmem:[%s25290_s3 + $0xf0c] ss:$16 sps:$4 sm:$0xff]  }
 0x4b4   :  { %8427 = vmatpush1.bf16.msra.mxu1 %v18185_v30  ;;  %8387 = vmatprep.subr.bf16.mxu0 %v18190_v36  ;;  %v18218_v30 = vld [vmem:[%s25290_s3 + $0xd08] ss:$16 sps:$4 sm:$0xff]  }
 0x4b5   :  { %8428 = vmatprep.subr.bf16.mxu1 %v18193_v46  ;;  %v18221_v36 = vld [vmem:[%s25290_s3 + $0xf08] ss:$16 sps:$4 sm:$0xff]   ;;  %v18226_v46 = vld [vmem:[%s25290_s3 + $0xd2c] ss:$16 sps:$4 sm:$0xff]  }
 0x4b7   :  { %8388 = vmatpush1.bf16.msra.mxu0 %v18188_v56  ;;  %v18229_v56 = vld [vmem:[%s25290_s3 + $0xf2c] ss:$16 sps:$4 sm:$0xff]  }
 0x4b8   :  { %8429 = vmatpush1.bf16.msra.mxu1 %v18191_v55  ;;  %8389 = vmatprep.subr.bf16.mxu0 %v18196_v1  ;;  %v18224_v55 = vld [vmem:[%s25290_s3 + $0xd28] ss:$16 sps:$4 sm:$0xff]  }
 0x4b9   :  { %8430 = vmatprep.subr.bf16.mxu1 %v18199_v0  ;;  %v18227_v1 = vld [vmem:[%s25290_s3 + $0xf28] ss:$16 sps:$4 sm:$0xff]   ;;  %v18232_v0 = vld [vmem:[%s25290_s3 + $0xd4c] ss:$16 sps:$4 sm:$0xff]  }
 0x4bb   :  { %8390 = vmatpush1.bf16.msra.mxu0 %v18194_v2  ;;  %v18235_v2 = vld [vmem:[%s25290_s3 + $0xf4c] ss:$16 sps:$4 sm:$0xff]  }
 0x4bc   :  { %8431 = vmatpush1.bf16.msra.mxu1 %v18197_v38  ;;  %8391 = vmatprep.subr.bf16.mxu0 %v18202_v8  ;;  %v18230_v38 = vld [vmem:[%s25290_s3 + $0xd48] ss:$16 sps:$4 sm:$0xff]  }
 0x4bd   :  { %v6497_v63 = vpop.f32.mrb[20].mxu0  ;;  %8432 = vmatprep.subr.bf16.mxu1 %v18205_v14  ;;  %v18233_v8 = vld [vmem:[%s25290_s3 + $0xf48] ss:$16 sps:$4 sm:$0xff]   ;;  %v18238_v14 = vld [vmem:[%s25290_s3 + $0xd6c] ss:$16 sps:$4 sm:$0xff]  }
 0x4be   :  { %v6498_v62 = vadd.f32 %v6497_v63, %v22413_v15  ;;  %v6538_v57 = vpop.f32.mrb[20].mxu1  ;;  %v6499_v31 = vpop.f32.mrb[21].mxu0  ;;  %v18209_v15 = vld [vmem:[%s25290_s3 + $0xec8] ss:$16 sps:$4 sm:$0xff]   ;;  %v18244_v63 = vld [vmem:[%s25290_s3 + $0xd8c] ss:$16 sps:$4 sm:$0xff]  }
 0x4bf   :  { %v6500_v60 = vadd.f32 %v6499_v31, %v22418_v28  ;;  %v6540_v34 = vpop.f32.mrb[21].mxu1  ;;  %v6501_v47 = vpop.f32.mrb[22].mxu0  ;;  %8392 = vmatpush1.bf16.msra.mxu0 %v18200_v25  ;;  %v18214_v28 = vld [vmem:[%s25290_s3 + $0xcec] ss:$16 sps:$4 sm:$0xff]  }
 0x4c0   :  { %v22836_v39 = vadd.f32 %v6538_v57, %v6498_v62  ;;  %v6542_v29 = vpop.f32.mrb[22].mxu1  ;;  %8433 = vmatpush1.bf16.msra.mxu1 %v18203_v40  ;;  %v6502_v10 = vpop.f32.mrb[23].mxu0  ;;  %8393 = vmatprep.subr.bf16.mxu0 %v18208_v42  ;;  %v18241_v25 = vld [vmem:[%s25290_s3 + $0xf6c] ss:$16 sps:$4 sm:$0xff]   ;;  %v18236_v40 = vld [vmem:[%s25290_s3 + $0xd68] ss:$16 sps:$4 sm:$0xff]  }
 0x4c1   :  { %v22844_v24 = vadd.f32 %v6540_v34, %v6500_v60  ;;  %v6543_v61 = vpop.f32.mrb[23].mxu1  ;;  %8434 = vmatprep.subr.bf16.mxu1 %v18211_v12  ;;  %v18239_v42 = vld [vmem:[%s25290_s3 + $0xf68] ss:$16 sps:$4 sm:$0xff]   ;;  %v18247_v12 = vld [vmem:[%s25290_s3 + $0xf8c] ss:$16 sps:$4 sm:$0xff]  }
 0x4c2   :  { %v18242_v62 = vld [vmem:[%s25290_s3 + $0xd88] ss:$16 sps:$4 sm:$0xff]   ;;  %v18250_v31 = vld [vmem:[%s25290_s3 + $0xdac] ss:$16 sps:$4 sm:$0xff]  }
 0x4c3   :  { %8394 = vmatpush1.bf16.msra.mxu0 %v18206_v23  ;;  %v18245_v57 = vld [vmem:[%s25290_s3 + $0xf88] ss:$16 sps:$4 sm:$0xff]   ;;  %v18253_v60 = vld [vmem:[%s25290_s3 + $0xfac] ss:$16 sps:$4 sm:$0xff]  }
 0x4c4   :  { %8435 = vmatpush1.bf16.msra.mxu1 %v18209_v15  ;;  %8395 = vmatprep.subr.bf16.mxu0 %v18214_v28  ;;  %v18248_v34 = vld [vmem:[%s25290_s3 + $0xda8] ss:$16 sps:$4 sm:$0xff]   ;;  %v18256_v23 = vld [vmem:[%s25290_s3 + $0xdcc] ss:$16 sps:$4 sm:$0xff]  }
 0x4c5   :  { %8436 = vmatprep.subr.bf16.mxu1 %v18217_v3  ;;  %v18251_v47 = vld [vmem:[%s25290_s3 + $0xfa8] ss:$16 sps:$4 sm:$0xff]   ;;  %v18259_v29 = vld [vmem:[%s25290_s3 + $0xfcc] ss:$16 sps:$4 sm:$0xff]  }
 0x4c6   :  { %v18254_v10 = vld [vmem:[%s25290_s3 + $0xdc8] ss:$16 sps:$4 sm:$0xff]   ;;  %v18262_v28 = vld [vmem:[%s25290_s3 + $0xdec] ss:$16 sps:$4 sm:$0xff]  }
 0x4c7   :  { %8396 = vmatpush1.bf16.msra.mxu0 %v18212_v16  ;;  %v18257_v15 = vld [vmem:[%s25290_s3 + $0xfc8] ss:$16 sps:$4 sm:$0xff]   ;;  %v18265_v61 = vld [vmem:[%s25290_s3 + $0xfec] ss:$16 sps:$4 sm:$0xff]  }
 0x4c8   :  { %8437 = vmatpush1.bf16.msra.mxu1 %v18215_v33  ;;  %8397 = vmatprep.subr.bf16.mxu0 %v18220_v35  ;;  %v18260_v3 = vld [vmem:[%s25290_s3 + $0xde8] ss:$16 sps:$4 sm:$0xff]   ;;  %v18268_v33 = vld [vmem:[%s25290_s3 + $0x1004] ss:$16 sps:$4 sm:$0xff]  }
 0x4c9   :  { %8438 = vmatprep.subr.bf16.mxu1 %v18223_v13  ;;  %v18263_v16 = vld [vmem:[%s25290_s3 + $0xfe8] ss:$16 sps:$4 sm:$0xff]   ;;  %v18271_v35 = vld [vmem:[%s25290_s3 + $0x1204] ss:$16 sps:$4 sm:$0xff]   ;;  %v18266_v13 = vld [vmem:[%s25290_s3 + $0x1000] ss:$16 sps:$4 sm:$0xff]  }
 0x4cb   :  { %8398 = vmatpush1.bf16.msra.mxu0 %v18218_v30  ;;  %v18269_v30 = vld [vmem:[%s25290_s3 + $0x1200] ss:$16 sps:$4 sm:$0xff]  }
 0x4cc   :  { %8439 = vmatpush1.bf16.msra.mxu1 %v18221_v36  ;;  %8399 = vmatprep.subr.bf16.mxu0 %v18226_v46  ;;  %v18274_v36 = vld [vmem:[%s25290_s3 + $0x1024] ss:$16 sps:$4 sm:$0xff]   ;;  %v22969_v46 = vpack.c.bf16 %v21497_v19, %v21497_v19  ;;  %v18275_v19 = vld [vmem:[%s25290_s3 + $0x1220] ss:$16 sps:$4 sm:$0xff]  }
 0x4cd   :  { %8440 = vmatprep.subr.bf16.mxu1 %v18229_v56  ;;  %v18277_v56 = vld [vmem:[%s25290_s3 + $0x1224] ss:$16 sps:$4 sm:$0xff]  }
 0x4cf   :  { %8400 = vmatpush1.bf16.msra.mxu0 %v18224_v55  ;;  %v22977_v55 = vpack.c.bf16 %v21500_v20, %v21500_v20  ;;  %v18283_v20 = vld [vmem:[%s25290_s3 + $0x1244] ss:$16 sps:$4 sm:$0xff]  }
 0x4d0   :  { %8441 = vmatpush1.bf16.msra.mxu1 %v18227_v1  ;;  %8401 = vmatprep.subr.bf16.mxu0 %v18232_v0  ;;  %v18272_v1 = vld [vmem:[%s25290_s3 + $0x1020] ss:$16 sps:$4 sm:$0xff]  }
 0x4d1   :  { %8442 = vmatprep.subr.bf16.mxu1 %v18235_v2  ;;  %v18281_v0 = vld [vmem:[%s25290_s3 + $0x1240] ss:$16 sps:$4 sm:$0xff]   ;;  %v18286_v2 = vld [vmem:[%s25290_s3 + $0x1064] ss:$16 sps:$4 sm:$0xff]  }
 0x4d3   :  { %8402 = vmatpush1.bf16.msra.mxu0 %v18230_v38  ;;  %v18289_v38 = vld [vmem:[%s25290_s3 + $0x1264] ss:$16 sps:$4 sm:$0xff]  }
 0x4d4   :  { %8443 = vmatpush1.bf16.msra.mxu1 %v18233_v8  ;;  %8403 = vmatprep.subr.bf16.mxu0 %v18238_v14  ;;  %v18284_v8 = vld [vmem:[%s25290_s3 + $0x1060] ss:$16 sps:$4 sm:$0xff]  }
 0x4d5   :  { %8444 = vmatprep.subr.bf16.mxu1 %v18241_v25  ;;  %v18287_v14 = vld [vmem:[%s25290_s3 + $0x1260] ss:$16 sps:$4 sm:$0xff]   ;;  %v18292_v25 = vld [vmem:[%s25290_s3 + $0x1084] ss:$16 sps:$4 sm:$0xff]  }
 0x4d7   :  { %8404 = vmatpush1.bf16.msra.mxu0 %v18236_v40  ;;  %v18295_v40 = vld [vmem:[%s25290_s3 + $0x1284] ss:$16 sps:$4 sm:$0xff]  }
 0x4d8   :  { %8445 = vmatpush1.bf16.msra.mxu1 %v18239_v42  ;;  %8405 = vmatprep.subr.bf16.mxu0 %v18244_v63  ;;  %v18290_v42 = vld [vmem:[%s25290_s3 + $0x1080] ss:$16 sps:$4 sm:$0xff]  }
 0x4d9   :  { %8446 = vmatprep.subr.bf16.mxu1 %v18247_v12  ;;  %v18293_v63 = vld [vmem:[%s25290_s3 + $0x1280] ss:$16 sps:$4 sm:$0xff]   ;;  %v18298_v12 = vld [vmem:[%s25290_s3 + $0x10a4] ss:$16 sps:$4 sm:$0xff]  }
 0x4db   :  { %8406 = vmatpush1.bf16.msra.mxu0 %v18242_v62  ;;  %v18301_v62 = vld [vmem:[%s25290_s3 + $0x12a4] ss:$16 sps:$4 sm:$0xff]  }
 0x4dc   :  { %8447 = vmatpush1.bf16.msra.mxu1 %v18245_v57  ;;  %8407 = vmatprep.subr.bf16.mxu0 %v18250_v31  ;;  %v18296_v57 = vld [vmem:[%s25290_s3 + $0x10a0] ss:$16 sps:$4 sm:$0xff]  }
 0x4dd   :  { %8448 = vmatprep.subr.bf16.mxu1 %v18253_v60  ;;  %v18299_v31 = vld [vmem:[%s25290_s3 + $0x12a0] ss:$16 sps:$4 sm:$0xff]   ;;  %v18304_v60 = vld [vmem:[%s25290_s3 + $0x10c4] ss:$16 sps:$4 sm:$0xff]  }
 0x4df   :  { %8408 = vmatpush1.bf16.msra.mxu0 %v18248_v34 }
 0x4e0   :  { %8449 = vmatpush1.bf16.msra.mxu1 %v18251_v47  ;;  %8409 = vmatprep.subr.bf16.mxu0 %v18256_v23  ;;  %v18307_v47 = vld [vmem:[%s25290_s3 + $0x12c4] ss:$16 sps:$4 sm:$0xff]  }
 0x4e1   :  { %8450 = vmatprep.subr.bf16.mxu1 %v18259_v29 }
 0x4e3   :  { %8410 = vmatpush1.bf16.msra.mxu0 %v18254_v10 }
 0x4e4   :  { %8451 = vmatpush1.bf16.msra.mxu1 %v18257_v15  ;;  %8411 = vmatprep.subr.bf16.mxu0 %v18262_v28 }
 0x4e5   :  { %8452 = vmatprep.subr.bf16.mxu1 %v18265_v61  ;;  %v18302_v61 = vld [vmem:[%s25290_s3 + $0x10c0] ss:$16 sps:$4 sm:$0xff]  }
 0x4e7   :  { %8412 = vmatpush1.bf16.msra.mxu0 %v18260_v3 }
 0x4e8   :  { %8453 = vmatpush1.bf16.msra.mxu1 %v18263_v16  ;;  %9260 = vmatprep.subr.bf16.mxu0 %v18268_v33 }
 0x4e9   :  { %9301 = vmatprep.subr.bf16.mxu1 %v18271_v35  ;;  %v18305_v35 = vld [vmem:[%s25290_s3 + $0x12c0] ss:$16 sps:$4 sm:$0xff]  }
 0x4ea   :  { %8414 = vmatmul.mubr.bf16.vlgmr.msra.gmra.mrb[36].mxu0 %v22752_v11  ;;  %v18280_v11 = vld [vmem:[%s25290_s3 + $0x1044] ss:$16 sps:$4 sm:$0xff]  }
 0x4eb   :  { %8455 = vmatmul.mubr.bf16.vlgmr.msra.gmra.mrb[36].mxu1 %v22759_v18  ;;  %9261 = vmatpush1.bf16.msra.mxu0 %v18266_v13  ;;  %v18278_v18 = vld [vmem:[%s25290_s3 + $0x1040] ss:$16 sps:$4 sm:$0xff]   ;;  %v18310_v13 = vld [vmem:[%s25290_s3 + $0x10e4] ss:$16 sps:$4 sm:$0xff]  }
 0x4ec   :  { %9292 = vmatprep.mubr.bf16.mxu0 %v22969_v46  ;;  %9302 = vmatpush1.bf16.msra.mxu1 %v18269_v30 }
 0x4ed   :  { %9333 = vmatprep.mubr.bf16.mxu1 %v22977_v55  ;;  %9262 = vmatprep.subr.bf16.mxu0 %v18274_v36 }
 0x4ee   :  { %9303 = vmatprep.subr.bf16.mxu1 %v18277_v56  ;;  %v18313_v56 = vld [vmem:[%s25290_s3 + $0x12e4] ss:$16 sps:$4 sm:$0xff]  }
 0x4ef   :  { %9263 = vmatpush1.bf16.msra.mxu0 %v18272_v1 }
 0x4f0   :  { %9304 = vmatpush1.bf16.msra.mxu1 %v18275_v19  ;;  %9264 = vmatprep.subr.bf16.mxu0 %v18280_v11  ;;  %v18308_v19 = vld [vmem:[%s25290_s3 + $0x10e0] ss:$16 sps:$4 sm:$0xff]   ;;  %v18316_v11 = vld [vmem:[%s25290_s3 + $0x1104] ss:$16 sps:$4 sm:$0xff]  }
 0x4f1   :  { %9305 = vmatprep.subr.bf16.mxu1 %v18283_v20  ;;  %v18314_v20 = vld [vmem:[%s25290_s3 + $0x1100] ss:$16 sps:$4 sm:$0xff]  }
 0x4f3   :  { %9265 = vmatpush1.bf16.msra.mxu0 %v18278_v18  ;;  %v18317_v18 = vld [vmem:[%s25290_s3 + $0x1300] ss:$16 sps:$4 sm:$0xff]  }
 0x4f4   :  { %9306 = vmatpush1.bf16.msra.mxu1 %v18281_v0  ;;  %9266 = vmatprep.subr.bf16.mxu0 %v18286_v2  ;;  %v18322_v0 = vld [vmem:[%s25290_s3 + $0x1124] ss:$16 sps:$4 sm:$0xff]  }
 0x4f5   :  { %9307 = vmatprep.subr.bf16.mxu1 %v18289_v38  ;;  %v18325_v2 = vld [vmem:[%s25290_s3 + $0x1324] ss:$16 sps:$4 sm:$0xff]   ;;  %v18320_v38 = vld [vmem:[%s25290_s3 + $0x1120] ss:$16 sps:$4 sm:$0xff]  }
 0x4f7   :  { %9267 = vmatpush1.bf16.msra.mxu0 %v18284_v8  ;;  %v18323_v8 = vld [vmem:[%s25290_s3 + $0x1320] ss:$16 sps:$4 sm:$0xff]  }
 0x4f8   :  { %9308 = vmatpush1.bf16.msra.mxu1 %v18287_v14  ;;  %9268 = vmatprep.subr.bf16.mxu0 %v18292_v25  ;;  %v18328_v14 = vld [vmem:[%s25290_s3 + $0x1144] ss:$16 sps:$4 sm:$0xff]  }
 0x4f9   :  { %9309 = vmatprep.subr.bf16.mxu1 %v18295_v40  ;;  %v18331_v25 = vld [vmem:[%s25290_s3 + $0x1344] ss:$16 sps:$4 sm:$0xff]   ;;  %v18326_v40 = vld [vmem:[%s25290_s3 + $0x1140] ss:$16 sps:$4 sm:$0xff]  }
 0x4fb   :  { %9269 = vmatpush1.bf16.msra.mxu0 %v18290_v42  ;;  %v18329_v42 = vld [vmem:[%s25290_s3 + $0x1340] ss:$16 sps:$4 sm:$0xff]  }
 0x4fc   :  { %9310 = vmatpush1.bf16.msra.mxu1 %v18293_v63  ;;  %9270 = vmatprep.subr.bf16.mxu0 %v18298_v12  ;;  %v18334_v63 = vld [vmem:[%s25290_s3 + $0x1164] ss:$16 sps:$4 sm:$0xff]  }
 0x4fd   :  { %v7372_v34 = vpop.f32.mrb[24].mxu0  ;;  %9311 = vmatprep.subr.bf16.mxu1 %v18301_v62  ;;  %v18337_v12 = vld [vmem:[%s25290_s3 + $0x1364] ss:$16 sps:$4 sm:$0xff]   ;;  %v18332_v62 = vld [vmem:[%s25290_s3 + $0x1160] ss:$16 sps:$4 sm:$0xff]  }
 0x4fe   :  { %v7413_v23 = vpop.f32.mrb[24].mxu1  ;;  %v7374_v29 = vpop.f32.mrb[25].mxu0 }
 0x4ff   :  { %v7414_v10 = vadd.f32 %v7413_v23, %v7372_v34  ;;  %v7415_v15 = vpop.f32.mrb[25].mxu1  ;;  %v7376_v28 = vpop.f32.mrb[26].mxu0  ;;  %9271 = vmatpush1.bf16.msra.mxu0 %v18296_v57  ;;  %v18335_v57 = vld [vmem:[%s25290_s3 + $0x1360] ss:$16 sps:$4 sm:$0xff]   ;;  %v18346_v23 = vld [vmem:[%s25290_s3 + $0x11a4] ss:$16 sps:$4 sm:$0xff]  }
 0x500   :  { %v7416_v3 = vadd.f32 %v7415_v15, %v7374_v29  ;;  %v7417_v16 = vpop.f32.mrb[26].mxu1  ;;  %9312 = vmatpush1.bf16.msra.mxu1 %v18299_v31  ;;  %v7377_v33 = vpop.f32.mrb[27].mxu0  ;;  %9272 = vmatprep.subr.bf16.mxu0 %v18304_v60  ;;  %v18340_v31 = vld [vmem:[%s25290_s3 + $0x1184] ss:$16 sps:$4 sm:$0xff]   ;;  %v18338_v34 = vld [vmem:[%s25290_s3 + $0x1180] ss:$16 sps:$4 sm:$0xff]  }
 0x501   :  { %v23051_v30 = vadd.f32 %v7414_v10, %v22626_v6  ;;  %v7418_v36 = vpop.f32.mrb[27].mxu1  ;;  %9313 = vmatprep.subr.bf16.mxu1 %v18307_v47  ;;  %v18311_v6 = vld [vmem:[%s25290_s3 + $0x12e0] ss:$16 sps:$4 sm:$0xff]   ;;  %v18343_v60 = vld [vmem:[%s25290_s3 + $0x1384] ss:$16 sps:$4 sm:$0xff]  }
 0x502   :  { %v23057_v1 = vadd.f32 %v7416_v3, %v22634_v37  ;;  %v18319_v37 = vld [vmem:[%s25290_s3 + $0x1304] ss:$16 sps:$4 sm:$0xff]   ;;  %v18341_v47 = vld [vmem:[%s25290_s3 + $0x1380] ss:$16 sps:$4 sm:$0xff]  }
 0x503   :  { %9273 = vmatpush1.bf16.msra.mxu0 %v18302_v61  ;;  %v18349_v29 = vld [vmem:[%s25290_s3 + $0x13a4] ss:$16 sps:$4 sm:$0xff]   ;;  %v18344_v10 = vld [vmem:[%s25290_s3 + $0x11a0] ss:$16 sps:$4 sm:$0xff]  }
 0x504   :  { %9314 = vmatpush1.bf16.msra.mxu1 %v18305_v35  ;;  %9274 = vmatprep.subr.bf16.mxu0 %v18310_v13  ;;  %v18347_v15 = vld [vmem:[%s25290_s3 + $0x13a0] ss:$16 sps:$4 sm:$0xff]   ;;  %v18352_v28 = vld [vmem:[%s25290_s3 + $0x11c4] ss:$16 sps:$4 sm:$0xff]  }
 0x505   :  { %9315 = vmatprep.subr.bf16.mxu1 %v18313_v56  ;;  %v18355_v61 = vld [vmem:[%s25290_s3 + $0x13c4] ss:$16 sps:$4 sm:$0xff]   ;;  %v18350_v3 = vld [vmem:[%s25290_s3 + $0x11c0] ss:$16 sps:$4 sm:$0xff]   ;;  %v18364_v56 = vld [vmem:[%s25290_s3 + $0x100c] ss:$16 sps:$4 sm:$0xff]  }
 0x506   :  { %v18353_v16 = vld [vmem:[%s25290_s3 + $0x13c0] ss:$16 sps:$4 sm:$0xff]   ;;  %v18358_v33 = vld [vmem:[%s25290_s3 + $0x11e4] ss:$16 sps:$4 sm:$0xff]  }
 0x507   :  { %9275 = vmatpush1.bf16.msra.mxu0 %v18308_v19  ;;  %v18361_v35 = vld [vmem:[%s25290_s3 + $0x13e4] ss:$16 sps:$4 sm:$0xff]   ;;  %v18356_v13 = vld [vmem:[%s25290_s3 + $0x11e0] ss:$16 sps:$4 sm:$0xff]   ;;  %v18367_v19 = vld [vmem:[%s25290_s3 + $0x120c] ss:$16 sps:$4 sm:$0xff]  }
 0x508   :  { %9316 = vmatpush1.bf16.msra.mxu1 %v18311_v6  ;;  %9276 = vmatprep.subr.bf16.mxu0 %v18316_v11  ;;  %v18359_v36 = vld [vmem:[%s25290_s3 + $0x13e0] ss:$16 sps:$4 sm:$0xff]   ;;  %v18362_v6 = vld [vmem:[%s25290_s3 + $0x1008] ss:$16 sps:$4 sm:$0xff]   ;;  %v23172_v11 = vpack.c.bf16 %v21507_v32, %v21507_v32  ;;  %v18373_v32 = vld [vmem:[%s25290_s3 + $0x122c] ss:$16 sps:$4 sm:$0xff]  }
 0x509   :  { %9317 = vmatprep.subr.bf16.mxu1 %v18319_v37  ;;  %v18365_v37 = vld [vmem:[%s25290_s3 + $0x1208] ss:$16 sps:$4 sm:$0xff]  }
 0x50b   :  { %9277 = vmatpush1.bf16.msra.mxu0 %v18314_v20  ;;  %v23179_v20 = vpack.c.bf16 %v21521_v43, %v21521_v43  ;;  %v18371_v43 = vld [vmem:[%s25290_s3 + $0x1228] ss:$16 sps:$4 sm:$0xff]  }
 0x50c   :  { %9318 = vmatpush1.bf16.msra.mxu1 %v18317_v18  ;;  %9278 = vmatprep.subr.bf16.mxu0 %v18322_v0  ;;  %v18370_v18 = vld [vmem:[%s25290_s3 + $0x102c] ss:$16 sps:$4 sm:$0xff]   ;;  %v18368_v0 = vld [vmem:[%s25290_s3 + $0x1028] ss:$16 sps:$4 sm:$0xff]  }
 0x50d   :  { %9319 = vmatprep.subr.bf16.mxu1 %v18325_v2  ;;  %v18376_v2 = vld [vmem:[%s25290_s3 + $0x104c] ss:$16 sps:$4 sm:$0xff]  }
 0x50f   :  { %9279 = vmatpush1.bf16.msra.mxu0 %v18320_v38  ;;  %v18379_v38 = vld [vmem:[%s25290_s3 + $0x124c] ss:$16 sps:$4 sm:$0xff]  }
 0x510   :  { %9320 = vmatpush1.bf16.msra.mxu1 %v18323_v8  ;;  %9280 = vmatprep.subr.bf16.mxu0 %v18328_v14  ;;  %v18377_v8 = vld [vmem:[%s25290_s3 + $0x1248] ss:$16 sps:$4 sm:$0xff]   ;;  %v18385_v14 = vld [vmem:[%s25290_s3 + $0x126c] ss:$16 sps:$4 sm:$0xff]  }
 0x511   :  { %9321 = vmatprep.subr.bf16.mxu1 %v18331_v25  ;;  %v18380_v25 = vld [vmem:[%s25290_s3 + $0x1068] ss:$16 sps:$4 sm:$0xff]  }
 0x513   :  { %9281 = vmatpush1.bf16.msra.mxu0 %v18326_v40  ;;  %v18383_v40 = vld [vmem:[%s25290_s3 + $0x1268] ss:$16 sps:$4 sm:$0xff]  }
 0x514   :  { %9322 = vmatpush1.bf16.msra.mxu1 %v18329_v42  ;;  %9282 = vmatprep.subr.bf16.mxu0 %v18334_v63  ;;  %v18388_v42 = vld [vmem:[%s25290_s3 + $0x108c] ss:$16 sps:$4 sm:$0xff]  }
 0x515   :  { %9323 = vmatprep.subr.bf16.mxu1 %v18337_v12  ;;  %v18391_v63 = vld [vmem:[%s25290_s3 + $0x128c] ss:$16 sps:$4 sm:$0xff]   ;;  %v18386_v12 = vld [vmem:[%s25290_s3 + $0x1088] ss:$16 sps:$4 sm:$0xff]  }
 0x517   :  { %9283 = vmatpush1.bf16.msra.mxu0 %v18332_v62  ;;  %v18389_v62 = vld [vmem:[%s25290_s3 + $0x1288] ss:$16 sps:$4 sm:$0xff]  }
 0x518   :  { %9324 = vmatpush1.bf16.msra.mxu1 %v18335_v57  ;;  %9284 = vmatprep.subr.bf16.mxu0 %v18340_v31  ;;  %v18394_v57 = vld [vmem:[%s25290_s3 + $0x10ac] ss:$16 sps:$4 sm:$0xff]  }
 0x519   :  { %9325 = vmatprep.subr.bf16.mxu1 %v18343_v60  ;;  %v18397_v31 = vld [vmem:[%s25290_s3 + $0x12ac] ss:$16 sps:$4 sm:$0xff]   ;;  %v18392_v60 = vld [vmem:[%s25290_s3 + $0x10a8] ss:$16 sps:$4 sm:$0xff]  }
 0x51b   :  { %9285 = vmatpush1.bf16.msra.mxu0 %v18338_v34  ;;  %v18395_v34 = vld [vmem:[%s25290_s3 + $0x12a8] ss:$16 sps:$4 sm:$0xff]  }
 0x51c   :  { %9326 = vmatpush1.bf16.msra.mxu1 %v18341_v47  ;;  %9286 = vmatprep.subr.bf16.mxu0 %v18346_v23  ;;  %v18400_v47 = vld [vmem:[%s25290_s3 + $0x10cc] ss:$16 sps:$4 sm:$0xff]  }
 0x51d   :  { %9327 = vmatprep.subr.bf16.mxu1 %v18349_v29  ;;  %v18403_v29 = vld [vmem:[%s25290_s3 + $0x12cc] ss:$16 sps:$4 sm:$0xff]  }
 0x51f   :  { %9287 = vmatpush1.bf16.msra.mxu0 %v18344_v10 }
 0x520   :  { %9328 = vmatpush1.bf16.msra.mxu1 %v18347_v15  ;;  %9288 = vmatprep.subr.bf16.mxu0 %v18352_v28 }
 0x521   :  { %9329 = vmatprep.subr.bf16.mxu1 %v18355_v61 }
 0x523   :  { %9289 = vmatpush1.bf16.msra.mxu0 %v18350_v3 }
 0x524   :  { %9330 = vmatpush1.bf16.msra.mxu1 %v18353_v16  ;;  %9290 = vmatprep.subr.bf16.mxu0 %v18358_v33  ;;  %v18398_v16 = vld [vmem:[%s25290_s3 + $0x10c8] ss:$16 sps:$4 sm:$0xff]  }
 0x525   :  { %9331 = vmatprep.subr.bf16.mxu1 %v18361_v35 }
 0x527   :  { %9291 = vmatpush1.bf16.msra.mxu0 %v18356_v13 }
 0x528   :  { %9332 = vmatpush1.bf16.msra.mxu1 %v18359_v36  ;;  %9342 = vmatprep.subr.bf16.mxu0 %v18364_v56  ;;  %v18401_v36 = vld [vmem:[%s25290_s3 + $0x12c8] ss:$16 sps:$4 sm:$0xff]   ;;  %v18406_v56 = vld [vmem:[%s25290_s3 + $0x10ec] ss:$16 sps:$4 sm:$0xff]  }
 0x529   :  { %9383 = vmatprep.subr.bf16.mxu1 %v18367_v19 }
 0x52a   :  { %9293 = vmatmul.mubr.bf16.vlgmr.msra.gmra.mrb[40].mxu0 %v23172_v11 }
 0x52b   :  { %9334 = vmatmul.mubr.bf16.vlgmr.msra.gmra.mrb[40].mxu1 %v23179_v20  ;;  %9343 = vmatpush1.bf16.msra.mxu0 %v18362_v6 }
 0x52c   :  { %9374 = vmatprep.mubr.bf16.mxu0 %v22969_v46  ;;  %9384 = vmatpush1.bf16.msra.mxu1 %v18365_v37  ;;  %v18374_v46 = vld [vmem:[%s25290_s3 + $0x1048] ss:$16 sps:$4 sm:$0xff]   ;;  %v18409_v37 = vld [vmem:[%s25290_s3 + $0x12ec] ss:$16 sps:$4 sm:$0xff]  }
 0x52d   :  { %9415 = vmatprep.mubr.bf16.mxu1 %v22977_v55  ;;  %9344 = vmatprep.subr.bf16.mxu0 %v18370_v18  ;;  %v18382_v55 = vld [vmem:[%s25290_s3 + $0x106c] ss:$16 sps:$4 sm:$0xff]  }
 0x52e   :  { %9385 = vmatprep.subr.bf16.mxu1 %v18373_v32  ;;  %v18404_v32 = vld [vmem:[%s25290_s3 + $0x10e8] ss:$16 sps:$4 sm:$0xff]  }
 0x52f   :  { %9345 = vmatpush1.bf16.msra.mxu0 %v18368_v0  ;;  %v18412_v0 = vld [vmem:[%s25290_s3 + $0x110c] ss:$16 sps:$4 sm:$0xff]  }
 0x530   :  { %9386 = vmatpush1.bf16.msra.mxu1 %v18371_v43  ;;  %9346 = vmatprep.subr.bf16.mxu0 %v18376_v2  ;;  %v18410_v43 = vld [vmem:[%s25290_s3 + $0x1108] ss:$16 sps:$4 sm:$0xff]  }
 0x531   :  { %9387 = vmatprep.subr.bf16.mxu1 %v18379_v38  ;;  %v18413_v2 = vld [vmem:[%s25290_s3 + $0x1308] ss:$16 sps:$4 sm:$0xff]   ;;  %v18418_v38 = vld [vmem:[%s25290_s3 + $0x112c] ss:$16 sps:$4 sm:$0xff]  }
 0x533   :  { %9347 = vmatpush1.bf16.msra.mxu0 %v18374_v46  ;;  %v18421_v46 = vld [vmem:[%s25290_s3 + $0x132c] ss:$16 sps:$4 sm:$0xff]  }
 0x534   :  { %9388 = vmatpush1.bf16.msra.mxu1 %v18377_v8  ;;  %9348 = vmatprep.subr.bf16.mxu0 %v18382_v55  ;;  %v18416_v8 = vld [vmem:[%s25290_s3 + $0x1128] ss:$16 sps:$4 sm:$0xff]  }
 0x535   :  { %9389 = vmatprep.subr.bf16.mxu1 %v18385_v14  ;;  %v18419_v55 = vld [vmem:[%s25290_s3 + $0x1328] ss:$16 sps:$4 sm:$0xff]   ;;  %v18424_v14 = vld [vmem:[%s25290_s3 + $0x114c] ss:$16 sps:$4 sm:$0xff]  }
 0x537   :  { %9349 = vmatpush1.bf16.msra.mxu0 %v18380_v25  ;;  %v18427_v25 = vld [vmem:[%s25290_s3 + $0x134c] ss:$16 sps:$4 sm:$0xff]  }
 0x538   :  { %9390 = vmatpush1.bf16.msra.mxu1 %v18383_v40  ;;  %9350 = vmatprep.subr.bf16.mxu0 %v18388_v42  ;;  %v18422_v40 = vld [vmem:[%s25290_s3 + $0x1148] ss:$16 sps:$4 sm:$0xff]  }
 0x539   :  { %9391 = vmatprep.subr.bf16.mxu1 %v18391_v63  ;;  %v18425_v42 = vld [vmem:[%s25290_s3 + $0x1348] ss:$16 sps:$4 sm:$0xff]   ;;  %v18430_v63 = vld [vmem:[%s25290_s3 + $0x116c] ss:$16 sps:$4 sm:$0xff]  }
 0x53b   :  { %9351 = vmatpush1.bf16.msra.mxu0 %v18386_v12  ;;  %v18433_v12 = vld [vmem:[%s25290_s3 + $0x136c] ss:$16 sps:$4 sm:$0xff]  }
 0x53c   :  { %9392 = vmatpush1.bf16.msra.mxu1 %v18389_v62  ;;  %9352 = vmatprep.subr.bf16.mxu0 %v18394_v57  ;;  %v18428_v62 = vld [vmem:[%s25290_s3 + $0x1168] ss:$16 sps:$4 sm:$0xff]  }
 0x53d   :  { %v7454_v23 = vpop.f32.mrb[28].mxu0  ;;  %9393 = vmatprep.subr.bf16.mxu1 %v18397_v31  ;;  %v18431_v57 = vld [vmem:[%s25290_s3 + $0x1368] ss:$16 sps:$4 sm:$0xff]   ;;  %v18436_v31 = vld [vmem:[%s25290_s3 + $0x118c] ss:$16 sps:$4 sm:$0xff]  }
 0x53e   :  { %v7495_v10 = vpop.f32.mrb[28].mxu1  ;;  %v7456_v15 = vpop.f32.mrb[29].mxu0 }
 0x53f   :  { %v7496_v28 = vadd.f32 %v7495_v10, %v7454_v23  ;;  %v7497_v61 = vpop.f32.mrb[29].mxu1  ;;  %v7458_v3 = vpop.f32.mrb[30].mxu0  ;;  %9353 = vmatpush1.bf16.msra.mxu0 %v18392_v60  ;;  %v18439_v60 = vld [vmem:[%s25290_s3 + $0x138c] ss:$16 sps:$4 sm:$0xff]   ;;  %v18440_v10 = vld [vmem:[%s25290_s3 + $0x11a8] ss:$16 sps:$4 sm:$0xff]  }
 0x540   :  { %v7498_v33 = vadd.f32 %v7497_v61, %v7456_v15  ;;  %v7499_v35 = vpop.f32.mrb[30].mxu1  ;;  %9394 = vmatpush1.bf16.msra.mxu1 %v18395_v34  ;;  %v7459_v13 = vpop.f32.mrb[31].mxu0  ;;  %9354 = vmatprep.subr.bf16.mxu0 %v18400_v47  ;;  %v18434_v34 = vld [vmem:[%s25290_s3 + $0x1188] ss:$16 sps:$4 sm:$0xff]   ;;  %v18442_v23 = vld [vmem:[%s25290_s3 + $0x11ac] ss:$16 sps:$4 sm:$0xff]  }
 0x541   :  { %v23261_v19 = vadd.f32 %v7496_v28, %v22836_v39  ;;  %v7500_v6 = vpop.f32.mrb[31].mxu1  ;;  %9395 = vmatprep.subr.bf16.mxu1 %v18403_v29  ;;  %v18407_v39 = vld [vmem:[%s25290_s3 + $0x12e8] ss:$16 sps:$4 sm:$0xff]   ;;  %v18445_v29 = vld [vmem:[%s25290_s3 + $0x13ac] ss:$16 sps:$4 sm:$0xff]  }
 0x542   :  { %v23267_v18 = vadd.f32 %v7498_v33, %v22844_v24  ;;  %v18415_v24 = vld [vmem:[%s25290_s3 + $0x130c] ss:$16 sps:$4 sm:$0xff]   ;;  %v18437_v47 = vld [vmem:[%s25290_s3 + $0x1388] ss:$16 sps:$4 sm:$0xff]   ;;  %v18463_v6 = vld [vmem:[%s25290_s3 + $0x1604] ss:$16 sps:$4 sm:$0xff]  }
 0x543   :  { %9355 = vmatpush1.bf16.msra.mxu0 %v18398_v16  ;;  %v18443_v15 = vld [vmem:[%s25290_s3 + $0x13a8] ss:$16 sps:$4 sm:$0xff]   ;;  %v18448_v28 = vld [vmem:[%s25290_s3 + $0x11cc] ss:$16 sps:$4 sm:$0xff]  }
 0x544   :  { %9396 = vmatpush1.bf16.msra.mxu1 %v18401_v36  ;;  %9356 = vmatprep.subr.bf16.mxu0 %v18406_v56  ;;  %v18451_v61 = vld [vmem:[%s25290_s3 + $0x13cc] ss:$16 sps:$4 sm:$0xff]   ;;  %v18446_v3 = vld [vmem:[%s25290_s3 + $0x11c8] ss:$16 sps:$4 sm:$0xff]   ;;  %v18460_v56 = vld [vmem:[%s25290_s3 + $0x1404] ss:$16 sps:$4 sm:$0xff]  }
 0x545   :  { %9397 = vmatprep.subr.bf16.mxu1 %v18409_v37  ;;  %v18449_v16 = vld [vmem:[%s25290_s3 + $0x13c8] ss:$16 sps:$4 sm:$0xff]   ;;  %v18454_v33 = vld [vmem:[%s25290_s3 + $0x11ec] ss:$16 sps:$4 sm:$0xff]   ;;  %v18458_v37 = vld [vmem:[%s25290_s3 + $0x1400] ss:$16 sps:$4 sm:$0xff]  }
 0x546   :  { %v18457_v35 = vld [vmem:[%s25290_s3 + $0x13ec] ss:$16 sps:$4 sm:$0xff]   ;;  %v18452_v13 = vld [vmem:[%s25290_s3 + $0x11e8] ss:$16 sps:$4 sm:$0xff]  }
 0x547   :  { %9357 = vmatpush1.bf16.msra.mxu0 %v18404_v32  ;;  %v18455_v36 = vld [vmem:[%s25290_s3 + $0x13e8] ss:$16 sps:$4 sm:$0xff]   ;;  %v18461_v32 = vld [vmem:[%s25290_s3 + $0x1600] ss:$16 sps:$4 sm:$0xff]  }
 0x548   :  { %9398 = vmatpush1.bf16.msra.mxu1 %v18407_v39  ;;  %9358 = vmatprep.subr.bf16.mxu0 %v18412_v0  ;;  %v18466_v39 = vld [vmem:[%s25290_s3 + $0x1424] ss:$16 sps:$4 sm:$0xff]   ;;  %v23389_v0 = vpack.c.bf16 %v21527_v45, %v21527_v45  ;;  %v18467_v45 = vld [vmem:[%s25290_s3 + $0x1620] ss:$16 sps:$4 sm:$0xff]  }
 0x549   :  { %9399 = vmatprep.subr.bf16.mxu1 %v18415_v24  ;;  %v18469_v24 = vld [vmem:[%s25290_s3 + $0x1624] ss:$16 sps:$4 sm:$0xff]  }
 0x54b   :  { %9359 = vmatpush1.bf16.msra.mxu0 %v18410_v43  ;;  %v23397_v43 = vpack.c.bf16 %v21539_v4, %v21539_v4  ;;  %v18475_v4 = vld [vmem:[%s25290_s3 + $0x1644] ss:$16 sps:$4 sm:$0xff]  }
 0x54c   :  { %9400 = vmatpush1.bf16.msra.mxu1 %v18413_v2  ;;  %9360 = vmatprep.subr.bf16.mxu0 %v18418_v38  ;;  %v18464_v2 = vld [vmem:[%s25290_s3 + $0x1420] ss:$16 sps:$4 sm:$0xff]  }
 0x54d   :  { %9401 = vmatprep.subr.bf16.mxu1 %v18421_v46  ;;  %v18473_v38 = vld [vmem:[%s25290_s3 + $0x1640] ss:$16 sps:$4 sm:$0xff]   ;;  %v18478_v46 = vld [vmem:[%s25290_s3 + $0x1464] ss:$16 sps:$4 sm:$0xff]  }
 0x54f   :  { %9361 = vmatpush1.bf16.msra.mxu0 %v18416_v8  ;;  %v18481_v8 = vld [vmem:[%s25290_s3 + $0x1664] ss:$16 sps:$4 sm:$0xff]  }
 0x550   :  { %9402 = vmatpush1.bf16.msra.mxu1 %v18419_v55  ;;  %9362 = vmatprep.subr.bf16.mxu0 %v18424_v14  ;;  %v18476_v55 = vld [vmem:[%s25290_s3 + $0x1460] ss:$16 sps:$4 sm:$0xff]  }
 0x551   :  { %9403 = vmatprep.subr.bf16.mxu1 %v18427_v25  ;;  %v18479_v14 = vld [vmem:[%s25290_s3 + $0x1660] ss:$16 sps:$4 sm:$0xff]   ;;  %v18484_v25 = vld [vmem:[%s25290_s3 + $0x1484] ss:$16 sps:$4 sm:$0xff]  }
 0x553   :  { %9363 = vmatpush1.bf16.msra.mxu0 %v18422_v40  ;;  %v18487_v40 = vld [vmem:[%s25290_s3 + $0x1684] ss:$16 sps:$4 sm:$0xff]  }
 0x554   :  { %9404 = vmatpush1.bf16.msra.mxu1 %v18425_v42  ;;  %9364 = vmatprep.subr.bf16.mxu0 %v18430_v63  ;;  %v18482_v42 = vld [vmem:[%s25290_s3 + $0x1480] ss:$16 sps:$4 sm:$0xff]  }
 0x555   :  { %9405 = vmatprep.subr.bf16.mxu1 %v18433_v12  ;;  %v18485_v63 = vld [vmem:[%s25290_s3 + $0x1680] ss:$16 sps:$4 sm:$0xff]   ;;  %v18490_v12 = vld [vmem:[%s25290_s3 + $0x14a4] ss:$16 sps:$4 sm:$0xff]  }
 0x557   :  { %9365 = vmatpush1.bf16.msra.mxu0 %v18428_v62  ;;  %v18493_v62 = vld [vmem:[%s25290_s3 + $0x16a4] ss:$16 sps:$4 sm:$0xff]  }
 0x558   :  { %9406 = vmatpush1.bf16.msra.mxu1 %v18431_v57  ;;  %9366 = vmatprep.subr.bf16.mxu0 %v18436_v31  ;;  %v18488_v57 = vld [vmem:[%s25290_s3 + $0x14a0] ss:$16 sps:$4 sm:$0xff]  }
 0x559   :  { %9407 = vmatprep.subr.bf16.mxu1 %v18439_v60  ;;  %v18491_v31 = vld [vmem:[%s25290_s3 + $0x16a0] ss:$16 sps:$4 sm:$0xff]   ;;  %v18496_v60 = vld [vmem:[%s25290_s3 + $0x14c4] ss:$16 sps:$4 sm:$0xff]  }
 0x55b   :  { %9367 = vmatpush1.bf16.msra.mxu0 %v18434_v34 }
 0x55c   :  { %9408 = vmatpush1.bf16.msra.mxu1 %v18437_v47  ;;  %9368 = vmatprep.subr.bf16.mxu0 %v18442_v23  ;;  %v18499_v47 = vld [vmem:[%s25290_s3 + $0x16c4] ss:$16 sps:$4 sm:$0xff]  }
 0x55d   :  { %9409 = vmatprep.subr.bf16.mxu1 %v18445_v29 }
 0x55f   :  { %9369 = vmatpush1.bf16.msra.mxu0 %v18440_v10 }
 0x560   :  { %9410 = vmatpush1.bf16.msra.mxu1 %v18443_v15  ;;  %9370 = vmatprep.subr.bf16.mxu0 %v18448_v28 }
 0x561   :  { %9411 = vmatprep.subr.bf16.mxu1 %v18451_v61  ;;  %v18494_v61 = vld [vmem:[%s25290_s3 + $0x14c0] ss:$16 sps:$4 sm:$0xff]  }
 0x563   :  { %9371 = vmatpush1.bf16.msra.mxu0 %v18446_v3 }
 0x564   :  { %9412 = vmatpush1.bf16.msra.mxu1 %v18449_v16  ;;  %9372 = vmatprep.subr.bf16.mxu0 %v18454_v33 }
 0x565   :  { %9413 = vmatprep.subr.bf16.mxu1 %v18457_v35  ;;  %v18497_v35 = vld [vmem:[%s25290_s3 + $0x16c0] ss:$16 sps:$4 sm:$0xff]  }
 0x567   :  { %9373 = vmatpush1.bf16.msra.mxu0 %v18452_v13  ;;  %v18502_v13 = vld [vmem:[%s25290_s3 + $0x14e4] ss:$16 sps:$4 sm:$0xff]  }
 0x568   :  { %9414 = vmatpush1.bf16.msra.mxu1 %v18455_v36  ;;  %10221 = vmatprep.subr.bf16.mxu0 %v18460_v56 }
 0x569   :  { %10262 = vmatprep.subr.bf16.mxu1 %v18463_v6  ;;  %v18505_v6 = vld [vmem:[%s25290_s3 + $0x16e4] ss:$16 sps:$4 sm:$0xff]  }
 0x56a   :  { %9375 = vmatmul.mubr.bf16.vlgmr.msra.gmra.mrb[44].mxu0 %v23172_v11  ;;  %v18472_v11 = vld [vmem:[%s25290_s3 + $0x1444] ss:$16 sps:$4 sm:$0xff]  }
 0x56b   :  { %9416 = vmatmul.mubr.bf16.vlgmr.msra.gmra.mrb[44].mxu1 %v23179_v20  ;;  %10222 = vmatpush1.bf16.msra.mxu0 %v18458_v37  ;;  %v18470_v20 = vld [vmem:[%s25290_s3 + $0x1440] ss:$16 sps:$4 sm:$0xff]  }
 0x56c   :  { %10253 = vmatprep.mubr.bf16.mxu0 %v23389_v0  ;;  %10263 = vmatpush1.bf16.msra.mxu1 %v18461_v32  ;;  %v18500_v32 = vld [vmem:[%s25290_s3 + $0x14e0] ss:$16 sps:$4 sm:$0xff]  }
 0x56d   :  { %10294 = vmatprep.mubr.bf16.mxu1 %v23397_v43  ;;  %10223 = vmatprep.subr.bf16.mxu0 %v18466_v39  ;;  %v18508_v39 = vld [vmem:[%s25290_s3 + $0x1504] ss:$16 sps:$4 sm:$0xff]  }
 0x56e   :  { %10264 = vmatprep.subr.bf16.mxu1 %v18469_v24  ;;  %v18506_v24 = vld [vmem:[%s25290_s3 + $0x1500] ss:$16 sps:$4 sm:$0xff]  }
 0x56f   :  { %10224 = vmatpush1.bf16.msra.mxu0 %v18464_v2  ;;  %v18509_v2 = vld [vmem:[%s25290_s3 + $0x1700] ss:$16 sps:$4 sm:$0xff]  }
 0x570   :  { %10265 = vmatpush1.bf16.msra.mxu1 %v18467_v45  ;;  %10225 = vmatprep.subr.bf16.mxu0 %v18472_v11  ;;  %v18514_v45 = vld [vmem:[%s25290_s3 + $0x1524] ss:$16 sps:$4 sm:$0xff]  }
 0x571   :  { %10266 = vmatprep.subr.bf16.mxu1 %v18475_v4  ;;  %v18517_v11 = vld [vmem:[%s25290_s3 + $0x1724] ss:$16 sps:$4 sm:$0xff]   ;;  %v18512_v4 = vld [vmem:[%s25290_s3 + $0x1520] ss:$16 sps:$4 sm:$0xff]  }
 0x573   :  { %10226 = vmatpush1.bf16.msra.mxu0 %v18470_v20  ;;  %v18515_v20 = vld [vmem:[%s25290_s3 + $0x1720] ss:$16 sps:$4 sm:$0xff]  }
 0x574   :  { %10267 = vmatpush1.bf16.msra.mxu1 %v18473_v38  ;;  %10227 = vmatprep.subr.bf16.mxu0 %v18478_v46  ;;  %v18520_v38 = vld [vmem:[%s25290_s3 + $0x1544] ss:$16 sps:$4 sm:$0xff]  }
 0x575   :  { %10268 = vmatprep.subr.bf16.mxu1 %v18481_v8  ;;  %v18523_v46 = vld [vmem:[%s25290_s3 + $0x1744] ss:$16 sps:$4 sm:$0xff]   ;;  %v18518_v8 = vld [vmem:[%s25290_s3 + $0x1540] ss:$16 sps:$4 sm:$0xff]  }
 0x577   :  { %10228 = vmatpush1.bf16.msra.mxu0 %v18476_v55  ;;  %v18521_v55 = vld [vmem:[%s25290_s3 + $0x1740] ss:$16 sps:$4 sm:$0xff]  }
 0x578   :  { %10269 = vmatpush1.bf16.msra.mxu1 %v18479_v14  ;;  %10229 = vmatprep.subr.bf16.mxu0 %v18484_v25  ;;  %v18526_v14 = vld [vmem:[%s25290_s3 + $0x1564] ss:$16 sps:$4 sm:$0xff]  }
 0x579   :  { %10270 = vmatprep.subr.bf16.mxu1 %v18487_v40  ;;  %v18529_v25 = vld [vmem:[%s25290_s3 + $0x1764] ss:$16 sps:$4 sm:$0xff]   ;;  %v18524_v40 = vld [vmem:[%s25290_s3 + $0x1560] ss:$16 sps:$4 sm:$0xff]  }
 0x57b   :  { %10230 = vmatpush1.bf16.msra.mxu0 %v18482_v42  ;;  %v18527_v42 = vld [vmem:[%s25290_s3 + $0x1760] ss:$16 sps:$4 sm:$0xff]  }
 0x57c   :  { %10271 = vmatpush1.bf16.msra.mxu1 %v18485_v63  ;;  %10231 = vmatprep.subr.bf16.mxu0 %v18490_v12  ;;  %v18532_v63 = vld [vmem:[%s25290_s3 + $0x1584] ss:$16 sps:$4 sm:$0xff]  }
 0x57d   :  { %v8333_v34 = vpop.f32.mrb[32].mxu0  ;;  %10272 = vmatprep.subr.bf16.mxu1 %v18493_v62  ;;  %v18535_v12 = vld [vmem:[%s25290_s3 + $0x1784] ss:$16 sps:$4 sm:$0xff]   ;;  %v18530_v62 = vld [vmem:[%s25290_s3 + $0x1580] ss:$16 sps:$4 sm:$0xff]  }
 0x57e   :  { %v8374_v23 = vpop.f32.mrb[32].mxu1  ;;  %v8335_v29 = vpop.f32.mrb[33].mxu0 }
 0x57f   :  { %v8375_v10 = vadd.f32 %v8374_v23, %v8333_v34  ;;  %v8376_v15 = vpop.f32.mrb[33].mxu1  ;;  %v8337_v28 = vpop.f32.mrb[34].mxu0  ;;  %10232 = vmatpush1.bf16.msra.mxu0 %v18488_v57  ;;  %v18533_v57 = vld [vmem:[%s25290_s3 + $0x1780] ss:$16 sps:$4 sm:$0xff]   ;;  %v18544_v23 = vld [vmem:[%s25290_s3 + $0x15c4] ss:$16 sps:$4 sm:$0xff]  }
 0x580   :  { %v8377_v3 = vadd.f32 %v8376_v15, %v8335_v29  ;;  %v8378_v16 = vpop.f32.mrb[34].mxu1  ;;  %10273 = vmatpush1.bf16.msra.mxu1 %v18491_v31  ;;  %v8338_v33 = vpop.f32.mrb[35].mxu0  ;;  %10233 = vmatprep.subr.bf16.mxu0 %v18496_v60  ;;  %v18538_v31 = vld [vmem:[%s25290_s3 + $0x15a4] ss:$16 sps:$4 sm:$0xff]   ;;  %v18536_v34 = vld [vmem:[%s25290_s3 + $0x15a0] ss:$16 sps:$4 sm:$0xff]  }
 0x581   :  { %v23471_v36 = vadd.f32 %v8375_v10, %v23051_v30  ;;  %v8379_v56 = vpop.f32.mrb[35].mxu1  ;;  %10274 = vmatprep.subr.bf16.mxu1 %v18499_v47  ;;  %v18503_v30 = vld [vmem:[%s25290_s3 + $0x16e0] ss:$16 sps:$4 sm:$0xff]   ;;  %v18541_v60 = vld [vmem:[%s25290_s3 + $0x17a4] ss:$16 sps:$4 sm:$0xff]  }
 0x582   :  { %v23477_v37 = vadd.f32 %v8377_v3, %v23057_v1  ;;  %v18511_v1 = vld [vmem:[%s25290_s3 + $0x1704] ss:$16 sps:$4 sm:$0xff]   ;;  %v18539_v47 = vld [vmem:[%s25290_s3 + $0x17a0] ss:$16 sps:$4 sm:$0xff]   ;;  %v18556_v33 = vld [vmem:[%s25290_s3 + $0x140c] ss:$16 sps:$4 sm:$0xff]   ;;  %v23592_v56 = vpack.c.bf16 %v21551_v17, %v21551_v17 }
 0x583   :  { %10234 = vmatpush1.bf16.msra.mxu0 %v18494_v61  ;;  %v18547_v29 = vld [vmem:[%s25290_s3 + $0x17c4] ss:$16 sps:$4 sm:$0xff]   ;;  %v18542_v10 = vld [vmem:[%s25290_s3 + $0x15c0] ss:$16 sps:$4 sm:$0xff]   ;;  %v18565_v17 = vld [vmem:[%s25290_s3 + $0x162c] ss:$16 sps:$4 sm:$0xff]  }
 0x584   :  { %10275 = vmatpush1.bf16.msra.mxu1 %v18497_v35  ;;  %10235 = vmatprep.subr.bf16.mxu0 %v18502_v13  ;;  %v18545_v15 = vld [vmem:[%s25290_s3 + $0x17c0] ss:$16 sps:$4 sm:$0xff]   ;;  %v18550_v28 = vld [vmem:[%s25290_s3 + $0x15e4] ss:$16 sps:$4 sm:$0xff]   ;;  %v18559_v35 = vld [vmem:[%s25290_s3 + $0x160c] ss:$16 sps:$4 sm:$0xff]  }
 0x585   :  { %10276 = vmatprep.subr.bf16.mxu1 %v18505_v6  ;;  %v18553_v61 = vld [vmem:[%s25290_s3 + $0x17e4] ss:$16 sps:$4 sm:$0xff]   ;;  %v18548_v3 = vld [vmem:[%s25290_s3 + $0x15e0] ss:$16 sps:$4 sm:$0xff]   ;;  %v18554_v13 = vld [vmem:[%s25290_s3 + $0x1408] ss:$16 sps:$4 sm:$0xff]  }
 0x586   :  { %v18551_v16 = vld [vmem:[%s25290_s3 + $0x17e0] ss:$16 sps:$4 sm:$0xff]   ;;  %v18557_v6 = vld [vmem:[%s25290_s3 + $0x1608] ss:$16 sps:$4 sm:$0xff]  }
 0x587   :  { %10236 = vmatpush1.bf16.msra.mxu0 %v18500_v32  ;;  %v23599_v32 = vpack.c.bf16 %v21554_v21, %v21554_v21  ;;  %v18563_v21 = vld [vmem:[%s25290_s3 + $0x1628] ss:$16 sps:$4 sm:$0xff]  }
 0x588   :  { %10277 = vmatpush1.bf16.msra.mxu1 %v18503_v30  ;;  %10237 = vmatprep.subr.bf16.mxu0 %v18508_v39  ;;  %v18562_v30 = vld [vmem:[%s25290_s3 + $0x142c] ss:$16 sps:$4 sm:$0xff]   ;;  %v18560_v39 = vld [vmem:[%s25290_s3 + $0x1428] ss:$16 sps:$4 sm:$0xff]  }
 0x589   :  { %10278 = vmatprep.subr.bf16.mxu1 %v18511_v1  ;;  %v18568_v1 = vld [vmem:[%s25290_s3 + $0x144c] ss:$16 sps:$4 sm:$0xff]  }
 0x58b   :  { %10238 = vmatpush1.bf16.msra.mxu0 %v18506_v24  ;;  %v18571_v24 = vld [vmem:[%s25290_s3 + $0x164c] ss:$16 sps:$4 sm:$0xff]  }
 0x58c   :  { %10279 = vmatpush1.bf16.msra.mxu1 %v18509_v2  ;;  %10239 = vmatprep.subr.bf16.mxu0 %v18514_v45  ;;  %v18569_v2 = vld [vmem:[%s25290_s3 + $0x1648] ss:$16 sps:$4 sm:$0xff]   ;;  %v18577_v45 = vld [vmem:[%s25290_s3 + $0x166c] ss:$16 sps:$4 sm:$0xff]  }
 0x58d   :  { %10280 = vmatprep.subr.bf16.mxu1 %v18517_v11  ;;  %v18572_v11 = vld [vmem:[%s25290_s3 + $0x1468] ss:$16 sps:$4 sm:$0xff]  }
 0x58f   :  { %10240 = vmatpush1.bf16.msra.mxu0 %v18512_v4  ;;  %v18575_v4 = vld [vmem:[%s25290_s3 + $0x1668] ss:$16 sps:$4 sm:$0xff]  }
 0x590   :  { %10281 = vmatpush1.bf16.msra.mxu1 %v18515_v20  ;;  %10241 = vmatprep.subr.bf16.mxu0 %v18520_v38  ;;  %v18580_v20 = vld [vmem:[%s25290_s3 + $0x148c] ss:$16 sps:$4 sm:$0xff]  }
 0x591   :  { %10282 = vmatprep.subr.bf16.mxu1 %v18523_v46  ;;  %v18583_v38 = vld [vmem:[%s25290_s3 + $0x168c] ss:$16 sps:$4 sm:$0xff]   ;;  %v18578_v46 = vld [vmem:[%s25290_s3 + $0x1488] ss:$16 sps:$4 sm:$0xff]  }
 0x593   :  { %10242 = vmatpush1.bf16.msra.mxu0 %v18518_v8  ;;  %v18581_v8 = vld [vmem:[%s25290_s3 + $0x1688] ss:$16 sps:$4 sm:$0xff]  }
 0x594   :  { %10283 = vmatpush1.bf16.msra.mxu1 %v18521_v55  ;;  %10243 = vmatprep.subr.bf16.mxu0 %v18526_v14  ;;  %v18586_v55 = vld [vmem:[%s25290_s3 + $0x14ac] ss:$16 sps:$4 sm:$0xff]  }
 0x595   :  { %10284 = vmatprep.subr.bf16.mxu1 %v18529_v25  ;;  %v18589_v14 = vld [vmem:[%s25290_s3 + $0x16ac] ss:$16 sps:$4 sm:$0xff]   ;;  %v18584_v25 = vld [vmem:[%s25290_s3 + $0x14a8] ss:$16 sps:$4 sm:$0xff]  }
 0x597   :  { %10244 = vmatpush1.bf16.msra.mxu0 %v18524_v40  ;;  %v18587_v40 = vld [vmem:[%s25290_s3 + $0x16a8] ss:$16 sps:$4 sm:$0xff]  }
 0x598   :  { %10285 = vmatpush1.bf16.msra.mxu1 %v18527_v42  ;;  %10245 = vmatprep.subr.bf16.mxu0 %v18532_v63  ;;  %v18592_v42 = vld [vmem:[%s25290_s3 + $0x14cc] ss:$16 sps:$4 sm:$0xff]  }
 0x599   :  { %10286 = vmatprep.subr.bf16.mxu1 %v18535_v12  ;;  %v18595_v12 = vld [vmem:[%s25290_s3 + $0x16cc] ss:$16 sps:$4 sm:$0xff]  }
 0x59b   :  { %10246 = vmatpush1.bf16.msra.mxu0 %v18530_v62 }
 0x59c   :  { %10287 = vmatpush1.bf16.msra.mxu1 %v18533_v57  ;;  %10247 = vmatprep.subr.bf16.mxu0 %v18538_v31 }
 0x59d   :  { %10288 = vmatprep.subr.bf16.mxu1 %v18541_v60 }
 0x59f   :  { %10248 = vmatpush1.bf16.msra.mxu0 %v18536_v34 }
 0x5a0   :  { %10289 = vmatpush1.bf16.msra.mxu1 %v18539_v47  ;;  %10249 = vmatprep.subr.bf16.mxu0 %v18544_v23  ;;  %v18590_v47 = vld [vmem:[%s25290_s3 + $0x14c8] ss:$16 sps:$4 sm:$0xff]  }
 0x5a1   :  { %10290 = vmatprep.subr.bf16.mxu1 %v18547_v29 }
 0x5a3   :  { %10250 = vmatpush1.bf16.msra.mxu0 %v18542_v10 }
 0x5a4   :  { %10291 = vmatpush1.bf16.msra.mxu1 %v18545_v15  ;;  %10251 = vmatprep.subr.bf16.mxu0 %v18550_v28  ;;  %v18593_v15 = vld [vmem:[%s25290_s3 + $0x16c8] ss:$16 sps:$4 sm:$0xff]   ;;  %v18598_v28 = vld [vmem:[%s25290_s3 + $0x14ec] ss:$16 sps:$4 sm:$0xff]  }
 0x5a5   :  { %10292 = vmatprep.subr.bf16.mxu1 %v18553_v61 }
 0x5a7   :  { %10252 = vmatpush1.bf16.msra.mxu0 %v18548_v3 }
 0x5a8   :  { %10293 = vmatpush1.bf16.msra.mxu1 %v18551_v16  ;;  %10303 = vmatprep.subr.bf16.mxu0 %v18556_v33  ;;  %v18601_v16 = vld [vmem:[%s25290_s3 + $0x16ec] ss:$16 sps:$4 sm:$0xff]  }
 0x5a9   :  { %10344 = vmatprep.subr.bf16.mxu1 %v18559_v35  ;;  %v18596_v35 = vld [vmem:[%s25290_s3 + $0x14e8] ss:$16 sps:$4 sm:$0xff]  }
 0x5aa   :  { %10254 = vmatmul.mubr.bf16.vlgmr.msra.gmra.mrb[48].mxu0 %v23592_v56 }
 0x5ab   :  { %10295 = vmatmul.mubr.bf16.vlgmr.msra.gmra.mrb[48].mxu1 %v23599_v32  ;;  %10304 = vmatpush1.bf16.msra.mxu0 %v18554_v13  ;;  %v18604_v13 = vld [vmem:[%s25290_s3 + $0x150c] ss:$16 sps:$4 sm:$0xff]  }
 0x5ac   :  { %10335 = vmatprep.mubr.bf16.mxu0 %v23389_v0  ;;  %10345 = vmatpush1.bf16.msra.mxu1 %v18557_v6  ;;  %v18566_v0 = vld [vmem:[%s25290_s3 + $0x1448] ss:$16 sps:$4 sm:$0xff]  }
 0x5ad   :  { %10376 = vmatprep.mubr.bf16.mxu1 %v23397_v43  ;;  %10305 = vmatprep.subr.bf16.mxu0 %v18562_v30  ;;  %v18574_v43 = vld [vmem:[%s25290_s3 + $0x146c] ss:$16 sps:$4 sm:$0xff]   ;;  %v18602_v6 = vld [vmem:[%s25290_s3 + $0x1508] ss:$16 sps:$4 sm:$0xff]  }
 0x5ae   :  { %10346 = vmatprep.subr.bf16.mxu1 %v18565_v17  ;;  %v18605_v30 = vld [vmem:[%s25290_s3 + $0x1708] ss:$16 sps:$4 sm:$0xff]   ;;  %v18610_v17 = vld [vmem:[%s25290_s3 + $0x152c] ss:$16 sps:$4 sm:$0xff]  }
 0x5af   :  { %10306 = vmatpush1.bf16.msra.mxu0 %v18560_v39  ;;  %v18613_v39 = vld [vmem:[%s25290_s3 + $0x172c] ss:$16 sps:$4 sm:$0xff]  }
 0x5b0   :  { %10347 = vmatpush1.bf16.msra.mxu1 %v18563_v21  ;;  %10307 = vmatprep.subr.bf16.mxu0 %v18568_v1  ;;  %v18608_v21 = vld [vmem:[%s25290_s3 + $0x1528] ss:$16 sps:$4 sm:$0xff]  }
 0x5b1   :  { %10348 = vmatprep.subr.bf16.mxu1 %v18571_v24  ;;  %v18611_v1 = vld [vmem:[%s25290_s3 + $0x1728] ss:$16 sps:$4 sm:$0xff]   ;;  %v18616_v24 = vld [vmem:[%s25290_s3 + $0x154c] ss:$16 sps:$4 sm:$0xff]  }
 0x5b3   :  { %10308 = vmatpush1.bf16.msra.mxu0 %v18566_v0  ;;  %v18619_v0 = vld [vmem:[%s25290_s3 + $0x174c] ss:$16 sps:$4 sm:$0xff]  }
 0x5b4   :  { %10349 = vmatpush1.bf16.msra.mxu1 %v18569_v2  ;;  %10309 = vmatprep.subr.bf16.mxu0 %v18574_v43  ;;  %v18614_v2 = vld [vmem:[%s25290_s3 + $0x1548] ss:$16 sps:$4 sm:$0xff]  }
 0x5b5   :  { %10350 = vmatprep.subr.bf16.mxu1 %v18577_v45  ;;  %v18617_v43 = vld [vmem:[%s25290_s3 + $0x1748] ss:$16 sps:$4 sm:$0xff]   ;;  %v18622_v45 = vld [vmem:[%s25290_s3 + $0x156c] ss:$16 sps:$4 sm:$0xff]  }
 0x5b7   :  { %10310 = vmatpush1.bf16.msra.mxu0 %v18572_v11  ;;  %v18625_v11 = vld [vmem:[%s25290_s3 + $0x176c] ss:$16 sps:$4 sm:$0xff]  }
 0x5b8   :  { %10351 = vmatpush1.bf16.msra.mxu1 %v18575_v4  ;;  %10311 = vmatprep.subr.bf16.mxu0 %v18580_v20  ;;  %v18620_v4 = vld [vmem:[%s25290_s3 + $0x1568] ss:$16 sps:$4 sm:$0xff]  }
 0x5b9   :  { %10352 = vmatprep.subr.bf16.mxu1 %v18583_v38  ;;  %v18623_v20 = vld [vmem:[%s25290_s3 + $0x1768] ss:$16 sps:$4 sm:$0xff]   ;;  %v18628_v38 = vld [vmem:[%s25290_s3 + $0x158c] ss:$16 sps:$4 sm:$0xff]  }
 0x5bb   :  { %10312 = vmatpush1.bf16.msra.mxu0 %v18578_v46  ;;  %v18631_v46 = vld [vmem:[%s25290_s3 + $0x178c] ss:$16 sps:$4 sm:$0xff]  }
 0x5bc   :  { %10353 = vmatpush1.bf16.msra.mxu1 %v18581_v8  ;;  %10313 = vmatprep.subr.bf16.mxu0 %v18586_v55  ;;  %v18626_v8 = vld [vmem:[%s25290_s3 + $0x1588] ss:$16 sps:$4 sm:$0xff]  }
 0x5bd   :  { %v8415_v63 = vpop.f32.mrb[36].mxu0  ;;  %10354 = vmatprep.subr.bf16.mxu1 %v18589_v14  ;;  %v18629_v55 = vld [vmem:[%s25290_s3 + $0x1788] ss:$16 sps:$4 sm:$0xff]   ;;  %v18634_v14 = vld [vmem:[%s25290_s3 + $0x15ac] ss:$16 sps:$4 sm:$0xff]  }
 0x5be   :  { %v8456_v62 = vpop.f32.mrb[36].mxu1  ;;  %v8417_v57 = vpop.f32.mrb[37].mxu0 }
 0x5bf   :  { %v8457_v31 = vadd.f32 %v8456_v62, %v8415_v63  ;;  %v8458_v60 = vpop.f32.mrb[37].mxu1  ;;  %v8419_v34 = vpop.f32.mrb[38].mxu0  ;;  %10314 = vmatpush1.bf16.msra.mxu0 %v18584_v25  ;;  %v18637_v25 = vld [vmem:[%s25290_s3 + $0x17ac] ss:$16 sps:$4 sm:$0xff]   ;;  %v18638_v62 = vld [vmem:[%s25290_s3 + $0x15c8] ss:$16 sps:$4 sm:$0xff]  }
 0x5c0   :  { %v8459_v23 = vadd.f32 %v8458_v60, %v8417_v57  ;;  %v8460_v29 = vpop.f32.mrb[38].mxu1  ;;  %10355 = vmatpush1.bf16.msra.mxu1 %v18587_v40  ;;  %v8420_v10 = vpop.f32.mrb[39].mxu0  ;;  %10315 = vmatprep.subr.bf16.mxu0 %v18592_v42  ;;  %v18632_v40 = vld [vmem:[%s25290_s3 + $0x15a8] ss:$16 sps:$4 sm:$0xff]   ;;  %v18640_v63 = vld [vmem:[%s25290_s3 + $0x15cc] ss:$16 sps:$4 sm:$0xff]  }
 0x5c1   :  { %v23681_v61 = vadd.f32 %v8457_v31, %v23261_v19  ;;  %v8461_v3 = vpop.f32.mrb[39].mxu1  ;;  %10356 = vmatprep.subr.bf16.mxu1 %v18595_v12  ;;  %v18599_v19 = vld [vmem:[%s25290_s3 + $0x16e8] ss:$16 sps:$4 sm:$0xff]   ;;  %v18643_v12 = vld [vmem:[%s25290_s3 + $0x17cc] ss:$16 sps:$4 sm:$0xff]  }
 0x5c2   :  { %v23687_v33 = vadd.f32 %v8459_v23, %v23267_v18  ;;  %v18607_v18 = vld [vmem:[%s25290_s3 + $0x170c] ss:$16 sps:$4 sm:$0xff]   ;;  %v18635_v42 = vld [vmem:[%s25290_s3 + $0x17a8] ss:$16 sps:$4 sm:$0xff]   ;;  %v18652_v23 = vld [vmem:[%s25290_s3 + $0x1804] ss:$16 sps:$4 sm:$0xff]   ;;  %v23809_v3 = vpack.c.bf16 %v21561_v22, %v21561_v22 }
 0x5c3   :  { %10316 = vmatpush1.bf16.msra.mxu0 %v18590_v47  ;;  %v18641_v57 = vld [vmem:[%s25290_s3 + $0x17c8] ss:$16 sps:$4 sm:$0xff]   ;;  %v18646_v31 = vld [vmem:[%s25290_s3 + $0x15ec] ss:$16 sps:$4 sm:$0xff]   ;;  %v18655_v29 = vld [vmem:[%s25290_s3 + $0x1a04] ss:$16 sps:$4 sm:$0xff]  }
 0x5c4   :  { %10357 = vmatpush1.bf16.msra.mxu1 %v18593_v15  ;;  %10317 = vmatprep.subr.bf16.mxu0 %v18598_v28  ;;  %v18649_v60 = vld [vmem:[%s25290_s3 + $0x17ec] ss:$16 sps:$4 sm:$0xff]   ;;  %v18644_v34 = vld [vmem:[%s25290_s3 + $0x15e8] ss:$16 sps:$4 sm:$0xff]   ;;  %v18650_v10 = vld [vmem:[%s25290_s3 + $0x1800] ss:$16 sps:$4 sm:$0xff]  }
 0x5c5   :  { %10358 = vmatprep.subr.bf16.mxu1 %v18601_v16  ;;  %v18647_v47 = vld [vmem:[%s25290_s3 + $0x17e8] ss:$16 sps:$4 sm:$0xff]   ;;  %v18653_v15 = vld [vmem:[%s25290_s3 + $0x1a00] ss:$16 sps:$4 sm:$0xff]   ;;  %v18658_v28 = vld [vmem:[%s25290_s3 + $0x1824] ss:$16 sps:$4 sm:$0xff]  }
 0x5c6   :  { %v18661_v16 = vld [vmem:[%s25290_s3 + $0x1a24] ss:$16 sps:$4 sm:$0xff]   ;;  %v18659_v22 = vld [vmem:[%s25290_s3 + $0x1a20] ss:$16 sps:$4 sm:$0xff]  }
 0x5c7   :  { %10318 = vmatpush1.bf16.msra.mxu0 %v18596_v35  ;;  %v23817_v35 = vpack.c.bf16 %v21569_v7, %v21569_v7  ;;  %v18667_v7 = vld [vmem:[%s25290_s3 + $0x1a44] ss:$16 sps:$4 sm:$0xff]  }
 0x5c8   :  { %10359 = vmatpush1.bf16.msra.mxu1 %v18599_v19  ;;  %10319 = vmatprep.subr.bf16.mxu0 %v18604_v13  ;;  %v18656_v19 = vld [vmem:[%s25290_s3 + $0x1820] ss:$16 sps:$4 sm:$0xff]  }
 0x5c9   :  { %10360 = vmatprep.subr.bf16.mxu1 %v18607_v18  ;;  %v18665_v13 = vld [vmem:[%s25290_s3 + $0x1a40] ss:$16 sps:$4 sm:$0xff]   ;;  %v18670_v18 = vld [vmem:[%s25290_s3 + $0x1864] ss:$16 sps:$4 sm:$0xff]  }
 0x5cb   :  { %10320 = vmatpush1.bf16.msra.mxu0 %v18602_v6  ;;  %v18673_v6 = vld [vmem:[%s25290_s3 + $0x1a64] ss:$16 sps:$4 sm:$0xff]  }
 0x5cc   :  { %10361 = vmatpush1.bf16.msra.mxu1 %v18605_v30  ;;  %10321 = vmatprep.subr.bf16.mxu0 %v18610_v17  ;;  %v18668_v30 = vld [vmem:[%s25290_s3 + $0x1860] ss:$16 sps:$4 sm:$0xff]  }
 0x5cd   :  { %10362 = vmatprep.subr.bf16.mxu1 %v18613_v39  ;;  %v18671_v17 = vld [vmem:[%s25290_s3 + $0x1a60] ss:$16 sps:$4 sm:$0xff]   ;;  %v18676_v39 = vld [vmem:[%s25290_s3 + $0x1884] ss:$16 sps:$4 sm:$0xff]  }
 0x5cf   :  { %10322 = vmatpush1.bf16.msra.mxu0 %v18608_v21  ;;  %v18679_v21 = vld [vmem:[%s25290_s3 + $0x1a84] ss:$16 sps:$4 sm:$0xff]  }
 0x5d0   :  { %10363 = vmatpush1.bf16.msra.mxu1 %v18611_v1  ;;  %10323 = vmatprep.subr.bf16.mxu0 %v18616_v24  ;;  %v18674_v1 = vld [vmem:[%s25290_s3 + $0x1880] ss:$16 sps:$4 sm:$0xff]  }
 0x5d1   :  { %10364 = vmatprep.subr.bf16.mxu1 %v18619_v0  ;;  %v18677_v24 = vld [vmem:[%s25290_s3 + $0x1a80] ss:$16 sps:$4 sm:$0xff]   ;;  %v18682_v0 = vld [vmem:[%s25290_s3 + $0x18a4] ss:$16 sps:$4 sm:$0xff]  }
 0x5d3   :  { %10324 = vmatpush1.bf16.msra.mxu0 %v18614_v2  ;;  %v18685_v2 = vld [vmem:[%s25290_s3 + $0x1aa4] ss:$16 sps:$4 sm:$0xff]  }
 0x5d4   :  { %10365 = vmatpush1.bf16.msra.mxu1 %v18617_v43  ;;  %10325 = vmatprep.subr.bf16.mxu0 %v18622_v45  ;;  %v18680_v43 = vld [vmem:[%s25290_s3 + $0x18a0] ss:$16 sps:$4 sm:$0xff]  }
 0x5d5   :  { %10366 = vmatprep.subr.bf16.mxu1 %v18625_v11  ;;  %v18683_v45 = vld [vmem:[%s25290_s3 + $0x1aa0] ss:$16 sps:$4 sm:$0xff]   ;;  %v18688_v11 = vld [vmem:[%s25290_s3 + $0x18c4] ss:$16 sps:$4 sm:$0xff]  }
 0x5d7   :  { %10326 = vmatpush1.bf16.msra.mxu0 %v18620_v4 }
 0x5d8   :  { %10367 = vmatpush1.bf16.msra.mxu1 %v18623_v20  ;;  %10327 = vmatprep.subr.bf16.mxu0 %v18628_v38  ;;  %v18691_v20 = vld [vmem:[%s25290_s3 + $0x1ac4] ss:$16 sps:$4 sm:$0xff]  }
 0x5d9   :  { %10368 = vmatprep.subr.bf16.mxu1 %v18631_v46 }
 0x5db   :  { %10328 = vmatpush1.bf16.msra.mxu0 %v18626_v8 }
 0x5dc   :  { %10369 = vmatpush1.bf16.msra.mxu1 %v18629_v55  ;;  %10329 = vmatprep.subr.bf16.mxu0 %v18634_v14 }
 0x5dd   :  { %10370 = vmatprep.subr.bf16.mxu1 %v18637_v25  ;;  %v18686_v25 = vld [vmem:[%s25290_s3 + $0x18c0] ss:$16 sps:$4 sm:$0xff]  }
 0x5df   :  { %10330 = vmatpush1.bf16.msra.mxu0 %v18632_v40 }
 0x5e0   :  { %10371 = vmatpush1.bf16.msra.mxu1 %v18635_v42  ;;  %10331 = vmatprep.subr.bf16.mxu0 %v18640_v63 }
 0x5e1   :  { %10372 = vmatprep.subr.bf16.mxu1 %v18643_v12  ;;  %v18689_v12 = vld [vmem:[%s25290_s3 + $0x1ac0] ss:$16 sps:$4 sm:$0xff]  }
 0x5e3   :  { %10332 = vmatpush1.bf16.msra.mxu0 %v18638_v62  ;;  %v18694_v62 = vld [vmem:[%s25290_s3 + $0x18e4] ss:$16 sps:$4 sm:$0xff]  }
 0x5e4   :  { %10373 = vmatpush1.bf16.msra.mxu1 %v18641_v57  ;;  %10333 = vmatprep.subr.bf16.mxu0 %v18646_v31 }
 0x5e5   :  { %10374 = vmatprep.subr.bf16.mxu1 %v18649_v60  ;;  %v18697_v60 = vld [vmem:[%s25290_s3 + $0x1ae4] ss:$16 sps:$4 sm:$0xff]  }
 0x5e7   :  { %10334 = vmatpush1.bf16.msra.mxu0 %v18644_v34 }
 0x5e8   :  { %10375 = vmatpush1.bf16.msra.mxu1 %v18647_v47  ;;  %11182 = vmatprep.subr.bf16.mxu0 %v18652_v23  ;;  %v18692_v47 = vld [vmem:[%s25290_s3 + $0x18e0] ss:$16 sps:$4 sm:$0xff]   ;;  %v18700_v23 = vld [vmem:[%s25290_s3 + $0x1904] ss:$16 sps:$4 sm:$0xff]  }
 0x5e9   :  { %11223 = vmatprep.subr.bf16.mxu1 %v18655_v29  ;;  %v18698_v29 = vld [vmem:[%s25290_s3 + $0x1900] ss:$16 sps:$4 sm:$0xff]  }
 0x5ea   :  { %10336 = vmatmul.mubr.bf16.vlgmr.msra.gmra.mrb[52].mxu0 %v23592_v56  ;;  %v18664_v56 = vld [vmem:[%s25290_s3 + $0x1844] ss:$16 sps:$4 sm:$0xff]  }
 0x5eb   :  { %10377 = vmatmul.mubr.bf16.vlgmr.msra.gmra.mrb[52].mxu1 %v23599_v32  ;;  %11183 = vmatpush1.bf16.msra.mxu0 %v18650_v10  ;;  %v18662_v32 = vld [vmem:[%s25290_s3 + $0x1840] ss:$16 sps:$4 sm:$0xff]  }
 0x5ec   :  { %11214 = vmatprep.mubr.bf16.mxu0 %v23809_v3  ;;  %11224 = vmatpush1.bf16.msra.mxu1 %v18653_v15  ;;  %v18701_v10 = vld [vmem:[%s25290_s3 + $0x1b00] ss:$16 sps:$4 sm:$0xff]   ;;  %v18706_v15 = vld [vmem:[%s25290_s3 + $0x1924] ss:$16 sps:$4 sm:$0xff]  }
 0x5ed   :  { %11255 = vmatprep.mubr.bf16.mxu1 %v23817_v35  ;;  %11184 = vmatprep.subr.bf16.mxu0 %v18658_v28  ;;  %v18709_v28 = vld [vmem:[%s25290_s3 + $0x1b24] ss:$16 sps:$4 sm:$0xff]  }
 0x5ee   :  { %11225 = vmatprep.subr.bf16.mxu1 %v18661_v16  ;;  %v18704_v16 = vld [vmem:[%s25290_s3 + $0x1920] ss:$16 sps:$4 sm:$0xff]  }
 0x5ef   :  { %11185 = vmatpush1.bf16.msra.mxu0 %v18656_v19  ;;  %v18707_v19 = vld [vmem:[%s25290_s3 + $0x1b20] ss:$16 sps:$4 sm:$0xff]  }
 0x5f0   :  { %11226 = vmatpush1.bf16.msra.mxu1 %v18659_v22  ;;  %11186 = vmatprep.subr.bf16.mxu0 %v18664_v56  ;;  %v18712_v22 = vld [vmem:[%s25290_s3 + $0x1944] ss:$16 sps:$4 sm:$0xff]  }
 0x5f1   :  { %11227 = vmatprep.subr.bf16.mxu1 %v18667_v7  ;;  %v18715_v56 = vld [vmem:[%s25290_s3 + $0x1b44] ss:$16 sps:$4 sm:$0xff]   ;;  %v18710_v7 = vld [vmem:[%s25290_s3 + $0x1940] ss:$16 sps:$4 sm:$0xff]  }
 0x5f3   :  { %11187 = vmatpush1.bf16.msra.mxu0 %v18662_v32  ;;  %v18713_v32 = vld [vmem:[%s25290_s3 + $0x1b40] ss:$16 sps:$4 sm:$0xff]  }
 0x5f4   :  { %11228 = vmatpush1.bf16.msra.mxu1 %v18665_v13  ;;  %11188 = vmatprep.subr.bf16.mxu0 %v18670_v18  ;;  %v18718_v13 = vld [vmem:[%s25290_s3 + $0x1964] ss:$16 sps:$4 sm:$0xff]  }
 0x5f5   :  { %11229 = vmatprep.subr.bf16.mxu1 %v18673_v6  ;;  %v18721_v18 = vld [vmem:[%s25290_s3 + $0x1b64] ss:$16 sps:$4 sm:$0xff]   ;;  %v18716_v6 = vld [vmem:[%s25290_s3 + $0x1960] ss:$16 sps:$4 sm:$0xff]  }
 0x5f7   :  { %11189 = vmatpush1.bf16.msra.mxu0 %v18668_v30  ;;  %v18719_v30 = vld [vmem:[%s25290_s3 + $0x1b60] ss:$16 sps:$4 sm:$0xff]  }
 0x5f8   :  { %11230 = vmatpush1.bf16.msra.mxu1 %v18671_v17  ;;  %11190 = vmatprep.subr.bf16.mxu0 %v18676_v39  ;;  %v18724_v17 = vld [vmem:[%s25290_s3 + $0x1984] ss:$16 sps:$4 sm:$0xff]  }
 0x5f9   :  { %11231 = vmatprep.subr.bf16.mxu1 %v18679_v21  ;;  %v18727_v39 = vld [vmem:[%s25290_s3 + $0x1b84] ss:$16 sps:$4 sm:$0xff]   ;;  %v18722_v21 = vld [vmem:[%s25290_s3 + $0x1980] ss:$16 sps:$4 sm:$0xff]  }
 0x5fb   :  { %11191 = vmatpush1.bf16.msra.mxu0 %v18674_v1  ;;  %v18725_v1 = vld [vmem:[%s25290_s3 + $0x1b80] ss:$16 sps:$4 sm:$0xff]  }
 0x5fc   :  { %11232 = vmatpush1.bf16.msra.mxu1 %v18677_v24  ;;  %11192 = vmatprep.subr.bf16.mxu0 %v18682_v0  ;;  %v18730_v24 = vld [vmem:[%s25290_s3 + $0x19a4] ss:$16 sps:$4 sm:$0xff]  }
 0x5fd   :  { %v9294_v4 = vpop.f32.mrb[40].mxu0  ;;  %11233 = vmatprep.subr.bf16.mxu1 %v18685_v2  ;;  %v18733_v0 = vld [vmem:[%s25290_s3 + $0x1ba4] ss:$16 sps:$4 sm:$0xff]   ;;  %v18728_v2 = vld [vmem:[%s25290_s3 + $0x19a0] ss:$16 sps:$4 sm:$0xff]  }
 0x5fe   :  { %v9335_v38 = vpop.f32.mrb[40].mxu1  ;;  %v9296_v46 = vpop.f32.mrb[41].mxu0 }
 0x5ff   :  { %v9336_v8 = vadd.f32 %v9335_v38, %v9294_v4  ;;  %v9337_v55 = vpop.f32.mrb[41].mxu1  ;;  %v9298_v14 = vpop.f32.mrb[42].mxu0  ;;  %11193 = vmatpush1.bf16.msra.mxu0 %v18680_v43  ;;  %v18731_v43 = vld [vmem:[%s25290_s3 + $0x1ba0] ss:$16 sps:$4 sm:$0xff]   ;;  %v18742_v38 = vld [vmem:[%s25290_s3 + $0x19e4] ss:$16 sps:$4 sm:$0xff]  }
 0x600   :  { %v9338_v40 = vadd.f32 %v9337_v55, %v9296_v46  ;;  %v9339_v42 = vpop.f32.mrb[42].mxu1  ;;  %11234 = vmatpush1.bf16.msra.mxu1 %v18683_v45  ;;  %v9299_v63 = vpop.f32.mrb[43].mxu0  ;;  %11194 = vmatprep.subr.bf16.mxu0 %v18688_v11  ;;  %v18736_v45 = vld [vmem:[%s25290_s3 + $0x19c4] ss:$16 sps:$4 sm:$0xff]   ;;  %v18734_v4 = vld [vmem:[%s25290_s3 + $0x19c0] ss:$16 sps:$4 sm:$0xff]  }
 0x601   :  { %v23891_v57 = vadd.f32 %v9336_v8, %v23471_v36  ;;  %v9340_v31 = vpop.f32.mrb[43].mxu1  ;;  %11235 = vmatprep.subr.bf16.mxu1 %v18691_v20  ;;  %v18695_v36 = vld [vmem:[%s25290_s3 + $0x1ae0] ss:$16 sps:$4 sm:$0xff]   ;;  %v18739_v11 = vld [vmem:[%s25290_s3 + $0x1bc4] ss:$16 sps:$4 sm:$0xff]   ;;  %v24012_v42 = vpack.c.bf16 %v21582_v44, %v21582_v44 }
 0x602   :  { %v23897_v34 = vadd.f32 %v9338_v40, %v23477_v37  ;;  %v18703_v37 = vld [vmem:[%s25290_s3 + $0x1b04] ss:$16 sps:$4 sm:$0xff]   ;;  %v18737_v20 = vld [vmem:[%s25290_s3 + $0x1bc0] ss:$16 sps:$4 sm:$0xff]   ;;  %v18748_v14 = vld [vmem:[%s25290_s3 + $0x180c] ss:$16 sps:$4 sm:$0xff]  }
 0x603   :  { %11195 = vmatpush1.bf16.msra.mxu0 %v18686_v25  ;;  %v18745_v46 = vld [vmem:[%s25290_s3 + $0x1be4] ss:$16 sps:$4 sm:$0xff]   ;;  %v18740_v8 = vld [vmem:[%s25290_s3 + $0x19e0] ss:$16 sps:$4 sm:$0xff]   ;;  %v18751_v25 = vld [vmem:[%s25290_s3 + $0x1a0c] ss:$16 sps:$4 sm:$0xff]  }
 0x604   :  { %11236 = vmatpush1.bf16.msra.mxu1 %v18689_v12  ;;  %11196 = vmatprep.subr.bf16.mxu0 %v18694_v62  ;;  %v18743_v55 = vld [vmem:[%s25290_s3 + $0x1be0] ss:$16 sps:$4 sm:$0xff]   ;;  %v18746_v40 = vld [vmem:[%s25290_s3 + $0x1808] ss:$16 sps:$4 sm:$0xff]   ;;  %v24019_v12 = vpack.c.bf16 %v21592_v41, %v21592_v41  ;;  %v18754_v62 = vld [vmem:[%s25290_s3 + $0x182c] ss:$16 sps:$4 sm:$0xff]  }
 0x605   :  { %11237 = vmatprep.subr.bf16.mxu1 %v18697_v60  ;;  %v18749_v63 = vld [vmem:[%s25290_s3 + $0x1a08] ss:$16 sps:$4 sm:$0xff]   ;;  %v18757_v44 = vld [vmem:[%s25290_s3 + $0x1a2c] ss:$16 sps:$4 sm:$0xff]  }
 0x606   :  { %v18752_v31 = vld [vmem:[%s25290_s3 + $0x1828] ss:$16 sps:$4 sm:$0xff]   ;;  %v18760_v60 = vld [vmem:[%s25290_s3 + $0x184c] ss:$16 sps:$4 sm:$0xff]  }
 0x607   :  { %11197 = vmatpush1.bf16.msra.mxu0 %v18692_v47  ;;  %v18755_v41 = vld [vmem:[%s25290_s3 + $0x1a28] ss:$16 sps:$4 sm:$0xff]   ;;  %v18763_v47 = vld [vmem:[%s25290_s3 + $0x1a4c] ss:$16 sps:$4 sm:$0xff]  }
 0x608   :  { %11238 = vmatpush1.bf16.msra.mxu1 %v18695_v36  ;;  %11198 = vmatprep.subr.bf16.mxu0 %v18700_v23  ;;  %v18761_v36 = vld [vmem:[%s25290_s3 + $0x1a48] ss:$16 sps:$4 sm:$0xff]   ;;  %v18769_v23 = vld [vmem:[%s25290_s3 + $0x1a6c] ss:$16 sps:$4 sm:$0xff]  }
 0x609   :  { %11239 = vmatprep.subr.bf16.mxu1 %v18703_v37  ;;  %v18764_v37 = vld [vmem:[%s25290_s3 + $0x1868] ss:$16 sps:$4 sm:$0xff]  }
 0x60b   :  { %11199 = vmatpush1.bf16.msra.mxu0 %v18698_v29  ;;  %v18767_v29 = vld [vmem:[%s25290_s3 + $0x1a68] ss:$16 sps:$4 sm:$0xff]  }
 0x60c   :  { %11240 = vmatpush1.bf16.msra.mxu1 %v18701_v10  ;;  %11200 = vmatprep.subr.bf16.mxu0 %v18706_v15  ;;  %v18772_v10 = vld [vmem:[%s25290_s3 + $0x188c] ss:$16 sps:$4 sm:$0xff]  }
 0x60d   :  { %11241 = vmatprep.subr.bf16.mxu1 %v18709_v28  ;;  %v18775_v15 = vld [vmem:[%s25290_s3 + $0x1a8c] ss:$16 sps:$4 sm:$0xff]   ;;  %v18770_v28 = vld [vmem:[%s25290_s3 + $0x1888] ss:$16 sps:$4 sm:$0xff]  }
 0x60f   :  { %11201 = vmatpush1.bf16.msra.mxu0 %v18704_v16  ;;  %v18773_v16 = vld [vmem:[%s25290_s3 + $0x1a88] ss:$16 sps:$4 sm:$0xff]  }
 0x610   :  { %11242 = vmatpush1.bf16.msra.mxu1 %v18707_v19  ;;  %11202 = vmatprep.subr.bf16.mxu0 %v18712_v22  ;;  %v18778_v19 = vld [vmem:[%s25290_s3 + $0x18ac] ss:$16 sps:$4 sm:$0xff]  }
 0x611   :  { %11243 = vmatprep.subr.bf16.mxu1 %v18715_v56  ;;  %v18781_v22 = vld [vmem:[%s25290_s3 + $0x1aac] ss:$16 sps:$4 sm:$0xff]   ;;  %v18776_v56 = vld [vmem:[%s25290_s3 + $0x18a8] ss:$16 sps:$4 sm:$0xff]  }
 0x613   :  { %11203 = vmatpush1.bf16.msra.mxu0 %v18710_v7  ;;  %v18779_v7 = vld [vmem:[%s25290_s3 + $0x1aa8] ss:$16 sps:$4 sm:$0xff]  }
 0x614   :  { %11244 = vmatpush1.bf16.msra.mxu1 %v18713_v32  ;;  %11204 = vmatprep.subr.bf16.mxu0 %v18718_v13  ;;  %v18784_v32 = vld [vmem:[%s25290_s3 + $0x18cc] ss:$16 sps:$4 sm:$0xff]  }
 0x615   :  { %11245 = vmatprep.subr.bf16.mxu1 %v18721_v18  ;;  %v18787_v18 = vld [vmem:[%s25290_s3 + $0x1acc] ss:$16 sps:$4 sm:$0xff]  }
 0x617   :  { %11205 = vmatpush1.bf16.msra.mxu0 %v18716_v6 }
 0x618   :  { %11246 = vmatpush1.bf16.msra.mxu1 %v18719_v30  ;;  %11206 = vmatprep.subr.bf16.mxu0 %v18724_v17 }
 0x619   :  { %11247 = vmatprep.subr.bf16.mxu1 %v18727_v39 }
 0x61b   :  { %11207 = vmatpush1.bf16.msra.mxu0 %v18722_v21 }
 0x61c   :  { %11248 = vmatpush1.bf16.msra.mxu1 %v18725_v1  ;;  %11208 = vmatprep.subr.bf16.mxu0 %v18730_v24  ;;  %v18782_v1 = vld [vmem:[%s25290_s3 + $0x18c8] ss:$16 sps:$4 sm:$0xff]  }
 0x61d   :  { %11249 = vmatprep.subr.bf16.mxu1 %v18733_v0 }
 0x61f   :  { %11209 = vmatpush1.bf16.msra.mxu0 %v18728_v2 }
 0x620   :  { %11250 = vmatpush1.bf16.msra.mxu1 %v18731_v43  ;;  %11210 = vmatprep.subr.bf16.mxu0 %v18736_v45  ;;  %v18785_v43 = vld [vmem:[%s25290_s3 + $0x1ac8] ss:$16 sps:$4 sm:$0xff]   ;;  %v18790_v45 = vld [vmem:[%s25290_s3 + $0x18ec] ss:$16 sps:$4 sm:$0xff]  }
 0x621   :  { %11251 = vmatprep.subr.bf16.mxu1 %v18739_v11 }
 0x623   :  { %11211 = vmatpush1.bf16.msra.mxu0 %v18734_v4 }
 0x624   :  { %11252 = vmatpush1.bf16.msra.mxu1 %v18737_v20  ;;  %11212 = vmatprep.subr.bf16.mxu0 %v18742_v38  ;;  %v18793_v20 = vld [vmem:[%s25290_s3 + $0x1aec] ss:$16 sps:$4 sm:$0xff]  }
 0x625   :  { %11253 = vmatprep.subr.bf16.mxu1 %v18745_v46  ;;  %v18788_v46 = vld [vmem:[%s25290_s3 + $0x18e8] ss:$16 sps:$4 sm:$0xff]  }
 0x627   :  { %11213 = vmatpush1.bf16.msra.mxu0 %v18740_v8  ;;  %v18796_v8 = vld [vmem:[%s25290_s3 + $0x190c] ss:$16 sps:$4 sm:$0xff]  }
 0x628   :  { %11254 = vmatpush1.bf16.msra.mxu1 %v18743_v55  ;;  %11264 = vmatprep.subr.bf16.mxu0 %v18748_v14  ;;  %v18794_v55 = vld [vmem:[%s25290_s3 + $0x1908] ss:$16 sps:$4 sm:$0xff]  }
 0x629   :  { %11305 = vmatprep.subr.bf16.mxu1 %v18751_v25  ;;  %v18797_v14 = vld [vmem:[%s25290_s3 + $0x1b08] ss:$16 sps:$4 sm:$0xff]   ;;  %v18802_v25 = vld [vmem:[%s25290_s3 + $0x192c] ss:$16 sps:$4 sm:$0xff]  }
 0x62a   :  { %11215 = vmatmul.mubr.bf16.vlgmr.msra.gmra.mrb[56].mxu0 %v24012_v42 }
 0x62b   :  { %11256 = vmatmul.mubr.bf16.vlgmr.msra.gmra.mrb[56].mxu1 %v24019_v12  ;;  %11265 = vmatpush1.bf16.msra.mxu0 %v18746_v40  ;;  %v18805_v40 = vld [vmem:[%s25290_s3 + $0x1b2c] ss:$16 sps:$4 sm:$0xff]  }
 0x62c   :  { %11296 = vmatprep.mubr.bf16.mxu0 %v23809_v3  ;;  %11306 = vmatpush1.bf16.msra.mxu1 %v18749_v63  ;;  %v18758_v3 = vld [vmem:[%s25290_s3 + $0x1848] ss:$16 sps:$4 sm:$0xff]  }
 0x62d   :  { %11337 = vmatprep.mubr.bf16.mxu1 %v23817_v35  ;;  %11266 = vmatprep.subr.bf16.mxu0 %v18754_v62  ;;  %v18766_v35 = vld [vmem:[%s25290_s3 + $0x186c] ss:$16 sps:$4 sm:$0xff]   ;;  %v18800_v63 = vld [vmem:[%s25290_s3 + $0x1928] ss:$16 sps:$4 sm:$0xff]  }
 0x62e   :  { %11307 = vmatprep.subr.bf16.mxu1 %v18757_v44  ;;  %v18803_v62 = vld [vmem:[%s25290_s3 + $0x1b28] ss:$16 sps:$4 sm:$0xff]   ;;  %v18808_v44 = vld [vmem:[%s25290_s3 + $0x194c] ss:$16 sps:$4 sm:$0xff]  }
 0x62f   :  { %11267 = vmatpush1.bf16.msra.mxu0 %v18752_v31  ;;  %v18811_v31 = vld [vmem:[%s25290_s3 + $0x1b4c] ss:$16 sps:$4 sm:$0xff]  }
 0x630   :  { %11308 = vmatpush1.bf16.msra.mxu1 %v18755_v41  ;;  %11268 = vmatprep.subr.bf16.mxu0 %v18760_v60  ;;  %v18806_v41 = vld [vmem:[%s25290_s3 + $0x1948] ss:$16 sps:$4 sm:$0xff]  }
 0x631   :  { %11309 = vmatprep.subr.bf16.mxu1 %v18763_v47  ;;  %v18809_v60 = vld [vmem:[%s25290_s3 + $0x1b48] ss:$16 sps:$4 sm:$0xff]   ;;  %v18814_v47 = vld [vmem:[%s25290_s3 + $0x196c] ss:$16 sps:$4 sm:$0xff]  }
 0x633   :  { %11269 = vmatpush1.bf16.msra.mxu0 %v18758_v3  ;;  %v18817_v3 = vld [vmem:[%s25290_s3 + $0x1b6c] ss:$16 sps:$4 sm:$0xff]  }
 0x634   :  { %11310 = vmatpush1.bf16.msra.mxu1 %v18761_v36  ;;  %11270 = vmatprep.subr.bf16.mxu0 %v18766_v35  ;;  %v18812_v36 = vld [vmem:[%s25290_s3 + $0x1968] ss:$16 sps:$4 sm:$0xff]  }
 0x635   :  { %11311 = vmatprep.subr.bf16.mxu1 %v18769_v23  ;;  %v18815_v35 = vld [vmem:[%s25290_s3 + $0x1b68] ss:$16 sps:$4 sm:$0xff]   ;;  %v18820_v23 = vld [vmem:[%s25290_s3 + $0x198c] ss:$16 sps:$4 sm:$0xff]  }
 0x637   :  { %11271 = vmatpush1.bf16.msra.mxu0 %v18764_v37  ;;  %v18823_v37 = vld [vmem:[%s25290_s3 + $0x1b8c] ss:$16 sps:$4 sm:$0xff]  }
 0x638   :  { %11312 = vmatpush1.bf16.msra.mxu1 %v18767_v29  ;;  %11272 = vmatprep.subr.bf16.mxu0 %v18772_v10  ;;  %v18818_v29 = vld [vmem:[%s25290_s3 + $0x1988] ss:$16 sps:$4 sm:$0xff]  }
 0x639   :  { %11313 = vmatprep.subr.bf16.mxu1 %v18775_v15  ;;  %v18821_v10 = vld [vmem:[%s25290_s3 + $0x1b88] ss:$16 sps:$4 sm:$0xff]   ;;  %v18826_v15 = vld [vmem:[%s25290_s3 + $0x19ac] ss:$16 sps:$4 sm:$0xff]  }
 0x63b   :  { %11273 = vmatpush1.bf16.msra.mxu0 %v18770_v28  ;;  %v18829_v28 = vld [vmem:[%s25290_s3 + $0x1bac] ss:$16 sps:$4 sm:$0xff]  }
 0x63c   :  { %11314 = vmatpush1.bf16.msra.mxu1 %v18773_v16  ;;  %11274 = vmatprep.subr.bf16.mxu0 %v18778_v19  ;;  %v18824_v16 = vld [vmem:[%s25290_s3 + $0x19a8] ss:$16 sps:$4 sm:$0xff]  }
 0x63d   :  { %v9376_v13 = vpop.f32.mrb[44].mxu0  ;;  %11315 = vmatprep.subr.bf16.mxu1 %v18781_v22  ;;  %v18827_v19 = vld [vmem:[%s25290_s3 + $0x1ba8] ss:$16 sps:$4 sm:$0xff]   ;;  %v18832_v22 = vld [vmem:[%s25290_s3 + $0x19cc] ss:$16 sps:$4 sm:$0xff]  }
 0x63e   :  { %v9417_v6 = vpop.f32.mrb[44].mxu1  ;;  %v9378_v30 = vpop.f32.mrb[45].mxu0 }
 0x63f   :  { %v9418_v17 = vadd.f32 %v9417_v6, %v9376_v13  ;;  %v9419_v39 = vpop.f32.mrb[45].mxu1  ;;  %v9380_v21 = vpop.f32.mrb[46].mxu0  ;;  %11275 = vmatpush1.bf16.msra.mxu0 %v18776_v56  ;;  %v18835_v56 = vld [vmem:[%s25290_s3 + $0x1bcc] ss:$16 sps:$4 sm:$0xff]   ;;  %v18836_v6 = vld [vmem:[%s25290_s3 + $0x19e8] ss:$16 sps:$4 sm:$0xff]  }
 0x640   :  { %v9420_v24 = vadd.f32 %v9419_v39, %v9378_v30  ;;  %v9421_v0 = vpop.f32.mrb[46].mxu1  ;;  %11316 = vmatpush1.bf16.msra.mxu1 %v18779_v7  ;;  %v9381_v2 = vpop.f32.mrb[47].mxu0  ;;  %11276 = vmatprep.subr.bf16.mxu0 %v18784_v32  ;;  %v18830_v7 = vld [vmem:[%s25290_s3 + $0x19c8] ss:$16 sps:$4 sm:$0xff]   ;;  %v18838_v13 = vld [vmem:[%s25290_s3 + $0x19ec] ss:$16 sps:$4 sm:$0xff]  }
 0x641   :  { %v24101_v11 = vadd.f32 %v9418_v17, %v23681_v61  ;;  %v9422_v4 = vpop.f32.mrb[47].mxu1  ;;  %11317 = vmatprep.subr.bf16.mxu1 %v18787_v18  ;;  %v18791_v61 = vld [vmem:[%s25290_s3 + $0x1ae8] ss:$16 sps:$4 sm:$0xff]   ;;  %v18841_v18 = vld [vmem:[%s25290_s3 + $0x1bec] ss:$16 sps:$4 sm:$0xff]   ;;  %v24229_v0 = vpack.c.bf16 %v21595_v58, %v21595_v58 }
 0x642   :  { %v24107_v38 = vadd.f32 %v9420_v24, %v23687_v33  ;;  %v18799_v33 = vld [vmem:[%s25290_s3 + $0x1b0c] ss:$16 sps:$4 sm:$0xff]   ;;  %v18833_v32 = vld [vmem:[%s25290_s3 + $0x1bc8] ss:$16 sps:$4 sm:$0xff]   ;;  %v18844_v17 = vld [vmem:[%s25290_s3 + $0x1c04] ss:$16 sps:$4 sm:$0xff]  }
 0x643   :  { %11277 = vmatpush1.bf16.msra.mxu0 %v18782_v1  ;;  %v18839_v30 = vld [vmem:[%s25290_s3 + $0x1be8] ss:$16 sps:$4 sm:$0xff]   ;;  %v18847_v39 = vld [vmem:[%s25290_s3 + $0x1e04] ss:$16 sps:$4 sm:$0xff]   ;;  %v18842_v21 = vld [vmem:[%s25290_s3 + $0x1c00] ss:$16 sps:$4 sm:$0xff]  }
 0x644   :  { %11318 = vmatpush1.bf16.msra.mxu1 %v18785_v43  ;;  %11278 = vmatprep.subr.bf16.mxu0 %v18790_v45  ;;  %v18845_v1 = vld [vmem:[%s25290_s3 + $0x1e00] ss:$16 sps:$4 sm:$0xff]   ;;  %v18850_v24 = vld [vmem:[%s25290_s3 + $0x1c24] ss:$16 sps:$4 sm:$0xff]   ;;  %v24237_v43 = vpack.c.bf16 %v21598_v59, %v21598_v59 }
 0x645   :  { %11319 = vmatprep.subr.bf16.mxu1 %v18793_v20  ;;  %v18853_v2 = vld [vmem:[%s25290_s3 + $0x1e24] ss:$16 sps:$4 sm:$0xff]   ;;  %v18848_v45 = vld [vmem:[%s25290_s3 + $0x1c20] ss:$16 sps:$4 sm:$0xff]  }
 0x646   :  { %v18851_v58 = vld [vmem:[%s25290_s3 + $0x1e20] ss:$16 sps:$4 sm:$0xff]   ;;  %v18859_v59 = vld [vmem:[%s25290_s3 + $0x1e44] ss:$16 sps:$4 sm:$0xff]  }
 0x647   :  { %11279 = vmatpush1.bf16.msra.mxu0 %v18788_v46  ;;  %v18857_v4 = vld [vmem:[%s25290_s3 + $0x1e40] ss:$16 sps:$4 sm:$0xff]   ;;  %v18862_v20 = vld [vmem:[%s25290_s3 + $0x1c64] ss:$16 sps:$4 sm:$0xff]  }
 0x648   :  { %11320 = vmatpush1.bf16.msra.mxu1 %v18791_v61  ;;  %11280 = vmatprep.subr.bf16.mxu0 %v18796_v8  ;;  %v18865_v46 = vld [vmem:[%s25290_s3 + $0x1e64] ss:$16 sps:$4 sm:$0xff]   ;;  %v18860_v61 = vld [vmem:[%s25290_s3 + $0x1c60] ss:$16 sps:$4 sm:$0xff]  }
 0x649   :  { %11321 = vmatprep.subr.bf16.mxu1 %v18799_v33  ;;  %v18863_v8 = vld [vmem:[%s25290_s3 + $0x1e60] ss:$16 sps:$4 sm:$0xff]   ;;  %v18868_v33 = vld [vmem:[%s25290_s3 + $0x1c84] ss:$16 sps:$4 sm:$0xff]  }
 0x64b   :  { %11281 = vmatpush1.bf16.msra.mxu0 %v18794_v55  ;;  %v18871_v55 = vld [vmem:[%s25290_s3 + $0x1e84] ss:$16 sps:$4 sm:$0xff]  }
 0x64c   :  { %11322 = vmatpush1.bf16.msra.mxu1 %v18797_v14  ;;  %11282 = vmatprep.subr.bf16.mxu0 %v18802_v25  ;;  %v18866_v14 = vld [vmem:[%s25290_s3 + $0x1c80] ss:$16 sps:$4 sm:$0xff]  }
 0x64d   :  { %11323 = vmatprep.subr.bf16.mxu1 %v18805_v40  ;;  %v18869_v25 = vld [vmem:[%s25290_s3 + $0x1e80] ss:$16 sps:$4 sm:$0xff]   ;;  %v18874_v40 = vld [vmem:[%s25290_s3 + $0x1ca4] ss:$16 sps:$4 sm:$0xff]  }
 0x64f   :  { %11283 = vmatpush1.bf16.msra.mxu0 %v18800_v63  ;;  %v18877_v63 = vld [vmem:[%s25290_s3 + $0x1ea4] ss:$16 sps:$4 sm:$0xff]  }
 0x650   :  { %11324 = vmatpush1.bf16.msra.mxu1 %v18803_v62  ;;  %11284 = vmatprep.subr.bf16.mxu0 %v18808_v44  ;;  %v18872_v62 = vld [vmem:[%s25290_s3 + $0x1ca0] ss:$16 sps:$4 sm:$0xff]  }
 0x651   :  { %11325 = vmatprep.subr.bf16.mxu1 %v18811_v31  ;;  %v18875_v44 = vld [vmem:[%s25290_s3 + $0x1ea0] ss:$16 sps:$4 sm:$0xff]   ;;  %v18880_v31 = vld [vmem:[%s25290_s3 + $0x1cc4] ss:$16 sps:$4 sm:$0xff]  }
 0x653   :  { %11285 = vmatpush1.bf16.msra.mxu0 %v18806_v41 }
 0x654   :  { %11326 = vmatpush1.bf16.msra.mxu1 %v18809_v60  ;;  %11286 = vmatprep.subr.bf16.mxu0 %v18814_v47  ;;  %v18883_v60 = vld [vmem:[%s25290_s3 + $0x1ec4] ss:$16 sps:$4 sm:$0xff]  }
 0x655   :  { %11327 = vmatprep.subr.bf16.mxu1 %v18817_v3 }
 0x657   :  { %11287 = vmatpush1.bf16.msra.mxu0 %v18812_v36 }
 0x658   :  { %11328 = vmatpush1.bf16.msra.mxu1 %v18815_v35  ;;  %11288 = vmatprep.subr.bf16.mxu0 %v18820_v23 }
 0x659   :  { %11329 = vmatprep.subr.bf16.mxu1 %v18823_v37  ;;  %v18878_v37 = vld [vmem:[%s25290_s3 + $0x1cc0] ss:$16 sps:$4 sm:$0xff]  }
 0x65b   :  { %11289 = vmatpush1.bf16.msra.mxu0 %v18818_v29 }
 0x65c   :  { %11330 = vmatpush1.bf16.msra.mxu1 %v18821_v10  ;;  %11290 = vmatprep.subr.bf16.mxu0 %v18826_v15 }
 0x65d   :  { %11331 = vmatprep.subr.bf16.mxu1 %v18829_v28  ;;  %v18881_v28 = vld [vmem:[%s25290_s3 + $0x1ec0] ss:$16 sps:$4 sm:$0xff]  }
 0x65f   :  { %11291 = vmatpush1.bf16.msra.mxu0 %v18824_v16  ;;  %v18886_v16 = vld [vmem:[%s25290_s3 + $0x1ce4] ss:$16 sps:$4 sm:$0xff]  }
 0x660   :  { %11332 = vmatpush1.bf16.msra.mxu1 %v18827_v19  ;;  %11292 = vmatprep.subr.bf16.mxu0 %v18832_v22 }
 0x661   :  { %11333 = vmatprep.subr.bf16.mxu1 %v18835_v56  ;;  %v18889_v56 = vld [vmem:[%s25290_s3 + $0x1ee4] ss:$16 sps:$4 sm:$0xff]  }
 0x663   :  { %11293 = vmatpush1.bf16.msra.mxu0 %v18830_v7 }
 0x664   :  { %11334 = vmatpush1.bf16.msra.mxu1 %v18833_v32  ;;  %11294 = vmatprep.subr.bf16.mxu0 %v18838_v13  ;;  %v18884_v32 = vld [vmem:[%s25290_s3 + $0x1ce0] ss:$16 sps:$4 sm:$0xff]   ;;  %v18892_v13 = vld [vmem:[%s25290_s3 + $0x1d04] ss:$16 sps:$4 sm:$0xff]  }
 0x665   :  { %11335 = vmatprep.subr.bf16.mxu1 %v18841_v18  ;;  %v18890_v18 = vld [vmem:[%s25290_s3 + $0x1d00] ss:$16 sps:$4 sm:$0xff]  }
 0x667   :  { %11295 = vmatpush1.bf16.msra.mxu0 %v18836_v6  ;;  %v18893_v6 = vld [vmem:[%s25290_s3 + $0x1f00] ss:$16 sps:$4 sm:$0xff]  }
 0x668   :  { %11336 = vmatpush1.bf16.msra.mxu1 %v18839_v30  ;;  %12147 = vmatprep.subr.bf16.mxu0 %v18844_v17  ;;  %v18898_v30 = vld [vmem:[%s25290_s3 + $0x1d24] ss:$16 sps:$4 sm:$0xff]  }
 0x669   :  { %12188 = vmatprep.subr.bf16.mxu1 %v18847_v39  ;;  %v18901_v17 = vld [vmem:[%s25290_s3 + $0x1f24] ss:$16 sps:$4 sm:$0xff]   ;;  %v18896_v39 = vld [vmem:[%s25290_s3 + $0x1d20] ss:$16 sps:$4 sm:$0xff]  }
 0x66a   :  { %11297 = vmatmul.mubr.bf16.vlgmr.msra.gmra.mrb[60].mxu0 %v24012_v42  ;;  %v18856_v42 = vld [vmem:[%s25290_s3 + $0x1c44] ss:$16 sps:$4 sm:$0xff]  }
 0x66b   :  { %11338 = vmatmul.mubr.bf16.vlgmr.msra.gmra.mrb[60].mxu1 %v24019_v12  ;;  %12148 = vmatpush1.bf16.msra.mxu0 %v18842_v21  ;;  %v18854_v12 = vld [vmem:[%s25290_s3 + $0x1c40] ss:$16 sps:$4 sm:$0xff]  }
 0x66c   :  { %12179 = vmatprep.mubr.bf16.mxu0 %v24229_v0  ;;  %12189 = vmatpush1.bf16.msra.mxu1 %v18845_v1  ;;  %v18899_v21 = vld [vmem:[%s25290_s3 + $0x1f20] ss:$16 sps:$4 sm:$0xff]   ;;  %v18904_v1 = vld [vmem:[%s25290_s3 + $0x1d44] ss:$16 sps:$4 sm:$0xff]  }
 0x66d   :  { %12220 = vmatprep.mubr.bf16.mxu1 %v24237_v43  ;;  %12149 = vmatprep.subr.bf16.mxu0 %v18850_v24  ;;  %v18907_v24 = vld [vmem:[%s25290_s3 + $0x1f44] ss:$16 sps:$4 sm:$0xff]  }
 0x66e   :  { %12190 = vmatprep.subr.bf16.mxu1 %v18853_v2  ;;  %v18902_v2 = vld [vmem:[%s25290_s3 + $0x1d40] ss:$16 sps:$4 sm:$0xff]  }
 0x66f   :  { %12150 = vmatpush1.bf16.msra.mxu0 %v18848_v45  ;;  %v18905_v45 = vld [vmem:[%s25290_s3 + $0x1f40] ss:$16 sps:$4 sm:$0xff]  }
 0x670   :  { %12191 = vmatpush1.bf16.msra.mxu1 %v18851_v58  ;;  %12151 = vmatprep.subr.bf16.mxu0 %v18856_v42  ;;  %v18910_v58 = vld [vmem:[%s25290_s3 + $0x1d64] ss:$16 sps:$4 sm:$0xff]  }
 0x671   :  { %12192 = vmatprep.subr.bf16.mxu1 %v18859_v59  ;;  %v18913_v42 = vld [vmem:[%s25290_s3 + $0x1f64] ss:$16 sps:$4 sm:$0xff]   ;;  %v18908_v59 = vld [vmem:[%s25290_s3 + $0x1d60] ss:$16 sps:$4 sm:$0xff]  }
 0x673   :  { %12152 = vmatpush1.bf16.msra.mxu0 %v18854_v12  ;;  %v18911_v12 = vld [vmem:[%s25290_s3 + $0x1f60] ss:$16 sps:$4 sm:$0xff]  }
 0x674   :  { %12193 = vmatpush1.bf16.msra.mxu1 %v18857_v4  ;;  %12153 = vmatprep.subr.bf16.mxu0 %v18862_v20  ;;  %v18916_v4 = vld [vmem:[%s25290_s3 + $0x1d84] ss:$16 sps:$4 sm:$0xff]  }
 0x675   :  { %12194 = vmatprep.subr.bf16.mxu1 %v18865_v46  ;;  %v18919_v20 = vld [vmem:[%s25290_s3 + $0x1f84] ss:$16 sps:$4 sm:$0xff]   ;;  %v18914_v46 = vld [vmem:[%s25290_s3 + $0x1d80] ss:$16 sps:$4 sm:$0xff]  }
 0x677   :  { %12154 = vmatpush1.bf16.msra.mxu0 %v18860_v61  ;;  %v18917_v61 = vld [vmem:[%s25290_s3 + $0x1f80] ss:$16 sps:$4 sm:$0xff]  }
 0x678   :  { %12195 = vmatpush1.bf16.msra.mxu1 %v18863_v8  ;;  %12155 = vmatprep.subr.bf16.mxu0 %v18868_v33  ;;  %v18922_v8 = vld [vmem:[%s25290_s3 + $0x1da4] ss:$16 sps:$4 sm:$0xff]  }
 0x679   :  { %12196 = vmatprep.subr.bf16.mxu1 %v18871_v55  ;;  %v18925_v33 = vld [vmem:[%s25290_s3 + $0x1fa4] ss:$16 sps:$4 sm:$0xff]   ;;  %v18920_v55 = vld [vmem:[%s25290_s3 + $0x1da0] ss:$16 sps:$4 sm:$0xff]  }
 0x67b   :  { %12156 = vmatpush1.bf16.msra.mxu0 %v18866_v14  ;;  %v18923_v14 = vld [vmem:[%s25290_s3 + $0x1fa0] ss:$16 sps:$4 sm:$0xff]  }
 0x67c   :  { %12197 = vmatpush1.bf16.msra.mxu1 %v18869_v25  ;;  %12157 = vmatprep.subr.bf16.mxu0 %v18874_v40  ;;  %v18928_v25 = vld [vmem:[%s25290_s3 + $0x1dc4] ss:$16 sps:$4 sm:$0xff]  }
 0x67d   :  { %v10255_v41 = vpop.f32.mrb[48].mxu0  ;;  %12198 = vmatprep.subr.bf16.mxu1 %v18877_v63  ;;  %v18931_v40 = vld [vmem:[%s25290_s3 + $0x1fc4] ss:$16 sps:$4 sm:$0xff]   ;;  %v18926_v63 = vld [vmem:[%s25290_s3 + $0x1dc0] ss:$16 sps:$4 sm:$0xff]  }
 0x67e   :  { %v10296_v47 = vpop.f32.mrb[48].mxu1  ;;  %v10257_v3 = vpop.f32.mrb[49].mxu0 }
 0x67f   :  { %v10297_v36 = vadd.f32 %v10296_v47, %v10255_v41  ;;  %v10298_v35 = vpop.f32.mrb[49].mxu1  ;;  %v10259_v23 = vpop.f32.mrb[50].mxu0  ;;  %12158 = vmatpush1.bf16.msra.mxu0 %v18872_v62  ;;  %v18929_v62 = vld [vmem:[%s25290_s3 + $0x1fc0] ss:$16 sps:$4 sm:$0xff]   ;;  %v18940_v47 = vld [vmem:[%s25290_s3 + $0x1c0c] ss:$16 sps:$4 sm:$0xff]  }
 0x680   :  { %v10299_v29 = vadd.f32 %v10298_v35, %v10257_v3  ;;  %v10300_v10 = vpop.f32.mrb[50].mxu1  ;;  %12199 = vmatpush1.bf16.msra.mxu1 %v18875_v44  ;;  %v10260_v15 = vpop.f32.mrb[51].mxu0  ;;  %12159 = vmatprep.subr.bf16.mxu0 %v18880_v31  ;;  %v18934_v44 = vld [vmem:[%s25290_s3 + $0x1de4] ss:$16 sps:$4 sm:$0xff]   ;;  %v18932_v41 = vld [vmem:[%s25290_s3 + $0x1de0] ss:$16 sps:$4 sm:$0xff]   ;;  %v24432_v35 = vpack.c.bf16 %v21609_v5, %v21609_v5 }
 0x681   :  { %v24311_v19 = vadd.f32 %v10297_v36, %v23891_v57  ;;  %v10301_v22 = vpop.f32.mrb[51].mxu1  ;;  %12200 = vmatprep.subr.bf16.mxu1 %v18883_v60  ;;  %v18887_v57 = vld [vmem:[%s25290_s3 + $0x1ee0] ss:$16 sps:$4 sm:$0xff]   ;;  %v18937_v31 = vld [vmem:[%s25290_s3 + $0x1fe4] ss:$16 sps:$4 sm:$0xff]  }
 0x682   :  { %v24317_v7 = vadd.f32 %v10299_v29, %v23897_v34  ;;  %v18895_v34 = vld [vmem:[%s25290_s3 + $0x1f04] ss:$16 sps:$4 sm:$0xff]   ;;  %v18935_v60 = vld [vmem:[%s25290_s3 + $0x1fe0] ss:$16 sps:$4 sm:$0xff]   ;;  %v18943_v3 = vld [vmem:[%s25290_s3 + $0x1e0c] ss:$16 sps:$4 sm:$0xff]  }
 0x683   :  { %12160 = vmatpush1.bf16.msra.mxu0 %v18878_v37  ;;  %v18938_v36 = vld [vmem:[%s25290_s3 + $0x1c08] ss:$16 sps:$4 sm:$0xff]   ;;  %v24439_v37 = vpack.c.bf16 %v21618_v9, %v21618_v9  ;;  %v18946_v29 = vld [vmem:[%s25290_s3 + $0x1c2c] ss:$16 sps:$4 sm:$0xff]  }
 0x684   :  { %12201 = vmatpush1.bf16.msra.mxu1 %v18881_v28  ;;  %12161 = vmatprep.subr.bf16.mxu0 %v18886_v16  ;;  %v18941_v23 = vld [vmem:[%s25290_s3 + $0x1e08] ss:$16 sps:$4 sm:$0xff]   ;;  %v18949_v5 = vld [vmem:[%s25290_s3 + $0x1e2c] ss:$16 sps:$4 sm:$0xff]  }
 0x685   :  { %12202 = vmatprep.subr.bf16.mxu1 %v18889_v56  ;;  %v18944_v10 = vld [vmem:[%s25290_s3 + $0x1c28] ss:$16 sps:$4 sm:$0xff]   ;;  %v18952_v15 = vld [vmem:[%s25290_s3 + $0x1c4c] ss:$16 sps:$4 sm:$0xff]  }
 0x686   :  { %v18947_v9 = vld [vmem:[%s25290_s3 + $0x1e28] ss:$16 sps:$4 sm:$0xff]   ;;  %v18955_v28 = vld [vmem:[%s25290_s3 + $0x1e4c] ss:$16 sps:$4 sm:$0xff]  }
 0x687   :  { %12162 = vmatpush1.bf16.msra.mxu0 %v18884_v32  ;;  %v18953_v16 = vld [vmem:[%s25290_s3 + $0x1e48] ss:$16 sps:$4 sm:$0xff]   ;;  %v18961_v22 = vld [vmem:[%s25290_s3 + $0x1e6c] ss:$16 sps:$4 sm:$0xff]  }
 0x688   :  { %12203 = vmatpush1.bf16.msra.mxu1 %v18887_v57  ;;  %12163 = vmatprep.subr.bf16.mxu0 %v18892_v13  ;;  %v18956_v56 = vld [vmem:[%s25290_s3 + $0x1c68] ss:$16 sps:$4 sm:$0xff]   ;;  %v18964_v57 = vld [vmem:[%s25290_s3 + $0x1c8c] ss:$16 sps:$4 sm:$0xff]  }
 0x689   :  { %12204 = vmatprep.subr.bf16.mxu1 %v18895_v34  ;;  %v18959_v32 = vld [vmem:[%s25290_s3 + $0x1e68] ss:$16 sps:$4 sm:$0xff]   ;;  %v18967_v13 = vld [vmem:[%s25290_s3 + $0x1e8c] ss:$16 sps:$4 sm:$0xff]  }
 0x68a   :  { %v18962_v34 = vld [vmem:[%s25290_s3 + $0x1c88] ss:$16 sps:$4 sm:$0xff]  }
 0x68b   :  { %12164 = vmatpush1.bf16.msra.mxu0 %v18890_v18  ;;  %v18965_v18 = vld [vmem:[%s25290_s3 + $0x1e88] ss:$16 sps:$4 sm:$0xff]  }
 0x68c   :  { %12205 = vmatpush1.bf16.msra.mxu1 %v18893_v6  ;;  %12165 = vmatprep.subr.bf16.mxu0 %v18898_v30  ;;  %v18970_v6 = vld [vmem:[%s25290_s3 + $0x1cac] ss:$16 sps:$4 sm:$0xff]  }
 0x68d   :  { %12206 = vmatprep.subr.bf16.mxu1 %v18901_v17  ;;  %v18973_v30 = vld [vmem:[%s25290_s3 + $0x1eac] ss:$16 sps:$4 sm:$0xff]   ;;  %v18968_v17 = vld [vmem:[%s25290_s3 + $0x1ca8] ss:$16 sps:$4 sm:$0xff]  }
 0x68f   :  { %12166 = vmatpush1.bf16.msra.mxu0 %v18896_v39  ;;  %v18971_v39 = vld [vmem:[%s25290_s3 + $0x1ea8] ss:$16 sps:$4 sm:$0xff]  }
 0x690   :  { %12207 = vmatpush1.bf16.msra.mxu1 %v18899_v21  ;;  %12167 = vmatprep.subr.bf16.mxu0 %v18904_v1  ;;  %v18976_v21 = vld [vmem:[%s25290_s3 + $0x1ccc] ss:$16 sps:$4 sm:$0xff]  }
 0x691   :  { %12208 = vmatprep.subr.bf16.mxu1 %v18907_v24  ;;  %v18979_v24 = vld [vmem:[%s25290_s3 + $0x1ecc] ss:$16 sps:$4 sm:$0xff]  }
 0x693   :  { %12168 = vmatpush1.bf16.msra.mxu0 %v18902_v2 }
 0x694   :  { %12209 = vmatpush1.bf16.msra.mxu1 %v18905_v45  ;;  %12169 = vmatprep.subr.bf16.mxu0 %v18910_v58 }
 0x695   :  { %12210 = vmatprep.subr.bf16.mxu1 %v18913_v42 }
 0x697   :  { %12170 = vmatpush1.bf16.msra.mxu0 %v18908_v59 }
 0x698   :  { %12211 = vmatpush1.bf16.msra.mxu1 %v18911_v12  ;;  %12171 = vmatprep.subr.bf16.mxu0 %v18916_v4  ;;  %v18974_v12 = vld [vmem:[%s25290_s3 + $0x1cc8] ss:$16 sps:$4 sm:$0xff]  }
 0x699   :  { %12212 = vmatprep.subr.bf16.mxu1 %v18919_v20 }
 0x69b   :  { %12172 = vmatpush1.bf16.msra.mxu0 %v18914_v46 }
 0x69c   :  { %12213 = vmatpush1.bf16.msra.mxu1 %v18917_v61  ;;  %12173 = vmatprep.subr.bf16.mxu0 %v18922_v8  ;;  %v18977_v61 = vld [vmem:[%s25290_s3 + $0x1ec8] ss:$16 sps:$4 sm:$0xff]   ;;  %v18982_v8 = vld [vmem:[%s25290_s3 + $0x1cec] ss:$16 sps:$4 sm:$0xff]  }
 0x69d   :  { %12214 = vmatprep.subr.bf16.mxu1 %v18925_v33 }
 0x69f   :  { %12174 = vmatpush1.bf16.msra.mxu0 %v18920_v55 }
 0x6a0   :  { %12215 = vmatpush1.bf16.msra.mxu1 %v18923_v14  ;;  %12175 = vmatprep.subr.bf16.mxu0 %v18928_v25  ;;  %v18985_v14 = vld [vmem:[%s25290_s3 + $0x1eec] ss:$16 sps:$4 sm:$0xff]  }
 0x6a1   :  { %12216 = vmatprep.subr.bf16.mxu1 %v18931_v40  ;;  %v18980_v40 = vld [vmem:[%s25290_s3 + $0x1ce8] ss:$16 sps:$4 sm:$0xff]  }
 0x6a3   :  { %12176 = vmatpush1.bf16.msra.mxu0 %v18926_v63  ;;  %v18988_v63 = vld [vmem:[%s25290_s3 + $0x1d0c] ss:$16 sps:$4 sm:$0xff]  }
 0x6a4   :  { %12217 = vmatpush1.bf16.msra.mxu1 %v18929_v62  ;;  %12177 = vmatprep.subr.bf16.mxu0 %v18934_v44  ;;  %v18986_v62 = vld [vmem:[%s25290_s3 + $0x1d08] ss:$16 sps:$4 sm:$0xff]  }
 0x6a5   :  { %12218 = vmatprep.subr.bf16.mxu1 %v18937_v31  ;;  %v18989_v44 = vld [vmem:[%s25290_s3 + $0x1f08] ss:$16 sps:$4 sm:$0xff]   ;;  %v18994_v31 = vld [vmem:[%s25290_s3 + $0x1d2c] ss:$16 sps:$4 sm:$0xff]  }
 0x6a7   :  { %12178 = vmatpush1.bf16.msra.mxu0 %v18932_v41  ;;  %v18997_v41 = vld [vmem:[%s25290_s3 + $0x1f2c] ss:$16 sps:$4 sm:$0xff]  }
 0x6a8   :  { %12219 = vmatpush1.bf16.msra.mxu1 %v18935_v60  ;;  %12229 = vmatprep.subr.bf16.mxu0 %v18940_v47  ;;  %v18992_v60 = vld [vmem:[%s25290_s3 + $0x1d28] ss:$16 sps:$4 sm:$0xff]  }
 0x6a9   :  { %12270 = vmatprep.subr.bf16.mxu1 %v18943_v3  ;;  %v18995_v47 = vld [vmem:[%s25290_s3 + $0x1f28] ss:$16 sps:$4 sm:$0xff]   ;;  %v19000_v3 = vld [vmem:[%s25290_s3 + $0x1d4c] ss:$16 sps:$4 sm:$0xff]  }
 0x6aa   :  { %12180 = vmatmul.mubr.bf16.vlgmr.msra.gmra.mrb[64].mxu0 %v24432_v35 }
 0x6ab   :  { %12221 = vmatmul.mubr.bf16.vlgmr.msra.gmra.mrb[64].mxu1 %v24439_v37  ;;  %12230 = vmatpush1.bf16.msra.mxu0 %v18938_v36  ;;  %v19003_v36 = vld [vmem:[%s25290_s3 + $0x1f4c] ss:$16 sps:$4 sm:$0xff]  }
 0x6ac   :  { %12261 = vmatprep.mubr.bf16.mxu0 %v24229_v0  ;;  %12271 = vmatpush1.bf16.msra.mxu1 %v18941_v23  ;;  %v18950_v0 = vld [vmem:[%s25290_s3 + $0x1c48] ss:$16 sps:$4 sm:$0xff]  }
 0x6ad   :  { %12302 = vmatprep.mubr.bf16.mxu1 %v24237_v43  ;;  %12231 = vmatprep.subr.bf16.mxu0 %v18946_v29  ;;  %v18958_v43 = vld [vmem:[%s25290_s3 + $0x1c6c] ss:$16 sps:$4 sm:$0xff]   ;;  %v18998_v23 = vld [vmem:[%s25290_s3 + $0x1d48] ss:$16 sps:$4 sm:$0xff]  }
 0x6ae   :  { %12272 = vmatprep.subr.bf16.mxu1 %v18949_v5  ;;  %v19001_v29 = vld [vmem:[%s25290_s3 + $0x1f48] ss:$16 sps:$4 sm:$0xff]   ;;  %v19006_v5 = vld [vmem:[%s25290_s3 + $0x1d6c] ss:$16 sps:$4 sm:$0xff]  }
 0x6af   :  { %12232 = vmatpush1.bf16.msra.mxu0 %v18944_v10  ;;  %v19009_v10 = vld [vmem:[%s25290_s3 + $0x1f6c] ss:$16 sps:$4 sm:$0xff]  }
 0x6b0   :  { %12273 = vmatpush1.bf16.msra.mxu1 %v18947_v9  ;;  %12233 = vmatprep.subr.bf16.mxu0 %v18952_v15  ;;  %v19004_v9 = vld [vmem:[%s25290_s3 + $0x1d68] ss:$16 sps:$4 sm:$0xff]  }
 0x6b1   :  { %12274 = vmatprep.subr.bf16.mxu1 %v18955_v28  ;;  %v19007_v15 = vld [vmem:[%s25290_s3 + $0x1f68] ss:$16 sps:$4 sm:$0xff]   ;;  %v19012_v28 = vld [vmem:[%s25290_s3 + $0x1d8c] ss:$16 sps:$4 sm:$0xff]  }
 0x6b3   :  { %12234 = vmatpush1.bf16.msra.mxu0 %v18950_v0  ;;  %v19015_v0 = vld [vmem:[%s25290_s3 + $0x1f8c] ss:$16 sps:$4 sm:$0xff]  }
 0x6b4   :  { %12275 = vmatpush1.bf16.msra.mxu1 %v18953_v16  ;;  %12235 = vmatprep.subr.bf16.mxu0 %v18958_v43  ;;  %v19010_v16 = vld [vmem:[%s25290_s3 + $0x1d88] ss:$16 sps:$4 sm:$0xff]  }
 0x6b5   :  { %12276 = vmatprep.subr.bf16.mxu1 %v18961_v22  ;;  %v19013_v43 = vld [vmem:[%s25290_s3 + $0x1f88] ss:$16 sps:$4 sm:$0xff]   ;;  %v19018_v22 = vld [vmem:[%s25290_s3 + $0x1dac] ss:$16 sps:$4 sm:$0xff]  }
 0x6b7   :  { %12236 = vmatpush1.bf16.msra.mxu0 %v18956_v56  ;;  %v19021_v56 = vld [vmem:[%s25290_s3 + $0x1fac] ss:$16 sps:$4 sm:$0xff]  }
 0x6b8   :  { %12277 = vmatpush1.bf16.msra.mxu1 %v18959_v32  ;;  %12237 = vmatprep.subr.bf16.mxu0 %v18964_v57  ;;  %v19016_v32 = vld [vmem:[%s25290_s3 + $0x1da8] ss:$16 sps:$4 sm:$0xff]  }
 0x6b9   :  { %12278 = vmatprep.subr.bf16.mxu1 %v18967_v13  ;;  %v19019_v57 = vld [vmem:[%s25290_s3 + $0x1fa8] ss:$16 sps:$4 sm:$0xff]   ;;  %v19024_v13 = vld [vmem:[%s25290_s3 + $0x1dcc] ss:$16 sps:$4 sm:$0xff]  }
 0x6bb   :  { %12238 = vmatpush1.bf16.msra.mxu0 %v18962_v34  ;;  %v19027_v34 = vld [vmem:[%s25290_s3 + $0x1fcc] ss:$16 sps:$4 sm:$0xff]  }
 0x6bc   :  { %12279 = vmatpush1.bf16.msra.mxu1 %v18965_v18  ;;  %12239 = vmatprep.subr.bf16.mxu0 %v18970_v6  ;;  %v19022_v18 = vld [vmem:[%s25290_s3 + $0x1dc8] ss:$16 sps:$4 sm:$0xff]  }
 0x6bd   :  { %v10337_v1 = vpop.f32.mrb[52].mxu0  ;;  %12280 = vmatprep.subr.bf16.mxu1 %v18973_v30  ;;  %v19025_v6 = vld [vmem:[%s25290_s3 + $0x1fc8] ss:$16 sps:$4 sm:$0xff]   ;;  %v19030_v30 = vld [vmem:[%s25290_s3 + $0x1dec] ss:$16 sps:$4 sm:$0xff]  }
 0x6be   :  { %v10378_v2 = vpop.f32.mrb[52].mxu1  ;;  %v10339_v45 = vpop.f32.mrb[53].mxu0 }
 0x6bf   :  { %v10379_v58 = vadd.f32 %v10378_v2, %v10337_v1  ;;  %v10380_v42 = vpop.f32.mrb[53].mxu1  ;;  %v10341_v59 = vpop.f32.mrb[54].mxu0  ;;  %12240 = vmatpush1.bf16.msra.mxu0 %v18968_v17  ;;  %v19033_v17 = vld [vmem:[%s25290_s3 + $0x1fec] ss:$16 sps:$4 sm:$0xff]   ;;  %v19036_v1 = vld [vmem:[%s25290_s3 + $0x2004] ss:$16 sps:$4 sm:$0xff]  }
 0x6c0   :  { %v10381_v4 = vadd.f32 %v10380_v42, %v10339_v45  ;;  %v10382_v20 = vpop.f32.mrb[54].mxu1  ;;  %12281 = vmatpush1.bf16.msra.mxu1 %v18971_v39  ;;  %v10342_v46 = vpop.f32.mrb[55].mxu0  ;;  %12241 = vmatprep.subr.bf16.mxu0 %v18976_v21  ;;  %v19028_v39 = vld [vmem:[%s25290_s3 + $0x1de8] ss:$16 sps:$4 sm:$0xff]   ;;  %v19034_v2 = vld [vmem:[%s25290_s3 + $0x2000] ss:$16 sps:$4 sm:$0xff]   ;;  %v24649_v42 = vpack.c.bf16 %v21421_v26, %v21421_v26 }
 0x6c1   :  { %v24521_v33 = vadd.f32 %v10379_v58, %v24101_v11  ;;  %v10383_v55 = vpop.f32.mrb[55].mxu1  ;;  %12282 = vmatprep.subr.bf16.mxu1 %v18979_v24  ;;  %v18983_v11 = vld [vmem:[%s25290_s3 + $0x1ee8] ss:$16 sps:$4 sm:$0xff]   ;;  %v19039_v24 = vld [vmem:[%s25290_s3 + $0x2204] ss:$16 sps:$4 sm:$0xff]  }
 0x6c2   :  { %v24527_v25 = vadd.f32 %v10381_v4, %v24107_v38  ;;  %v18991_v38 = vld [vmem:[%s25290_s3 + $0x1f0c] ss:$16 sps:$4 sm:$0xff]   ;;  %v19031_v21 = vld [vmem:[%s25290_s3 + $0x1fe8] ss:$16 sps:$4 sm:$0xff]   ;;  %v19037_v45 = vld [vmem:[%s25290_s3 + $0x2200] ss:$16 sps:$4 sm:$0xff]  }
 0x6c3   :  { %12242 = vmatpush1.bf16.msra.mxu0 %v18974_v12  ;;  %v19042_v58 = vld [vmem:[%s25290_s3 + $0x2024] ss:$16 sps:$4 sm:$0xff]   ;;  %v24657_v12 = vpack.c.bf16 %v21426_v27, %v21426_v27  ;;  %v19040_v4 = vld [vmem:[%s25290_s3 + $0x2020] ss:$16 sps:$4 sm:$0xff]  }
 0x6c4   :  { %12283 = vmatpush1.bf16.msra.mxu1 %v18977_v61  ;;  %12243 = vmatprep.subr.bf16.mxu0 %v18982_v8  ;;  %v19045_v59 = vld [vmem:[%s25290_s3 + $0x2224] ss:$16 sps:$4 sm:$0xff]   ;;  %v19043_v26 = vld [vmem:[%s25290_s3 + $0x2220] ss:$16 sps:$4 sm:$0xff]  }
 0x6c5   :  { %12284 = vmatprep.subr.bf16.mxu1 %v18985_v14  ;;  %v19051_v27 = vld [vmem:[%s25290_s3 + $0x2244] ss:$16 sps:$4 sm:$0xff]   ;;  %v19049_v20 = vld [vmem:[%s25290_s3 + $0x2240] ss:$16 sps:$4 sm:$0xff]  }
 0x6c6   :  { %v19054_v46 = vld [vmem:[%s25290_s3 + $0x2064] ss:$16 sps:$4 sm:$0xff]   ;;  %v19052_v8 = vld [vmem:[%s25290_s3 + $0x2060] ss:$16 sps:$4 sm:$0xff]  }
 0x6c7   :  { %12244 = vmatpush1.bf16.msra.mxu0 %v18980_v40  ;;  %v19057_v61 = vld [vmem:[%s25290_s3 + $0x2264] ss:$16 sps:$4 sm:$0xff]   ;;  %v19055_v55 = vld [vmem:[%s25290_s3 + $0x2260] ss:$16 sps:$4 sm:$0xff]  }
 0x6c8   :  { %12285 = vmatpush1.bf16.msra.mxu1 %v18983_v11  ;;  %12245 = vmatprep.subr.bf16.mxu0 %v18988_v63  ;;  %v19060_v14 = vld [vmem:[%s25290_s3 + $0x2084] ss:$16 sps:$4 sm:$0xff]   ;;  %v19058_v11 = vld [vmem:[%s25290_s3 + $0x2080] ss:$16 sps:$4 sm:$0xff]  }
 0x6c9   :  { %12286 = vmatprep.subr.bf16.mxu1 %v18991_v38  ;;  %v19063_v40 = vld [vmem:[%s25290_s3 + $0x2284] ss:$16 sps:$4 sm:$0xff]   ;;  %v19061_v63 = vld [vmem:[%s25290_s3 + $0x2280] ss:$16 sps:$4 sm:$0xff]  }
 0x6ca   :  { %v19066_v38 = vld [vmem:[%s25290_s3 + $0x20a4] ss:$16 sps:$4 sm:$0xff]  }
 0x6cb   :  { %12246 = vmatpush1.bf16.msra.mxu0 %v18986_v62  ;;  %v19069_v62 = vld [vmem:[%s25290_s3 + $0x22a4] ss:$16 sps:$4 sm:$0xff]  }
 0x6cc   :  { %12287 = vmatpush1.bf16.msra.mxu1 %v18989_v44  ;;  %12247 = vmatprep.subr.bf16.mxu0 %v18994_v31  ;;  %v19064_v44 = vld [vmem:[%s25290_s3 + $0x20a0] ss:$16 sps:$4 sm:$0xff]  }
 0x6cd   :  { %12288 = vmatprep.subr.bf16.mxu1 %v18997_v41  ;;  %v19067_v31 = vld [vmem:[%s25290_s3 + $0x22a0] ss:$16 sps:$4 sm:$0xff]   ;;  %v19072_v41 = vld [vmem:[%s25290_s3 + $0x20c4] ss:$16 sps:$4 sm:$0xff]  }
 0x6cf   :  { %12248 = vmatpush1.bf16.msra.mxu0 %v18992_v60 }
 0x6d0   :  { %12289 = vmatpush1.bf16.msra.mxu1 %v18995_v47  ;;  %12249 = vmatprep.subr.bf16.mxu0 %v19000_v3  ;;  %v19075_v47 = vld [vmem:[%s25290_s3 + $0x22c4] ss:$16 sps:$4 sm:$0xff]  }
 0x6d1   :  { %12290 = vmatprep.subr.bf16.mxu1 %v19003_v36 }
 0x6d3   :  { %12250 = vmatpush1.bf16.msra.mxu0 %v18998_v23 }
 0x6d4   :  { %12291 = vmatpush1.bf16.msra.mxu1 %v19001_v29  ;;  %12251 = vmatprep.subr.bf16.mxu0 %v19006_v5 }
 0x6d5   :  { %12292 = vmatprep.subr.bf16.mxu1 %v19009_v10  ;;  %v19070_v10 = vld [vmem:[%s25290_s3 + $0x20c0] ss:$16 sps:$4 sm:$0xff]  }
 0x6d7   :  { %12252 = vmatpush1.bf16.msra.mxu0 %v19004_v9 }
 0x6d8   :  { %12293 = vmatpush1.bf16.msra.mxu1 %v19007_v15  ;;  %12253 = vmatprep.subr.bf16.mxu0 %v19012_v28 }
 0x6d9   :  { %12294 = vmatprep.subr.bf16.mxu1 %v19015_v0  ;;  %v19073_v0 = vld [vmem:[%s25290_s3 + $0x22c0] ss:$16 sps:$4 sm:$0xff]  }
 0x6db   :  { %12254 = vmatpush1.bf16.msra.mxu0 %v19010_v16  ;;  %v19078_v16 = vld [vmem:[%s25290_s3 + $0x20e4] ss:$16 sps:$4 sm:$0xff]  }
 0x6dc   :  { %12295 = vmatpush1.bf16.msra.mxu1 %v19013_v43  ;;  %12255 = vmatprep.subr.bf16.mxu0 %v19018_v22 }
 0x6dd   :  { %12296 = vmatprep.subr.bf16.mxu1 %v19021_v56  ;;  %v19081_v56 = vld [vmem:[%s25290_s3 + $0x22e4] ss:$16 sps:$4 sm:$0xff]  }
 0x6df   :  { %12256 = vmatpush1.bf16.msra.mxu0 %v19016_v32 }
 0x6e0   :  { %12297 = vmatpush1.bf16.msra.mxu1 %v19019_v57  ;;  %12257 = vmatprep.subr.bf16.mxu0 %v19024_v13  ;;  %v19076_v57 = vld [vmem:[%s25290_s3 + $0x20e0] ss:$16 sps:$4 sm:$0xff]   ;;  %v19084_v13 = vld [vmem:[%s25290_s3 + $0x2104] ss:$16 sps:$4 sm:$0xff]  }
 0x6e1   :  { %12298 = vmatprep.subr.bf16.mxu1 %v19027_v34  ;;  %v19082_v34 = vld [vmem:[%s25290_s3 + $0x2100] ss:$16 sps:$4 sm:$0xff]  }
 0x6e3   :  { %12258 = vmatpush1.bf16.msra.mxu0 %v19022_v18  ;;  %v19085_v18 = vld [vmem:[%s25290_s3 + $0x2300] ss:$16 sps:$4 sm:$0xff]  }
 0x6e4   :  { %12299 = vmatpush1.bf16.msra.mxu1 %v19025_v6  ;;  %12259 = vmatprep.subr.bf16.mxu0 %v19030_v30  ;;  %v19090_v6 = vld [vmem:[%s25290_s3 + $0x2124] ss:$16 sps:$4 sm:$0xff]  }
 0x6e5   :  { %12300 = vmatprep.subr.bf16.mxu1 %v19033_v17  ;;  %v19093_v30 = vld [vmem:[%s25290_s3 + $0x2324] ss:$16 sps:$4 sm:$0xff]   ;;  %v19088_v17 = vld [vmem:[%s25290_s3 + $0x2120] ss:$16 sps:$4 sm:$0xff]  }
 0x6e7   :  { %12260 = vmatpush1.bf16.msra.mxu0 %v19028_v39  ;;  %v19091_v39 = vld [vmem:[%s25290_s3 + $0x2320] ss:$16 sps:$4 sm:$0xff]  }
 0x6e8   :  { %12301 = vmatpush1.bf16.msra.mxu1 %v19031_v21  ;;  %13092 = vmatprep.subr.bf16.mxu0 %v19036_v1  ;;  %v19096_v21 = vld [vmem:[%s25290_s3 + $0x2144] ss:$16 sps:$4 sm:$0xff]  }
 0x6e9   :  { %13133 = vmatprep.subr.bf16.mxu1 %v19039_v24  ;;  %v19099_v1 = vld [vmem:[%s25290_s3 + $0x2344] ss:$16 sps:$4 sm:$0xff]   ;;  %v19094_v24 = vld [vmem:[%s25290_s3 + $0x2140] ss:$16 sps:$4 sm:$0xff]  }
 0x6ea   :  { %12262 = vmatmul.mubr.bf16.vlgmr.msra.gmra.mrb[68].mxu0 %v24432_v35  ;;  %v19048_v35 = vld [vmem:[%s25290_s3 + $0x2044] ss:$16 sps:$4 sm:$0xff]  }
 0x6eb   :  { %12303 = vmatmul.mubr.bf16.vlgmr.msra.gmra.mrb[68].mxu1 %v24439_v37  ;;  %13093 = vmatpush1.bf16.msra.mxu0 %v19034_v2  ;;  %v19046_v37 = vld [vmem:[%s25290_s3 + $0x2040] ss:$16 sps:$4 sm:$0xff]  }
 0x6ec   :  { %13124 = vmatprep.mubr.bf16.mxu0 %v24649_v42  ;;  %13134 = vmatpush1.bf16.msra.mxu1 %v19037_v45  ;;  %v19097_v2 = vld [vmem:[%s25290_s3 + $0x2340] ss:$16 sps:$4 sm:$0xff]   ;;  %v19102_v45 = vld [vmem:[%s25290_s3 + $0x2164] ss:$16 sps:$4 sm:$0xff]  }
 0x6ed   :  { %13165 = vmatprep.mubr.bf16.mxu1 %v24657_v12  ;;  %13094 = vmatprep.subr.bf16.mxu0 %v19042_v58  ;;  %v19105_v58 = vld [vmem:[%s25290_s3 + $0x2364] ss:$16 sps:$4 sm:$0xff]  }
 0x6ee   :  { %13135 = vmatprep.subr.bf16.mxu1 %v19045_v59  ;;  %v19100_v59 = vld [vmem:[%s25290_s3 + $0x2160] ss:$16 sps:$4 sm:$0xff]  }
 0x6ef   :  { %13095 = vmatpush1.bf16.msra.mxu0 %v19040_v4  ;;  %v19103_v4 = vld [vmem:[%s25290_s3 + $0x2360] ss:$16 sps:$4 sm:$0xff]  }
 0x6f0   :  { %13136 = vmatpush1.bf16.msra.mxu1 %v19043_v26  ;;  %13096 = vmatprep.subr.bf16.mxu0 %v19048_v35  ;;  %v19108_v26 = vld [vmem:[%s25290_s3 + $0x2184] ss:$16 sps:$4 sm:$0xff]  }
 0x6f1   :  { %13137 = vmatprep.subr.bf16.mxu1 %v19051_v27  ;;  %v19111_v35 = vld [vmem:[%s25290_s3 + $0x2384] ss:$16 sps:$4 sm:$0xff]   ;;  %v19106_v27 = vld [vmem:[%s25290_s3 + $0x2180] ss:$16 sps:$4 sm:$0xff]  }
 0x6f3   :  { %13097 = vmatpush1.bf16.msra.mxu0 %v19046_v37  ;;  %v19109_v37 = vld [vmem:[%s25290_s3 + $0x2380] ss:$16 sps:$4 sm:$0xff]  }
 0x6f4   :  { %13138 = vmatpush1.bf16.msra.mxu1 %v19049_v20  ;;  %13098 = vmatprep.subr.bf16.mxu0 %v19054_v46  ;;  %v19114_v20 = vld [vmem:[%s25290_s3 + $0x21a4] ss:$16 sps:$4 sm:$0xff]  }
 0x6f5   :  { %13139 = vmatprep.subr.bf16.mxu1 %v19057_v61  ;;  %v19117_v46 = vld [vmem:[%s25290_s3 + $0x23a4] ss:$16 sps:$4 sm:$0xff]   ;;  %v19112_v61 = vld [vmem:[%s25290_s3 + $0x21a0] ss:$16 sps:$4 sm:$0xff]  }
 0x6f7   :  { %13099 = vmatpush1.bf16.msra.mxu0 %v19052_v8  ;;  %v19115_v8 = vld [vmem:[%s25290_s3 + $0x23a0] ss:$16 sps:$4 sm:$0xff]  }
 0x6f8   :  { %13140 = vmatpush1.bf16.msra.mxu1 %v19055_v55  ;;  %13100 = vmatprep.subr.bf16.mxu0 %v19060_v14  ;;  %v19120_v55 = vld [vmem:[%s25290_s3 + $0x21c4] ss:$16 sps:$4 sm:$0xff]  }
 0x6f9   :  { %13141 = vmatprep.subr.bf16.mxu1 %v19063_v40  ;;  %v19123_v14 = vld [vmem:[%s25290_s3 + $0x23c4] ss:$16 sps:$4 sm:$0xff]   ;;  %v19118_v40 = vld [vmem:[%s25290_s3 + $0x21c0] ss:$16 sps:$4 sm:$0xff]  }
 0x6fb   :  { %13101 = vmatpush1.bf16.msra.mxu0 %v19058_v11  ;;  %v19121_v11 = vld [vmem:[%s25290_s3 + $0x23c0] ss:$16 sps:$4 sm:$0xff]  }
 0x6fc   :  { %13142 = vmatpush1.bf16.msra.mxu1 %v19061_v63  ;;  %13102 = vmatprep.subr.bf16.mxu0 %v19066_v38  ;;  %v19126_v63 = vld [vmem:[%s25290_s3 + $0x21e4] ss:$16 sps:$4 sm:$0xff]  }
 0x6fd   :  { %v11216_v60 = vpop.f32.mrb[56].mxu0  ;;  %13143 = vmatprep.subr.bf16.mxu1 %v19069_v62  ;;  %v19129_v38 = vld [vmem:[%s25290_s3 + $0x23e4] ss:$16 sps:$4 sm:$0xff]   ;;  %v19124_v62 = vld [vmem:[%s25290_s3 + $0x21e0] ss:$16 sps:$4 sm:$0xff]  }
 0x6fe   :  { %v11257_v3 = vpop.f32.mrb[56].mxu1  ;;  %v11218_v36 = vpop.f32.mrb[57].mxu0 }
 0x6ff   :  { %v11258_v23 = vadd.f32 %v11257_v3, %v11216_v60  ;;  %v11259_v29 = vpop.f32.mrb[57].mxu1  ;;  %v11220_v5 = vpop.f32.mrb[58].mxu0  ;;  %13103 = vmatpush1.bf16.msra.mxu0 %v19064_v44  ;;  %v19127_v44 = vld [vmem:[%s25290_s3 + $0x23e0] ss:$16 sps:$4 sm:$0xff]   ;;  %v19130_v60 = vld [vmem:[%s25290_s3 + $0x2008] ss:$16 sps:$4 sm:$0xff]  }
 0x700   :  { %v11260_v9 = vadd.f32 %v11259_v29, %v11218_v36  ;;  %v11261_v15 = vpop.f32.mrb[58].mxu1  ;;  %13144 = vmatpush1.bf16.msra.mxu1 %v19067_v31  ;;  %v11221_v28 = vpop.f32.mrb[59].mxu0  ;;  %13104 = vmatprep.subr.bf16.mxu0 %v19072_v41  ;;  %v19132_v31 = vld [vmem:[%s25290_s3 + $0x200c] ss:$16 sps:$4 sm:$0xff]   ;;  %v19133_v3 = vld [vmem:[%s25290_s3 + $0x2208] ss:$16 sps:$4 sm:$0xff]   ;;  %v24859_v36 = vpack.c.bf16 %v21353_v54, %v21353_v54 }
 0x701   :  { %v24731_v43 = vadd.f32 %v11258_v23, %v24311_v19  ;;  %v11262_v22 = vpop.f32.mrb[59].mxu1  ;;  %13145 = vmatprep.subr.bf16.mxu1 %v19075_v47  ;;  %v19079_v19 = vld [vmem:[%s25290_s3 + $0x22e0] ss:$16 sps:$4 sm:$0xff]   ;;  %v19135_v41 = vld [vmem:[%s25290_s3 + $0x220c] ss:$16 sps:$4 sm:$0xff]   ;;  %v24852_v47 = vpack.c.bf16 %v21348_v49, %v21348_v49 }
 0x702   :  { %v24737_v32 = vadd.f32 %v11260_v9, %v24317_v7  ;;  %v19087_v7 = vld [vmem:[%s25290_s3 + $0x2304] ss:$16 sps:$4 sm:$0xff]   ;;  %v19138_v23 = vld [vmem:[%s25290_s3 + $0x202c] ss:$16 sps:$4 sm:$0xff]   ;;  %v19136_v29 = vld [vmem:[%s25290_s3 + $0x2028] ss:$16 sps:$4 sm:$0xff]  }
 0x703   :  { %13105 = vmatpush1.bf16.msra.mxu0 %v19070_v10  ;;  %v19141_v49 = vld [vmem:[%s25290_s3 + $0x222c] ss:$16 sps:$4 sm:$0xff]   ;;  %v19139_v54 = vld [vmem:[%s25290_s3 + $0x2228] ss:$16 sps:$4 sm:$0xff]  }
 0x704   :  { %13146 = vmatpush1.bf16.msra.mxu1 %v19073_v0  ;;  %13106 = vmatprep.subr.bf16.mxu0 %v19078_v16  ;;  %v19144_v5 = vld [vmem:[%s25290_s3 + $0x204c] ss:$16 sps:$4 sm:$0xff]   ;;  %v19145_v9 = vld [vmem:[%s25290_s3 + $0x2248] ss:$16 sps:$4 sm:$0xff]  }
 0x705   :  { %13147 = vmatprep.subr.bf16.mxu1 %v19081_v56  ;;  %v19147_v10 = vld [vmem:[%s25290_s3 + $0x224c] ss:$16 sps:$4 sm:$0xff]   ;;  %v19148_v28 = vld [vmem:[%s25290_s3 + $0x2068] ss:$16 sps:$4 sm:$0xff]  }
 0x706   :  { %v19153_v15 = vld [vmem:[%s25290_s3 + $0x226c] ss:$16 sps:$4 sm:$0xff]   ;;  %v19151_v0 = vld [vmem:[%s25290_s3 + $0x2268] ss:$16 sps:$4 sm:$0xff]  }
 0x707   :  { %13107 = vmatpush1.bf16.msra.mxu0 %v19076_v57  ;;  %v19156_v16 = vld [vmem:[%s25290_s3 + $0x208c] ss:$16 sps:$4 sm:$0xff]   ;;  %v19154_v56 = vld [vmem:[%s25290_s3 + $0x2088] ss:$16 sps:$4 sm:$0xff]  }
 0x708   :  { %13148 = vmatpush1.bf16.msra.mxu1 %v19079_v19  ;;  %13108 = vmatprep.subr.bf16.mxu0 %v19084_v13  ;;  %v19159_v22 = vld [vmem:[%s25290_s3 + $0x228c] ss:$16 sps:$4 sm:$0xff]   ;;  %v19157_v57 = vld [vmem:[%s25290_s3 + $0x2288] ss:$16 sps:$4 sm:$0xff]  }
 0x709   :  { %13149 = vmatprep.subr.bf16.mxu1 %v19087_v7  ;;  %v19162_v19 = vld [vmem:[%s25290_s3 + $0x20ac] ss:$16 sps:$4 sm:$0xff]   ;;  %v19160_v7 = vld [vmem:[%s25290_s3 + $0x20a8] ss:$16 sps:$4 sm:$0xff]  }
 0x70a   :  { %v19165_v13 = vld [vmem:[%s25290_s3 + $0x22ac] ss:$16 sps:$4 sm:$0xff]  }
 0x70b   :  { %13109 = vmatpush1.bf16.msra.mxu0 %v19082_v34  ;;  %v19163_v34 = vld [vmem:[%s25290_s3 + $0x22a8] ss:$16 sps:$4 sm:$0xff]  }
 0x70c   :  { %13150 = vmatpush1.bf16.msra.mxu1 %v19085_v18  ;;  %13110 = vmatprep.subr.bf16.mxu0 %v19090_v6  ;;  %v19168_v18 = vld [vmem:[%s25290_s3 + $0x20cc] ss:$16 sps:$4 sm:$0xff]  }
 0x70d   :  { %13151 = vmatprep.subr.bf16.mxu1 %v19093_v30  ;;  %v19171_v30 = vld [vmem:[%s25290_s3 + $0x22cc] ss:$16 sps:$4 sm:$0xff]  }
 0x70f   :  { %13111 = vmatpush1.bf16.msra.mxu0 %v19088_v17 }
 0x710   :  { %13152 = vmatpush1.bf16.msra.mxu1 %v19091_v39  ;;  %13112 = vmatprep.subr.bf16.mxu0 %v19096_v21 }
 0x711   :  { %13153 = vmatprep.subr.bf16.mxu1 %v19099_v1 }
 0x713   :  { %13113 = vmatpush1.bf16.msra.mxu0 %v19094_v24 }
 0x714   :  { %13154 = vmatpush1.bf16.msra.mxu1 %v19097_v2  ;;  %13114 = vmatprep.subr.bf16.mxu0 %v19102_v45  ;;  %v19166_v2 = vld [vmem:[%s25290_s3 + $0x20c8] ss:$16 sps:$4 sm:$0xff]  }
 0x715   :  { %13155 = vmatprep.subr.bf16.mxu1 %v19105_v58 }
 0x717   :  { %13115 = vmatpush1.bf16.msra.mxu0 %v19100_v59 }
 0x718   :  { %13156 = vmatpush1.bf16.msra.mxu1 %v19103_v4  ;;  %13116 = vmatprep.subr.bf16.mxu0 %v19108_v26  ;;  %v19169_v4 = vld [vmem:[%s25290_s3 + $0x22c8] ss:$16 sps:$4 sm:$0xff]   ;;  %v19174_v26 = vld [vmem:[%s25290_s3 + $0x20ec] ss:$16 sps:$4 sm:$0xff]  }
 0x719   :  { %13157 = vmatprep.subr.bf16.mxu1 %v19111_v35 }
 0x71b   :  { %13117 = vmatpush1.bf16.msra.mxu0 %v19106_v27 }
 0x71c   :  { %13158 = vmatpush1.bf16.msra.mxu1 %v19109_v37  ;;  %13118 = vmatprep.subr.bf16.mxu0 %v19114_v20  ;;  %v19177_v37 = vld [vmem:[%s25290_s3 + $0x22ec] ss:$16 sps:$4 sm:$0xff]  }
 0x71d   :  { %13159 = vmatprep.subr.bf16.mxu1 %v19117_v46  ;;  %v19172_v46 = vld [vmem:[%s25290_s3 + $0x20e8] ss:$16 sps:$4 sm:$0xff]  }
 0x71f   :  { %13119 = vmatpush1.bf16.msra.mxu0 %v19112_v61  ;;  %v19180_v61 = vld [vmem:[%s25290_s3 + $0x210c] ss:$16 sps:$4 sm:$0xff]  }
 0x720   :  { %13160 = vmatpush1.bf16.msra.mxu1 %v19115_v8  ;;  %13120 = vmatprep.subr.bf16.mxu0 %v19120_v55  ;;  %v19178_v8 = vld [vmem:[%s25290_s3 + $0x2108] ss:$16 sps:$4 sm:$0xff]  }
 0x721   :  { %13161 = vmatprep.subr.bf16.mxu1 %v19123_v14  ;;  %v19181_v55 = vld [vmem:[%s25290_s3 + $0x2308] ss:$16 sps:$4 sm:$0xff]   ;;  %v19186_v14 = vld [vmem:[%s25290_s3 + $0x212c] ss:$16 sps:$4 sm:$0xff]  }
 0x723   :  { %13121 = vmatpush1.bf16.msra.mxu0 %v19118_v40  ;;  %v19189_v40 = vld [vmem:[%s25290_s3 + $0x232c] ss:$16 sps:$4 sm:$0xff]  }
 0x724   :  { %13162 = vmatpush1.bf16.msra.mxu1 %v19121_v11  ;;  %13122 = vmatprep.subr.bf16.mxu0 %v19126_v63  ;;  %v19184_v11 = vld [vmem:[%s25290_s3 + $0x2128] ss:$16 sps:$4 sm:$0xff]  }
 0x725   :  { %13163 = vmatprep.subr.bf16.mxu1 %v19129_v38  ;;  %v19187_v63 = vld [vmem:[%s25290_s3 + $0x2328] ss:$16 sps:$4 sm:$0xff]   ;;  %v19192_v38 = vld [vmem:[%s25290_s3 + $0x214c] ss:$16 sps:$4 sm:$0xff]  }
 0x727   :  { %13123 = vmatpush1.bf16.msra.mxu0 %v19124_v62  ;;  %v19195_v62 = vld [vmem:[%s25290_s3 + $0x234c] ss:$16 sps:$4 sm:$0xff]  }
 0x728   :  { %13164 = vmatpush1.bf16.msra.mxu1 %v19127_v44  ;;  %13174 = vmatprep.subr.bf16.mxu0 %v19132_v31  ;;  %v19190_v44 = vld [vmem:[%s25290_s3 + $0x2148] ss:$16 sps:$4 sm:$0xff]  }
 0x729   :  { %13215 = vmatprep.subr.bf16.mxu1 %v19135_v41  ;;  %v19193_v31 = vld [vmem:[%s25290_s3 + $0x2348] ss:$16 sps:$4 sm:$0xff]   ;;  %v19198_v41 = vld [vmem:[%s25290_s3 + $0x216c] ss:$16 sps:$4 sm:$0xff]  }
 0x72a   :  { %13125 = vmatmul.mubr.bf16.vlgmr.msra.gmra.mrb[72].mxu0 %v24852_v47 }
 0x72b   :  { %13166 = vmatmul.mubr.bf16.vlgmr.msra.gmra.mrb[72].mxu1 %v24859_v36  ;;  %13175 = vmatpush1.bf16.msra.mxu0 %v19130_v60  ;;  %v19201_v60 = vld [vmem:[%s25290_s3 + $0x236c] ss:$16 sps:$4 sm:$0xff]  }
 0x72c   :  { %13206 = vmatprep.mubr.bf16.mxu0 %v24649_v42  ;;  %13216 = vmatpush1.bf16.msra.mxu1 %v19133_v3  ;;  %v19142_v42 = vld [vmem:[%s25290_s3 + $0x2048] ss:$16 sps:$4 sm:$0xff]  }
 0x72d   :  { %13247 = vmatprep.mubr.bf16.mxu1 %v24657_v12  ;;  %13176 = vmatprep.subr.bf16.mxu0 %v19138_v23  ;;  %v19150_v12 = vld [vmem:[%s25290_s3 + $0x206c] ss:$16 sps:$4 sm:$0xff]   ;;  %v19196_v3 = vld [vmem:[%s25290_s3 + $0x2168] ss:$16 sps:$4 sm:$0xff]  }
 0x72e   :  { %13217 = vmatprep.subr.bf16.mxu1 %v19141_v49  ;;  %v19199_v23 = vld [vmem:[%s25290_s3 + $0x2368] ss:$16 sps:$4 sm:$0xff]   ;;  %v19204_v49 = vld [vmem:[%s25290_s3 + $0x218c] ss:$16 sps:$4 sm:$0xff]  }
 0x72f   :  { %13177 = vmatpush1.bf16.msra.mxu0 %v19136_v29  ;;  %v19207_v29 = vld [vmem:[%s25290_s3 + $0x238c] ss:$16 sps:$4 sm:$0xff]  }
 0x730   :  { %13218 = vmatpush1.bf16.msra.mxu1 %v19139_v54  ;;  %13178 = vmatprep.subr.bf16.mxu0 %v19144_v5  ;;  %v19202_v54 = vld [vmem:[%s25290_s3 + $0x2188] ss:$16 sps:$4 sm:$0xff]  }
 0x731   :  { %13219 = vmatprep.subr.bf16.mxu1 %v19147_v10  ;;  %v19205_v5 = vld [vmem:[%s25290_s3 + $0x2388] ss:$16 sps:$4 sm:$0xff]   ;;  %v19210_v10 = vld [vmem:[%s25290_s3 + $0x21ac] ss:$16 sps:$4 sm:$0xff]  }
 0x733   :  { %13179 = vmatpush1.bf16.msra.mxu0 %v19142_v42  ;;  %v19213_v42 = vld [vmem:[%s25290_s3 + $0x23ac] ss:$16 sps:$4 sm:$0xff]  }
 0x734   :  { %13220 = vmatpush1.bf16.msra.mxu1 %v19145_v9  ;;  %13180 = vmatprep.subr.bf16.mxu0 %v19150_v12  ;;  %v19208_v9 = vld [vmem:[%s25290_s3 + $0x21a8] ss:$16 sps:$4 sm:$0xff]  }
 0x735   :  { %13221 = vmatprep.subr.bf16.mxu1 %v19153_v15  ;;  %v19211_v12 = vld [vmem:[%s25290_s3 + $0x23a8] ss:$16 sps:$4 sm:$0xff]   ;;  %v19216_v15 = vld [vmem:[%s25290_s3 + $0x21cc] ss:$16 sps:$4 sm:$0xff]  }
 0x737   :  { %13181 = vmatpush1.bf16.msra.mxu0 %v19148_v28  ;;  %v19219_v28 = vld [vmem:[%s25290_s3 + $0x23cc] ss:$16 sps:$4 sm:$0xff]  }
 0x738   :  { %13222 = vmatpush1.bf16.msra.mxu1 %v19151_v0  ;;  %13182 = vmatprep.subr.bf16.mxu0 %v19156_v16  ;;  %v19214_v0 = vld [vmem:[%s25290_s3 + $0x21c8] ss:$16 sps:$4 sm:$0xff]  }
 0x739   :  { %13223 = vmatprep.subr.bf16.mxu1 %v19159_v22  ;;  %v19217_v16 = vld [vmem:[%s25290_s3 + $0x23c8] ss:$16 sps:$4 sm:$0xff]   ;;  %v19222_v22 = vld [vmem:[%s25290_s3 + $0x21ec] ss:$16 sps:$4 sm:$0xff]  }
 0x73b   :  { %13183 = vmatpush1.bf16.msra.mxu0 %v19154_v56  ;;  %v19225_v56 = vld [vmem:[%s25290_s3 + $0x23ec] ss:$16 sps:$4 sm:$0xff]  }
 0x73c   :  { %13224 = vmatpush1.bf16.msra.mxu1 %v19157_v57  ;;  %13184 = vmatprep.subr.bf16.mxu0 %v19162_v19  ;;  %v13314_v57 = vld [vmem:[%s25292_s5 + $0x80] sm:$0xff]  ;;  %v13315_v19 = vld [vmem:[%s25292_s5 + $0x88] sm:$0xff] }
 0x73d   :  { %v11298_v6 = vpop.f32.mrb[60].mxu0  ;;  %13225 = vmatprep.subr.bf16.mxu1 %v19165_v13  ;;  %v19220_v13 = vld [vmem:[%s25290_s3 + $0x21e8] ss:$16 sps:$4 sm:$0xff]  }
 0x73e   :  { %v11339_v17 = vpop.f32.mrb[60].mxu1  ;;  %v11300_v39 = vpop.f32.mrb[61].mxu0 }
 0x73f   :  { %v11340_v21 = vadd.f32 %v11339_v17, %v11298_v6  ;;  %v11341_v1 = vpop.f32.mrb[61].mxu1  ;;  %v11302_v24 = vpop.f32.mrb[62].mxu0  ;;  %13185 = vmatpush1.bf16.msra.mxu0 %v19160_v7  ;;  %v19223_v7 = vld [vmem:[%s25290_s3 + $0x23e8] ss:$16 sps:$4 sm:$0xff]  }
 0x740   :  { %v11342_v45 = vadd.f32 %v11341_v1, %v11300_v39  ;;  %v11343_v58 = vpop.f32.mrb[62].mxu1  ;;  %13226 = vmatpush1.bf16.msra.mxu1 %v19163_v34  ;;  %v11303_v59 = vpop.f32.mrb[63].mxu0  ;;  %13186 = vmatprep.subr.bf16.mxu0 %v19168_v18  ;;  %v16384_v34 = vpack.c.bf16 %v13315_v19, %v13314_v57  ;;  %v13298_v18 = vld [vmem:[%s25292_s5] sm:$0xff]  ;;  %v13299_v6 = vld [vmem:[%s25292_s5 + $0x8] sm:$0xff]  ;;  %v13317_v17 = vld [vmem:[%s25292_s5 + $0x98] sm:$0xff] }
 0x741   :  { %v24941_v35 = vadd.f32 %v11340_v21, %v24521_v33  ;;  %v11344_v27 = vpop.f32.mrb[63].mxu1  ;;  %13227 = vmatprep.subr.bf16.mxu1 %v19171_v30  ;;  %v19175_v33 = vld [vmem:[%s25290_s3 + $0x22e8] ss:$16 sps:$4 sm:$0xff]   ;;  %v13316_v30 = vld [vmem:[%s25292_s5 + $0x90] sm:$0xff]  ;;  %v16386_v39 = vpack.c.bf16 %v13299_v6, %v13298_v18  ;;  %v13330_v6 = vld [vmem:[%s25292_s5 + $0x100] sm:$0xff] }
 0x742   :  { %v24947_v20 = vadd.f32 %v11342_v45, %v24527_v25  ;;  %v19183_v25 = vld [vmem:[%s25290_s3 + $0x230c] ss:$16 sps:$4 sm:$0xff]   ;;  %v16388_v21 = vpack.c.bf16 %v13317_v17, %v13316_v30  ;;  %v13300_v1 = vld [vmem:[%s25292_s5 + $0x10] sm:$0xff] }
 0x743   :  { %13187 = vmatpush1.bf16.msra.mxu0 %v19166_v2  ;;  %v13301_v24 = vld [vmem:[%s25292_s5 + $0x18] sm:$0xff]  ;;  %v13318_v2 = vld [vmem:[%s25292_s5 + $0xa0] sm:$0xff]  ;;  %v13319_v45 = vld [vmem:[%s25292_s5 + $0xa8] sm:$0xff] }
 0x744   :  { %13228 = vmatpush1.bf16.msra.mxu1 %v19169_v4  ;;  %13188 = vmatprep.subr.bf16.mxu0 %v19174_v26  ;;  %v16390_v58 = vpack.c.bf16 %v13301_v24, %v13300_v1  ;;  %v16392_v59 = vpack.c.bf16 %v13319_v45, %v13318_v2  ;;  %v13302_v4 = vld [vmem:[%s25292_s5 + $0x20] sm:$0xff]  ;;  %v13303_v26 = vld [vmem:[%s25292_s5 + $0x28] sm:$0xff]  ;;  %v13320_v27 = vld [vmem:[%s25292_s5 + $0xb0] sm:$0xff] }
 0x745   :  { %13229 = vmatprep.subr.bf16.mxu1 %v19177_v37  ;;  %v13347_v18 = vld [vmem:[%s25292_s5 + $0x188] sm:$0xff]  ;;  %v13349_v1 = vld [vmem:[%s25292_s5 + $0x198] sm:$0xff]  ;;  %v13332_v45 = vld [vmem:[%s25292_s5 + $0x110] sm:$0xff] }
 0x747   :  { %13189 = vmatpush1.bf16.msra.mxu0 %v19172_v46  ;;  %v13304_v46 = vld [vmem:[%s25292_s5 + $0x30] sm:$0xff] }
 0x748   :  { %13230 = vmatpush1.bf16.msra.mxu1 %v19175_v33  ;;  %13190 = vmatprep.subr.bf16.mxu0 %v19180_v61  ;;  %v13305_v33 = vld [vmem:[%s25292_s5 + $0x38] sm:$0xff]  ;;  %v13322_v61 = vld [vmem:[%s25292_s5 + $0xc0] sm:$0xff] }
 0x749   :  { %13231 = vmatprep.subr.bf16.mxu1 %v19183_v25  ;;  %v13323_v25 = vld [vmem:[%s25292_s5 + $0xc8] sm:$0xff] }
 0x74b   :  { %13191 = vmatpush1.bf16.msra.mxu0 %v19178_v8  ;;  %v16398_v8 = vpack.c.bf16 %v13305_v33, %v13304_v46  ;;  %v13353_v46 = vld [vmem:[%s25292_s5 + $0x1b8] sm:$0xff] }
 0x74c   :  { %13232 = vmatpush1.bf16.msra.mxu1 %v19181_v55  ;;  %13192 = vmatprep.subr.bf16.mxu0 %v19186_v14  ;;  %v16400_v55 = vpack.c.bf16 %v13323_v25, %v13322_v61  ;;  %v13306_v14 = vld [vmem:[%s25292_s5 + $0x40] sm:$0xff]  ;;  %v13336_v25 = vld [vmem:[%s25292_s5 + $0x130] sm:$0xff] }
 0x74d   :  { %13233 = vmatprep.subr.bf16.mxu1 %v19189_v40  ;;  %v13307_v40 = vld [vmem:[%s25292_s5 + $0x48] sm:$0xff] }
 0x74f   :  { %13193 = vmatpush1.bf16.msra.mxu0 %v19184_v11  ;;  %v16402_v11 = vpack.c.bf16 %v13307_v40, %v13306_v14  ;;  %v13355_v14 = vld [vmem:[%s25292_s5 + $0x1c8] sm:$0xff] }
 0x750   :  { %13234 = vmatpush1.bf16.msra.mxu1 %v19187_v63  ;;  %13194 = vmatprep.subr.bf16.mxu0 %v19192_v38 }
 0x751   :  { %13235 = vmatprep.subr.bf16.mxu1 %v19195_v62 }
 0x753   :  { %13195 = vmatpush1.bf16.msra.mxu0 %v19190_v44 }
 0x754   :  { %13236 = vmatpush1.bf16.msra.mxu1 %v19193_v31  ;;  %13196 = vmatprep.subr.bf16.mxu0 %v19198_v41 }
 0x755   :  { %13237 = vmatprep.subr.bf16.mxu1 %v19201_v60 }
 0x757   :  { %13197 = vmatpush1.bf16.msra.mxu0 %v19196_v3 }
 0x758   :  { %13238 = vmatpush1.bf16.msra.mxu1 %v19199_v23  ;;  %13198 = vmatprep.subr.bf16.mxu0 %v19204_v49 }
 0x759   :  { %13239 = vmatprep.subr.bf16.mxu1 %v19207_v29 }
 0x75b   :  { %13199 = vmatpush1.bf16.msra.mxu0 %v19202_v54 }
 0x75c   :  { %13240 = vmatpush1.bf16.msra.mxu1 %v19205_v5  ;;  %13200 = vmatprep.subr.bf16.mxu0 %v19210_v10  ;;  %v13324_v5 = vld [vmem:[%s25292_s5 + $0xd0] sm:$0xff]  ;;  %v13325_v10 = vld [vmem:[%s25292_s5 + $0xd8] sm:$0xff] }
 0x75d   :  { %13241 = vmatprep.subr.bf16.mxu1 %v19213_v42  ;;  %v16404_v42 = vpack.c.bf16 %v13325_v10, %v13324_v5 }
 0x75f   :  { %13201 = vmatpush1.bf16.msra.mxu0 %v19208_v9  ;;  %v13308_v9 = vld [vmem:[%s25292_s5 + $0x50] sm:$0xff] }
 0x760   :  { %13242 = vmatpush1.bf16.msra.mxu1 %v19211_v12  ;;  %13202 = vmatprep.subr.bf16.mxu0 %v19216_v15  ;;  %v13327_v15 = vld [vmem:[%s25292_s5 + $0xe8] sm:$0xff] }
 0x761   :  { %13243 = vmatprep.subr.bf16.mxu1 %v19219_v28  ;;  %v13310_v28 = vld [vmem:[%s25292_s5 + $0x60] sm:$0xff] }
 0x763   :  { %13203 = vmatpush1.bf16.msra.mxu0 %v19214_v0  ;;  %v13311_v0 = vld [vmem:[%s25292_s5 + $0x68] sm:$0xff] }
 0x764   :  { %13244 = vmatpush1.bf16.msra.mxu1 %v19217_v16  ;;  %13204 = vmatprep.subr.bf16.mxu0 %v19222_v22  ;;  %v13328_v22 = vld [vmem:[%s25292_s5 + $0xf0] sm:$0xff]  ;;  %v16410_v57 = vpack.c.bf16 %v13311_v0, %v13310_v28 }
 0x765   :  { %13245 = vmatprep.subr.bf16.mxu1 %v19225_v56  ;;  %v13329_v56 = vld [vmem:[%s25292_s5 + $0xf8] sm:$0xff]  ;;  %v13340_v28 = vld [vmem:[%s25292_s5 + $0x150] sm:$0xff] }
 0x766   :  { %v16412_v19 = vpack.c.bf16 %v13329_v56, %v13328_v22  ;;  %v13342_v22 = vld [vmem:[%s25292_s5 + $0x160] sm:$0xff]  ;;  %v13343_v56 = vld [vmem:[%s25292_s5 + $0x168] sm:$0xff] }
 0x767   :  { %13205 = vmatpush1.bf16.msra.mxu0 %v19220_v13  ;;  %v13312_v13 = vld [vmem:[%s25292_s5 + $0x70] sm:$0xff] }
 0x768   :  { %13246 = vmatpush1.bf16.msra.mxu1 %v19223_v7  ;;  %16385 = vmatprep.subr.bf16.mxu0 %v16384_v34  ;;  %v13313_v7 = vld [vmem:[%s25292_s5 + $0x78] sm:$0xff]  ;;  %v13346_v34 = vld [vmem:[%s25292_s5 + $0x180] sm:$0xff] }
 0x769   :  { %v16414_v30 = vpack.c.bf16 %v13313_v7, %v13312_v13  ;;  %v16416_v17 = vpack.c.bf16 %v13347_v18, %v13346_v34  ;;  %v13361_v13 = vld [vmem:[%s25292_s5 + $0x1f8] sm:$0xff]  ;;  %v16442_v7 = vpack.c.bf16 %v13343_v56, %v13342_v22  ;;  %v13344_v18 = vld [vmem:[%s25292_s5 + $0x170] sm:$0xff] }
 0x76a   :  { %13207 = vmatmul.mubr.bf16.vlgmr.msra.gmra.mrb[76].mxu0 %v24852_v47  ;;  %v13321_v47 = vld [vmem:[%s25292_s5 + $0xb8] sm:$0xff] }
 0x76b   :  { %13248 = vmatmul.mubr.bf16.vlgmr.msra.gmra.mrb[76].mxu1 %v24859_v36  ;;  %16387 = vmatpush3.bf16.msra.mxu0 %v16386_v39  ;;  %v16394_v36 = vpack.c.bf16 %v13303_v26, %v13302_v4  ;;  %v16396_v37 = vpack.c.bf16 %v13321_v47, %v13320_v27  ;;  %v13331_v39 = vld [vmem:[%s25292_s5 + $0x108] sm:$0xff]  ;;  %v13334_v47 = vld [vmem:[%s25292_s5 + $0x120] sm:$0xff] }
 0x76c   :  { %16389 = vmatprep.subr.bf16.mxu0 %v16388_v21  ;;  %v13348_v21 = vld [vmem:[%s25292_s5 + $0x190] sm:$0xff]  ;;  %v16418_v24 = vpack.c.bf16 %v13331_v39, %v13330_v6  ;;  %16417 = vmatprep.subr.bf16.mxu1 %v16416_v17  ;;  %v13351_v4 = vld [vmem:[%s25292_s5 + $0x1a8] sm:$0xff]  ;;  %v13345_v6 = vld [vmem:[%s25292_s5 + $0x178] sm:$0xff] }
 0x76d   :  { %v16420_v2 = vpack.c.bf16 %v13349_v1, %v13348_v21  ;;  %v13260_v17 = vld [vmem:[%s25291_s4] sm:$0xf] }
 0x76e   :  { %16419 = vmatpush3.bf16.msra.mxu1 %v16418_v24 }
 0x76f   :  { %16391 = vmatpush3.bf16.msra.mxu0 %v16390_v58  ;;  %v13333_v58 = vld [vmem:[%s25292_s5 + $0x118] sm:$0xff]  ;;  %16421 = vmatprep.subr.bf16.mxu1 %v16420_v2  ;;  %v13265_v2 = vrot.slane %v13260_v17, %v634_v50 }
 0x770   :  { %16393 = vmatprep.subr.bf16.mxu0 %v16392_v59  ;;  %v13350_v59 = vld [vmem:[%s25292_s5 + $0x1a0] sm:$0xff]  ;;  %v16422_v26 = vpack.c.bf16 %v13333_v58, %v13332_v45 }
 0x771   :  { %v16424_v27 = vpack.c.bf16 %v13351_v4, %v13350_v59  ;;  %v13269_v4 = vrot.slane %v13260_v17, %v638_v52 }
 0x772   :  { %16423 = vmatpush3.bf16.msra.mxu1 %v16422_v26 }
 0x773   :  { %16395 = vmatpush3.bf16.msra.mxu0 %v16394_v36  ;;  %v13335_v36 = vld [vmem:[%s25292_s5 + $0x128] sm:$0xff]  ;;  %16425 = vmatprep.subr.bf16.mxu1 %v16424_v27 }
 0x774   :  { %16397 = vmatprep.subr.bf16.mxu0 %v16396_v37  ;;  %v13352_v37 = vld [vmem:[%s25292_s5 + $0x1b0] sm:$0xff]  ;;  %v16426_v33 = vpack.c.bf16 %v13335_v36, %v13334_v47 }
 0x775   :  { %v16428_v61 = vpack.c.bf16 %v13353_v46, %v13352_v37 }
 0x776   :  { %16427 = vmatpush3.bf16.msra.mxu1 %v16426_v33 }
 0x777   :  { %16399 = vmatpush3.bf16.msra.mxu0 %v16398_v8  ;;  %v13337_v8 = vld [vmem:[%s25292_s5 + $0x138] sm:$0xff]  ;;  %16429 = vmatprep.subr.bf16.mxu1 %v16428_v61 }
 0x778   :  { %16401 = vmatprep.subr.bf16.mxu0 %v16400_v55  ;;  %v13354_v55 = vld [vmem:[%s25292_s5 + $0x1c0] sm:$0xff]  ;;  %v16430_v40 = vpack.c.bf16 %v13337_v8, %v13336_v25 }
 0x77a   :  { %16431 = vmatpush3.bf16.msra.mxu1 %v16430_v40 }
 0x77b   :  { %16403 = vmatpush3.bf16.msra.mxu0 %v16402_v11  ;;  %v16432_v11 = vpack.c.bf16 %v13355_v14, %v13354_v55 }
 0x77c   :  { %16405 = vmatprep.subr.bf16.mxu0 %v16404_v42 }
 0x77d   :  { %v12181_v63 = vpop.f32.mrb[64].mxu0  ;;  %16433 = vmatprep.subr.bf16.mxu1 %v16432_v11 }
 0x77e   :  { %v12222_v38 = vpop.f32.mrb[64].mxu1  ;;  %v12183_v62 = vpop.f32.mrb[65].mxu0 }
 0x77f   :  { %v12223_v44 = vadd.f32 %v12222_v38, %v12181_v63  ;;  %v12224_v31 = vpop.f32.mrb[65].mxu1  ;;  %v12185_v41 = vpop.f32.mrb[66].mxu0  ;;  %v13338_v63 = vld [vmem:[%s25292_s5 + $0x140] sm:$0xff]  ;;  %v13339_v38 = vld [vmem:[%s25292_s5 + $0x148] sm:$0xff] }
 0x780   :  { %v12225_v60 = vadd.f32 %v12224_v31, %v12183_v62  ;;  %v12226_v3 = vpop.f32.mrb[66].mxu1  ;;  %v12186_v23 = vpop.f32.mrb[67].mxu0  ;;  %v16434_v62 = vpack.c.bf16 %v13339_v38, %v13338_v63  ;;  %v13277_v38 = vrot.slane %v13260_v17, %v646_v53 }
 0x781   :  { %v25114_v49 = vadd.f32 %v12223_v44, %v24731_v43  ;;  %v12227_v29 = vpop.f32.mrb[67].mxu1  ;;  %v13309_v43 = vld [vmem:[%s25292_s5 + $0x58] sm:$0xff] }
 0x782   :  { %v25117_v54 = vadd.f32 %v12225_v60, %v24737_v32  ;;  %v13326_v32 = vld [vmem:[%s25292_s5 + $0xe0] sm:$0xff]  ;;  %v16406_v12 = vpack.c.bf16 %v13309_v43, %v13308_v9  ;;  %16435 = vmatpush3.bf16.msra.mxu1 %v16434_v62 }
 0x783   :  { %v16408_v16 = vpack.c.bf16 %v13327_v15, %v13326_v32  ;;  %v13356_v32 = vld [vmem:[%s25292_s5 + $0x1d0] sm:$0xff] }
 0x784   :  { %16407 = vmatpush3.bf16.msra.mxu0 %v16406_v12  ;;  %v13357_v12 = vld [vmem:[%s25292_s5 + $0x1d8] sm:$0xff] }
 0x785   :  { %16409 = vmatprep.subr.bf16.mxu0 %v16408_v16  ;;  %v16436_v15 = vpack.c.bf16 %v13357_v12, %v13356_v32  ;;  %v13359_v16 = vld [vmem:[%s25292_s5 + $0x1e8] sm:$0xff] }
 0x787   :  { %16437 = vmatprep.subr.bf16.mxu1 %v16436_v15 }
 0x788   :  { %16411 = vmatpush3.bf16.msra.mxu0 %v16410_v57 }
 0x789   :  { %16413 = vmatprep.subr.bf16.mxu0 %v16412_v19  ;;  %v13360_v19 = vld [vmem:[%s25292_s5 + $0x1f0] sm:$0xff] }
 0x78a   :  { %v16444_v34 = vpack.c.bf16 %v13361_v13, %v13360_v19 }
 0x78c   :  { %16415 = vmatpush3.bf16.msra.mxu0 %v16414_v30  ;;  %v16446_v30 = vpack.c.bf16 %v13345_v6, %v13344_v18 }
 0x7bd   :  { %v12263_v44 = vpop.f32.mrb[68].mxu0 }
 0x7be   :  { %v12304_v31 = vpop.f32.mrb[68].mxu1  ;;  %v12265_v41 = vpop.f32.mrb[69].mxu0 }
 0x7bf   :  { %v12305_v60 = vadd.f32 %v12304_v31, %v12263_v44  ;;  %v12306_v3 = vpop.f32.mrb[69].mxu1  ;;  %v12267_v23 = vpop.f32.mrb[70].mxu0 }
 0x7c0   :  { %v12307_v29 = vadd.f32 %v12306_v3, %v12265_v41  ;;  %v12308_v5 = vpop.f32.mrb[70].mxu1  ;;  %v12268_v10 = vpop.f32.mrb[71].mxu0 }
 0x7c1   :  { %v25216_v42 = vadd.f32 %v12305_v60, %v24941_v35  ;;  %v12309_v9 = vpop.f32.mrb[71].mxu1  ;;  %v13341_v35 = vld [vmem:[%s25292_s5 + $0x158] sm:$0xff] }
 0x7c2   :  { %v25219_v43 = vadd.f32 %v12307_v29, %v24947_v20  ;;  %v13358_v20 = vld [vmem:[%s25292_s5 + $0x1e0] sm:$0xff]  ;;  %v16438_v0 = vpack.c.bf16 %v13341_v35, %v13340_v28 }
 0x7c3   :  { %v16440_v57 = vpack.c.bf16 %v13359_v16, %v13358_v20 }
 0x7c4   :  { %16439 = vmatpush3.bf16.msra.mxu1 %v16438_v0 }
 0x7c5   :  { %16441 = vmatprep.subr.bf16.mxu1 %v16440_v57 }
 0x7c8   :  { %16443 = vmatpush3.bf16.msra.mxu1 %v16442_v7 }
 0x7c9   :  { %16445 = vmatprep.subr.bf16.mxu1 %v16444_v34 }
 0x7cc   :  { %16447 = vmatpush3.bf16.msra.mxu1 %v16446_v30 }
 0x7fd   :  { %v13126_v39 = vpop.f32.mrb[72].mxu0 }
 0x7fe   :  { %v13167_v21 = vpop.f32.mrb[72].mxu1  ;;  %v13128_v1 = vpop.f32.mrb[73].mxu0 }
 0x7ff   :  { %v13168_v24 = vadd.f32 %v13167_v21, %v13126_v39  ;;  %v13169_v45 = vpop.f32.mrb[73].mxu1  ;;  %v13130_v58 = vpop.f32.mrb[74].mxu0 }
 0x800   :  { %v13170_v59 = vadd.f32 %v13169_v45, %v13128_v1  ;;  %v13171_v26 = vpop.f32.mrb[74].mxu1  ;;  %v13131_v27 = vpop.f32.mrb[75].mxu0 }
 0x801   :  { %v13256_v47 = vadd.f32 %v13168_v24, %v25114_v49  ;;  %v13172_v36 = vpop.f32.mrb[75].mxu1  ;;  %v13273_v49 = vrot.slane %v13260_v17, %v642_v51 }
 0x802   :  { %v13257_v37 = vadd.f32 %v13170_v59, %v25117_v54 }
 0x803   :  { %v13282_v46 = vadd.f32 %v13265_v2, %v13256_v47 }
 0x804   :  { %v13283_v33 = vadd.f32 %v13269_v4, %v13257_v37 }
 0x805   :  { %v13290_v61 = vmul.f32 0.2, %v13282_v46  ;;  %vm13286_vm14 = vcmp.ge.f32.partialorder %v13282_v46, 0.0 }
 0x806   :  { %vm13287_vm13 = vcmp.ge.f32.partialorder %v13283_v33, 0.0  ;;  %v13291_v25 = vmul.f32 0.2, %v13283_v33 }
 0x807   :  { %v13294_v8 = vsel %vm13286_vm14, %v13282_v46, %v13290_v61 }
 0x808   :  { %v13295_v50 = vsel %vm13287_vm13, %v13283_v33, %v13291_v25 }
 0x809   :  { %13433 = vmatprep.mubr.f32.mxu0 %v13295_v50 }
 0x80a   :  { %13434 = vmatmul.mubr.f32.vlgmr.msra.gmra.mrb[80].mxu0 %v13294_v8 }
 0x83d   :  { %v13208_v55 = vpop.f32.mrb[76].mxu0 }
 0x83e   :  { %v13249_v14 = vpop.f32.mrb[76].mxu1  ;;  %v13210_v52 = vpop.f32.mrb[77].mxu0 }
 0x83f   :  { %v13250_v40 = vadd.f32 %v13249_v14, %v13208_v55  ;;  %v13251_v11 = vpop.f32.mrb[77].mxu1  ;;  %v13212_v63 = vpop.f32.mrb[78].mxu0 }
 0x840   :  { %v13252_v54 = vadd.f32 %v13251_v11, %v13210_v52  ;;  %v13253_v62 = vpop.f32.mrb[78].mxu1  ;;  %v13213_v44 = vpop.f32.mrb[79].mxu0 }
 0x841   :  { %v13258_v31 = vadd.f32 %v13250_v40, %v25216_v42  ;;  %v13254_v41 = vpop.f32.mrb[79].mxu1  ;;  %v16313_v42 = vld [vmem:[%s25293_s6] ss:$0 sm:$0xff] }
 0x842   :  { %v13259_v60 = vadd.f32 %v13252_v54, %v25219_v43 }
 0x843   :  { %v13284_v3 = vadd.f32 %v13273_v49, %v13258_v31 }
 0x844   :  { %v13285_v23 = vadd.f32 %v13277_v38, %v13259_v60 }
 0x845   :  { %v13292_v29 = vmul.f32 0.2, %v13284_v3  ;;  %vm13288_vm0 = vcmp.ge.f32.partialorder %v13284_v3, 0.0 }
 0x846   :  { %vm13289_vm15 = vcmp.ge.f32.partialorder %v13285_v23, 0.0  ;;  %v13293_v5 = vmul.f32 0.2, %v13285_v23 }
 0x847   :  { %v13296_v10 = vsel %vm13288_vm0, %v13284_v3, %v13292_v29 }
 0x848   :  { %v13297_v51 = vsel %vm13289_vm15, %v13285_v23, %v13293_v5 }
 0x849   :  { %13503 = vmatprep.mubr.f32.mxu1 %v13297_v51 }
 0x84a   :  { %13504 = vmatmul.mubr.f32.vlgmr.msra.gmra.mrb[80].mxu1 %v13296_v10 }
 0x8dd   :  { %v16346_v9 = vpop.f32.mrb[80].mxu0 }
 0x8de   :  { %v16347_v48 = vpop.f32.mrb[81].mxu0 }
 0x8df   :  { %v16348_v53 = vadd.f32 %v16347_v48, %v16346_v9 }
 0x8e1   :  { %v13436_v43 = vadd.f32 %v16348_v53, %v16313_v42 }
 0x91d   :  { %v16381_v32 = vpop.f32.mrb[80].mxu1 }
 0x91e   :  { %v16382_v12 = vpop.f32.mrb[81].mxu1 }
 0x91f   :  { %v16383_v15 = vadd.f32 %v16382_v12, %v16381_v32 }
 0x921   :  { %v13506_v28 = vadd.f32 %v16383_v15, %v13436_v43 }
 0x923   :  { %13510 = vst.msk [vmem:[#allocation2] sm:$0x3] %vm13509_vm1, %v13506_v28 }
 0x924   :  { %19237 = shalt.err (!%p19234_p4)
}
 0x925   :  { %s19238_s6 = scalar_lea.hbm %s25294_s7, 32 }
 0x926   :  { %p19239_p5 = scmp.ne.s32.totalorder %s25294_s7, %s19238_s6  ;;  %p19242_p6 = scmp.lt.u32.totalorder %s19238_s6, %s25294_s7 }
 0x928   :  { %p19244_p7 = pnand %p19242_p6, %p19239_p5 }
 0x92a   :  { %19247 = shalt.err (!%p19244_p7)
}
 0x92b   :  { %13520 = dma.vmem_to_hbm [thread:$0]  %s13518_s27, 32, %s25294_s7, [#allocation3]  }
 0x92c   :  { %19248 = dma.done.wait [#allocation3], 32  }
 0x92d   :  { %19249 = vsyncadd [#allocation3], 4294967264 }
 0x92e   :  { %13524 = vsyncpa [#allocation3], 1 }

</bundles_post_ra>
